<compile_context>
chip_gen: v7x
topology: tpu7x:2x2x1
jax: 0.10.0
libtpu: 0.0.40
codegen_flags: <defaults>
</compile_context>

<pallas_src>
import functools

import jax
import jax.numpy as jnp
from jax.experimental import pallas as pl
from jax.experimental.pallas import tpu as pltpu

LANE = 128
VMEM_LIMIT = 32 * 1024 * 1024          # safe scoped-VMEM budget on v5e/v6e/v7x


def _round_up(x, m):
    return (x + m - 1) // m * m


def _pick_tile_k(kpad, max_tile=1536):
    """Largest multiple of 128 that divides kpad and is <= max_tile."""
    best, t = 128, 128
    while t <= min(kpad, max_tile):
        if kpad % t == 0:
            best = t
        t += 128
    return best


# ----------------------------------------------------------------------------
# Kernel 1: gridded matmul + bias (+prefix ReLU)  — im2col convs / generic GEMM
# ----------------------------------------------------------------------------
def _matmul_bias_act_kernel(relu_cols, x_ref, w_ref, b_ref, o_ref, acc_ref):
    """out = act(sum_k x_tile @ w_tile + b); grid = (M tiles, K tiles).

    relu_cols: None -> no ReLU; >= N -> full ReLU; else ReLU on columns < relu_cols.
    """
    k = pl.program_id(1)

    @pl.when(k == 0)
    def _():
        acc_ref[...] = jnp.zeros_like(acc_ref)

    acc_ref[...] += jnp.dot(x_ref[...], w_ref[...],
                            preferred_element_type=jnp.float32)

    @pl.when(k == pl.num_programs(1) - 1)
    def _():
        acc = acc_ref[...] + b_ref[...]
        if relu_cols is not None:
            npad = acc.shape[-1]
            if relu_cols >= npad:
                acc = jnp.maximum(acc, 0.0)
            else:
                col = jax.lax.broadcasted_iota(jnp.int32, acc.shape, 1)
                acc = jnp.where(col < relu_cols, jnp.maximum(acc, 0.0), acc)
        o_ref[...] = acc.astype(o_ref.dtype)


def fused_matmul(x, w, b, *, relu_cols, out_dtype=jnp.bfloat16, tile_m=256):
    """(M, Kpad) bf16 @ (Kpad, Npad) bf16 + b, f32 accumulation, prefix ReLU."""
    m, kdim = x.shape
    kpad, npad = w.shape
    assert kdim == kpad
    tile_m = min(tile_m, _round_up(m, 8))
    m_pad = _round_up(m, tile_m)
    if m_pad != m:
        x = jnp.pad(x, ((0, m_pad - m), (0, 0)))
    tile_k = _pick_tile_k(kpad)
    grid = (m_pad // tile_m, kpad // tile_k)
    out = pl.pallas_call(
        functools.partial(_matmul_bias_act_kernel, relu_cols),
        out_shape=jax.ShapeDtypeStruct((m_pad, npad), out_dtype),
        grid_spec=pltpu.PrefetchScalarGridSpec(
            num_scalar_prefetch=0,
            grid=grid,
            in_specs=[
                pl.BlockSpec((tile_m, tile_k), lambda i, k: (i, k)),
                pl.BlockSpec((tile_k, npad), lambda i, k: (k, 0)),
                pl.BlockSpec((1, npad), lambda i, k: (0, 0)),
            ],
            out_specs=pl.BlockSpec((tile_m, npad), lambda i, k: (i, 0)),
            scratch_shapes=[pltpu.VMEM((tile_m, npad), jnp.float32)],
        ),
        compiler_params=pltpu.CompilerParams(
            dimension_semantics=("parallel", "arbitrary"),
            vmem_limit_bytes=VMEM_LIMIT),
    )(x, w, b)
    return out[:m] if m_pad != m else out


# ----------------------------------------------------------------------------
# Kernel 2: direct 3x3 stride-1 conv (no im2col) + bias (+residual) (+ReLU)
#
# The spatially padded activation is flattened to (N, rows, C) ("wide rows");
# tap (di, dj) of the 3x3 kernel is a contiguous row-slice at static offset
# di*(W+2)+dj.  We compute W+2 columns per output row (2 are over-compute
# garbage) and slice them off in the wrapper.  All 9 tap matmuls are unrolled
# in a single grid step per image; accumulation is f32 in-register.
# ----------------------------------------------------------------------------
def _conv3x3_s1_kernel(wp, rr, relu, has_res, *refs):
    if has_res:
        x_ref, w_ref, b_ref, r_ref, o_ref = refs
    else:
        x_ref, w_ref, b_ref, o_ref = refs
    cout = o_ref.shape[-1]
    acc = jnp.zeros((rr, cout), jnp.float32)
    for t in range(9):                      # static unroll over the 9 taps
        di, dj = divmod(t, 3)
        off = di * wp + dj                  # static row offset of this tap
        xs = x_ref[0, pl.ds(off, rr), :]    # (rr, Cin) bf16
        acc = acc + jnp.dot(xs, w_ref[t], preferred_element_type=jnp.float32)
    acc = acc + b_ref[...]
    if has_res:
        acc = acc + r_ref[0].astype(jnp.float32)   # residual already wide-layout
    if relu:
        acc = jnp.maximum(acc, 0.0)
    o_ref[0] = acc.astype(o_ref.dtype)


def _pad_wide(t):
    """Spatial pad (top 1, bottom 2, left 1, right 1) and flatten H,W -> rows."""
    n, h, w, c = t.shape
    return jnp.pad(t, ((0, 0), (1, 2), (1, 1), (0, 0))).reshape(
        n, (h + 3) * (w + 2), c)


def _pad_cols2(t):
    """Right-pad 2 columns and flatten H,W -> rows (matches wide output layout)."""
    n, h, w, c = t.shape
    return jnp.pad(t, ((0, 0), (0, 0), (0, 2), (0, 0))).reshape(n, h * (w + 2), c)


def conv3x3_s1(x, p, *, relu, residual=None):
    """3x3 / stride 1 / pad 1 conv + folded BN (+residual) (+ReLU), NHWC."""
    n, h, w, cin = x.shape
    cout = p["w"].shape[-1]
    wp = w + 2
    rr = h * wp                      # wide output rows (incl. 2 garbage cols/row)
    ff = (h + 3) * wp                # flattened padded input rows
    args = [_pad_wide(x), p["w"], p["b"]]
    in_specs = [
        pl.BlockSpec((1, ff, cin), lambda i: (i, 0, 0)),
        pl.BlockSpec((9, cin, cout), lambda i: (0, 0, 0)),
        pl.BlockSpec((1, cout), lambda i: (0, 0)),
    ]
    if residual is not None:
        args.append(_pad_cols2(residual))
        in_specs.append(pl.BlockSpec((1, rr, cout), lambda i: (i, 0, 0)))
    kernel = functools.partial(_conv3x3_s1_kernel, wp, rr, relu,
                               residual is not None)
    out_wide = pl.pallas_call(
        kernel,
        out_shape=jax.ShapeDtypeStruct((n, rr, cout), jnp.bfloat16),
        grid_spec=pltpu.PrefetchScalarGridSpec(
            num_scalar_prefetch=0,
            grid=(n,),
            in_specs=in_specs,
            out_specs=pl.BlockSpec((1, rr, cout), lambda i: (i, 0, 0)),
        ),
        compiler_params=pltpu.CompilerParams(
            dimension_semantics=("parallel",),
            vmem_limit_bytes=VMEM_LIMIT),
    )(*args)
    # drop the 2 over-computed columns per output row
    return out_wide.reshape(n, h, wp, cout)[:, :, :w, :]


# ----------------------------------------------------------------------------
# Kernel 3: fused global average pool + final Linear (classifier head)
# ----------------------------------------------------------------------------
def _avgpool_fc_kernel(x_ref, w_ref, b_ref, o_ref):
    feat = jnp.mean(x_ref[...].astype(jnp.float32), axis=1)          # (N, Cpad)
    logits = jnp.dot(feat.astype(jnp.bfloat16), w_ref[...],
                     preferred_element_type=jnp.float32)
    o_ref[...] = logits + b_ref[...]


def avgpool_fc(x, fc_w, fc_b):
    n, h, w, c = x.shape
    x2 = x.reshape(n, h * w, c)
    vmem = pl.BlockSpec(memory_space=pltpu.MemorySpace.VMEM)
    return pl.pallas_call(
        _avgpool_fc_kernel,
        out_shape=jax.ShapeDtypeStruct((n, fc_w.shape[1]), jnp.float32),
        in_specs=[vmem, vmem, vmem],
        out_specs=vmem,
        compiler_params=pltpu.CompilerParams(vmem_limit_bytes=VMEM_LIMIT),
    )(x2, fc_w, fc_b)


# ----------------------------------------------------------------------------
# JAX glue: im2col (strided / stem convs only), max-pool
# ----------------------------------------------------------------------------
def _im2col(x, k, stride, pad):
    """NHWC -> (N*Ho*Wo, k*k*C) patches, tap ordering (kh, kw, Cin)."""
    n, h, w, c = x.shape
    xp = jnp.pad(x, ((0, 0), (pad, pad), (pad, pad), (0, 0)))
    ho = (h + 2 * pad - k) // stride + 1
    wo = (w + 2 * pad - k) // stride + 1
    cols = []
    for di in range(k):
        for dj in range(k):
            cols.append(xp[:, di:di + stride * (ho - 1) + 1:stride,
                           dj:dj + stride * (wo - 1) + 1:stride, :])
    patches = jnp.concatenate(cols, axis=-1)
    return patches.reshape(n * ho * wo, k * k * c), (n, ho, wo)


def conv_matmul(x, p, *, relu_cols):
    """Strided conv (stem 7x7/s2, fused 3x3/s2 + 1x1/s2) via im2col + matmul."""
    patches, (n, ho, wo) = _im2col(x, p["k"], p["stride"], p["pad"])
    kpad = p["w"].shape[0]
    if patches.shape[1] != kpad:
        patches = jnp.pad(patches, ((0, 0), (0, kpad - patches.shape[1])))
    out = fused_matmul(patches, p["w"], p["b"], relu_cols=relu_cols)
    return out.reshape(n, ho, wo, -1)


def max_pool_3x3_s2p1(x):
    """MaxPool2d(3, stride=2, padding=1) as an XLA-fused maximum tree."""
    n, h, w, c = x.shape
    ho = (h + 2 - 3) // 2 + 1
    wo = (w + 2 - 3) // 2 + 1
    xp = jnp.pad(x, ((0, 0), (1, 1), (1, 1), (0, 0)),
                 constant_values=-jnp.inf)
    out = None
    for di in range(3):
        for dj in range(3):
            tap = xp[:, di:di + 2 * (ho - 1) + 1:2,
                     dj:dj + 2 * (wo - 1) + 1:2, :]
            out = tap if out is None else jnp.maximum(out, tap)
    return out


# ----------------------------------------------------------------------------
# Parameters (deterministic, ResNet-18 structure, scaled width, BN pre-folded)
# ----------------------------------------------------------------------------
def _conv_weight(key, cout, cin, k):
    fan_out = cout * k * k
    return ((2.0 / fan_out) ** 0.5) * jax.random.normal(
        key, (cout, cin, k, k), jnp.float32)


def _bn_fold(key, c, eps=1e-5):
    k1, k2, k3, k4 = jax.random.split(key, 4)
    gamma = 1.0 + 0.1 * jax.random.normal(k1, (c,), jnp.float32)
    beta = 0.1 * jax.random.normal(k2, (c,), jnp.float32)
    mean = 0.1 * jax.random.normal(k3, (c,), jnp.float32)
    var = 0.9 + 0.2 * jax.random.uniform(k4, (c,), jnp.float32)
    scale = gamma / jnp.sqrt(var + eps)
    bias = beta - mean * scale
    return scale, bias


def _pack_conv3x3(w, scale, bias, cin_pad, cout_pad):
    """Direct-conv path: weights (9, Cin_pad, Cout_pad) bf16, BN scale folded."""
    cout, cin, kh, kw = w.shape
    assert kh == 3 and kw == 3
    wf = w * scale[:, None, None, None]
    wt = jnp.transpose(wf, (2, 3, 1, 0)).reshape(9, cin, cout)
    wt = jnp.pad(wt, ((0, 0), (0, cin_pad - cin), (0, cout_pad - cout)))
    b = jnp.pad(bias, (0, cout_pad - cout)).reshape(1, cout_pad)
    return {"w": wt.astype(jnp.bfloat16), "b": b.astype(jnp.float32)}


def _pack_conv_mat(w, scale, bias, cin_act, cout_pad, stride, pad):
    """im2col path: weights (Kpad, Cout_pad) bf16, BN scale folded."""
    cout, cin, kh, kw = w.shape
    wf = w * scale[:, None, None, None]
    wt = jnp.transpose(wf, (2, 3, 1, 0))                    # (kh,kw,cin,cout)
    wt = jnp.pad(wt, ((0, 0), (0, 0), (0, cin_act - cin), (0, cout_pad - cout)))
    wt = wt.reshape(kh * kw * cin_act, cout_pad)
    kdim = kh * kw * cin_act
    kpad = _round_up(kdim, LANE)
    wt = jnp.pad(wt, ((0, kpad - kdim), (0, 0)))
    b = jnp.pad(bias, (0, cout_pad - cout)).reshape(1, cout_pad)
    return {"w": wt.astype(jnp.bfloat16), "b": b.astype(jnp.float32),
            "k": kh, "stride": stride, "pad": pad, "relu_cols": cout_pad}


def _pack_conv1_down_fused(w1, s1, b1, wd, sd, bd, cin_pad, cout_pad):
    """Fuse 3x3/s2 conv1 and 1x1/s2 downsample into one (9*Cin_pad, 2*Cout_pad)
    weight matrix.  The 1x1 weights sit at the center-tap rows (tap (1,1)),
    whose im2col patch column is exactly x[2i, 2j] — the downsample's input."""
    cout, cin, _, _ = w1.shape
    # conv1 (ReLU half)
    w1f = w1 * s1[:, None, None, None]
    wt = jnp.transpose(w1f, (2, 3, 1, 0))                   # (3,3,cin,cout)
    wt = jnp.pad(wt, ((0, 0), (0, 0), (0, cin_pad - cin), (0, cout_pad - cout)))
    wt = wt.reshape(9 * cin_pad, cout_pad)
    # downsample (no-ReLU half), center tap only
    wdf = jnp.transpose(wd[:, :, 0, 0] * sd[:, None])        # (cin, cout)
    wdf = jnp.pad(wdf, ((0, cin_pad - cin), (0, cout_pad - cout)))
    wdn = jnp.zeros((9 * cin_pad, cout_pad), jnp.float32)
    wdn = wdn.at[4 * cin_pad:5 * cin_pad].set(wdf)
    wcomb = jnp.concatenate([wt, wdn], axis=1)               # (9*cinp, 2*coutp)
    b1p = jnp.pad(b1, (0, cout_pad - cout))
    bdp = jnp.pad(bd, (0, cout_pad - cout))
    b = jnp.concatenate([b1p, bdp]).reshape(1, 2 * cout_pad)
    return {"w": wcomb.astype(jnp.bfloat16), "b": b.astype(jnp.float32),
            "k": 3, "stride": 2, "pad": 1,
            "relu_cols": cout_pad, "cout_pad": cout_pad}


def _block_params(key, cin, cout, stride):
    keys = jax.random.split(key, 6)
    cinp = _round_up(cin, LANE)
    coutp = _round_up(cout, LANE)
    w1 = _conv_weight(keys[0], cout, cin, 3)
    s1, b1 = _bn_fold(keys[1], cout)
    w2 = _conv_weight(keys[2], cout, cout, 3)
    s2, b2 = _bn_fold(keys[3], cout)
    p = {"stride": stride}
    if stride == 1:
        p["conv1"] = _pack_conv3x3(w1, s1, b1, cinp, coutp)
    else:
        wd = _conv_weight(keys[4], cout, cin, 1)
        sd, bd = _bn_fold(keys[5], cout)
        p["conv1down"] = _pack_conv1_down_fused(w1, s1, b1, wd, sd, bd,
                                                cinp, coutp)
    p["conv2"] = _pack_conv3x3(w2, s2, b2, coutp, coutp)
    return p


def build_params(key, base_width=8, num_class=10):
    keys = jax.random.split(key, 12)
    c = base_width
    feadim = 8 * c
    cpad = _round_up(feadim, LANE)
    ncpad = _round_up(num_class, LANE)
    w0 = _conv_weight(keys[0], c, 3, 7)
    s0, b0 = _bn_fold(keys[1], c)
    fc_w = 0.05 * jax.random.normal(keys[10], (num_class, feadim), jnp.float32)
    fc_b = 0.05 * jax.random.normal(keys[11], (num_class,), jnp.float32)
    return {
        "stem": _pack_conv_mat(w0, s0, b0, cin_act=3,
                               cout_pad=_round_up(c, LANE), stride=2, pad=3),
        "layer1": [_block_params(keys[2], c, c, 1),
                   _block_params(keys[3], c, c, 1)],
        "layer2": [_block_params(keys[4], c, 2 * c, 2),
                   _block_params(keys[5], 2 * c, 2 * c, 1)],
        "layer3": [_block_params(keys[6], 2 * c, 4 * c, 2),
                   _block_params(keys[7], 4 * c, 4 * c, 1)],
        "layer4": [_block_params(keys[8], 4 * c, 8 * c, 2),
                   _block_params(keys[9], 8 * c, 8 * c, 1)],
        "fc_w": jnp.pad(fc_w.T, ((0, cpad - feadim),
                                 (0, ncpad - num_class))).astype(jnp.bfloat16),
        "fc_b": jnp.pad(fc_b, (0, ncpad - num_class)).reshape(1, ncpad),
        "num_class": num_class,
        "feadim": feadim,
    }


# ----------------------------------------------------------------------------
# Forward pass (mirrors ResNet.forward; midlevel=False, isdetach=True)
# ----------------------------------------------------------------------------
def _basic_block(x, p):
    if p["stride"] == 1:
        out = conv3x3_s1(x, p["conv1"], relu=True)
        identity = x
    else:
        # conv1 (3x3/s2, ReLU) and 1x1/s2 downsample fused into one matmul
        comb = conv_matmul(x, p["conv1down"],
                           relu_cols=p["conv1down"]["relu_cols"])
        coutp = p["conv1down"]["cout_pad"]
        out = comb[..., :coutp]
        identity = comb[..., coutp:]
    # conv2 + BN + residual add + ReLU, fused in the direct-conv kernel
    return conv3x3_s1(out, p["conv2"], relu=True, residual=identity)


def resnet_forward(x_nchw, params):
    # NCHW (PyTorch) -> NHWC bf16 (channels on the 128-lane axis)
    x = jnp.transpose(x_nchw, (0, 2, 3, 1)).astype(jnp.bfloat16)

    # self.conv3 : stem + maxpool + layer1 + layer2
    x = conv_matmul(x, params["stem"], relu_cols=params["stem"]["relu_cols"])
    x = max_pool_3x3_s2p1(x)
    for blk in params["layer1"]:
        x = _basic_block(x, blk)
    for blk in params["layer2"]:
        x = _basic_block(x, blk)

    # self.conv4 : layer3
    for blk in params["layer3"]:
        x = _basic_block(x, blk)
    # TODO(synk): midlevel head (conv4_1 + AdaptiveMaxPool + mcls) omitted —
    # conf.midlevel defaults to False, so mlogits is None.

    # self.conv5 : layer4
    for blk in params["layer4"]:
        x = _basic_block(x, blk)

    # avg_pool(x).view(N, -1) + classifier, fused in one kernel
    logits_pad = avgpool_fc(x, params["fc_w"], params["fc_b"])
    logits = logits_pad[:, :params["num_class"]]

    # x.detach() returned in PyTorch NCHW layout (real channels only)
    x_det = jax.lax.stop_gradient(
        jnp.transpose(x[..., :params["feadim"]].astype(jnp.float32),
                      (0, 3, 1, 2)))
    return logits, x_det, None


# ----------------------------------------------------------------------------
if __name__ == "__main__":
    key = jax.random.PRNGKey(0)
    pkey, xkey = jax.random.split(key)

    num_class = 10
    base_width = 8                      # scaled-down ResNet-18 (feadim = 64)
    params = build_params(pkey, base_width=base_width, num_class=num_class)

    x = jax.random.normal(xkey, (2, 3, 32, 32), jnp.float32)   # NCHW, RGB

    fwd = jax.jit(lambda inp: resnet_forward(inp, params))
    logits, feat, mlogits = fwd(x)
    jax.block_until_ready(logits)
    jax.block_until_ready(feat)

    assert logits.shape == (2, num_class)
    assert feat.shape == (2, 8 * base_width, 1, 1)
    assert mlogits is None
    assert bool(jnp.all(jnp.isfinite(logits)))

    print("KERNEL_OK")
</pallas_src>

<mosaic_0001>
module attributes {stable_mosaic.version = 11 : i64} {
  func.func @_matmul_bias_act_kernel(%arg0: i32, %arg1: i32, %arg2: memref<256x256xbf16, #tpu.memory_space<vmem>>, %arg3: memref<256x128xbf16, #tpu.memory_space<vmem>>, %arg4: memref<1x128xf32, #tpu.memory_space<vmem>>, %arg5: memref<256x128xbf16, #tpu.memory_space<vmem>>, %arg6: memref<256x128xf32, #tpu.memory_space<vmem>>) attributes {dimension_semantics = [#tpu.dimension_semantics<parallel>, #tpu.dimension_semantics<arbitrary>], iteration_bounds = array<i64: 2, 1>, scalar_prefetch = 0 : i64, scratch_operands = 1 : i64, tpu.core_type = #tpu.core_type<tc>, window_params = [{transform_indices = @transform_0, window_bounds = array<i64: 256, 256>}, {transform_indices = @transform_1, window_bounds = array<i64: 256, 128>}, {pipeline_mode = #tpu.pipeline_mode<synchronous>, transform_indices = @transform_2, window_bounds = array<i64: 1, 128>}, {transform_indices = @transform_3, window_bounds = array<i64: 256, 128>}]} {
    %c0_i32 = arith.constant 0 : i32
    %0 = arith.cmpi eq, %arg1, %c0_i32 : i32
    %1 = arith.extui %0 : i1 to i32
    %c0_i32_0 = arith.constant 0 : i32
    %2 = arith.cmpi ne, %1, %c0_i32_0 : i32
    scf.if %2 {
      %cst_10 = arith.constant 0.000000e+00 : f32
      %12 = vector.broadcast %cst_10 : f32 to vector<256x128xf32>
      %c0_11 = arith.constant 0 : index
      %c0_12 = arith.constant 0 : index
      %13 = vector.load %arg6[%c0_11, %c0_12] : memref<256x128xf32, #tpu.memory_space<vmem>>, vector<256x128xf32>
      tpu.vector_store %arg6[%c0_11, %c0_12], %12 {strides = array<i32>} : memref<256x128xf32, #tpu.memory_space<vmem>>, vector<256x128xf32>,
    } else {
    }
    %c0 = arith.constant 0 : index
    %c0_1 = arith.constant 0 : index
    %3 = vector.load %arg6[%c0, %c0_1] : memref<256x128xf32, #tpu.memory_space<vmem>>, vector<256x128xf32>
    %c0_2 = arith.constant 0 : index
    %c0_3 = arith.constant 0 : index
    %4 = vector.load %arg2[%c0_2, %c0_3] : memref<256x256xbf16, #tpu.memory_space<vmem>>, vector<256x256xbf16>
    %c0_4 = arith.constant 0 : index
    %c0_5 = arith.constant 0 : index
    %5 = vector.load %arg3[%c0_4, %c0_5] : memref<256x128xbf16, #tpu.memory_space<vmem>>, vector<256x128xbf16>
    %cst = arith.constant dense<0.000000e+00> : vector<256x128xf32>
    %6 = tpu.matmul %4, %5, %cst {dimension_numbers = #tpu.dot_dimension_numbers<[1], [0], [0], [1], [0, 0, 1, 1], [], []>} : vector<256x256xbf16>, vector<256x128xbf16>, vector<256x128xf32> -> vector<256x128xf32>
    %7 = arith.addf %3, %6 : vector<256x128xf32>
    %c0_6 = arith.constant 0 : index
    %c0_7 = arith.constant 0 : index
    %8 = vector.load %arg6[%c0_6, %c0_7] : memref<256x128xf32, #tpu.memory_space<vmem>>, vector<256x128xf32>
    tpu.vector_store %arg6[%c0_6, %c0_7], %7 {strides = array<i32>} : memref<256x128xf32, #tpu.memory_space<vmem>>, vector<256x128xf32>,
    %c0_i32_8 = arith.constant 0 : i32
    %9 = arith.cmpi eq, %arg1, %c0_i32_8 : i32
    %10 = arith.extui %9 : i1 to i32
    %c0_i32_9 = arith.constant 0 : i32
    %11 = arith.cmpi ne, %10, %c0_i32_9 : i32
    scf.if %11 {
      %c0_10 = arith.constant 0 : index
      %c0_11 = arith.constant 0 : index
      %12 = vector.load %arg6[%c0_10, %c0_11] : memref<256x128xf32, #tpu.memory_space<vmem>>, vector<256x128xf32>
      %c0_12 = arith.constant 0 : index
      %c0_13 = arith.constant 0 : index
      %13 = vector.load %arg4[%c0_12, %c0_13] : memref<1x128xf32, #tpu.memory_space<vmem>>, vector<1x128xf32>
      %14 = vector.broadcast %13 : vector<1x128xf32> to vector<256x128xf32>
      %15 = arith.addf %12, %14 : vector<256x128xf32>
      %cst_14 = arith.constant 0.000000e+00 : f32
      %16 = vector.broadcast %cst_14 : f32 to vector<256x128xf32>
      %17 = arith.maximumf %15, %16 : vector<256x128xf32>
      %18 = arith.truncf %17 : vector<256x128xf32> to vector<256x128xbf16>
      %c0_15 = arith.constant 0 : index
      %c0_16 = arith.constant 0 : index
      %19 = vector.load %arg5[%c0_15, %c0_16] : memref<256x128xbf16, #tpu.memory_space<vmem>>, vector<256x128xbf16>
      tpu.vector_store %arg5[%c0_15, %c0_16], %18 {strides = array<i32>} : memref<256x128xbf16, #tpu.memory_space<vmem>>, vector<256x128xbf16>,
    } else {
    }
    return
  }
  func.func @transform_0(%arg0: i32, %arg1: i32) -> (i32, i32) {
    %c0_i32 = arith.constant 0 : i32
    return %arg0, %arg1 : i32, i32
  }
  func.func @transform_1(%arg0: i32, %arg1: i32) -> (i32, i32) {
    %c0_i32 = arith.constant 0 : i32
    %c0_i32_0 = arith.constant 0 : i32
    return %arg1, %c0_i32 : i32, i32
  }
  func.func @transform_2(%arg0: i32, %arg1: i32) -> (i32, i32) {
    %c0_i32 = arith.constant 0 : i32
    %c0_i32_0 = arith.constant 0 : i32
    %c0_i32_1 = arith.constant 0 : i32
    return %c0_i32, %c0_i32_0 : i32, i32
  }
  func.func @transform_3(%arg0: i32, %arg1: i32) -> (i32, i32) {
    %c0_i32 = arith.constant 0 : i32
    %c0_i32_0 = arith.constant 0 : i32
    return %arg0, %c0_i32 : i32, i32
  }
}

module attributes {stable_mosaic.version = 11 : i64} {
  func.func @_conv3x3_s1_kernel(%arg0: i32, %arg1: memref<1x110x128xbf16, #tpu.memory_space<vmem>>, %arg2: memref<9x128x128xbf16, #tpu.memory_space<vmem>>, %arg3: memref<1x128xf32, #tpu.memory_space<vmem>>, %arg4: memref<1x80x128xbf16, #tpu.memory_space<vmem>>) attributes {dimension_semantics = [#tpu.dimension_semantics<parallel>], iteration_bounds = array<i64: 2>, scalar_prefetch = 0 : i64, scratch_operands = 0 : i64, tpu.core_type = #tpu.core_type<tc>, window_params = [{transform_indices = @transform_0, window_bounds = array<i64: 1, 110, 128>}, {pipeline_mode = #tpu.pipeline_mode<synchronous>, transform_indices = @transform_1, window_bounds = array<i64: 9, 128, 128>}, {pipeline_mode = #tpu.pipeline_mode<synchronous>, transform_indices = @transform_2, window_bounds = array<i64: 1, 128>}, {transform_indices = @transform_3, window_bounds = array<i64: 1, 80, 128>}]} {
    %cst = arith.constant 0.000000e+00 : f32
    %0 = vector.broadcast %cst : f32 to vector<80x128xf32>
    %c0 = arith.constant 0 : index
    %c0_0 = arith.constant 0 : index
    %c0_1 = arith.constant 0 : index
    %1 = vector.load %arg1[%c0, %c0_0, %c0_1] : memref<1x110x128xbf16, #tpu.memory_space<vmem>>, vector<1x80x128xbf16>
    %2 = vector.shape_cast %1 : vector<1x80x128xbf16> to vector<80x128xbf16>
    %c0_2 = arith.constant 0 : index
    %c0_3 = arith.constant 0 : index
    %c0_4 = arith.constant 0 : index
    %3 = vector.load %arg2[%c0_2, %c0_3, %c0_4] : memref<9x128x128xbf16, #tpu.memory_space<vmem>>, vector<1x128x128xbf16>
    %4 = vector.shape_cast %3 : vector<1x128x128xbf16> to vector<128x128xbf16>
    %cst_5 = arith.constant dense<0.000000e+00> : vector<80x128xf32>
    %5 = tpu.matmul %2, %4, %cst_5 {dimension_numbers = #tpu.dot_dimension_numbers<[1], [0], [0], [1], [0, 0, 1, 1], [], []>} : vector<80x128xbf16>, vector<128x128xbf16>, vector<80x128xf32> -> vector<80x128xf32>
    %6 = arith.addf %0, %5 : vector<80x128xf32>
    %c0_6 = arith.constant 0 : index
    %c1 = arith.constant 1 : index
    %c0_7 = arith.constant 0 : index
    %7 = vector.load %arg1[%c0_6, %c1, %c0_7] : memref<1x110x128xbf16, #tpu.memory_space<vmem>>, vector<1x80x128xbf16>
    %8 = vector.shape_cast %7 : vector<1x80x128xbf16> to vector<80x128xbf16>
    %c1_8 = arith.constant 1 : index
    %c0_9 = arith.constant 0 : index
    %c0_10 = arith.constant 0 : index
    %9 = vector.load %arg2[%c1_8, %c0_9, %c0_10] : memref<9x128x128xbf16, #tpu.memory_space<vmem>>, vector<1x128x128xbf16>
    %10 = vector.shape_cast %9 : vector<1x128x128xbf16> to vector<128x128xbf16>
    %cst_11 = arith.constant dense<0.000000e+00> : vector<80x128xf32>
    %11 = tpu.matmul %8, %10, %cst_11 {dimension_numbers = #tpu.dot_dimension_numbers<[1], [0], [0], [1], [0, 0, 1, 1], [], []>} : vector<80x128xbf16>, vector<128x128xbf16>, vector<80x128xf32> -> vector<80x128xf32>
    %12 = arith.addf %6, %11 : vector<80x128xf32>
    %c0_12 = arith.constant 0 : index
    %c2 = arith.constant 2 : index
    %c0_13 = arith.constant 0 : index
    %13 = vector.load %arg1[%c0_12, %c2, %c0_13] : memref<1x110x128xbf16, #tpu.memory_space<vmem>>, vector<1x80x128xbf16>
    %14 = vector.shape_cast %13 : vector<1x80x128xbf16> to vector<80x128xbf16>
    %c2_14 = arith.constant 2 : index
    %c0_15 = arith.constant 0 : index
    %c0_16 = arith.constant 0 : index
    %15 = vector.load %arg2[%c2_14, %c0_15, %c0_16] : memref<9x128x128xbf16, #tpu.memory_space<vmem>>, vector<1x128x128xbf16>
    %16 = vector.shape_cast %15 : vector<1x128x128xbf16> to vector<128x128xbf16>
    %cst_17 = arith.constant dense<0.000000e+00> : vector<80x128xf32>
    %17 = tpu.matmul %14, %16, %cst_17 {dimension_numbers = #tpu.dot_dimension_numbers<[1], [0], [0], [1], [0, 0, 1, 1], [], []>} : vector<80x128xbf16>, vector<128x128xbf16>, vector<80x128xf32> -> vector<80x128xf32>
    %18 = arith.addf %12, %17 : vector<80x128xf32>
    %c0_18 = arith.constant 0 : index
    %c10 = arith.constant 10 : index
    %c0_19 = arith.constant 0 : index
    %19 = vector.load %arg1[%c0_18, %c10, %c0_19] : memref<1x110x128xbf16, #tpu.memory_space<vmem>>, vector<1x80x128xbf16>
    %20 = vector.shape_cast %19 : vector<1x80x128xbf16> to vector<80x128xbf16>
    %c3 = arith.constant 3 : index
    %c0_20 = arith.constant 0 : index
    %c0_21 = arith.constant 0 : index
    %21 = vector.load %arg2[%c3, %c0_20, %c0_21] : memref<9x128x128xbf16, #tpu.memory_space<vmem>>, vector<1x128x128xbf16>
    %22 = vector.shape_cast %21 : vector<1x128x128xbf16> to vector<128x128xbf16>
    %cst_22 = arith.constant dense<0.000000e+00> : vector<80x128xf32>
    %23 = tpu.matmul %20, %22, %cst_22 {dimension_numbers = #tpu.dot_dimension_numbers<[1], [0], [0], [1], [0, 0, 1, 1], [], []>} : vector<80x128xbf16>, vector<128x128xbf16>, vector<80x128xf32> -> vector<80x128xf32>
    %24 = arith.addf %18, %23 : vector<80x128xf32>
    %c0_23 = arith.constant 0 : index
    %c11 = arith.constant 11 : index
    %c0_24 = arith.constant 0 : index
    %25 = vector.load %arg1[%c0_23, %c11, %c0_24] : memref<1x110x128xbf16, #tpu.memory_space<vmem>>, vector<1x80x128xbf16>
    %26 = vector.shape_cast %25 : vector<1x80x128xbf16> to vector<80x128xbf16>
    %c4 = arith.constant 4 : index
    %c0_25 = arith.constant 0 : index
    %c0_26 = arith.constant 0 : index
    %27 = vector.load %arg2[%c4, %c0_25, %c0_26] : memref<9x128x128xbf16, #tpu.memory_space<vmem>>, vector<1x128x128xbf16>
    %28 = vector.shape_cast %27 : vector<1x128x128xbf16> to vector<128x128xbf16>
    %cst_27 = arith.constant dense<0.000000e+00> : vector<80x128xf32>
    %29 = tpu.matmul %26, %28, %cst_27 {dimension_numbers = #tpu.dot_dimension_numbers<[1], [0], [0], [1], [0, 0, 1, 1], [], []>} : vector<80x128xbf16>, vector<128x128xbf16>, vector<80x128xf32> -> vector<80x128xf32>
    %30 = arith.addf %24, %29 : vector<80x128xf32>
    %c0_28 = arith.constant 0 : index
    %c12 = arith.constant 12 : index
    %c0_29 = arith.constant 0 : index
    %31 = vector.load %arg1[%c0_28, %c12, %c0_29] : memref<1x110x128xbf16, #tpu.memory_space<vmem>>, vector<1x80x128xbf16>
    %32 = vector.shape_cast %31 : vector<1x80x128xbf16> to vector<80x128xbf16>
    %c5 = arith.constant 5 : index
    %c0_30 = arith.constant 0 : index
    %c0_31 = arith.constant 0 : index
    %33 = vector.load %arg2[%c5, %c0_30, %c0_31] : memref<9x128x128xbf16, #tpu.memory_space<vmem>>, vector<1x128x128xbf16>
    %34 = vector.shape_cast %33 : vector<1x128x128xbf16> to vector<128x128xbf16>
    %cst_32 = arith.constant dense<0.000000e+00> : vector<80x128xf32>
    %35 = tpu.matmul %32, %34, %cst_32 {dimension_numbers = #tpu.dot_dimension_numbers<[1], [0], [0], [1], [0, 0, 1, 1], [], []>} : vector<80x128xbf16>, vector<128x128xbf16>, vector<80x128xf32> -> vector<80x128xf32>
    %36 = arith.addf %30, %35 : vector<80x128xf32>
    %c0_33 = arith.constant 0 : index
    %c20 = arith.constant 20 : index
    %c0_34 = arith.constant 0 : index
    %37 = vector.load %arg1[%c0_33, %c20, %c0_34] : memref<1x110x128xbf16, #tpu.memory_space<vmem>>, vector<1x80x128xbf16>
    %38 = vector.shape_cast %37 : vector<1x80x128xbf16> to vector<80x128xbf16>
    %c6 = arith.constant 6 : index
    %c0_35 = arith.constant 0 : index
    %c0_36 = arith.constant 0 : index
    %39 = vector.load %arg2[%c6, %c0_35, %c0_36] : memref<9x128x128xbf16, #tpu.memory_space<vmem>>, vector<1x128x128xbf16>
    %40 = vector.shape_cast %39 : vector<1x128x128xbf16> to vector<128x128xbf16>
    %cst_37 = arith.constant dense<0.000000e+00> : vector<80x128xf32>
    %41 = tpu.matmul %38, %40, %cst_37 {dimension_numbers = #tpu.dot_dimension_numbers<[1], [0], [0], [1], [0, 0, 1, 1], [], []>} : vector<80x128xbf16>, vector<128x128xbf16>, vector<80x128xf32> -> vector<80x128xf32>
    %42 = arith.addf %36, %41 : vector<80x128xf32>
    %c0_38 = arith.constant 0 : index
    %c21 = arith.constant 21 : index
    %c0_39 = arith.constant 0 : index
    %43 = vector.load %arg1[%c0_38, %c21, %c0_39] : memref<1x110x128xbf16, #tpu.memory_space<vmem>>, vector<1x80x128xbf16>
    %44 = vector.shape_cast %43 : vector<1x80x128xbf16> to vector<80x128xbf16>
    %c7 = arith.constant 7 : index
    %c0_40 = arith.constant 0 : index
    %c0_41 = arith.constant 0 : index
    %45 = vector.load %arg2[%c7, %c0_40, %c0_41] : memref<9x128x128xbf16, #tpu.memory_space<vmem>>, vector<1x128x128xbf16>
    %46 = vector.shape_cast %45 : vector<1x128x128xbf16> to vector<128x128xbf16>
    %cst_42 = arith.constant dense<0.000000e+00> : vector<80x128xf32>
    %47 = tpu.matmul %44, %46, %cst_42 {dimension_numbers = #tpu.dot_dimension_numbers<[1], [0], [0], [1], [0, 0, 1, 1], [], []>} : vector<80x128xbf16>, vector<128x128xbf16>, vector<80x128xf32> -> vector<80x128xf32>
    %48 = arith.addf %42, %47 : vector<80x128xf32>
    %c0_43 = arith.constant 0 : index
    %c22 = arith.constant 22 : index
    %c0_44 = arith.constant 0 : index
    %49 = vector.load %arg1[%c0_43, %c22, %c0_44] : memref<1x110x128xbf16, #tpu.memory_space<vmem>>, vector<1x80x128xbf16>
    %50 = vector.shape_cast %49 : vector<1x80x128xbf16> to vector<80x128xbf16>
    %c8 = arith.constant 8 : index
    %c0_45 = arith.constant 0 : index
    %c0_46 = arith.constant 0 : index
    %51 = vector.load %arg2[%c8, %c0_45, %c0_46] : memref<9x128x128xbf16, #tpu.memory_space<vmem>>, vector<1x128x128xbf16>
    %52 = vector.shape_cast %51 : vector<1x128x128xbf16> to vector<128x128xbf16>
    %cst_47 = arith.constant dense<0.000000e+00> : vector<80x128xf32>
    %53 = tpu.matmul %50, %52, %cst_47 {dimension_numbers = #tpu.dot_dimension_numbers<[1], [0], [0], [1], [0, 0, 1, 1], [], []>} : vector<80x128xbf16>, vector<128x128xbf16>, vector<80x128xf32> -> vector<80x128xf32>
    %54 = arith.addf %48, %53 : vector<80x128xf32>
    %c0_48 = arith.constant 0 : index
    %c0_49 = arith.constant 0 : index
    %55 = vector.load %arg3[%c0_48, %c0_49] : memref<1x128xf32, #tpu.memory_space<vmem>>, vector<1x128xf32>
    %56 = vector.broadcast %55 : vector<1x128xf32> to vector<80x128xf32>
    %57 = arith.addf %54, %56 : vector<80x128xf32>
    %cst_50 = arith.constant 0.000000e+00 : f32
    %58 = vector.broadcast %cst_50 : f32 to vector<80x128xf32>
    %59 = arith.maximumf %57, %58 : vector<80x128xf32>
    %60 = arith.truncf %59 : vector<80x128xf32> to vector<80x128xbf16>
    %c0_51 = arith.constant 0 : index
    %c0_52 = arith.constant 0 : index
    %c0_53 = arith.constant 0 : index
    %61 = vector.load %arg4[%c0_51, %c0_52, %c0_53] : memref<1x80x128xbf16, #tpu.memory_space<vmem>>, vector<1x80x128xbf16>
    %62 = vector.shape_cast %61 : vector<1x80x128xbf16> to vector<80x128xbf16>
    %63 = vector.shape_cast %60 : vector<80x128xbf16> to vector<1x80x128xbf16>
    tpu.vector_store %arg4[%c0_51, %c0_52, %c0_53], %63 {strides = array<i32>} : memref<1x80x128xbf16, #tpu.memory_space<vmem>>, vector<1x80x128xbf16>,
    return
  }
  func.func @transform_0(%arg0: i32) -> (i32, i32, i32) {
    %c0_i32 = arith.constant 0 : i32
    %c0_i32_0 = arith.constant 0 : i32
    %c0_i32_1 = arith.constant 0 : i32
    return %arg0, %c0_i32, %c0_i32_0 : i32, i32, i32
  }
  func.func @transform_1(%arg0: i32) -> (i32, i32, i32) {
    %c0_i32 = arith.constant 0 : i32
    %c0_i32_0 = arith.constant 0 : i32
    %c0_i32_1 = arith.constant 0 : i32
    %c0_i32_2 = arith.constant 0 : i32
    return %c0_i32, %c0_i32_0, %c0_i32_1 : i32, i32, i32
  }
  func.func @transform_2(%arg0: i32) -> (i32, i32) {
    %c0_i32 = arith.constant 0 : i32
    %c0_i32_0 = arith.constant 0 : i32
    %c0_i32_1 = arith.constant 0 : i32
    return %c0_i32, %c0_i32_0 : i32, i32
  }
  func.func @transform_3(%arg0: i32) -> (i32, i32, i32) {
    %c0_i32 = arith.constant 0 : i32
    %c0_i32_0 = arith.constant 0 : i32
    %c0_i32_1 = arith.constant 0 : i32
    return %arg0, %c0_i32, %c0_i32_0 : i32, i32, i32
  }
}

module attributes {stable_mosaic.version = 11 : i64} {
  func.func @_conv3x3_s1_kernel(%arg0: i32, %arg1: memref<1x110x128xbf16, #tpu.memory_space<vmem>>, %arg2: memref<9x128x128xbf16, #tpu.memory_space<vmem>>, %arg3: memref<1x128xf32, #tpu.memory_space<vmem>>, %arg4: memref<1x80x128xbf16, #tpu.memory_space<vmem>>, %arg5: memref<1x80x128xbf16, #tpu.memory_space<vmem>>) attributes {dimension_semantics = [#tpu.dimension_semantics<parallel>], iteration_bounds = array<i64: 2>, scalar_prefetch = 0 : i64, scratch_operands = 0 : i64, tpu.core_type = #tpu.core_type<tc>, window_params = [{transform_indices = @transform_0, window_bounds = array<i64: 1, 110, 128>}, {pipeline_mode = #tpu.pipeline_mode<synchronous>, transform_indices = @transform_1, window_bounds = array<i64: 9, 128, 128>}, {pipeline_mode = #tpu.pipeline_mode<synchronous>, transform_indices = @transform_2, window_bounds = array<i64: 1, 128>}, {transform_indices = @transform_3, window_bounds = array<i64: 1, 80, 128>}, {transform_indices = @transform_4, window_bounds = array<i64: 1, 80, 128>}]} {
    %cst = arith.constant 0.000000e+00 : f32
    %0 = vector.broadcast %cst : f32 to vector<80x128xf32>
    %c0 = arith.constant 0 : index
    %c0_0 = arith.constant 0 : index
    %c0_1 = arith.constant 0 : index
    %1 = vector.load %arg1[%c0, %c0_0, %c0_1] : memref<1x110x128xbf16, #tpu.memory_space<vmem>>, vector<1x80x128xbf16>
    %2 = vector.shape_cast %1 : vector<1x80x128xbf16> to vector<80x128xbf16>
    %c0_2 = arith.constant 0 : index
    %c0_3 = arith.constant 0 : index
    %c0_4 = arith.constant 0 : index
    %3 = vector.load %arg2[%c0_2, %c0_3, %c0_4] : memref<9x128x128xbf16, #tpu.memory_space<vmem>>, vector<1x128x128xbf16>
    %4 = vector.shape_cast %3 : vector<1x128x128xbf16> to vector<128x128xbf16>
    %cst_5 = arith.constant dense<0.000000e+00> : vector<80x128xf32>
    %5 = tpu.matmul %2, %4, %cst_5 {dimension_numbers = #tpu.dot_dimension_numbers<[1], [0], [0], [1], [0, 0, 1, 1], [], []>} : vector<80x128xbf16>, vector<128x128xbf16>, vector<80x128xf32> -> vector<80x128xf32>
    %6 = arith.addf %0, %5 : vector<80x128xf32>
    %c0_6 = arith.constant 0 : index
    %c1 = arith.constant 1 : index
    %c0_7 = arith.constant 0 : index
    %7 = vector.load %arg1[%c0_6, %c1, %c0_7] : memref<1x110x128xbf16, #tpu.memory_space<vmem>>, vector<1x80x128xbf16>
    %8 = vector.shape_cast %7 : vector<1x80x128xbf16> to vector<80x128xbf16>
    %c1_8 = arith.constant 1 : index
    %c0_9 = arith.constant 0 : index
    %c0_10 = arith.constant 0 : index
    %9 = vector.load %arg2[%c1_8, %c0_9, %c0_10] : memref<9x128x128xbf16, #tpu.memory_space<vmem>>, vector<1x128x128xbf16>
    %10 = vector.shape_cast %9 : vector<1x128x128xbf16> to vector<128x128xbf16>
    %cst_11 = arith.constant dense<0.000000e+00> : vector<80x128xf32>
    %11 = tpu.matmul %8, %10, %cst_11 {dimension_numbers = #tpu.dot_dimension_numbers<[1], [0], [0], [1], [0, 0, 1, 1], [], []>} : vector<80x128xbf16>, vector<128x128xbf16>, vector<80x128xf32> -> vector<80x128xf32>
    %12 = arith.addf %6, %11 : vector<80x128xf32>
    %c0_12 = arith.constant 0 : index
    %c2 = arith.constant 2 : index
    %c0_13 = arith.constant 0 : index
    %13 = vector.load %arg1[%c0_12, %c2, %c0_13] : memref<1x110x128xbf16, #tpu.memory_space<vmem>>, vector<1x80x128xbf16>
    %14 = vector.shape_cast %13 : vector<1x80x128xbf16> to vector<80x128xbf16>
    %c2_14 = arith.constant 2 : index
    %c0_15 = arith.constant 0 : index
    %c0_16 = arith.constant 0 : index
    %15 = vector.load %arg2[%c2_14, %c0_15, %c0_16] : memref<9x128x128xbf16, #tpu.memory_space<vmem>>, vector<1x128x128xbf16>
    %16 = vector.shape_cast %15 : vector<1x128x128xbf16> to vector<128x128xbf16>
    %cst_17 = arith.constant dense<0.000000e+00> : vector<80x128xf32>
    %17 = tpu.matmul %14, %16, %cst_17 {dimension_numbers = #tpu.dot_dimension_numbers<[1], [0], [0], [1], [0, 0, 1, 1], [], []>} : vector<80x128xbf16>, vector<128x128xbf16>, vector<80x128xf32> -> vector<80x128xf32>
    %18 = arith.addf %12, %17 : vector<80x128xf32>
    %c0_18 = arith.constant 0 : index
    %c10 = arith.constant 10 : index
    %c0_19 = arith.constant 0 : index
    %19 = vector.load %arg1[%c0_18, %c10, %c0_19] : memref<1x110x128xbf16, #tpu.memory_space<vmem>>, vector<1x80x128xbf16>
    %20 = vector.shape_cast %19 : vector<1x80x128xbf16> to vector<80x128xbf16>
    %c3 = arith.constant 3 : index
    %c0_20 = arith.constant 0 : index
    %c0_21 = arith.constant 0 : index
    %21 = vector.load %arg2[%c3, %c0_20, %c0_21] : memref<9x128x128xbf16, #tpu.memory_space<vmem>>, vector<1x128x128xbf16>
    %22 = vector.shape_cast %21 : vector<1x128x128xbf16> to vector<128x128xbf16>
    %cst_22 = arith.constant dense<0.000000e+00> : vector<80x128xf32>
    %23 = tpu.matmul %20, %22, %cst_22 {dimension_numbers = #tpu.dot_dimension_numbers<[1], [0], [0], [1], [0, 0, 1, 1], [], []>} : vector<80x128xbf16>, vector<128x128xbf16>, vector<80x128xf32> -> vector<80x128xf32>
    %24 = arith.addf %18, %23 : vector<80x128xf32>
    %c0_23 = arith.constant 0 : index
    %c11 = arith.constant 11 : index
    %c0_24 = arith.constant 0 : index
    %25 = vector.load %arg1[%c0_23, %c11, %c0_24] : memref<1x110x128xbf16, #tpu.memory_space<vmem>>, vector<1x80x128xbf16>
    %26 = vector.shape_cast %25 : vector<1x80x128xbf16> to vector<80x128xbf16>
    %c4 = arith.constant 4 : index
    %c0_25 = arith.constant 0 : index
    %c0_26 = arith.constant 0 : index
    %27 = vector.load %arg2[%c4, %c0_25, %c0_26] : memref<9x128x128xbf16, #tpu.memory_space<vmem>>, vector<1x128x128xbf16>
    %28 = vector.shape_cast %27 : vector<1x128x128xbf16> to vector<128x128xbf16>
    %cst_27 = arith.constant dense<0.000000e+00> : vector<80x128xf32>
    %29 = tpu.matmul %26, %28, %cst_27 {dimension_numbers = #tpu.dot_dimension_numbers<[1], [0], [0], [1], [0, 0, 1, 1], [], []>} : vector<80x128xbf16>, vector<128x128xbf16>, vector<80x128xf32> -> vector<80x128xf32>
    %30 = arith.addf %24, %29 : vector<80x128xf32>
    %c0_28 = arith.constant 0 : index
    %c12 = arith.constant 12 : index
    %c0_29 = arith.constant 0 : index
    %31 = vector.load %arg1[%c0_28, %c12, %c0_29] : memref<1x110x128xbf16, #tpu.memory_space<vmem>>, vector<1x80x128xbf16>
    %32 = vector.shape_cast %31 : vector<1x80x128xbf16> to vector<80x128xbf16>
    %c5 = arith.constant 5 : index
    %c0_30 = arith.constant 0 : index
    %c0_31 = arith.constant 0 : index
    %33 = vector.load %arg2[%c5, %c0_30, %c0_31] : memref<9x128x128xbf16, #tpu.memory_space<vmem>>, vector<1x128x128xbf16>
    %34 = vector.shape_cast %33 : vector<1x128x128xbf16> to vector<128x128xbf16>
    %cst_32 = arith.constant dense<0.000000e+00> : vector<80x128xf32>
    %35 = tpu.matmul %32, %34, %cst_32 {dimension_numbers = #tpu.dot_dimension_numbers<[1], [0], [0], [1], [0, 0, 1, 1], [], []>} : vector<80x128xbf16>, vector<128x128xbf16>, vector<80x128xf32> -> vector<80x128xf32>
    %36 = arith.addf %30, %35 : vector<80x128xf32>
    %c0_33 = arith.constant 0 : index
    %c20 = arith.constant 20 : index
    %c0_34 = arith.constant 0 : index
    %37 = vector.load %arg1[%c0_33, %c20, %c0_34] : memref<1x110x128xbf16, #tpu.memory_space<vmem>>, vector<1x80x128xbf16>
    %38 = vector.shape_cast %37 : vector<1x80x128xbf16> to vector<80x128xbf16>
    %c6 = arith.constant 6 : index
    %c0_35 = arith.constant 0 : index
    %c0_36 = arith.constant 0 : index
    %39 = vector.load %arg2[%c6, %c0_35, %c0_36] : memref<9x128x128xbf16, #tpu.memory_space<vmem>>, vector<1x128x128xbf16>
    %40 = vector.shape_cast %39 : vector<1x128x128xbf16> to vector<128x128xbf16>
    %cst_37 = arith.constant dense<0.000000e+00> : vector<80x128xf32>
    %41 = tpu.matmul %38, %40, %cst_37 {dimension_numbers = #tpu.dot_dimension_numbers<[1], [0], [0], [1], [0, 0, 1, 1], [], []>} : vector<80x128xbf16>, vector<128x128xbf16>, vector<80x128xf32> -> vector<80x128xf32>
    %42 = arith.addf %36, %41 : vector<80x128xf32>
    %c0_38 = arith.constant 0 : index
    %c21 = arith.constant 21 : index
    %c0_39 = arith.constant 0 : index
    %43 = vector.load %arg1[%c0_38, %c21, %c0_39] : memref<1x110x128xbf16, #tpu.memory_space<vmem>>, vector<1x80x128xbf16>
    %44 = vector.shape_cast %43 : vector<1x80x128xbf16> to vector<80x128xbf16>
    %c7 = arith.constant 7 : index
    %c0_40 = arith.constant 0 : index
    %c0_41 = arith.constant 0 : index
    %45 = vector.load %arg2[%c7, %c0_40, %c0_41] : memref<9x128x128xbf16, #tpu.memory_space<vmem>>, vector<1x128x128xbf16>
    %46 = vector.shape_cast %45 : vector<1x128x128xbf16> to vector<128x128xbf16>
    %cst_42 = arith.constant dense<0.000000e+00> : vector<80x128xf32>
    %47 = tpu.matmul %44, %46, %cst_42 {dimension_numbers = #tpu.dot_dimension_numbers<[1], [0], [0], [1], [0, 0, 1, 1], [], []>} : vector<80x128xbf16>, vector<128x128xbf16>, vector<80x128xf32> -> vector<80x128xf32>
    %48 = arith.addf %42, %47 : vector<80x128xf32>
    %c0_43 = arith.constant 0 : index
    %c22 = arith.constant 22 : index
    %c0_44 = arith.constant 0 : index
    %49 = vector.load %arg1[%c0_43, %c22, %c0_44] : memref<1x110x128xbf16, #tpu.memory_space<vmem>>, vector<1x80x128xbf16>
    %50 = vector.shape_cast %49 : vector<1x80x128xbf16> to vector<80x128xbf16>
    %c8 = arith.constant 8 : index
    %c0_45 = arith.constant 0 : index
    %c0_46 = arith.constant 0 : index
    %51 = vector.load %arg2[%c8, %c0_45, %c0_46] : memref<9x128x128xbf16, #tpu.memory_space<vmem>>, vector<1x128x128xbf16>
    %52 = vector.shape_cast %51 : vector<1x128x128xbf16> to vector<128x128xbf16>
    %cst_47 = arith.constant dense<0.000000e+00> : vector<80x128xf32>
    %53 = tpu.matmul %50, %52, %cst_47 {dimension_numbers = #tpu.dot_dimension_numbers<[1], [0], [0], [1], [0, 0, 1, 1], [], []>} : vector<80x128xbf16>, vector<128x128xbf16>, vector<80x128xf32> -> vector<80x128xf32>
    %54 = arith.addf %48, %53 : vector<80x128xf32>
    %c0_48 = arith.constant 0 : index
    %c0_49 = arith.constant 0 : index
    %55 = vector.load %arg3[%c0_48, %c0_49] : memref<1x128xf32, #tpu.memory_space<vmem>>, vector<1x128xf32>
    %56 = vector.broadcast %55 : vector<1x128xf32> to vector<80x128xf32>
    %57 = arith.addf %54, %56 : vector<80x128xf32>
    %c0_50 = arith.constant 0 : index
    %c0_51 = arith.constant 0 : index
    %c0_52 = arith.constant 0 : index
    %58 = vector.load %arg4[%c0_50, %c0_51, %c0_52] : memref<1x80x128xbf16, #tpu.memory_space<vmem>>, vector<1x80x128xbf16>
    %59 = vector.shape_cast %58 : vector<1x80x128xbf16> to vector<80x128xbf16>
    %60 = arith.extf %59 : vector<80x128xbf16> to vector<80x128xf32>
    %61 = arith.addf %57, %60 : vector<80x128xf32>
    %cst_53 = arith.constant 0.000000e+00 : f32
    %62 = vector.broadcast %cst_53 : f32 to vector<80x128xf32>
    %63 = arith.maximumf %61, %62 : vector<80x128xf32>
    %64 = arith.truncf %63 : vector<80x128xf32> to vector<80x128xbf16>
    %c0_54 = arith.constant 0 : index
    %c0_55 = arith.constant 0 : index
    %c0_56 = arith.constant 0 : index
    %65 = vector.load %arg5[%c0_54, %c0_55, %c0_56] : memref<1x80x128xbf16, #tpu.memory_space<vmem>>, vector<1x80x128xbf16>
    %66 = vector.shape_cast %65 : vector<1x80x128xbf16> to vector<80x128xbf16>
    %67 = vector.shape_cast %64 : vector<80x128xbf16> to vector<1x80x128xbf16>
    tpu.vector_store %arg5[%c0_54, %c0_55, %c0_56], %67 {strides = array<i32>} : memref<1x80x128xbf16, #tpu.memory_space<vmem>>, vector<1x80x128xbf16>,
    return
  }
  func.func @transform_0(%arg0: i32) -> (i32, i32, i32) {
    %c0_i32 = arith.constant 0 : i32
    %c0_i32_0 = arith.constant 0 : i32
    %c0_i32_1 = arith.constant 0 : i32
    return %arg0, %c0_i32, %c0_i32_0 : i32, i32, i32
  }
  func.func @transform_1(%arg0: i32) -> (i32, i32, i32) {
    %c0_i32 = arith.constant 0 : i32
    %c0_i32_0 = arith.constant 0 : i32
    %c0_i32_1 = arith.constant 0 : i32
    %c0_i32_2 = arith.constant 0 : i32
    return %c0_i32, %c0_i32_0, %c0_i32_1 : i32, i32, i32
  }
  func.func @transform_2(%arg0: i32) -> (i32, i32) {
    %c0_i32 = arith.constant 0 : i32
    %c0_i32_0 = arith.constant 0 : i32
    %c0_i32_1 = arith.constant 0 : i32
    return %c0_i32, %c0_i32_0 : i32, i32
  }
  func.func @transform_3(%arg0: i32) -> (i32, i32, i32) {
    %c0_i32 = arith.constant 0 : i32
    %c0_i32_0 = arith.constant 0 : i32
    %c0_i32_1 = arith.constant 0 : i32
    return %arg0, %c0_i32, %c0_i32_0 : i32, i32, i32
  }
  func.func @transform_4(%arg0: i32) -> (i32, i32, i32) {
    %c0_i32 = arith.constant 0 : i32
    %c0_i32_0 = arith.constant 0 : i32
    %c0_i32_1 = arith.constant 0 : i32
    return %arg0, %c0_i32, %c0_i32_0 : i32, i32, i32
  }
}

module attributes {stable_mosaic.version = 11 : i64} {
  func.func @_matmul_bias_act_kernel(%arg0: i32, %arg1: i32, %arg2: memref<32x1152xbf16, #tpu.memory_space<vmem>>, %arg3: memref<1152x256xbf16, #tpu.memory_space<vmem>>, %arg4: memref<1x256xf32, #tpu.memory_space<vmem>>, %arg5: memref<32x256xbf16, #tpu.memory_space<vmem>>, %arg6: memref<32x256xf32, #tpu.memory_space<vmem>>) attributes {dimension_semantics = [#tpu.dimension_semantics<parallel>, #tpu.dimension_semantics<arbitrary>], iteration_bounds = array<i64: 1, 1>, scalar_prefetch = 0 : i64, scratch_operands = 1 : i64, tpu.core_type = #tpu.core_type<tc>, window_params = [{transform_indices = @transform_0, window_bounds = array<i64: 32, 1152>}, {transform_indices = @transform_1, window_bounds = array<i64: 1152, 256>}, {pipeline_mode = #tpu.pipeline_mode<synchronous>, transform_indices = @transform_2, window_bounds = array<i64: 1, 256>}, {transform_indices = @transform_3, window_bounds = array<i64: 32, 256>}]} {
    %c0_i32 = arith.constant 0 : i32
    %0 = arith.cmpi eq, %arg1, %c0_i32 : i32
    %1 = arith.extui %0 : i1 to i32
    %c0_i32_0 = arith.constant 0 : i32
    %2 = arith.cmpi ne, %1, %c0_i32_0 : i32
    scf.if %2 {
      %cst_10 = arith.constant 0.000000e+00 : f32
      %12 = vector.broadcast %cst_10 : f32 to vector<32x256xf32>
      %c0_11 = arith.constant 0 : index
      %c0_12 = arith.constant 0 : index
      %13 = vector.load %arg6[%c0_11, %c0_12] : memref<32x256xf32, #tpu.memory_space<vmem>>, vector<32x256xf32>
      tpu.vector_store %arg6[%c0_11, %c0_12], %12 {strides = array<i32>} : memref<32x256xf32, #tpu.memory_space<vmem>>, vector<32x256xf32>,
    } else {
    }
    %c0 = arith.constant 0 : index
    %c0_1 = arith.constant 0 : index
    %3 = vector.load %arg6[%c0, %c0_1] : memref<32x256xf32, #tpu.memory_space<vmem>>, vector<32x256xf32>
    %c0_2 = arith.constant 0 : index
    %c0_3 = arith.constant 0 : index
    %4 = vector.load %arg2[%c0_2, %c0_3] : memref<32x1152xbf16, #tpu.memory_space<vmem>>, vector<32x1152xbf16>
    %c0_4 = arith.constant 0 : index
    %c0_5 = arith.constant 0 : index
    %5 = vector.load %arg3[%c0_4, %c0_5] : memref<1152x256xbf16, #tpu.memory_space<vmem>>, vector<1152x256xbf16>
    %cst = arith.constant dense<0.000000e+00> : vector<32x256xf32>
    %6 = tpu.matmul %4, %5, %cst {dimension_numbers = #tpu.dot_dimension_numbers<[1], [0], [0], [1], [0, 0, 1, 1], [], []>} : vector<32x1152xbf16>, vector<1152x256xbf16>, vector<32x256xf32> -> vector<32x256xf32>
    %7 = arith.addf %3, %6 : vector<32x256xf32>
    %c0_6 = arith.constant 0 : index
    %c0_7 = arith.constant 0 : index
    %8 = vector.load %arg6[%c0_6, %c0_7] : memref<32x256xf32, #tpu.memory_space<vmem>>, vector<32x256xf32>
    tpu.vector_store %arg6[%c0_6, %c0_7], %7 {strides = array<i32>} : memref<32x256xf32, #tpu.memory_space<vmem>>, vector<32x256xf32>,
    %c0_i32_8 = arith.constant 0 : i32
    %9 = arith.cmpi eq, %arg1, %c0_i32_8 : i32
    %10 = arith.extui %9 : i1 to i32
    %c0_i32_9 = arith.constant 0 : i32
    %11 = arith.cmpi ne, %10, %c0_i32_9 : i32
    scf.if %11 {
      %c0_10 = arith.constant 0 : index
      %c0_11 = arith.constant 0 : index
      %12 = vector.load %arg6[%c0_10, %c0_11] : memref<32x256xf32, #tpu.memory_space<vmem>>, vector<32x256xf32>
      %c0_12 = arith.constant 0 : index
      %c0_13 = arith.constant 0 : index
      %13 = vector.load %arg4[%c0_12, %c0_13] : memref<1x256xf32, #tpu.memory_space<vmem>>, vector<1x256xf32>
      %14 = vector.broadcast %13 : vector<1x256xf32> to vector<32x256xf32>
      %15 = arith.addf %12, %14 : vector<32x256xf32>
      %16 = tpu.iota {dimensions = array<i32: 1>} : vector<32x256xi32>
      %c128_i32 = arith.constant 128 : i32
      %17 = vector.broadcast %c128_i32 : i32 to vector<32x256xi32>
      %18 = arith.cmpi slt, %16, %17 : vector<32x256xi32>
      %cst_14 = arith.constant 0.000000e+00 : f32
      %19 = vector.broadcast %cst_14 : f32 to vector<32x256xf32>
      %20 = arith.maximumf %15, %19 : vector<32x256xf32>
      %21 = arith.select %18, %20, %15 : vector<32x256xi1>, vector<32x256xf32>
      %22 = arith.truncf %21 : vector<32x256xf32> to vector<32x256xbf16>
      %c0_15 = arith.constant 0 : index
      %c0_16 = arith.constant 0 : index
      %23 = vector.load %arg5[%c0_15, %c0_16] : memref<32x256xbf16, #tpu.memory_space<vmem>>, vector<32x256xbf16>
      tpu.vector_store %arg5[%c0_15, %c0_16], %22 {strides = array<i32>} : memref<32x256xbf16, #tpu.memory_space<vmem>>, vector<32x256xbf16>,
    } else {
    }
    return
  }
  func.func @transform_0(%arg0: i32, %arg1: i32) -> (i32, i32) {
    %c0_i32 = arith.constant 0 : i32
    return %arg0, %arg1 : i32, i32
  }
  func.func @transform_1(%arg0: i32, %arg1: i32) -> (i32, i32) {
    %c0_i32 = arith.constant 0 : i32
    %c0_i32_0 = arith.constant 0 : i32
    return %arg1, %c0_i32 : i32, i32
  }
  func.func @transform_2(%arg0: i32, %arg1: i32) -> (i32, i32) {
    %c0_i32 = arith.constant 0 : i32
    %c0_i32_0 = arith.constant 0 : i32
    %c0_i32_1 = arith.constant 0 : i32
    return %c0_i32, %c0_i32_0 : i32, i32
  }
  func.func @transform_3(%arg0: i32, %arg1: i32) -> (i32, i32) {
    %c0_i32 = arith.constant 0 : i32
    %c0_i32_0 = arith.constant 0 : i32
    return %arg0, %c0_i32 : i32, i32
  }
}

module attributes {stable_mosaic.version = 11 : i64} {
  func.func @_conv3x3_s1_kernel(%arg0: i32, %arg1: memref<1x42x128xbf16, #tpu.memory_space<vmem>>, %arg2: memref<9x128x128xbf16, #tpu.memory_space<vmem>>, %arg3: memref<1x128xf32, #tpu.memory_space<vmem>>, %arg4: memref<1x24x128xbf16, #tpu.memory_space<vmem>>) attributes {dimension_semantics = [#tpu.dimension_semantics<parallel>], iteration_bounds = array<i64: 2>, scalar_prefetch = 0 : i64, scratch_operands = 0 : i64, tpu.core_type = #tpu.core_type<tc>, window_params = [{transform_indices = @transform_0, window_bounds = array<i64: 1, 42, 128>}, {pipeline_mode = #tpu.pipeline_mode<synchronous>, transform_indices = @transform_1, window_bounds = array<i64: 9, 128, 128>}, {pipeline_mode = #tpu.pipeline_mode<synchronous>, transform_indices = @transform_2, window_bounds = array<i64: 1, 128>}, {transform_indices = @transform_3, window_bounds = array<i64: 1, 24, 128>}]} {
    %cst = arith.constant 0.000000e+00 : f32
    %0 = vector.broadcast %cst : f32 to vector<24x128xf32>
    %c0 = arith.constant 0 : index
    %c0_0 = arith.constant 0 : index
    %c0_1 = arith.constant 0 : index
    %1 = vector.load %arg1[%c0, %c0_0, %c0_1] : memref<1x42x128xbf16, #tpu.memory_space<vmem>>, vector<1x24x128xbf16>
    %2 = vector.shape_cast %1 : vector<1x24x128xbf16> to vector<24x128xbf16>
    %c0_2 = arith.constant 0 : index
    %c0_3 = arith.constant 0 : index
    %c0_4 = arith.constant 0 : index
    %3 = vector.load %arg2[%c0_2, %c0_3, %c0_4] : memref<9x128x128xbf16, #tpu.memory_space<vmem>>, vector<1x128x128xbf16>
    %4 = vector.shape_cast %3 : vector<1x128x128xbf16> to vector<128x128xbf16>
    %cst_5 = arith.constant dense<0.000000e+00> : vector<24x128xf32>
    %5 = tpu.matmul %2, %4, %cst_5 {dimension_numbers = #tpu.dot_dimension_numbers<[1], [0], [0], [1], [0, 0, 1, 1], [], []>} : vector<24x128xbf16>, vector<128x128xbf16>, vector<24x128xf32> -> vector<24x128xf32>
    %6 = arith.addf %0, %5 : vector<24x128xf32>
    %c0_6 = arith.constant 0 : index
    %c1 = arith.constant 1 : index
    %c0_7 = arith.constant 0 : index
    %7 = vector.load %arg1[%c0_6, %c1, %c0_7] : memref<1x42x128xbf16, #tpu.memory_space<vmem>>, vector<1x24x128xbf16>
    %8 = vector.shape_cast %7 : vector<1x24x128xbf16> to vector<24x128xbf16>
    %c1_8 = arith.constant 1 : index
    %c0_9 = arith.constant 0 : index
    %c0_10 = arith.constant 0 : index
    %9 = vector.load %arg2[%c1_8, %c0_9, %c0_10] : memref<9x128x128xbf16, #tpu.memory_space<vmem>>, vector<1x128x128xbf16>
    %10 = vector.shape_cast %9 : vector<1x128x128xbf16> to vector<128x128xbf16>
    %cst_11 = arith.constant dense<0.000000e+00> : vector<24x128xf32>
    %11 = tpu.matmul %8, %10, %cst_11 {dimension_numbers = #tpu.dot_dimension_numbers<[1], [0], [0], [1], [0, 0, 1, 1], [], []>} : vector<24x128xbf16>, vector<128x128xbf16>, vector<24x128xf32> -> vector<24x128xf32>
    %12 = arith.addf %6, %11 : vector<24x128xf32>
    %c0_12 = arith.constant 0 : index
    %c2 = arith.constant 2 : index
    %c0_13 = arith.constant 0 : index
    %13 = vector.load %arg1[%c0_12, %c2, %c0_13] : memref<1x42x128xbf16, #tpu.memory_space<vmem>>, vector<1x24x128xbf16>
    %14 = vector.shape_cast %13 : vector<1x24x128xbf16> to vector<24x128xbf16>
    %c2_14 = arith.constant 2 : index
    %c0_15 = arith.constant 0 : index
    %c0_16 = arith.constant 0 : index
    %15 = vector.load %arg2[%c2_14, %c0_15, %c0_16] : memref<9x128x128xbf16, #tpu.memory_space<vmem>>, vector<1x128x128xbf16>
    %16 = vector.shape_cast %15 : vector<1x128x128xbf16> to vector<128x128xbf16>
    %cst_17 = arith.constant dense<0.000000e+00> : vector<24x128xf32>
    %17 = tpu.matmul %14, %16, %cst_17 {dimension_numbers = #tpu.dot_dimension_numbers<[1], [0], [0], [1], [0, 0, 1, 1], [], []>} : vector<24x128xbf16>, vector<128x128xbf16>, vector<24x128xf32> -> vector<24x128xf32>
    %18 = arith.addf %12, %17 : vector<24x128xf32>
    %c0_18 = arith.constant 0 : index
    %c6 = arith.constant 6 : index
    %c0_19 = arith.constant 0 : index
    %19 = vector.load %arg1[%c0_18, %c6, %c0_19] : memref<1x42x128xbf16, #tpu.memory_space<vmem>>, vector<1x24x128xbf16>
    %20 = vector.shape_cast %19 : vector<1x24x128xbf16> to vector<24x128xbf16>
    %c3 = arith.constant 3 : index
    %c0_20 = arith.constant 0 : index
    %c0_21 = arith.constant 0 : index
    %21 = vector.load %arg2[%c3, %c0_20, %c0_21] : memref<9x128x128xbf16, #tpu.memory_space<vmem>>, vector<1x128x128xbf16>
    %22 = vector.shape_cast %21 : vector<1x128x128xbf16> to vector<128x128xbf16>
    %cst_22 = arith.constant dense<0.000000e+00> : vector<24x128xf32>
    %23 = tpu.matmul %20, %22, %cst_22 {dimension_numbers = #tpu.dot_dimension_numbers<[1], [0], [0], [1], [0, 0, 1, 1], [], []>} : vector<24x128xbf16>, vector<128x128xbf16>, vector<24x128xf32> -> vector<24x128xf32>
    %24 = arith.addf %18, %23 : vector<24x128xf32>
    %c0_23 = arith.constant 0 : index
    %c7 = arith.constant 7 : index
    %c0_24 = arith.constant 0 : index
    %25 = vector.load %arg1[%c0_23, %c7, %c0_24] : memref<1x42x128xbf16, #tpu.memory_space<vmem>>, vector<1x24x128xbf16>
    %26 = vector.shape_cast %25 : vector<1x24x128xbf16> to vector<24x128xbf16>
    %c4 = arith.constant 4 : index
    %c0_25 = arith.constant 0 : index
    %c0_26 = arith.constant 0 : index
    %27 = vector.load %arg2[%c4, %c0_25, %c0_26] : memref<9x128x128xbf16, #tpu.memory_space<vmem>>, vector<1x128x128xbf16>
    %28 = vector.shape_cast %27 : vector<1x128x128xbf16> to vector<128x128xbf16>
    %cst_27 = arith.constant dense<0.000000e+00> : vector<24x128xf32>
    %29 = tpu.matmul %26, %28, %cst_27 {dimension_numbers = #tpu.dot_dimension_numbers<[1], [0], [0], [1], [0, 0, 1, 1], [], []>} : vector<24x128xbf16>, vector<128x128xbf16>, vector<24x128xf32> -> vector<24x128xf32>
    %30 = arith.addf %24, %29 : vector<24x128xf32>
    %c0_28 = arith.constant 0 : index
    %c8 = arith.constant 8 : index
    %c0_29 = arith.constant 0 : index
    %31 = vector.load %arg1[%c0_28, %c8, %c0_29] : memref<1x42x128xbf16, #tpu.memory_space<vmem>>, vector<1x24x128xbf16>
    %32 = vector.shape_cast %31 : vector<1x24x128xbf16> to vector<24x128xbf16>
    %c5 = arith.constant 5 : index
    %c0_30 = arith.constant 0 : index
    %c0_31 = arith.constant 0 : index
    %33 = vector.load %arg2[%c5, %c0_30, %c0_31] : memref<9x128x128xbf16, #tpu.memory_space<vmem>>, vector<1x128x128xbf16>
    %34 = vector.shape_cast %33 : vector<1x128x128xbf16> to vector<128x128xbf16>
    %cst_32 = arith.constant dense<0.000000e+00> : vector<24x128xf32>
    %35 = tpu.matmul %32, %34, %cst_32 {dimension_numbers = #tpu.dot_dimension_numbers<[1], [0], [0], [1], [0, 0, 1, 1], [], []>} : vector<24x128xbf16>, vector<128x128xbf16>, vector<24x128xf32> -> vector<24x128xf32>
    %36 = arith.addf %30, %35 : vector<24x128xf32>
    %c0_33 = arith.constant 0 : index
    %c12 = arith.constant 12 : index
    %c0_34 = arith.constant 0 : index
    %37 = vector.load %arg1[%c0_33, %c12, %c0_34] : memref<1x42x128xbf16, #tpu.memory_space<vmem>>, vector<1x24x128xbf16>
    %38 = vector.shape_cast %37 : vector<1x24x128xbf16> to vector<24x128xbf16>
    %c6_35 = arith.constant 6 : index
    %c0_36 = arith.constant 0 : index
    %c0_37 = arith.constant 0 : index
    %39 = vector.load %arg2[%c6_35, %c0_36, %c0_37] : memref<9x128x128xbf16, #tpu.memory_space<vmem>>, vector<1x128x128xbf16>
    %40 = vector.shape_cast %39 : vector<1x128x128xbf16> to vector<128x128xbf16>
    %cst_38 = arith.constant dense<0.000000e+00> : vector<24x128xf32>
    %41 = tpu.matmul %38, %40, %cst_38 {dimension_numbers = #tpu.dot_dimension_numbers<[1], [0], [0], [1], [0, 0, 1, 1], [], []>} : vector<24x128xbf16>, vector<128x128xbf16>, vector<24x128xf32> -> vector<24x128xf32>
    %42 = arith.addf %36, %41 : vector<24x128xf32>
    %c0_39 = arith.constant 0 : index
    %c13 = arith.constant 13 : index
    %c0_40 = arith.constant 0 : index
    %43 = vector.load %arg1[%c0_39, %c13, %c0_40] : memref<1x42x128xbf16, #tpu.memory_space<vmem>>, vector<1x24x128xbf16>
    %44 = vector.shape_cast %43 : vector<1x24x128xbf16> to vector<24x128xbf16>
    %c7_41 = arith.constant 7 : index
    %c0_42 = arith.constant 0 : index
    %c0_43 = arith.constant 0 : index
    %45 = vector.load %arg2[%c7_41, %c0_42, %c0_43] : memref<9x128x128xbf16, #tpu.memory_space<vmem>>, vector<1x128x128xbf16>
    %46 = vector.shape_cast %45 : vector<1x128x128xbf16> to vector<128x128xbf16>
    %cst_44 = arith.constant dense<0.000000e+00> : vector<24x128xf32>
    %47 = tpu.matmul %44, %46, %cst_44 {dimension_numbers = #tpu.dot_dimension_numbers<[1], [0], [0], [1], [0, 0, 1, 1], [], []>} : vector<24x128xbf16>, vector<128x128xbf16>, vector<24x128xf32> -> vector<24x128xf32>
    %48 = arith.addf %42, %47 : vector<24x128xf32>
    %c0_45 = arith.constant 0 : index
    %c14 = arith.constant 14 : index
    %c0_46 = arith.constant 0 : index
    %49 = vector.load %arg1[%c0_45, %c14, %c0_46] : memref<1x42x128xbf16, #tpu.memory_space<vmem>>, vector<1x24x128xbf16>
    %50 = vector.shape_cast %49 : vector<1x24x128xbf16> to vector<24x128xbf16>
    %c8_47 = arith.constant 8 : index
    %c0_48 = arith.constant 0 : index
    %c0_49 = arith.constant 0 : index
    %51 = vector.load %arg2[%c8_47, %c0_48, %c0_49] : memref<9x128x128xbf16, #tpu.memory_space<vmem>>, vector<1x128x128xbf16>
    %52 = vector.shape_cast %51 : vector<1x128x128xbf16> to vector<128x128xbf16>
    %cst_50 = arith.constant dense<0.000000e+00> : vector<24x128xf32>
    %53 = tpu.matmul %50, %52, %cst_50 {dimension_numbers = #tpu.dot_dimension_numbers<[1], [0], [0], [1], [0, 0, 1, 1], [], []>} : vector<24x128xbf16>, vector<128x128xbf16>, vector<24x128xf32> -> vector<24x128xf32>
    %54 = arith.addf %48, %53 : vector<24x128xf32>
    %c0_51 = arith.constant 0 : index
    %c0_52 = arith.constant 0 : index
    %55 = vector.load %arg3[%c0_51, %c0_52] : memref<1x128xf32, #tpu.memory_space<vmem>>, vector<1x128xf32>
    %56 = vector.broadcast %55 : vector<1x128xf32> to vector<24x128xf32>
    %57 = arith.addf %54, %56 : vector<24x128xf32>
    %cst_53 = arith.constant 0.000000e+00 : f32
    %58 = vector.broadcast %cst_53 : f32 to vector<24x128xf32>
    %59 = arith.maximumf %57, %58 : vector<24x128xf32>
    %60 = arith.truncf %59 : vector<24x128xf32> to vector<24x128xbf16>
    %c0_54 = arith.constant 0 : index
    %c0_55 = arith.constant 0 : index
    %c0_56 = arith.constant 0 : index
    %61 = vector.load %arg4[%c0_54, %c0_55, %c0_56] : memref<1x24x128xbf16, #tpu.memory_space<vmem>>, vector<1x24x128xbf16>
    %62 = vector.shape_cast %61 : vector<1x24x128xbf16> to vector<24x128xbf16>
    %63 = vector.shape_cast %60 : vector<24x128xbf16> to vector<1x24x128xbf16>
    tpu.vector_store %arg4[%c0_54, %c0_55, %c0_56], %63 {strides = array<i32>} : memref<1x24x128xbf16, #tpu.memory_space<vmem>>, vector<1x24x128xbf16>,
    return
  }
  func.func @transform_0(%arg0: i32) -> (i32, i32, i32) {
    %c0_i32 = arith.constant 0 : i32
    %c0_i32_0 = arith.constant 0 : i32
    %c0_i32_1 = arith.constant 0 : i32
    return %arg0, %c0_i32, %c0_i32_0 : i32, i32, i32
  }
  func.func @transform_1(%arg0: i32) -> (i32, i32, i32) {
    %c0_i32 = arith.constant 0 : i32
    %c0_i32_0 = arith.constant 0 : i32
    %c0_i32_1 = arith.constant 0 : i32
    %c0_i32_2 = arith.constant 0 : i32
    return %c0_i32, %c0_i32_0, %c0_i32_1 : i32, i32, i32
  }
  func.func @transform_2(%arg0: i32) -> (i32, i32) {
    %c0_i32 = arith.constant 0 : i32
    %c0_i32_0 = arith.constant 0 : i32
    %c0_i32_1 = arith.constant 0 : i32
    return %c0_i32, %c0_i32_0 : i32, i32
  }
  func.func @transform_3(%arg0: i32) -> (i32, i32, i32) {
    %c0_i32 = arith.constant 0 : i32
    %c0_i32_0 = arith.constant 0 : i32
    %c0_i32_1 = arith.constant 0 : i32
    return %arg0, %c0_i32, %c0_i32_0 : i32, i32, i32
  }
}

module attributes {stable_mosaic.version = 11 : i64} {
  func.func @_conv3x3_s1_kernel(%arg0: i32, %arg1: memref<1x42x128xbf16, #tpu.memory_space<vmem>>, %arg2: memref<9x128x128xbf16, #tpu.memory_space<vmem>>, %arg3: memref<1x128xf32, #tpu.memory_space<vmem>>, %arg4: memref<1x24x128xbf16, #tpu.memory_space<vmem>>, %arg5: memref<1x24x128xbf16, #tpu.memory_space<vmem>>) attributes {dimension_semantics = [#tpu.dimension_semantics<parallel>], iteration_bounds = array<i64: 2>, scalar_prefetch = 0 : i64, scratch_operands = 0 : i64, tpu.core_type = #tpu.core_type<tc>, window_params = [{transform_indices = @transform_0, window_bounds = array<i64: 1, 42, 128>}, {pipeline_mode = #tpu.pipeline_mode<synchronous>, transform_indices = @transform_1, window_bounds = array<i64: 9, 128, 128>}, {pipeline_mode = #tpu.pipeline_mode<synchronous>, transform_indices = @transform_2, window_bounds = array<i64: 1, 128>}, {transform_indices = @transform_3, window_bounds = array<i64: 1, 24, 128>}, {transform_indices = @transform_4, window_bounds = array<i64: 1, 24, 128>}]} {
    %cst = arith.constant 0.000000e+00 : f32
    %0 = vector.broadcast %cst : f32 to vector<24x128xf32>
    %c0 = arith.constant 0 : index
    %c0_0 = arith.constant 0 : index
    %c0_1 = arith.constant 0 : index
    %1 = vector.load %arg1[%c0, %c0_0, %c0_1] : memref<1x42x128xbf16, #tpu.memory_space<vmem>>, vector<1x24x128xbf16>
    %2 = vector.shape_cast %1 : vector<1x24x128xbf16> to vector<24x128xbf16>
    %c0_2 = arith.constant 0 : index
    %c0_3 = arith.constant 0 : index
    %c0_4 = arith.constant 0 : index
    %3 = vector.load %arg2[%c0_2, %c0_3, %c0_4] : memref<9x128x128xbf16, #tpu.memory_space<vmem>>, vector<1x128x128xbf16>
    %4 = vector.shape_cast %3 : vector<1x128x128xbf16> to vector<128x128xbf16>
    %cst_5 = arith.constant dense<0.000000e+00> : vector<24x128xf32>
    %5 = tpu.matmul %2, %4, %cst_5 {dimension_numbers = #tpu.dot_dimension_numbers<[1], [0], [0], [1], [0, 0, 1, 1], [], []>} : vector<24x128xbf16>, vector<128x128xbf16>, vector<24x128xf32> -> vector<24x128xf32>
    %6 = arith.addf %0, %5 : vector<24x128xf32>
    %c0_6 = arith.constant 0 : index
    %c1 = arith.constant 1 : index
    %c0_7 = arith.constant 0 : index
    %7 = vector.load %arg1[%c0_6, %c1, %c0_7] : memref<1x42x128xbf16, #tpu.memory_space<vmem>>, vector<1x24x128xbf16>
    %8 = vector.shape_cast %7 : vector<1x24x128xbf16> to vector<24x128xbf16>
    %c1_8 = arith.constant 1 : index
    %c0_9 = arith.constant 0 : index
    %c0_10 = arith.constant 0 : index
    %9 = vector.load %arg2[%c1_8, %c0_9, %c0_10] : memref<9x128x128xbf16, #tpu.memory_space<vmem>>, vector<1x128x128xbf16>
    %10 = vector.shape_cast %9 : vector<1x128x128xbf16> to vector<128x128xbf16>
    %cst_11 = arith.constant dense<0.000000e+00> : vector<24x128xf32>
    %11 = tpu.matmul %8, %10, %cst_11 {dimension_numbers = #tpu.dot_dimension_numbers<[1], [0], [0], [1], [0, 0, 1, 1], [], []>} : vector<24x128xbf16>, vector<128x128xbf16>, vector<24x128xf32> -> vector<24x128xf32>
    %12 = arith.addf %6, %11 : vector<24x128xf32>
    %c0_12 = arith.constant 0 : index
    %c2 = arith.constant 2 : index
    %c0_13 = arith.constant 0 : index
    %13 = vector.load %arg1[%c0_12, %c2, %c0_13] : memref<1x42x128xbf16, #tpu.memory_space<vmem>>, vector<1x24x128xbf16>
    %14 = vector.shape_cast %13 : vector<1x24x128xbf16> to vector<24x128xbf16>
    %c2_14 = arith.constant 2 : index
    %c0_15 = arith.constant 0 : index
    %c0_16 = arith.constant 0 : index
    %15 = vector.load %arg2[%c2_14, %c0_15, %c0_16] : memref<9x128x128xbf16, #tpu.memory_space<vmem>>, vector<1x128x128xbf16>
    %16 = vector.shape_cast %15 : vector<1x128x128xbf16> to vector<128x128xbf16>
    %cst_17 = arith.constant dense<0.000000e+00> : vector<24x128xf32>
    %17 = tpu.matmul %14, %16, %cst_17 {dimension_numbers = #tpu.dot_dimension_numbers<[1], [0], [0], [1], [0, 0, 1, 1], [], []>} : vector<24x128xbf16>, vector<128x128xbf16>, vector<24x128xf32> -> vector<24x128xf32>
    %18 = arith.addf %12, %17 : vector<24x128xf32>
    %c0_18 = arith.constant 0 : index
    %c6 = arith.constant 6 : index
    %c0_19 = arith.constant 0 : index
    %19 = vector.load %arg1[%c0_18, %c6, %c0_19] : memref<1x42x128xbf16, #tpu.memory_space<vmem>>, vector<1x24x128xbf16>
    %20 = vector.shape_cast %19 : vector<1x24x128xbf16> to vector<24x128xbf16>
    %c3 = arith.constant 3 : index
    %c0_20 = arith.constant 0 : index
    %c0_21 = arith.constant 0 : index
    %21 = vector.load %arg2[%c3, %c0_20, %c0_21] : memref<9x128x128xbf16, #tpu.memory_space<vmem>>, vector<1x128x128xbf16>
    %22 = vector.shape_cast %21 : vector<1x128x128xbf16> to vector<128x128xbf16>
    %cst_22 = arith.constant dense<0.000000e+00> : vector<24x128xf32>
    %23 = tpu.matmul %20, %22, %cst_22 {dimension_numbers = #tpu.dot_dimension_numbers<[1], [0], [0], [1], [0, 0, 1, 1], [], []>} : vector<24x128xbf16>, vector<128x128xbf16>, vector<24x128xf32> -> vector<24x128xf32>
    %24 = arith.addf %18, %23 : vector<24x128xf32>
    %c0_23 = arith.constant 0 : index
    %c7 = arith.constant 7 : index
    %c0_24 = arith.constant 0 : index
    %25 = vector.load %arg1[%c0_23, %c7, %c0_24] : memref<1x42x128xbf16, #tpu.memory_space<vmem>>, vector<1x24x128xbf16>
    %26 = vector.shape_cast %25 : vector<1x24x128xbf16> to vector<24x128xbf16>
    %c4 = arith.constant 4 : index
    %c0_25 = arith.constant 0 : index
    %c0_26 = arith.constant 0 : index
    %27 = vector.load %arg2[%c4, %c0_25, %c0_26] : memref<9x128x128xbf16, #tpu.memory_space<vmem>>, vector<1x128x128xbf16>
    %28 = vector.shape_cast %27 : vector<1x128x128xbf16> to vector<128x128xbf16>
    %cst_27 = arith.constant dense<0.000000e+00> : vector<24x128xf32>
    %29 = tpu.matmul %26, %28, %cst_27 {dimension_numbers = #tpu.dot_dimension_numbers<[1], [0], [0], [1], [0, 0, 1, 1], [], []>} : vector<24x128xbf16>, vector<128x128xbf16>, vector<24x128xf32> -> vector<24x128xf32>
    %30 = arith.addf %24, %29 : vector<24x128xf32>
    %c0_28 = arith.constant 0 : index
    %c8 = arith.constant 8 : index
    %c0_29 = arith.constant 0 : index
    %31 = vector.load %arg1[%c0_28, %c8, %c0_29] : memref<1x42x128xbf16, #tpu.memory_space<vmem>>, vector<1x24x128xbf16>
    %32 = vector.shape_cast %31 : vector<1x24x128xbf16> to vector<24x128xbf16>
    %c5 = arith.constant 5 : index
    %c0_30 = arith.constant 0 : index
    %c0_31 = arith.constant 0 : index
    %33 = vector.load %arg2[%c5, %c0_30, %c0_31] : memref<9x128x128xbf16, #tpu.memory_space<vmem>>, vector<1x128x128xbf16>
    %34 = vector.shape_cast %33 : vector<1x128x128xbf16> to vector<128x128xbf16>
    %cst_32 = arith.constant dense<0.000000e+00> : vector<24x128xf32>
    %35 = tpu.matmul %32, %34, %cst_32 {dimension_numbers = #tpu.dot_dimension_numbers<[1], [0], [0], [1], [0, 0, 1, 1], [], []>} : vector<24x128xbf16>, vector<128x128xbf16>, vector<24x128xf32> -> vector<24x128xf32>
    %36 = arith.addf %30, %35 : vector<24x128xf32>
    %c0_33 = arith.constant 0 : index
    %c12 = arith.constant 12 : index
    %c0_34 = arith.constant 0 : index
    %37 = vector.load %arg1[%c0_33, %c12, %c0_34] : memref<1x42x128xbf16, #tpu.memory_space<vmem>>, vector<1x24x128xbf16>
    %38 = vector.shape_cast %37 : vector<1x24x128xbf16> to vector<24x128xbf16>
    %c6_35 = arith.constant 6 : index
    %c0_36 = arith.constant 0 : index
    %c0_37 = arith.constant 0 : index
    %39 = vector.load %arg2[%c6_35, %c0_36, %c0_37] : memref<9x128x128xbf16, #tpu.memory_space<vmem>>, vector<1x128x128xbf16>
    %40 = vector.shape_cast %39 : vector<1x128x128xbf16> to vector<128x128xbf16>
    %cst_38 = arith.constant dense<0.000000e+00> : vector<24x128xf32>
    %41 = tpu.matmul %38, %40, %cst_38 {dimension_numbers = #tpu.dot_dimension_numbers<[1], [0], [0], [1], [0, 0, 1, 1], [], []>} : vector<24x128xbf16>, vector<128x128xbf16>, vector<24x128xf32> -> vector<24x128xf32>
    %42 = arith.addf %36, %41 : vector<24x128xf32>
    %c0_39 = arith.constant 0 : index
    %c13 = arith.constant 13 : index
    %c0_40 = arith.constant 0 : index
    %43 = vector.load %arg1[%c0_39, %c13, %c0_40] : memref<1x42x128xbf16, #tpu.memory_space<vmem>>, vector<1x24x128xbf16>
    %44 = vector.shape_cast %43 : vector<1x24x128xbf16> to vector<24x128xbf16>
    %c7_41 = arith.constant 7 : index
    %c0_42 = arith.constant 0 : index
    %c0_43 = arith.constant 0 : index
    %45 = vector.load %arg2[%c7_41, %c0_42, %c0_43] : memref<9x128x128xbf16, #tpu.memory_space<vmem>>, vector<1x128x128xbf16>
    %46 = vector.shape_cast %45 : vector<1x128x128xbf16> to vector<128x128xbf16>
    %cst_44 = arith.constant dense<0.000000e+00> : vector<24x128xf32>
    %47 = tpu.matmul %44, %46, %cst_44 {dimension_numbers = #tpu.dot_dimension_numbers<[1], [0], [0], [1], [0, 0, 1, 1], [], []>} : vector<24x128xbf16>, vector<128x128xbf16>, vector<24x128xf32> -> vector<24x128xf32>
    %48 = arith.addf %42, %47 : vector<24x128xf32>
    %c0_45 = arith.constant 0 : index
    %c14 = arith.constant 14 : index
    %c0_46 = arith.constant 0 : index
    %49 = vector.load %arg1[%c0_45, %c14, %c0_46] : memref<1x42x128xbf16, #tpu.memory_space<vmem>>, vector<1x24x128xbf16>
    %50 = vector.shape_cast %49 : vector<1x24x128xbf16> to vector<24x128xbf16>
    %c8_47 = arith.constant 8 : index
    %c0_48 = arith.constant 0 : index
    %c0_49 = arith.constant 0 : index
    %51 = vector.load %arg2[%c8_47, %c0_48, %c0_49] : memref<9x128x128xbf16, #tpu.memory_space<vmem>>, vector<1x128x128xbf16>
    %52 = vector.shape_cast %51 : vector<1x128x128xbf16> to vector<128x128xbf16>
    %cst_50 = arith.constant dense<0.000000e+00> : vector<24x128xf32>
    %53 = tpu.matmul %50, %52, %cst_50 {dimension_numbers = #tpu.dot_dimension_numbers<[1], [0], [0], [1], [0, 0, 1, 1], [], []>} : vector<24x128xbf16>, vector<128x128xbf16>, vector<24x128xf32> -> vector<24x128xf32>
    %54 = arith.addf %48, %53 : vector<24x128xf32>
    %c0_51 = arith.constant 0 : index
    %c0_52 = arith.constant 0 : index
    %55 = vector.load %arg3[%c0_51, %c0_52] : memref<1x128xf32, #tpu.memory_space<vmem>>, vector<1x128xf32>
    %56 = vector.broadcast %55 : vector<1x128xf32> to vector<24x128xf32>
    %57 = arith.addf %54, %56 : vector<24x128xf32>
    %c0_53 = arith.constant 0 : index
    %c0_54 = arith.constant 0 : index
    %c0_55 = arith.constant 0 : index
    %58 = vector.load %arg4[%c0_53, %c0_54, %c0_55] : memref<1x24x128xbf16, #tpu.memory_space<vmem>>, vector<1x24x128xbf16>
    %59 = vector.shape_cast %58 : vector<1x24x128xbf16> to vector<24x128xbf16>
    %60 = arith.extf %59 : vector<24x128xbf16> to vector<24x128xf32>
    %61 = arith.addf %57, %60 : vector<24x128xf32>
    %cst_56 = arith.constant 0.000000e+00 : f32
    %62 = vector.broadcast %cst_56 : f32 to vector<24x128xf32>
    %63 = arith.maximumf %61, %62 : vector<24x128xf32>
    %64 = arith.truncf %63 : vector<24x128xf32> to vector<24x128xbf16>
    %c0_57 = arith.constant 0 : index
    %c0_58 = arith.constant 0 : index
    %c0_59 = arith.constant 0 : index
    %65 = vector.load %arg5[%c0_57, %c0_58, %c0_59] : memref<1x24x128xbf16, #tpu.memory_space<vmem>>, vector<1x24x128xbf16>
    %66 = vector.shape_cast %65 : vector<1x24x128xbf16> to vector<24x128xbf16>
    %67 = vector.shape_cast %64 : vector<24x128xbf16> to vector<1x24x128xbf16>
    tpu.vector_store %arg5[%c0_57, %c0_58, %c0_59], %67 {strides = array<i32>} : memref<1x24x128xbf16, #tpu.memory_space<vmem>>, vector<1x24x128xbf16>,
    return
  }
  func.func @transform_0(%arg0: i32) -> (i32, i32, i32) {
    %c0_i32 = arith.constant 0 : i32
    %c0_i32_0 = arith.constant 0 : i32
    %c0_i32_1 = arith.constant 0 : i32
    return %arg0, %c0_i32, %c0_i32_0 : i32, i32, i32
  }
  func.func @transform_1(%arg0: i32) -> (i32, i32, i32) {
    %c0_i32 = arith.constant 0 : i32
    %c0_i32_0 = arith.constant 0 : i32
    %c0_i32_1 = arith.constant 0 : i32
    %c0_i32_2 = arith.constant 0 : i32
    return %c0_i32, %c0_i32_0, %c0_i32_1 : i32, i32, i32
  }
  func.func @transform_2(%arg0: i32) -> (i32, i32) {
    %c0_i32 = arith.constant 0 : i32
    %c0_i32_0 = arith.constant 0 : i32
    %c0_i32_1 = arith.constant 0 : i32
    return %c0_i32, %c0_i32_0 : i32, i32
  }
  func.func @transform_3(%arg0: i32) -> (i32, i32, i32) {
    %c0_i32 = arith.constant 0 : i32
    %c0_i32_0 = arith.constant 0 : i32
    %c0_i32_1 = arith.constant 0 : i32
    return %arg0, %c0_i32, %c0_i32_0 : i32, i32, i32
  }
  func.func @transform_4(%arg0: i32) -> (i32, i32, i32) {
    %c0_i32 = arith.constant 0 : i32
    %c0_i32_0 = arith.constant 0 : i32
    %c0_i32_1 = arith.constant 0 : i32
    return %arg0, %c0_i32, %c0_i32_0 : i32, i32, i32
  }
}

module attributes {stable_mosaic.version = 11 : i64} {
  func.func @_matmul_bias_act_kernel(%arg0: i32, %arg1: i32, %arg2: memref<8x1152xbf16, #tpu.memory_space<vmem>>, %arg3: memref<1152x256xbf16, #tpu.memory_space<vmem>>, %arg4: memref<1x256xf32, #tpu.memory_space<vmem>>, %arg5: memref<8x256xbf16, #tpu.memory_space<vmem>>, %arg6: memref<8x256xf32, #tpu.memory_space<vmem>>) attributes {dimension_semantics = [#tpu.dimension_semantics<parallel>, #tpu.dimension_semantics<arbitrary>], iteration_bounds = array<i64: 1, 1>, scalar_prefetch = 0 : i64, scratch_operands = 1 : i64, tpu.core_type = #tpu.core_type<tc>, window_params = [{transform_indices = @transform_0, window_bounds = array<i64: 8, 1152>}, {transform_indices = @transform_1, window_bounds = array<i64: 1152, 256>}, {pipeline_mode = #tpu.pipeline_mode<synchronous>, transform_indices = @transform_2, window_bounds = array<i64: 1, 256>}, {transform_indices = @transform_3, window_bounds = array<i64: 8, 256>}]} {
    %c0_i32 = arith.constant 0 : i32
    %0 = arith.cmpi eq, %arg1, %c0_i32 : i32
    %1 = arith.extui %0 : i1 to i32
    %c0_i32_0 = arith.constant 0 : i32
    %2 = arith.cmpi ne, %1, %c0_i32_0 : i32
    scf.if %2 {
      %cst_10 = arith.constant 0.000000e+00 : f32
      %12 = vector.broadcast %cst_10 : f32 to vector<8x256xf32>
      %c0_11 = arith.constant 0 : index
      %c0_12 = arith.constant 0 : index
      %13 = vector.load %arg6[%c0_11, %c0_12] : memref<8x256xf32, #tpu.memory_space<vmem>>, vector<8x256xf32>
      tpu.vector_store %arg6[%c0_11, %c0_12], %12 {strides = array<i32>} : memref<8x256xf32, #tpu.memory_space<vmem>>, vector<8x256xf32>,
    } else {
    }
    %c0 = arith.constant 0 : index
    %c0_1 = arith.constant 0 : index
    %3 = vector.load %arg6[%c0, %c0_1] : memref<8x256xf32, #tpu.memory_space<vmem>>, vector<8x256xf32>
    %c0_2 = arith.constant 0 : index
    %c0_3 = arith.constant 0 : index
    %4 = vector.load %arg2[%c0_2, %c0_3] : memref<8x1152xbf16, #tpu.memory_space<vmem>>, vector<8x1152xbf16>
    %c0_4 = arith.constant 0 : index
    %c0_5 = arith.constant 0 : index
    %5 = vector.load %arg3[%c0_4, %c0_5] : memref<1152x256xbf16, #tpu.memory_space<vmem>>, vector<1152x256xbf16>
    %cst = arith.constant dense<0.000000e+00> : vector<8x256xf32>
    %6 = tpu.matmul %4, %5, %cst {dimension_numbers = #tpu.dot_dimension_numbers<[1], [0], [0], [1], [0, 0, 1, 1], [], []>} : vector<8x1152xbf16>, vector<1152x256xbf16>, vector<8x256xf32> -> vector<8x256xf32>
    %7 = arith.addf %3, %6 : vector<8x256xf32>
    %c0_6 = arith.constant 0 : index
    %c0_7 = arith.constant 0 : index
    %8 = vector.load %arg6[%c0_6, %c0_7] : memref<8x256xf32, #tpu.memory_space<vmem>>, vector<8x256xf32>
    tpu.vector_store %arg6[%c0_6, %c0_7], %7 {strides = array<i32>} : memref<8x256xf32, #tpu.memory_space<vmem>>, vector<8x256xf32>,
    %c0_i32_8 = arith.constant 0 : i32
    %9 = arith.cmpi eq, %arg1, %c0_i32_8 : i32
    %10 = arith.extui %9 : i1 to i32
    %c0_i32_9 = arith.constant 0 : i32
    %11 = arith.cmpi ne, %10, %c0_i32_9 : i32
    scf.if %11 {
      %c0_10 = arith.constant 0 : index
      %c0_11 = arith.constant 0 : index
      %12 = vector.load %arg6[%c0_10, %c0_11] : memref<8x256xf32, #tpu.memory_space<vmem>>, vector<8x256xf32>
      %c0_12 = arith.constant 0 : index
      %c0_13 = arith.constant 0 : index
      %13 = vector.load %arg4[%c0_12, %c0_13] : memref<1x256xf32, #tpu.memory_space<vmem>>, vector<1x256xf32>
      %14 = vector.broadcast %13 : vector<1x256xf32> to vector<8x256xf32>
      %15 = arith.addf %12, %14 : vector<8x256xf32>
      %16 = tpu.iota {dimensions = array<i32: 1>} : vector<8x256xi32>
      %c128_i32 = arith.constant 128 : i32
      %17 = vector.broadcast %c128_i32 : i32 to vector<8x256xi32>
      %18 = arith.cmpi slt, %16, %17 : vector<8x256xi32>
      %cst_14 = arith.constant 0.000000e+00 : f32
      %19 = vector.broadcast %cst_14 : f32 to vector<8x256xf32>
      %20 = arith.maximumf %15, %19 : vector<8x256xf32>
      %21 = arith.select %18, %20, %15 : vector<8x256xi1>, vector<8x256xf32>
      %22 = arith.truncf %21 : vector<8x256xf32> to vector<8x256xbf16>
      %c0_15 = arith.constant 0 : index
      %c0_16 = arith.constant 0 : index
      %23 = vector.load %arg5[%c0_15, %c0_16] : memref<8x256xbf16, #tpu.memory_space<vmem>>, vector<8x256xbf16>
      tpu.vector_store %arg5[%c0_15, %c0_16], %22 {strides = array<i32>} : memref<8x256xbf16, #tpu.memory_space<vmem>>, vector<8x256xbf16>,
    } else {
    }
    return
  }
  func.func @transform_0(%arg0: i32, %arg1: i32) -> (i32, i32) {
    %c0_i32 = arith.constant 0 : i32
    return %arg0, %arg1 : i32, i32
  }
  func.func @transform_1(%arg0: i32, %arg1: i32) -> (i32, i32) {
    %c0_i32 = arith.constant 0 : i32
    %c0_i32_0 = arith.constant 0 : i32
    return %arg1, %c0_i32 : i32, i32
  }
  func.func @transform_2(%arg0: i32, %arg1: i32) -> (i32, i32) {
    %c0_i32 = arith.constant 0 : i32
    %c0_i32_0 = arith.constant 0 : i32
    %c0_i32_1 = arith.constant 0 : i32
    return %c0_i32, %c0_i32_0 : i32, i32
  }
  func.func @transform_3(%arg0: i32, %arg1: i32) -> (i32, i32) {
    %c0_i32 = arith.constant 0 : i32
    %c0_i32_0 = arith.constant 0 : i32
    return %arg0, %c0_i32 : i32, i32
  }
}

module attributes {stable_mosaic.version = 11 : i64} {
  func.func @_conv3x3_s1_kernel(%arg0: i32, %arg1: memref<1x20x128xbf16, #tpu.memory_space<vmem>>, %arg2: memref<9x128x128xbf16, #tpu.memory_space<vmem>>, %arg3: memref<1x128xf32, #tpu.memory_space<vmem>>, %arg4: memref<1x8x128xbf16, #tpu.memory_space<vmem>>, %arg5: memref<1x8x128xbf16, #tpu.memory_space<vmem>>) attributes {dimension_semantics = [#tpu.dimension_semantics<parallel>], iteration_bounds = array<i64: 2>, scalar_prefetch = 0 : i64, scratch_operands = 0 : i64, tpu.core_type = #tpu.core_type<tc>, window_params = [{transform_indices = @transform_0, window_bounds = array<i64: 1, 20, 128>}, {pipeline_mode = #tpu.pipeline_mode<synchronous>, transform_indices = @transform_1, window_bounds = array<i64: 9, 128, 128>}, {pipeline_mode = #tpu.pipeline_mode<synchronous>, transform_indices = @transform_2, window_bounds = array<i64: 1, 128>}, {transform_indices = @transform_3, window_bounds = array<i64: 1, 8, 128>}, {transform_indices = @transform_4, window_bounds = array<i64: 1, 8, 128>}]} {
    %cst = arith.constant 0.000000e+00 : f32
    %0 = vector.broadcast %cst : f32 to vector<8x128xf32>
    %c0 = arith.constant 0 : index
    %c0_0 = arith.constant 0 : index
    %c0_1 = arith.constant 0 : index
    %1 = vector.load %arg1[%c0, %c0_0, %c0_1] : memref<1x20x128xbf16, #tpu.memory_space<vmem>>, vector<1x8x128xbf16>
    %2 = vector.shape_cast %1 : vector<1x8x128xbf16> to vector<8x128xbf16>
    %c0_2 = arith.constant 0 : index
    %c0_3 = arith.constant 0 : index
    %c0_4 = arith.constant 0 : index
    %3 = vector.load %arg2[%c0_2, %c0_3, %c0_4] : memref<9x128x128xbf16, #tpu.memory_space<vmem>>, vector<1x128x128xbf16>
    %4 = vector.shape_cast %3 : vector<1x128x128xbf16> to vector<128x128xbf16>
    %cst_5 = arith.constant dense<0.000000e+00> : vector<8x128xf32>
    %5 = tpu.matmul %2, %4, %cst_5 {dimension_numbers = #tpu.dot_dimension_numbers<[1], [0], [0], [1], [0, 0, 1, 1], [], []>} : vector<8x128xbf16>, vector<128x128xbf16>, vector<8x128xf32> -> vector<8x128xf32>
    %6 = arith.addf %0, %5 : vector<8x128xf32>
    %c0_6 = arith.constant 0 : index
    %c1 = arith.constant 1 : index
    %c0_7 = arith.constant 0 : index
    %7 = vector.load %arg1[%c0_6, %c1, %c0_7] : memref<1x20x128xbf16, #tpu.memory_space<vmem>>, vector<1x8x128xbf16>
    %8 = vector.shape_cast %7 : vector<1x8x128xbf16> to vector<8x128xbf16>
    %c1_8 = arith.constant 1 : index
    %c0_9 = arith.constant 0 : index
    %c0_10 = arith.constant 0 : index
    %9 = vector.load %arg2[%c1_8, %c0_9, %c0_10] : memref<9x128x128xbf16, #tpu.memory_space<vmem>>, vector<1x128x128xbf16>
    %10 = vector.shape_cast %9 : vector<1x128x128xbf16> to vector<128x128xbf16>
    %cst_11 = arith.constant dense<0.000000e+00> : vector<8x128xf32>
    %11 = tpu.matmul %8, %10, %cst_11 {dimension_numbers = #tpu.dot_dimension_numbers<[1], [0], [0], [1], [0, 0, 1, 1], [], []>} : vector<8x128xbf16>, vector<128x128xbf16>, vector<8x128xf32> -> vector<8x128xf32>
    %12 = arith.addf %6, %11 : vector<8x128xf32>
    %c0_12 = arith.constant 0 : index
    %c2 = arith.constant 2 : index
    %c0_13 = arith.constant 0 : index
    %13 = vector.load %arg1[%c0_12, %c2, %c0_13] : memref<1x20x128xbf16, #tpu.memory_space<vmem>>, vector<1x8x128xbf16>
    %14 = vector.shape_cast %13 : vector<1x8x128xbf16> to vector<8x128xbf16>
    %c2_14 = arith.constant 2 : index
    %c0_15 = arith.constant 0 : index
    %c0_16 = arith.constant 0 : index
    %15 = vector.load %arg2[%c2_14, %c0_15, %c0_16] : memref<9x128x128xbf16, #tpu.memory_space<vmem>>, vector<1x128x128xbf16>
    %16 = vector.shape_cast %15 : vector<1x128x128xbf16> to vector<128x128xbf16>
    %cst_17 = arith.constant dense<0.000000e+00> : vector<8x128xf32>
    %17 = tpu.matmul %14, %16, %cst_17 {dimension_numbers = #tpu.dot_dimension_numbers<[1], [0], [0], [1], [0, 0, 1, 1], [], []>} : vector<8x128xbf16>, vector<128x128xbf16>, vector<8x128xf32> -> vector<8x128xf32>
    %18 = arith.addf %12, %17 : vector<8x128xf32>
    %c0_18 = arith.constant 0 : index
    %c4 = arith.constant 4 : index
    %c0_19 = arith.constant 0 : index
    %19 = vector.load %arg1[%c0_18, %c4, %c0_19] : memref<1x20x128xbf16, #tpu.memory_space<vmem>>, vector<1x8x128xbf16>
    %20 = vector.shape_cast %19 : vector<1x8x128xbf16> to vector<8x128xbf16>
    %c3 = arith.constant 3 : index
    %c0_20 = arith.constant 0 : index
    %c0_21 = arith.constant 0 : index
    %21 = vector.load %arg2[%c3, %c0_20, %c0_21] : memref<9x128x128xbf16, #tpu.memory_space<vmem>>, vector<1x128x128xbf16>
    %22 = vector.shape_cast %21 : vector<1x128x128xbf16> to vector<128x128xbf16>
    %cst_22 = arith.constant dense<0.000000e+00> : vector<8x128xf32>
    %23 = tpu.matmul %20, %22, %cst_22 {dimension_numbers = #tpu.dot_dimension_numbers<[1], [0], [0], [1], [0, 0, 1, 1], [], []>} : vector<8x128xbf16>, vector<128x128xbf16>, vector<8x128xf32> -> vector<8x128xf32>
    %24 = arith.addf %18, %23 : vector<8x128xf32>
    %c0_23 = arith.constant 0 : index
    %c5 = arith.constant 5 : index
    %c0_24 = arith.constant 0 : index
    %25 = vector.load %arg1[%c0_23, %c5, %c0_24] : memref<1x20x128xbf16, #tpu.memory_space<vmem>>, vector<1x8x128xbf16>
    %26 = vector.shape_cast %25 : vector<1x8x128xbf16> to vector<8x128xbf16>
    %c4_25 = arith.constant 4 : index
    %c0_26 = arith.constant 0 : index
    %c0_27 = arith.constant 0 : index
    %27 = vector.load %arg2[%c4_25, %c0_26, %c0_27] : memref<9x128x128xbf16, #tpu.memory_space<vmem>>, vector<1x128x128xbf16>
    %28 = vector.shape_cast %27 : vector<1x128x128xbf16> to vector<128x128xbf16>
    %cst_28 = arith.constant dense<0.000000e+00> : vector<8x128xf32>
    %29 = tpu.matmul %26, %28, %cst_28 {dimension_numbers = #tpu.dot_dimension_numbers<[1], [0], [0], [1], [0, 0, 1, 1], [], []>} : vector<8x128xbf16>, vector<128x128xbf16>, vector<8x128xf32> -> vector<8x128xf32>
    %30 = arith.addf %24, %29 : vector<8x128xf32>
    %c0_29 = arith.constant 0 : index
    %c6 = arith.constant 6 : index
    %c0_30 = arith.constant 0 : index
    %31 = vector.load %arg1[%c0_29, %c6, %c0_30] : memref<1x20x128xbf16, #tpu.memory_space<vmem>>, vector<1x8x128xbf16>
    %32 = vector.shape_cast %31 : vector<1x8x128xbf16> to vector<8x128xbf16>
    %c5_31 = arith.constant 5 : index
    %c0_32 = arith.constant 0 : index
    %c0_33 = arith.constant 0 : index
    %33 = vector.load %arg2[%c5_31, %c0_32, %c0_33] : memref<9x128x128xbf16, #tpu.memory_space<vmem>>, vector<1x128x128xbf16>
    %34 = vector.shape_cast %33 : vector<1x128x128xbf16> to vector<128x128xbf16>
    %cst_34 = arith.constant dense<0.000000e+00> : vector<8x128xf32>
    %35 = tpu.matmul %32, %34, %cst_34 {dimension_numbers = #tpu.dot_dimension_numbers<[1], [0], [0], [1], [0, 0, 1, 1], [], []>} : vector<8x128xbf16>, vector<128x128xbf16>, vector<8x128xf32> -> vector<8x128xf32>
    %36 = arith.addf %30, %35 : vector<8x128xf32>
    %c0_35 = arith.constant 0 : index
    %c8 = arith.constant 8 : index
    %c0_36 = arith.constant 0 : index
    %37 = vector.load %arg1[%c0_35, %c8, %c0_36] : memref<1x20x128xbf16, #tpu.memory_space<vmem>>, vector<1x8x128xbf16>
    %38 = vector.shape_cast %37 : vector<1x8x128xbf16> to vector<8x128xbf16>
    %c6_37 = arith.constant 6 : index
    %c0_38 = arith.constant 0 : index
    %c0_39 = arith.constant 0 : index
    %39 = vector.load %arg2[%c6_37, %c0_38, %c0_39] : memref<9x128x128xbf16, #tpu.memory_space<vmem>>, vector<1x128x128xbf16>
    %40 = vector.shape_cast %39 : vector<1x128x128xbf16> to vector<128x128xbf16>
    %cst_40 = arith.constant dense<0.000000e+00> : vector<8x128xf32>
    %41 = tpu.matmul %38, %40, %cst_40 {dimension_numbers = #tpu.dot_dimension_numbers<[1], [0], [0], [1], [0, 0, 1, 1], [], []>} : vector<8x128xbf16>, vector<128x128xbf16>, vector<8x128xf32> -> vector<8x128xf32>
    %42 = arith.addf %36, %41 : vector<8x128xf32>
    %c0_41 = arith.constant 0 : index
    %c9 = arith.constant 9 : index
    %c0_42 = arith.constant 0 : index
    %43 = vector.load %arg1[%c0_41, %c9, %c0_42] : memref<1x20x128xbf16, #tpu.memory_space<vmem>>, vector<1x8x128xbf16>
    %44 = vector.shape_cast %43 : vector<1x8x128xbf16> to vector<8x128xbf16>
    %c7 = arith.constant 7 : index
    %c0_43 = arith.constant 0 : index
    %c0_44 = arith.constant 0 : index
    %45 = vector.load %arg2[%c7, %c0_43, %c0_44] : memref<9x128x128xbf16, #tpu.memory_space<vmem>>, vector<1x128x128xbf16>
    %46 = vector.shape_cast %45 : vector<1x128x128xbf16> to vector<128x128xbf16>
    %cst_45 = arith.constant dense<0.000000e+00> : vector<8x128xf32>
    %47 = tpu.matmul %44, %46, %cst_45 {dimension_numbers = #tpu.dot_dimension_numbers<[1], [0], [0], [1], [0, 0, 1, 1], [], []>} : vector<8x128xbf16>, vector<128x128xbf16>, vector<8x128xf32> -> vector<8x128xf32>
    %48 = arith.addf %42, %47 : vector<8x128xf32>
    %c0_46 = arith.constant 0 : index
    %c10 = arith.constant 10 : index
    %c0_47 = arith.constant 0 : index
    %49 = vector.load %arg1[%c0_46, %c10, %c0_47] : memref<1x20x128xbf16, #tpu.memory_space<vmem>>, vector<1x8x128xbf16>
    %50 = vector.shape_cast %49 : vector<1x8x128xbf16> to vector<8x128xbf16>
    %c8_48 = arith.constant 8 : index
    %c0_49 = arith.constant 0 : index
    %c0_50 = arith.constant 0 : index
    %51 = vector.load %arg2[%c8_48, %c0_49, %c0_50] : memref<9x128x128xbf16, #tpu.memory_space<vmem>>, vector<1x128x128xbf16>
    %52 = vector.shape_cast %51 : vector<1x128x128xbf16> to vector<128x128xbf16>
    %cst_51 = arith.constant dense<0.000000e+00> : vector<8x128xf32>
    %53 = tpu.matmul %50, %52, %cst_51 {dimension_numbers = #tpu.dot_dimension_numbers<[1], [0], [0], [1], [0, 0, 1, 1], [], []>} : vector<8x128xbf16>, vector<128x128xbf16>, vector<8x128xf32> -> vector<8x128xf32>
    %54 = arith.addf %48, %53 : vector<8x128xf32>
    %c0_52 = arith.constant 0 : index
    %c0_53 = arith.constant 0 : index
    %55 = vector.load %arg3[%c0_52, %c0_53] : memref<1x128xf32, #tpu.memory_space<vmem>>, vector<1x128xf32>
    %56 = vector.broadcast %55 : vector<1x128xf32> to vector<8x128xf32>
    %57 = arith.addf %54, %56 : vector<8x128xf32>
    %c0_54 = arith.constant 0 : index
    %c0_55 = arith.constant 0 : index
    %c0_56 = arith.constant 0 : index
    %58 = vector.load %arg4[%c0_54, %c0_55, %c0_56] : memref<1x8x128xbf16, #tpu.memory_space<vmem>>, vector<1x8x128xbf16>
    %59 = vector.shape_cast %58 : vector<1x8x128xbf16> to vector<8x128xbf16>
    %60 = arith.extf %59 : vector<8x128xbf16> to vector<8x128xf32>
    %61 = arith.addf %57, %60 : vector<8x128xf32>
    %cst_57 = arith.constant 0.000000e+00 : f32
    %62 = vector.broadcast %cst_57 : f32 to vector<8x128xf32>
    %63 = arith.maximumf %61, %62 : vector<8x128xf32>
    %64 = arith.truncf %63 : vector<8x128xf32> to vector<8x128xbf16>
    %c0_58 = arith.constant 0 : index
    %c0_59 = arith.constant 0 : index
    %c0_60 = arith.constant 0 : index
    %65 = vector.load %arg5[%c0_58, %c0_59, %c0_60] : memref<1x8x128xbf16, #tpu.memory_space<vmem>>, vector<1x8x128xbf16>
    %66 = vector.shape_cast %65 : vector<1x8x128xbf16> to vector<8x128xbf16>
    %67 = vector.shape_cast %64 : vector<8x128xbf16> to vector<1x8x128xbf16>
    tpu.vector_store %arg5[%c0_58, %c0_59, %c0_60], %67 {strides = array<i32>} : memref<1x8x128xbf16, #tpu.memory_space<vmem>>, vector<1x8x128xbf16>,
    return
  }
  func.func @transform_0(%arg0: i32) -> (i32, i32, i32) {
    %c0_i32 = arith.constant 0 : i32
    %c0_i32_0 = arith.constant 0 : i32
    %c0_i32_1 = arith.constant 0 : i32
    return %arg0, %c0_i32, %c0_i32_0 : i32, i32, i32
  }
  func.func @transform_1(%arg0: i32) -> (i32, i32, i32) {
    %c0_i32 = arith.constant 0 : i32
    %c0_i32_0 = arith.constant 0 : i32
    %c0_i32_1 = arith.constant 0 : i32
    %c0_i32_2 = arith.constant 0 : i32
    return %c0_i32, %c0_i32_0, %c0_i32_1 : i32, i32, i32
  }
  func.func @transform_2(%arg0: i32) -> (i32, i32) {
    %c0_i32 = arith.constant 0 : i32
    %c0_i32_0 = arith.constant 0 : i32
    %c0_i32_1 = arith.constant 0 : i32
    return %c0_i32, %c0_i32_0 : i32, i32
  }
  func.func @transform_3(%arg0: i32) -> (i32, i32, i32) {
    %c0_i32 = arith.constant 0 : i32
    %c0_i32_0 = arith.constant 0 : i32
    %c0_i32_1 = arith.constant 0 : i32
    return %arg0, %c0_i32, %c0_i32_0 : i32, i32, i32
  }
  func.func @transform_4(%arg0: i32) -> (i32, i32, i32) {
    %c0_i32 = arith.constant 0 : i32
    %c0_i32_0 = arith.constant 0 : i32
    %c0_i32_1 = arith.constant 0 : i32
    return %arg0, %c0_i32, %c0_i32_0 : i32, i32, i32
  }
}

module attributes {stable_mosaic.version = 11 : i64} {
  func.func @_conv3x3_s1_kernel(%arg0: i32, %arg1: memref<1x20x128xbf16, #tpu.memory_space<vmem>>, %arg2: memref<9x128x128xbf16, #tpu.memory_space<vmem>>, %arg3: memref<1x128xf32, #tpu.memory_space<vmem>>, %arg4: memref<1x8x128xbf16, #tpu.memory_space<vmem>>) attributes {dimension_semantics = [#tpu.dimension_semantics<parallel>], iteration_bounds = array<i64: 2>, scalar_prefetch = 0 : i64, scratch_operands = 0 : i64, tpu.core_type = #tpu.core_type<tc>, window_params = [{transform_indices = @transform_0, window_bounds = array<i64: 1, 20, 128>}, {pipeline_mode = #tpu.pipeline_mode<synchronous>, transform_indices = @transform_1, window_bounds = array<i64: 9, 128, 128>}, {pipeline_mode = #tpu.pipeline_mode<synchronous>, transform_indices = @transform_2, window_bounds = array<i64: 1, 128>}, {transform_indices = @transform_3, window_bounds = array<i64: 1, 8, 128>}]} {
    %cst = arith.constant 0.000000e+00 : f32
    %0 = vector.broadcast %cst : f32 to vector<8x128xf32>
    %c0 = arith.constant 0 : index
    %c0_0 = arith.constant 0 : index
    %c0_1 = arith.constant 0 : index
    %1 = vector.load %arg1[%c0, %c0_0, %c0_1] : memref<1x20x128xbf16, #tpu.memory_space<vmem>>, vector<1x8x128xbf16>
    %2 = vector.shape_cast %1 : vector<1x8x128xbf16> to vector<8x128xbf16>
    %c0_2 = arith.constant 0 : index
    %c0_3 = arith.constant 0 : index
    %c0_4 = arith.constant 0 : index
    %3 = vector.load %arg2[%c0_2, %c0_3, %c0_4] : memref<9x128x128xbf16, #tpu.memory_space<vmem>>, vector<1x128x128xbf16>
    %4 = vector.shape_cast %3 : vector<1x128x128xbf16> to vector<128x128xbf16>
    %cst_5 = arith.constant dense<0.000000e+00> : vector<8x128xf32>
    %5 = tpu.matmul %2, %4, %cst_5 {dimension_numbers = #tpu.dot_dimension_numbers<[1], [0], [0], [1], [0, 0, 1, 1], [], []>} : vector<8x128xbf16>, vector<128x128xbf16>, vector<8x128xf32> -> vector<8x128xf32>
    %6 = arith.addf %0, %5 : vector<8x128xf32>
    %c0_6 = arith.constant 0 : index
    %c1 = arith.constant 1 : index
    %c0_7 = arith.constant 0 : index
    %7 = vector.load %arg1[%c0_6, %c1, %c0_7] : memref<1x20x128xbf16, #tpu.memory_space<vmem>>, vector<1x8x128xbf16>
    %8 = vector.shape_cast %7 : vector<1x8x128xbf16> to vector<8x128xbf16>
    %c1_8 = arith.constant 1 : index
    %c0_9 = arith.constant 0 : index
    %c0_10 = arith.constant 0 : index
    %9 = vector.load %arg2[%c1_8, %c0_9, %c0_10] : memref<9x128x128xbf16, #tpu.memory_space<vmem>>, vector<1x128x128xbf16>
    %10 = vector.shape_cast %9 : vector<1x128x128xbf16> to vector<128x128xbf16>
    %cst_11 = arith.constant dense<0.000000e+00> : vector<8x128xf32>
    %11 = tpu.matmul %8, %10, %cst_11 {dimension_numbers = #tpu.dot_dimension_numbers<[1], [0], [0], [1], [0, 0, 1, 1], [], []>} : vector<8x128xbf16>, vector<128x128xbf16>, vector<8x128xf32> -> vector<8x128xf32>
    %12 = arith.addf %6, %11 : vector<8x128xf32>
    %c0_12 = arith.constant 0 : index
    %c2 = arith.constant 2 : index
    %c0_13 = arith.constant 0 : index
    %13 = vector.load %arg1[%c0_12, %c2, %c0_13] : memref<1x20x128xbf16, #tpu.memory_space<vmem>>, vector<1x8x128xbf16>
    %14 = vector.shape_cast %13 : vector<1x8x128xbf16> to vector<8x128xbf16>
    %c2_14 = arith.constant 2 : index
    %c0_15 = arith.constant 0 : index
    %c0_16 = arith.constant 0 : index
    %15 = vector.load %arg2[%c2_14, %c0_15, %c0_16] : memref<9x128x128xbf16, #tpu.memory_space<vmem>>, vector<1x128x128xbf16>
    %16 = vector.shape_cast %15 : vector<1x128x128xbf16> to vector<128x128xbf16>
    %cst_17 = arith.constant dense<0.000000e+00> : vector<8x128xf32>
    %17 = tpu.matmul %14, %16, %cst_17 {dimension_numbers = #tpu.dot_dimension_numbers<[1], [0], [0], [1], [0, 0, 1, 1], [], []>} : vector<8x128xbf16>, vector<128x128xbf16>, vector<8x128xf32> -> vector<8x128xf32>
    %18 = arith.addf %12, %17 : vector<8x128xf32>
    %c0_18 = arith.constant 0 : index
    %c4 = arith.constant 4 : index
    %c0_19 = arith.constant 0 : index
    %19 = vector.load %arg1[%c0_18, %c4, %c0_19] : memref<1x20x128xbf16, #tpu.memory_space<vmem>>, vector<1x8x128xbf16>
    %20 = vector.shape_cast %19 : vector<1x8x128xbf16> to vector<8x128xbf16>
    %c3 = arith.constant 3 : index
    %c0_20 = arith.constant 0 : index
    %c0_21 = arith.constant 0 : index
    %21 = vector.load %arg2[%c3, %c0_20, %c0_21] : memref<9x128x128xbf16, #tpu.memory_space<vmem>>, vector<1x128x128xbf16>
    %22 = vector.shape_cast %21 : vector<1x128x128xbf16> to vector<128x128xbf16>
    %cst_22 = arith.constant dense<0.000000e+00> : vector<8x128xf32>
    %23 = tpu.matmul %20, %22, %cst_22 {dimension_numbers = #tpu.dot_dimension_numbers<[1], [0], [0], [1], [0, 0, 1, 1], [], []>} : vector<8x128xbf16>, vector<128x128xbf16>, vector<8x128xf32> -> vector<8x128xf32>
    %24 = arith.addf %18, %23 : vector<8x128xf32>
    %c0_23 = arith.constant 0 : index
    %c5 = arith.constant 5 : index
    %c0_24 = arith.constant 0 : index
    %25 = vector.load %arg1[%c0_23, %c5, %c0_24] : memref<1x20x128xbf16, #tpu.memory_space<vmem>>, vector<1x8x128xbf16>
    %26 = vector.shape_cast %25 : vector<1x8x128xbf16> to vector<8x128xbf16>
    %c4_25 = arith.constant 4 : index
    %c0_26 = arith.constant 0 : index
    %c0_27 = arith.constant 0 : index
    %27 = vector.load %arg2[%c4_25, %c0_26, %c0_27] : memref<9x128x128xbf16, #tpu.memory_space<vmem>>, vector<1x128x128xbf16>
    %28 = vector.shape_cast %27 : vector<1x128x128xbf16> to vector<128x128xbf16>
    %cst_28 = arith.constant dense<0.000000e+00> : vector<8x128xf32>
    %29 = tpu.matmul %26, %28, %cst_28 {dimension_numbers = #tpu.dot_dimension_numbers<[1], [0], [0], [1], [0, 0, 1, 1], [], []>} : vector<8x128xbf16>, vector<128x128xbf16>, vector<8x128xf32> -> vector<8x128xf32>
    %30 = arith.addf %24, %29 : vector<8x128xf32>
    %c0_29 = arith.constant 0 : index
    %c6 = arith.constant 6 : index
    %c0_30 = arith.constant 0 : index
    %31 = vector.load %arg1[%c0_29, %c6, %c0_30] : memref<1x20x128xbf16, #tpu.memory_space<vmem>>, vector<1x8x128xbf16>
    %32 = vector.shape_cast %31 : vector<1x8x128xbf16> to vector<8x128xbf16>
    %c5_31 = arith.constant 5 : index
    %c0_32 = arith.constant 0 : index
    %c0_33 = arith.constant 0 : index
    %33 = vector.load %arg2[%c5_31, %c0_32, %c0_33] : memref<9x128x128xbf16, #tpu.memory_space<vmem>>, vector<1x128x128xbf16>
    %34 = vector.shape_cast %33 : vector<1x128x128xbf16> to vector<128x128xbf16>
    %cst_34 = arith.constant dense<0.000000e+00> : vector<8x128xf32>
    %35 = tpu.matmul %32, %34, %cst_34 {dimension_numbers = #tpu.dot_dimension_numbers<[1], [0], [0], [1], [0, 0, 1, 1], [], []>} : vector<8x128xbf16>, vector<128x128xbf16>, vector<8x128xf32> -> vector<8x128xf32>
    %36 = arith.addf %30, %35 : vector<8x128xf32>
    %c0_35 = arith.constant 0 : index
    %c8 = arith.constant 8 : index
    %c0_36 = arith.constant 0 : index
    %37 = vector.load %arg1[%c0_35, %c8, %c0_36] : memref<1x20x128xbf16, #tpu.memory_space<vmem>>, vector<1x8x128xbf16>
    %38 = vector.shape_cast %37 : vector<1x8x128xbf16> to vector<8x128xbf16>
    %c6_37 = arith.constant 6 : index
    %c0_38 = arith.constant 0 : index
    %c0_39 = arith.constant 0 : index
    %39 = vector.load %arg2[%c6_37, %c0_38, %c0_39] : memref<9x128x128xbf16, #tpu.memory_space<vmem>>, vector<1x128x128xbf16>
    %40 = vector.shape_cast %39 : vector<1x128x128xbf16> to vector<128x128xbf16>
    %cst_40 = arith.constant dense<0.000000e+00> : vector<8x128xf32>
    %41 = tpu.matmul %38, %40, %cst_40 {dimension_numbers = #tpu.dot_dimension_numbers<[1], [0], [0], [1], [0, 0, 1, 1], [], []>} : vector<8x128xbf16>, vector<128x128xbf16>, vector<8x128xf32> -> vector<8x128xf32>
    %42 = arith.addf %36, %41 : vector<8x128xf32>
    %c0_41 = arith.constant 0 : index
    %c9 = arith.constant 9 : index
    %c0_42 = arith.constant 0 : index
    %43 = vector.load %arg1[%c0_41, %c9, %c0_42] : memref<1x20x128xbf16, #tpu.memory_space<vmem>>, vector<1x8x128xbf16>
    %44 = vector.shape_cast %43 : vector<1x8x128xbf16> to vector<8x128xbf16>
    %c7 = arith.constant 7 : index
    %c0_43 = arith.constant 0 : index
    %c0_44 = arith.constant 0 : index
    %45 = vector.load %arg2[%c7, %c0_43, %c0_44] : memref<9x128x128xbf16, #tpu.memory_space<vmem>>, vector<1x128x128xbf16>
    %46 = vector.shape_cast %45 : vector<1x128x128xbf16> to vector<128x128xbf16>
    %cst_45 = arith.constant dense<0.000000e+00> : vector<8x128xf32>
    %47 = tpu.matmul %44, %46, %cst_45 {dimension_numbers = #tpu.dot_dimension_numbers<[1], [0], [0], [1], [0, 0, 1, 1], [], []>} : vector<8x128xbf16>, vector<128x128xbf16>, vector<8x128xf32> -> vector<8x128xf32>
    %48 = arith.addf %42, %47 : vector<8x128xf32>
    %c0_46 = arith.constant 0 : index
    %c10 = arith.constant 10 : index
    %c0_47 = arith.constant 0 : index
    %49 = vector.load %arg1[%c0_46, %c10, %c0_47] : memref<1x20x128xbf16, #tpu.memory_space<vmem>>, vector<1x8x128xbf16>
    %50 = vector.shape_cast %49 : vector<1x8x128xbf16> to vector<8x128xbf16>
    %c8_48 = arith.constant 8 : index
    %c0_49 = arith.constant 0 : index
    %c0_50 = arith.constant 0 : index
    %51 = vector.load %arg2[%c8_48, %c0_49, %c0_50] : memref<9x128x128xbf16, #tpu.memory_space<vmem>>, vector<1x128x128xbf16>
    %52 = vector.shape_cast %51 : vector<1x128x128xbf16> to vector<128x128xbf16>
    %cst_51 = arith.constant dense<0.000000e+00> : vector<8x128xf32>
    %53 = tpu.matmul %50, %52, %cst_51 {dimension_numbers = #tpu.dot_dimension_numbers<[1], [0], [0], [1], [0, 0, 1, 1], [], []>} : vector<8x128xbf16>, vector<128x128xbf16>, vector<8x128xf32> -> vector<8x128xf32>
    %54 = arith.addf %48, %53 : vector<8x128xf32>
    %c0_52 = arith.constant 0 : index
    %c0_53 = arith.constant 0 : index
    %55 = vector.load %arg3[%c0_52, %c0_53] : memref<1x128xf32, #tpu.memory_space<vmem>>, vector<1x128xf32>
    %56 = vector.broadcast %55 : vector<1x128xf32> to vector<8x128xf32>
    %57 = arith.addf %54, %56 : vector<8x128xf32>
    %cst_54 = arith.constant 0.000000e+00 : f32
    %58 = vector.broadcast %cst_54 : f32 to vector<8x128xf32>
    %59 = arith.maximumf %57, %58 : vector<8x128xf32>
    %60 = arith.truncf %59 : vector<8x128xf32> to vector<8x128xbf16>
    %c0_55 = arith.constant 0 : index
    %c0_56 = arith.constant 0 : index
    %c0_57 = arith.constant 0 : index
    %61 = vector.load %arg4[%c0_55, %c0_56, %c0_57] : memref<1x8x128xbf16, #tpu.memory_space<vmem>>, vector<1x8x128xbf16>
    %62 = vector.shape_cast %61 : vector<1x8x128xbf16> to vector<8x128xbf16>
    %63 = vector.shape_cast %60 : vector<8x128xbf16> to vector<1x8x128xbf16>
    tpu.vector_store %arg4[%c0_55, %c0_56, %c0_57], %63 {strides = array<i32>} : memref<1x8x128xbf16, #tpu.memory_space<vmem>>, vector<1x8x128xbf16>,
    return
  }
  func.func @transform_0(%arg0: i32) -> (i32, i32, i32) {
    %c0_i32 = arith.constant 0 : i32
    %c0_i32_0 = arith.constant 0 : i32
    %c0_i32_1 = arith.constant 0 : i32
    return %arg0, %c0_i32, %c0_i32_0 : i32, i32, i32
  }
  func.func @transform_1(%arg0: i32) -> (i32, i32, i32) {
    %c0_i32 = arith.constant 0 : i32
    %c0_i32_0 = arith.constant 0 : i32
    %c0_i32_1 = arith.constant 0 : i32
    %c0_i32_2 = arith.constant 0 : i32
    return %c0_i32, %c0_i32_0, %c0_i32_1 : i32, i32, i32
  }
  func.func @transform_2(%arg0: i32) -> (i32, i32) {
    %c0_i32 = arith.constant 0 : i32
    %c0_i32_0 = arith.constant 0 : i32
    %c0_i32_1 = arith.constant 0 : i32
    return %c0_i32, %c0_i32_0 : i32, i32
  }
  func.func @transform_3(%arg0: i32) -> (i32, i32, i32) {
    %c0_i32 = arith.constant 0 : i32
    %c0_i32_0 = arith.constant 0 : i32
    %c0_i32_1 = arith.constant 0 : i32
    return %arg0, %c0_i32, %c0_i32_0 : i32, i32, i32
  }
}

module attributes {stable_mosaic.version = 11 : i64} {
  func.func @_conv3x3_s1_kernel(%arg0: i32, %arg1: memref<1x12x128xbf16, #tpu.memory_space<vmem>>, %arg2: memref<9x128x128xbf16, #tpu.memory_space<vmem>>, %arg3: memref<1x128xf32, #tpu.memory_space<vmem>>, %arg4: memref<1x3x128xbf16, #tpu.memory_space<vmem>>, %arg5: memref<1x3x128xbf16, #tpu.memory_space<vmem>>) attributes {dimension_semantics = [#tpu.dimension_semantics<parallel>], iteration_bounds = array<i64: 2>, scalar_prefetch = 0 : i64, scratch_operands = 0 : i64, tpu.core_type = #tpu.core_type<tc>, window_params = [{transform_indices = @transform_0, window_bounds = array<i64: 1, 12, 128>}, {pipeline_mode = #tpu.pipeline_mode<synchronous>, transform_indices = @transform_1, window_bounds = array<i64: 9, 128, 128>}, {pipeline_mode = #tpu.pipeline_mode<synchronous>, transform_indices = @transform_2, window_bounds = array<i64: 1, 128>}, {transform_indices = @transform_3, window_bounds = array<i64: 1, 3, 128>}, {transform_indices = @transform_4, window_bounds = array<i64: 1, 3, 128>}]} {
    %cst = arith.constant 0.000000e+00 : f32
    %0 = vector.broadcast %cst : f32 to vector<3x128xf32>
    %c0 = arith.constant 0 : index
    %c0_0 = arith.constant 0 : index
    %c0_1 = arith.constant 0 : index
    %1 = vector.load %arg1[%c0, %c0_0, %c0_1] : memref<1x12x128xbf16, #tpu.memory_space<vmem>>, vector<1x3x128xbf16>
    %2 = vector.shape_cast %1 : vector<1x3x128xbf16> to vector<3x128xbf16>
    %c0_2 = arith.constant 0 : index
    %c0_3 = arith.constant 0 : index
    %c0_4 = arith.constant 0 : index
    %3 = vector.load %arg2[%c0_2, %c0_3, %c0_4] : memref<9x128x128xbf16, #tpu.memory_space<vmem>>, vector<1x128x128xbf16>
    %4 = vector.shape_cast %3 : vector<1x128x128xbf16> to vector<128x128xbf16>
    %cst_5 = arith.constant dense<0.000000e+00> : vector<3x128xf32>
    %5 = tpu.matmul %2, %4, %cst_5 {dimension_numbers = #tpu.dot_dimension_numbers<[1], [0], [0], [1], [0, 0, 1, 1], [], []>} : vector<3x128xbf16>, vector<128x128xbf16>, vector<3x128xf32> -> vector<3x128xf32>
    %6 = arith.addf %0, %5 : vector<3x128xf32>
    %c0_6 = arith.constant 0 : index
    %c1 = arith.constant 1 : index
    %c0_7 = arith.constant 0 : index
    %7 = vector.load %arg1[%c0_6, %c1, %c0_7] : memref<1x12x128xbf16, #tpu.memory_space<vmem>>, vector<1x3x128xbf16>
    %8 = vector.shape_cast %7 : vector<1x3x128xbf16> to vector<3x128xbf16>
    %c1_8 = arith.constant 1 : index
    %c0_9 = arith.constant 0 : index
    %c0_10 = arith.constant 0 : index
    %9 = vector.load %arg2[%c1_8, %c0_9, %c0_10] : memref<9x128x128xbf16, #tpu.memory_space<vmem>>, vector<1x128x128xbf16>
    %10 = vector.shape_cast %9 : vector<1x128x128xbf16> to vector<128x128xbf16>
    %cst_11 = arith.constant dense<0.000000e+00> : vector<3x128xf32>
    %11 = tpu.matmul %8, %10, %cst_11 {dimension_numbers = #tpu.dot_dimension_numbers<[1], [0], [0], [1], [0, 0, 1, 1], [], []>} : vector<3x128xbf16>, vector<128x128xbf16>, vector<3x128xf32> -> vector<3x128xf32>
    %12 = arith.addf %6, %11 : vector<3x128xf32>
    %c0_12 = arith.constant 0 : index
    %c2 = arith.constant 2 : index
    %c0_13 = arith.constant 0 : index
    %13 = vector.load %arg1[%c0_12, %c2, %c0_13] : memref<1x12x128xbf16, #tpu.memory_space<vmem>>, vector<1x3x128xbf16>
    %14 = vector.shape_cast %13 : vector<1x3x128xbf16> to vector<3x128xbf16>
    %c2_14 = arith.constant 2 : index
    %c0_15 = arith.constant 0 : index
    %c0_16 = arith.constant 0 : index
    %15 = vector.load %arg2[%c2_14, %c0_15, %c0_16] : memref<9x128x128xbf16, #tpu.memory_space<vmem>>, vector<1x128x128xbf16>
    %16 = vector.shape_cast %15 : vector<1x128x128xbf16> to vector<128x128xbf16>
    %cst_17 = arith.constant dense<0.000000e+00> : vector<3x128xf32>
    %17 = tpu.matmul %14, %16, %cst_17 {dimension_numbers = #tpu.dot_dimension_numbers<[1], [0], [0], [1], [0, 0, 1, 1], [], []>} : vector<3x128xbf16>, vector<128x128xbf16>, vector<3x128xf32> -> vector<3x128xf32>
    %18 = arith.addf %12, %17 : vector<3x128xf32>
    %c0_18 = arith.constant 0 : index
    %c3 = arith.constant 3 : index
    %c0_19 = arith.constant 0 : index
    %19 = vector.load %arg1[%c0_18, %c3, %c0_19] : memref<1x12x128xbf16, #tpu.memory_space<vmem>>, vector<1x3x128xbf16>
    %20 = vector.shape_cast %19 : vector<1x3x128xbf16> to vector<3x128xbf16>
    %c3_20 = arith.constant 3 : index
    %c0_21 = arith.constant 0 : index
    %c0_22 = arith.constant 0 : index
    %21 = vector.load %arg2[%c3_20, %c0_21, %c0_22] : memref<9x128x128xbf16, #tpu.memory_space<vmem>>, vector<1x128x128xbf16>
    %22 = vector.shape_cast %21 : vector<1x128x128xbf16> to vector<128x128xbf16>
    %cst_23 = arith.constant dense<0.000000e+00> : vector<3x128xf32>
    %23 = tpu.matmul %20, %22, %cst_23 {dimension_numbers = #tpu.dot_dimension_numbers<[1], [0], [0], [1], [0, 0, 1, 1], [], []>} : vector<3x128xbf16>, vector<128x128xbf16>, vector<3x128xf32> -> vector<3x128xf32>
    %24 = arith.addf %18, %23 : vector<3x128xf32>
    %c0_24 = arith.constant 0 : index
    %c4 = arith.constant 4 : index
    %c0_25 = arith.constant 0 : index
    %25 = vector.load %arg1[%c0_24, %c4, %c0_25] : memref<1x12x128xbf16, #tpu.memory_space<vmem>>, vector<1x3x128xbf16>
    %26 = vector.shape_cast %25 : vector<1x3x128xbf16> to vector<3x128xbf16>
    %c4_26 = arith.constant 4 : index
    %c0_27 = arith.constant 0 : index
    %c0_28 = arith.constant 0 : index
    %27 = vector.load %arg2[%c4_26, %c0_27, %c0_28] : memref<9x128x128xbf16, #tpu.memory_space<vmem>>, vector<1x128x128xbf16>
    %28 = vector.shape_cast %27 : vector<1x128x128xbf16> to vector<128x128xbf16>
    %cst_29 = arith.constant dense<0.000000e+00> : vector<3x128xf32>
    %29 = tpu.matmul %26, %28, %cst_29 {dimension_numbers = #tpu.dot_dimension_numbers<[1], [0], [0], [1], [0, 0, 1, 1], [], []>} : vector<3x128xbf16>, vector<128x128xbf16>, vector<3x128xf32> -> vector<3x128xf32>
    %30 = arith.addf %24, %29 : vector<3x128xf32>
    %c0_30 = arith.constant 0 : index
    %c5 = arith.constant 5 : index
    %c0_31 = arith.constant 0 : index
    %31 = vector.load %arg1[%c0_30, %c5, %c0_31] : memref<1x12x128xbf16, #tpu.memory_space<vmem>>, vector<1x3x128xbf16>
    %32 = vector.shape_cast %31 : vector<1x3x128xbf16> to vector<3x128xbf16>
    %c5_32 = arith.constant 5 : index
    %c0_33 = arith.constant 0 : index
    %c0_34 = arith.constant 0 : index
    %33 = vector.load %arg2[%c5_32, %c0_33, %c0_34] : memref<9x128x128xbf16, #tpu.memory_space<vmem>>, vector<1x128x128xbf16>
    %34 = vector.shape_cast %33 : vector<1x128x128xbf16> to vector<128x128xbf16>
    %cst_35 = arith.constant dense<0.000000e+00> : vector<3x128xf32>
    %35 = tpu.matmul %32, %34, %cst_35 {dimension_numbers = #tpu.dot_dimension_numbers<[1], [0], [0], [1], [0, 0, 1, 1], [], []>} : vector<3x128xbf16>, vector<128x128xbf16>, vector<3x128xf32> -> vector<3x128xf32>
    %36 = arith.addf %30, %35 : vector<3x128xf32>
    %c0_36 = arith.constant 0 : index
    %c6 = arith.constant 6 : index
    %c0_37 = arith.constant 0 : index
    %37 = vector.load %arg1[%c0_36, %c6, %c0_37] : memref<1x12x128xbf16, #tpu.memory_space<vmem>>, vector<1x3x128xbf16>
    %38 = vector.shape_cast %37 : vector<1x3x128xbf16> to vector<3x128xbf16>
    %c6_38 = arith.constant 6 : index
    %c0_39 = arith.constant 0 : index
    %c0_40 = arith.constant 0 : index
    %39 = vector.load %arg2[%c6_38, %c0_39, %c0_40] : memref<9x128x128xbf16, #tpu.memory_space<vmem>>, vector<1x128x128xbf16>
    %40 = vector.shape_cast %39 : vector<1x128x128xbf16> to vector<128x128xbf16>
    %cst_41 = arith.constant dense<0.000000e+00> : vector<3x128xf32>
    %41 = tpu.matmul %38, %40, %cst_41 {dimension_numbers = #tpu.dot_dimension_numbers<[1], [0], [0], [1], [0, 0, 1, 1], [], []>} : vector<3x128xbf16>, vector<128x128xbf16>, vector<3x128xf32> -> vector<3x128xf32>
    %42 = arith.addf %36, %41 : vector<3x128xf32>
    %c0_42 = arith.constant 0 : index
    %c7 = arith.constant 7 : index
    %c0_43 = arith.constant 0 : index
    %43 = vector.load %arg1[%c0_42, %c7, %c0_43] : memref<1x12x128xbf16, #tpu.memory_space<vmem>>, vector<1x3x128xbf16>
    %44 = vector.shape_cast %43 : vector<1x3x128xbf16> to vector<3x128xbf16>
    %c7_44 = arith.constant 7 : index
    %c0_45 = arith.constant 0 : index
    %c0_46 = arith.constant 0 : index
    %45 = vector.load %arg2[%c7_44, %c0_45, %c0_46] : memref<9x128x128xbf16, #tpu.memory_space<vmem>>, vector<1x128x128xbf16>
    %46 = vector.shape_cast %45 : vector<1x128x128xbf16> to vector<128x128xbf16>
    %cst_47 = arith.constant dense<0.000000e+00> : vector<3x128xf32>
    %47 = tpu.matmul %44, %46, %cst_47 {dimension_numbers = #tpu.dot_dimension_numbers<[1], [0], [0], [1], [0, 0, 1, 1], [], []>} : vector<3x128xbf16>, vector<128x128xbf16>, vector<3x128xf32> -> vector<3x128xf32>
    %48 = arith.addf %42, %47 : vector<3x128xf32>
    %c0_48 = arith.constant 0 : index
    %c8 = arith.constant 8 : index
    %c0_49 = arith.constant 0 : index
    %49 = vector.load %arg1[%c0_48, %c8, %c0_49] : memref<1x12x128xbf16, #tpu.memory_space<vmem>>, vector<1x3x128xbf16>
    %50 = vector.shape_cast %49 : vector<1x3x128xbf16> to vector<3x128xbf16>
    %c8_50 = arith.constant 8 : index
    %c0_51 = arith.constant 0 : index
    %c0_52 = arith.constant 0 : index
    %51 = vector.load %arg2[%c8_50, %c0_51, %c0_52] : memref<9x128x128xbf16, #tpu.memory_space<vmem>>, vector<1x128x128xbf16>
    %52 = vector.shape_cast %51 : vector<1x128x128xbf16> to vector<128x128xbf16>
    %cst_53 = arith.constant dense<0.000000e+00> : vector<3x128xf32>
    %53 = tpu.matmul %50, %52, %cst_53 {dimension_numbers = #tpu.dot_dimension_numbers<[1], [0], [0], [1], [0, 0, 1, 1], [], []>} : vector<3x128xbf16>, vector<128x128xbf16>, vector<3x128xf32> -> vector<3x128xf32>
    %54 = arith.addf %48, %53 : vector<3x128xf32>
    %c0_54 = arith.constant 0 : index
    %c0_55 = arith.constant 0 : index
    %55 = vector.load %arg3[%c0_54, %c0_55] : memref<1x128xf32, #tpu.memory_space<vmem>>, vector<1x128xf32>
    %56 = vector.broadcast %55 : vector<1x128xf32> to vector<3x128xf32>
    %57 = arith.addf %54, %56 : vector<3x128xf32>
    %c0_56 = arith.constant 0 : index
    %c0_57 = arith.constant 0 : index
    %c0_58 = arith.constant 0 : index
    %58 = vector.load %arg4[%c0_56, %c0_57, %c0_58] : memref<1x3x128xbf16, #tpu.memory_space<vmem>>, vector<1x3x128xbf16>
    %59 = vector.shape_cast %58 : vector<1x3x128xbf16> to vector<3x128xbf16>
    %60 = arith.extf %59 : vector<3x128xbf16> to vector<3x128xf32>
    %61 = arith.addf %57, %60 : vector<3x128xf32>
    %cst_59 = arith.constant 0.000000e+00 : f32
    %62 = vector.broadcast %cst_59 : f32 to vector<3x128xf32>
    %63 = arith.maximumf %61, %62 : vector<3x128xf32>
    %64 = arith.truncf %63 : vector<3x128xf32> to vector<3x128xbf16>
    %c0_60 = arith.constant 0 : index
    %c0_61 = arith.constant 0 : index
    %c0_62 = arith.constant 0 : index
    %65 = vector.load %arg5[%c0_60, %c0_61, %c0_62] : memref<1x3x128xbf16, #tpu.memory_space<vmem>>, vector<1x3x128xbf16>
    %66 = vector.shape_cast %65 : vector<1x3x128xbf16> to vector<3x128xbf16>
    %67 = vector.shape_cast %64 : vector<3x128xbf16> to vector<1x3x128xbf16>
    tpu.vector_store %arg5[%c0_60, %c0_61, %c0_62], %67 {strides = array<i32>} : memref<1x3x128xbf16, #tpu.memory_space<vmem>>, vector<1x3x128xbf16>,
    return
  }
  func.func @transform_0(%arg0: i32) -> (i32, i32, i32) {
    %c0_i32 = arith.constant 0 : i32
    %c0_i32_0 = arith.constant 0 : i32
    %c0_i32_1 = arith.constant 0 : i32
    return %arg0, %c0_i32, %c0_i32_0 : i32, i32, i32
  }
  func.func @transform_1(%arg0: i32) -> (i32, i32, i32) {
    %c0_i32 = arith.constant 0 : i32
    %c0_i32_0 = arith.constant 0 : i32
    %c0_i32_1 = arith.constant 0 : i32
    %c0_i32_2 = arith.constant 0 : i32
    return %c0_i32, %c0_i32_0, %c0_i32_1 : i32, i32, i32
  }
  func.func @transform_2(%arg0: i32) -> (i32, i32) {
    %c0_i32 = arith.constant 0 : i32
    %c0_i32_0 = arith.constant 0 : i32
    %c0_i32_1 = arith.constant 0 : i32
    return %c0_i32, %c0_i32_0 : i32, i32
  }
  func.func @transform_3(%arg0: i32) -> (i32, i32, i32) {
    %c0_i32 = arith.constant 0 : i32
    %c0_i32_0 = arith.constant 0 : i32
    %c0_i32_1 = arith.constant 0 : i32
    return %arg0, %c0_i32, %c0_i32_0 : i32, i32, i32
  }
  func.func @transform_4(%arg0: i32) -> (i32, i32, i32) {
    %c0_i32 = arith.constant 0 : i32
    %c0_i32_0 = arith.constant 0 : i32
    %c0_i32_1 = arith.constant 0 : i32
    return %arg0, %c0_i32, %c0_i32_0 : i32, i32, i32
  }
}

module attributes {stable_mosaic.version = 11 : i64} {
  func.func @_conv3x3_s1_kernel(%arg0: i32, %arg1: memref<1x12x128xbf16, #tpu.memory_space<vmem>>, %arg2: memref<9x128x128xbf16, #tpu.memory_space<vmem>>, %arg3: memref<1x128xf32, #tpu.memory_space<vmem>>, %arg4: memref<1x3x128xbf16, #tpu.memory_space<vmem>>) attributes {dimension_semantics = [#tpu.dimension_semantics<parallel>], iteration_bounds = array<i64: 2>, scalar_prefetch = 0 : i64, scratch_operands = 0 : i64, tpu.core_type = #tpu.core_type<tc>, window_params = [{transform_indices = @transform_0, window_bounds = array<i64: 1, 12, 128>}, {pipeline_mode = #tpu.pipeline_mode<synchronous>, transform_indices = @transform_1, window_bounds = array<i64: 9, 128, 128>}, {pipeline_mode = #tpu.pipeline_mode<synchronous>, transform_indices = @transform_2, window_bounds = array<i64: 1, 128>}, {transform_indices = @transform_3, window_bounds = array<i64: 1, 3, 128>}]} {
    %cst = arith.constant 0.000000e+00 : f32
    %0 = vector.broadcast %cst : f32 to vector<3x128xf32>
    %c0 = arith.constant 0 : index
    %c0_0 = arith.constant 0 : index
    %c0_1 = arith.constant 0 : index
    %1 = vector.load %arg1[%c0, %c0_0, %c0_1] : memref<1x12x128xbf16, #tpu.memory_space<vmem>>, vector<1x3x128xbf16>
    %2 = vector.shape_cast %1 : vector<1x3x128xbf16> to vector<3x128xbf16>
    %c0_2 = arith.constant 0 : index
    %c0_3 = arith.constant 0 : index
    %c0_4 = arith.constant 0 : index
    %3 = vector.load %arg2[%c0_2, %c0_3, %c0_4] : memref<9x128x128xbf16, #tpu.memory_space<vmem>>, vector<1x128x128xbf16>
    %4 = vector.shape_cast %3 : vector<1x128x128xbf16> to vector<128x128xbf16>
    %cst_5 = arith.constant dense<0.000000e+00> : vector<3x128xf32>
    %5 = tpu.matmul %2, %4, %cst_5 {dimension_numbers = #tpu.dot_dimension_numbers<[1], [0], [0], [1], [0, 0, 1, 1], [], []>} : vector<3x128xbf16>, vector<128x128xbf16>, vector<3x128xf32> -> vector<3x128xf32>
    %6 = arith.addf %0, %5 : vector<3x128xf32>
    %c0_6 = arith.constant 0 : index
    %c1 = arith.constant 1 : index
    %c0_7 = arith.constant 0 : index
    %7 = vector.load %arg1[%c0_6, %c1, %c0_7] : memref<1x12x128xbf16, #tpu.memory_space<vmem>>, vector<1x3x128xbf16>
    %8 = vector.shape_cast %7 : vector<1x3x128xbf16> to vector<3x128xbf16>
    %c1_8 = arith.constant 1 : index
    %c0_9 = arith.constant 0 : index
    %c0_10 = arith.constant 0 : index
    %9 = vector.load %arg2[%c1_8, %c0_9, %c0_10] : memref<9x128x128xbf16, #tpu.memory_space<vmem>>, vector<1x128x128xbf16>
    %10 = vector.shape_cast %9 : vector<1x128x128xbf16> to vector<128x128xbf16>
    %cst_11 = arith.constant dense<0.000000e+00> : vector<3x128xf32>
    %11 = tpu.matmul %8, %10, %cst_11 {dimension_numbers = #tpu.dot_dimension_numbers<[1], [0], [0], [1], [0, 0, 1, 1], [], []>} : vector<3x128xbf16>, vector<128x128xbf16>, vector<3x128xf32> -> vector<3x128xf32>
    %12 = arith.addf %6, %11 : vector<3x128xf32>
    %c0_12 = arith.constant 0 : index
    %c2 = arith.constant 2 : index
    %c0_13 = arith.constant 0 : index
    %13 = vector.load %arg1[%c0_12, %c2, %c0_13] : memref<1x12x128xbf16, #tpu.memory_space<vmem>>, vector<1x3x128xbf16>
    %14 = vector.shape_cast %13 : vector<1x3x128xbf16> to vector<3x128xbf16>
    %c2_14 = arith.constant 2 : index
    %c0_15 = arith.constant 0 : index
    %c0_16 = arith.constant 0 : index
    %15 = vector.load %arg2[%c2_14, %c0_15, %c0_16] : memref<9x128x128xbf16, #tpu.memory_space<vmem>>, vector<1x128x128xbf16>
    %16 = vector.shape_cast %15 : vector<1x128x128xbf16> to vector<128x128xbf16>
    %cst_17 = arith.constant dense<0.000000e+00> : vector<3x128xf32>
    %17 = tpu.matmul %14, %16, %cst_17 {dimension_numbers = #tpu.dot_dimension_numbers<[1], [0], [0], [1], [0, 0, 1, 1], [], []>} : vector<3x128xbf16>, vector<128x128xbf16>, vector<3x128xf32> -> vector<3x128xf32>
    %18 = arith.addf %12, %17 : vector<3x128xf32>
    %c0_18 = arith.constant 0 : index
    %c3 = arith.constant 3 : index
    %c0_19 = arith.constant 0 : index
    %19 = vector.load %arg1[%c0_18, %c3, %c0_19] : memref<1x12x128xbf16, #tpu.memory_space<vmem>>, vector<1x3x128xbf16>
    %20 = vector.shape_cast %19 : vector<1x3x128xbf16> to vector<3x128xbf16>
    %c3_20 = arith.constant 3 : index
    %c0_21 = arith.constant 0 : index
    %c0_22 = arith.constant 0 : index
    %21 = vector.load %arg2[%c3_20, %c0_21, %c0_22] : memref<9x128x128xbf16, #tpu.memory_space<vmem>>, vector<1x128x128xbf16>
    %22 = vector.shape_cast %21 : vector<1x128x128xbf16> to vector<128x128xbf16>
    %cst_23 = arith.constant dense<0.000000e+00> : vector<3x128xf32>
    %23 = tpu.matmul %20, %22, %cst_23 {dimension_numbers = #tpu.dot_dimension_numbers<[1], [0], [0], [1], [0, 0, 1, 1], [], []>} : vector<3x128xbf16>, vector<128x128xbf16>, vector<3x128xf32> -> vector<3x128xf32>
    %24 = arith.addf %18, %23 : vector<3x128xf32>
    %c0_24 = arith.constant 0 : index
    %c4 = arith.constant 4 : index
    %c0_25 = arith.constant 0 : index
    %25 = vector.load %arg1[%c0_24, %c4, %c0_25] : memref<1x12x128xbf16, #tpu.memory_space<vmem>>, vector<1x3x128xbf16>
    %26 = vector.shape_cast %25 : vector<1x3x128xbf16> to vector<3x128xbf16>
    %c4_26 = arith.constant 4 : index
    %c0_27 = arith.constant 0 : index
    %c0_28 = arith.constant 0 : index
    %27 = vector.load %arg2[%c4_26, %c0_27, %c0_28] : memref<9x128x128xbf16, #tpu.memory_space<vmem>>, vector<1x128x128xbf16>
    %28 = vector.shape_cast %27 : vector<1x128x128xbf16> to vector<128x128xbf16>
    %cst_29 = arith.constant dense<0.000000e+00> : vector<3x128xf32>
    %29 = tpu.matmul %26, %28, %cst_29 {dimension_numbers = #tpu.dot_dimension_numbers<[1], [0], [0], [1], [0, 0, 1, 1], [], []>} : vector<3x128xbf16>, vector<128x128xbf16>, vector<3x128xf32> -> vector<3x128xf32>
    %30 = arith.addf %24, %29 : vector<3x128xf32>
    %c0_30 = arith.constant 0 : index
    %c5 = arith.constant 5 : index
    %c0_31 = arith.constant 0 : index
    %31 = vector.load %arg1[%c0_30, %c5, %c0_31] : memref<1x12x128xbf16, #tpu.memory_space<vmem>>, vector<1x3x128xbf16>
    %32 = vector.shape_cast %31 : vector<1x3x128xbf16> to vector<3x128xbf16>
    %c5_32 = arith.constant 5 : index
    %c0_33 = arith.constant 0 : index
    %c0_34 = arith.constant 0 : index
    %33 = vector.load %arg2[%c5_32, %c0_33, %c0_34] : memref<9x128x128xbf16, #tpu.memory_space<vmem>>, vector<1x128x128xbf16>
    %34 = vector.shape_cast %33 : vector<1x128x128xbf16> to vector<128x128xbf16>
    %cst_35 = arith.constant dense<0.000000e+00> : vector<3x128xf32>
    %35 = tpu.matmul %32, %34, %cst_35 {dimension_numbers = #tpu.dot_dimension_numbers<[1], [0], [0], [1], [0, 0, 1, 1], [], []>} : vector<3x128xbf16>, vector<128x128xbf16>, vector<3x128xf32> -> vector<3x128xf32>
    %36 = arith.addf %30, %35 : vector<3x128xf32>
    %c0_36 = arith.constant 0 : index
    %c6 = arith.constant 6 : index
    %c0_37 = arith.constant 0 : index
    %37 = vector.load %arg1[%c0_36, %c6, %c0_37] : memref<1x12x128xbf16, #tpu.memory_space<vmem>>, vector<1x3x128xbf16>
    %38 = vector.shape_cast %37 : vector<1x3x128xbf16> to vector<3x128xbf16>
    %c6_38 = arith.constant 6 : index
    %c0_39 = arith.constant 0 : index
    %c0_40 = arith.constant 0 : index
    %39 = vector.load %arg2[%c6_38, %c0_39, %c0_40] : memref<9x128x128xbf16, #tpu.memory_space<vmem>>, vector<1x128x128xbf16>
    %40 = vector.shape_cast %39 : vector<1x128x128xbf16> to vector<128x128xbf16>
    %cst_41 = arith.constant dense<0.000000e+00> : vector<3x128xf32>
    %41 = tpu.matmul %38, %40, %cst_41 {dimension_numbers = #tpu.dot_dimension_numbers<[1], [0], [0], [1], [0, 0, 1, 1], [], []>} : vector<3x128xbf16>, vector<128x128xbf16>, vector<3x128xf32> -> vector<3x128xf32>
    %42 = arith.addf %36, %41 : vector<3x128xf32>
    %c0_42 = arith.constant 0 : index
    %c7 = arith.constant 7 : index
    %c0_43 = arith.constant 0 : index
    %43 = vector.load %arg1[%c0_42, %c7, %c0_43] : memref<1x12x128xbf16, #tpu.memory_space<vmem>>, vector<1x3x128xbf16>
    %44 = vector.shape_cast %43 : vector<1x3x128xbf16> to vector<3x128xbf16>
    %c7_44 = arith.constant 7 : index
    %c0_45 = arith.constant 0 : index
    %c0_46 = arith.constant 0 : index
    %45 = vector.load %arg2[%c7_44, %c0_45, %c0_46] : memref<9x128x128xbf16, #tpu.memory_space<vmem>>, vector<1x128x128xbf16>
    %46 = vector.shape_cast %45 : vector<1x128x128xbf16> to vector<128x128xbf16>
    %cst_47 = arith.constant dense<0.000000e+00> : vector<3x128xf32>
    %47 = tpu.matmul %44, %46, %cst_47 {dimension_numbers = #tpu.dot_dimension_numbers<[1], [0], [0], [1], [0, 0, 1, 1], [], []>} : vector<3x128xbf16>, vector<128x128xbf16>, vector<3x128xf32> -> vector<3x128xf32>
    %48 = arith.addf %42, %47 : vector<3x128xf32>
    %c0_48 = arith.constant 0 : index
    %c8 = arith.constant 8 : index
    %c0_49 = arith.constant 0 : index
    %49 = vector.load %arg1[%c0_48, %c8, %c0_49] : memref<1x12x128xbf16, #tpu.memory_space<vmem>>, vector<1x3x128xbf16>
    %50 = vector.shape_cast %49 : vector<1x3x128xbf16> to vector<3x128xbf16>
    %c8_50 = arith.constant 8 : index
    %c0_51 = arith.constant 0 : index
    %c0_52 = arith.constant 0 : index
    %51 = vector.load %arg2[%c8_50, %c0_51, %c0_52] : memref<9x128x128xbf16, #tpu.memory_space<vmem>>, vector<1x128x128xbf16>
    %52 = vector.shape_cast %51 : vector<1x128x128xbf16> to vector<128x128xbf16>
    %cst_53 = arith.constant dense<0.000000e+00> : vector<3x128xf32>
    %53 = tpu.matmul %50, %52, %cst_53 {dimension_numbers = #tpu.dot_dimension_numbers<[1], [0], [0], [1], [0, 0, 1, 1], [], []>} : vector<3x128xbf16>, vector<128x128xbf16>, vector<3x128xf32> -> vector<3x128xf32>
    %54 = arith.addf %48, %53 : vector<3x128xf32>
    %c0_54 = arith.constant 0 : index
    %c0_55 = arith.constant 0 : index
    %55 = vector.load %arg3[%c0_54, %c0_55] : memref<1x128xf32, #tpu.memory_space<vmem>>, vector<1x128xf32>
    %56 = vector.broadcast %55 : vector<1x128xf32> to vector<3x128xf32>
    %57 = arith.addf %54, %56 : vector<3x128xf32>
    %cst_56 = arith.constant 0.000000e+00 : f32
    %58 = vector.broadcast %cst_56 : f32 to vector<3x128xf32>
    %59 = arith.maximumf %57, %58 : vector<3x128xf32>
    %60 = arith.truncf %59 : vector<3x128xf32> to vector<3x128xbf16>
    %c0_57 = arith.constant 0 : index
    %c0_58 = arith.constant 0 : index
    %c0_59 = arith.constant 0 : index
    %61 = vector.load %arg4[%c0_57, %c0_58, %c0_59] : memref<1x3x128xbf16, #tpu.memory_space<vmem>>, vector<1x3x128xbf16>
    %62 = vector.shape_cast %61 : vector<1x3x128xbf16> to vector<3x128xbf16>
    %63 = vector.shape_cast %60 : vector<3x128xbf16> to vector<1x3x128xbf16>
    tpu.vector_store %arg4[%c0_57, %c0_58, %c0_59], %63 {strides = array<i32>} : memref<1x3x128xbf16, #tpu.memory_space<vmem>>, vector<1x3x128xbf16>,
    return
  }
  func.func @transform_0(%arg0: i32) -> (i32, i32, i32) {
    %c0_i32 = arith.constant 0 : i32
    %c0_i32_0 = arith.constant 0 : i32
    %c0_i32_1 = arith.constant 0 : i32
    return %arg0, %c0_i32, %c0_i32_0 : i32, i32, i32
  }
  func.func @transform_1(%arg0: i32) -> (i32, i32, i32) {
    %c0_i32 = arith.constant 0 : i32
    %c0_i32_0 = arith.constant 0 : i32
    %c0_i32_1 = arith.constant 0 : i32
    %c0_i32_2 = arith.constant 0 : i32
    return %c0_i32, %c0_i32_0, %c0_i32_1 : i32, i32, i32
  }
  func.func @transform_2(%arg0: i32) -> (i32, i32) {
    %c0_i32 = arith.constant 0 : i32
    %c0_i32_0 = arith.constant 0 : i32
    %c0_i32_1 = arith.constant 0 : i32
    return %c0_i32, %c0_i32_0 : i32, i32
  }
  func.func @transform_3(%arg0: i32) -> (i32, i32, i32) {
    %c0_i32 = arith.constant 0 : i32
    %c0_i32_0 = arith.constant 0 : i32
    %c0_i32_1 = arith.constant 0 : i32
    return %arg0, %c0_i32, %c0_i32_0 : i32, i32, i32
  }
}

module attributes {stable_mosaic.version = 11 : i64} {
  func.func @_avgpool_fc_kernel(%arg0: memref<2x1x128xbf16, #tpu.memory_space<vmem>>, %arg1: memref<128x128xbf16, #tpu.memory_space<vmem>>, %arg2: memref<1x128xf32, #tpu.memory_space<vmem>>, %arg3: memref<2x128xf32, #tpu.memory_space<vmem>>) attributes {dimension_semantics = [], scalar_prefetch = 0 : i64, scratch_operands = 0 : i64, tpu.core_type = #tpu.core_type<tc>} {
    %c0 = arith.constant 0 : index
    %c0_0 = arith.constant 0 : index
    %c0_1 = arith.constant 0 : index
    %0 = vector.load %arg0[%c0, %c0_0, %c0_1] : memref<2x1x128xbf16, #tpu.memory_space<vmem>>, vector<2x1x128xbf16>
    %1 = arith.extf %0 : vector<2x1x128xbf16> to vector<2x1x128xf32>
    %cst = arith.constant dense<0.000000e+00> : vector<2x128xf32>
    %2 = vector.multi_reduction <add>, %1, %cst [1] : vector<2x1x128xf32> to vector<2x128xf32>
    %cst_2 = arith.constant 1.000000e+00 : f32
    %3 = vector.broadcast %cst_2 : f32 to vector<2x128xf32>
    %4 = arith.divf %2, %3 : vector<2x128xf32>
    %5 = arith.truncf %4 : vector<2x128xf32> to vector<2x128xbf16>
    %c0_3 = arith.constant 0 : index
    %c0_4 = arith.constant 0 : index
    %6 = vector.load %arg1[%c0_3, %c0_4] : memref<128x128xbf16, #tpu.memory_space<vmem>>, vector<128x128xbf16>
    %cst_5 = arith.constant dense<0.000000e+00> : vector<2x128xf32>
    %7 = tpu.matmul %5, %6, %cst_5 {dimension_numbers = #tpu.dot_dimension_numbers<[1], [0], [0], [1], [0, 0, 1, 1], [], []>} : vector<2x128xbf16>, vector<128x128xbf16>, vector<2x128xf32> -> vector<2x128xf32>
    %c0_6 = arith.constant 0 : index
    %c0_7 = arith.constant 0 : index
    %8 = vector.load %arg2[%c0_6, %c0_7] : memref<1x128xf32, #tpu.memory_space<vmem>>, vector<1x128xf32>
    %9 = vector.broadcast %8 : vector<1x128xf32> to vector<2x128xf32>
    %10 = arith.addf %7, %9 : vector<2x128xf32>
    %c0_8 = arith.constant 0 : index
    %c0_9 = arith.constant 0 : index
    %11 = vector.load %arg3[%c0_8, %c0_9] : memref<2x128xf32, #tpu.memory_space<vmem>>, vector<2x128xf32>
    tpu.vector_store %arg3[%c0_8, %c0_9], %10 {strides = array<i32>} : memref<2x128xf32, #tpu.memory_space<vmem>>, vector<2x128xf32>,
    return
  }
}

</mosaic_0001>

<bundles_post_ra>
// kernel: _lambda_.18
= control target key start
LH: loop header
LB: loop body
LE: loop exit
PB: predicated region body
PF: predicated region fallthrough
CT: control target
= control target key end

     0   :  { %s1675_s12 = smov 0   ;;  %s1677_s13 = smov 0   ;;  %s1849_s0 = inlined_call_operand.vmem [shape: bf16[512,256], index: 0, kind: input, shape index: {}]   ;;  %s1850_s1 = inlined_call_operand.vmem [shape: bf16[256,128], index: 1, kind: input, shape index: {}]   ;;  %s1851_s2 = inlined_call_operand.vmem [shape: f32[1,128], index: 2, kind: input, shape index: {}]   ;;  %s1852_s3 = inlined_call_operand.vmem [shape: bf16[512,128], index: 3, kind: output, shape index: {}]  }
   0x1   :  { %s1679_s14 = smov 0  }
   0x2 LB: > { %s25_s15 = sadd.s32 1, %s1649_s13  ;;  %p1198_p0 = scmp.ge.s32.totalorder %s1653_s14, 1  ;;  %s1653_s14 = sphi %s1679_s14, %s13_s14   ;;  %s1649_s13 = sphi %s1677_s13, %s1854_s13   ;;  %s1645_s12 = sphi %s1675_s12, %s1853_s12  }
   0x3   : > { %p27_p1 = scmp.ge.s32.totalorder %s25_s15, 2  ;;  %p169_p2 = scmp.lt.s32.totalorder %s1653_s14, 3 }
   0x5   : > { %s1856_s15 = smov (%p27_p1, %s25_s15), 0  ;;  %p170_p3 = pnand %p1198_p0, %p169_p2 }
   0x6   : > { %v1567_v0 = vld [vmem:[%s1850_s1 + $0x40] sm:$0xff] (!%p170_p3)   ;;  %s1199_s18 = sshll.u32 (!%p170_p3), %s1645_s12, 5  ;;  %v1569_v2 = vld [vmem:[%s1850_s1 + $0x48] sm:$0xff] (!%p170_p3)   ;;  %v1571_v4 = vld [vmem:[%s1850_s1 + $0x50] sm:$0xff] (!%p170_p3)  }
   0x7   : > { %173 = sbr.rel (%p170_p3) target bundleno = 320 (0x140), region = 32  ;;  %v1568_v1 = vld [vmem:[%s1850_s1] sm:$0xff] (!%p170_p3)   ;;  %1415 = vmatprep.subr.bf16.mxu0 (!%p170_p3), %v1567_v0  ;;  %1527 = vmatprep.subr.bf16.mxu1 (!%p170_p3), %v1567_v0  ;;  %v1570_v3 = vld [vmem:[%s1850_s1 + $0x8] sm:$0xff] (!%p170_p3)   ;;  %p205_p4 = scmp.lt.s32.totalorder (!%p170_p3), %s1199_s18, 63  ;;  %v1572_v5 = vld [vmem:[%s1850_s1 + $0x10] sm:$0xff] (!%p170_p3)  }
   0x8   : > { %1416 = vmatpush3.bf16.msra.mxu0 (!%p170_p3), %v1568_v1  ;;  %1535 = vmatpush3.bf16.msra.mxu1 (!%p170_p3), %v1568_v1  ;;  %v1573_v6 = vld [vmem:[%s1850_s1 + $0x58] sm:$0xff] (!%p170_p3)   ;;  %v1575_v8 = vld [vmem:[%s1850_s1 + $0x60] sm:$0xff] (!%p170_p3)   ;;  %v1577_v10 = vld [vmem:[%s1850_s1 + $0x68] sm:$0xff] (!%p170_p3)  }
   0x9   : > { %1417 = vmatprep.subr.bf16.mxu0 (!%p170_p3), %v1569_v2  ;;  %1528 = vmatprep.subr.bf16.mxu1 (!%p170_p3), %v1569_v2  ;;  %v1574_v7 = vld [vmem:[%s1850_s1 + $0x18] sm:$0xff] (!%p170_p3)   ;;  %v1576_v9 = vld [vmem:[%s1850_s1 + $0x20] sm:$0xff] (!%p170_p3)   ;;  %v1578_v13 = vld [vmem:[%s1850_s1 + $0x28] sm:$0xff] (!%p170_p3)  }
   0xa   : > { %v1579_v14 = vld [vmem:[%s1850_s1 + $0x70] sm:$0xff] (!%p170_p3)   ;;  %v1581_v16 = vld [vmem:[%s1850_s1 + $0x78] sm:$0xff] (!%p170_p3)   ;;  %v1784_v51 = vld [vmem:[%s1851_s2] ss:$0 sm:$0xff] (!%p170_p3) }
   0xb   : > { %v1580_v15 = vld [vmem:[%s1850_s1 + $0x30] sm:$0xff] (!%p170_p3)   ;;  %v1582_v17 = vld [vmem:[%s1850_s1 + $0x38] sm:$0xff] (!%p170_p3)  }
   0xc   : > { %1418 = vmatpush3.bf16.msra.mxu0 (!%p170_p3), %v1570_v3  ;;  %1536 = vmatpush3.bf16.msra.mxu1 (!%p170_p3), %v1570_v3 }
   0xd   : > { %1419 = vmatprep.subr.bf16.mxu0 (!%p170_p3), %v1571_v4  ;;  %1529 = vmatprep.subr.bf16.mxu1 (!%p170_p3), %v1571_v4 }
   0xe   : > { %s1858_s18 = smov (!%p205_p4, %s1199_s18), 63 }
   0xf   : > { %s1287_s6 = sshll.u32 %s1858_s18, 3  ;;  %s1203_s5 = sshll.u32 %s1858_s18, 2 }
  0x10   : > { %1420 = vmatpush3.bf16.msra.mxu0 %v1572_v5  ;;  %1537 = vmatpush3.bf16.msra.mxu1 %v1572_v5  ;;  %s1726_s11 = scalar_lea.vmem %s1849_s0, %s1287_s6  ;;  %s1794_s8 = scalar_lea.vmem %s1852_s3, %s1203_s5 }
  0x11   : > { %1421 = vmatprep.subr.bf16.mxu0 %v1573_v6  ;;  %1530 = vmatprep.subr.bf16.mxu1 %v1573_v6  ;;  %v1585_v11 = vld [vmem:[%s1726_s11 + $0x4] ss:$8 sps:$4 sm:$0xff]   ;;  %v1583_v18 = vld [vmem:[%s1726_s11] ss:$8 sps:$4 sm:$0xff]   ;;  %v1589_v20 = vld [vmem:[%s1726_s11 + $0x14] ss:$8 sps:$4 sm:$0xff]  }
  0x12   : > { %v1588_v12 = vld [vmem:[%s1726_s11 + $0x84] ss:$8 sps:$4 sm:$0xff]   ;;  %648 = vmatprep.mubr.bf16.mxu0 %v1585_v11  ;;  %v1586_v19 = vld [vmem:[%s1726_s11 + $0x80] ss:$8 sps:$4 sm:$0xff]   ;;  %v1591_v21 = vld [vmem:[%s1726_s11 + $0x94] ss:$8 sps:$4 sm:$0xff]  }
  0x13   : > { %712 = vmatprep.mubr.bf16.mxu1 %v1588_v12  ;;  %v1593_v22 = vld [vmem:[%s1726_s11 + $0x10] ss:$8 sps:$4 sm:$0xff]   ;;  %v1595_v24 = vld [vmem:[%s1726_s11 + $0x24] ss:$8 sps:$4 sm:$0xff]   ;;  %v1599_v26 = vld [vmem:[%s1726_s11 + $0x20] ss:$8 sps:$4 sm:$0xff]  }
  0x14   : > { %1422 = vmatpush3.bf16.msra.mxu0 %v1574_v7  ;;  %1538 = vmatpush3.bf16.msra.mxu1 %v1574_v7  ;;  %v1594_v23 = vld [vmem:[%s1726_s11 + $0x90] ss:$8 sps:$4 sm:$0xff]   ;;  %v1597_v25 = vld [vmem:[%s1726_s11 + $0xa4] ss:$8 sps:$4 sm:$0xff]   ;;  %v1600_v27 = vld [vmem:[%s1726_s11 + $0xa0] ss:$8 sps:$4 sm:$0xff]  }
  0x15   : > { %1423 = vmatprep.subr.bf16.mxu0 %v1575_v8  ;;  %1531 = vmatprep.subr.bf16.mxu1 %v1575_v8  ;;  %v1601_v28 = vld [vmem:[%s1726_s11 + $0x34] ss:$8 sps:$4 sm:$0xff]   ;;  %v1605_v30 = vld [vmem:[%s1726_s11 + $0x30] ss:$8 sps:$4 sm:$0xff]   ;;  %v1607_v32 = vld [vmem:[%s1726_s11 + $0x44] ss:$8 sps:$4 sm:$0xff]  }
  0x16   : > { %v1603_v29 = vld [vmem:[%s1726_s11 + $0xb4] ss:$8 sps:$4 sm:$0xff]   ;;  %v1606_v31 = vld [vmem:[%s1726_s11 + $0xb0] ss:$8 sps:$4 sm:$0xff]   ;;  %v1609_v33 = vld [vmem:[%s1726_s11 + $0xc4] ss:$8 sps:$4 sm:$0xff]  }
  0x17   : > { %v1611_v34 = vld [vmem:[%s1726_s11 + $0x40] ss:$8 sps:$4 sm:$0xff]   ;;  %v1613_v36 = vld [vmem:[%s1726_s11 + $0x54] ss:$8 sps:$4 sm:$0xff]   ;;  %v1617_v38 = vld [vmem:[%s1726_s11 + $0x50] ss:$8 sps:$4 sm:$0xff]  }
  0x18   : > { %1424 = vmatpush3.bf16.msra.mxu0 %v1576_v9  ;;  %1539 = vmatpush3.bf16.msra.mxu1 %v1576_v9  ;;  %v1612_v35 = vld [vmem:[%s1726_s11 + $0xc0] ss:$8 sps:$4 sm:$0xff]   ;;  %v1615_v37 = vld [vmem:[%s1726_s11 + $0xd4] ss:$8 sps:$4 sm:$0xff]   ;;  %v1618_v39 = vld [vmem:[%s1726_s11 + $0xd0] ss:$8 sps:$4 sm:$0xff]  }
  0x19   : > { %1425 = vmatprep.subr.bf16.mxu0 %v1577_v10  ;;  %1532 = vmatprep.subr.bf16.mxu1 %v1577_v10  ;;  %v1619_v40 = vld [vmem:[%s1726_s11 + $0x64] ss:$8 sps:$4 sm:$0xff]   ;;  %v1623_v42 = vld [vmem:[%s1726_s11 + $0x60] ss:$8 sps:$4 sm:$0xff]   ;;  %v1625_v44 = vld [vmem:[%s1726_s11 + $0x74] ss:$8 sps:$4 sm:$0xff]  }
  0x1a   : > { %v1621_v41 = vld [vmem:[%s1726_s11 + $0xe4] ss:$8 sps:$4 sm:$0xff]   ;;  %v1624_v43 = vld [vmem:[%s1726_s11 + $0xe0] ss:$8 sps:$4 sm:$0xff]   ;;  %v1627_v45 = vld [vmem:[%s1726_s11 + $0xf4] ss:$8 sps:$4 sm:$0xff]  }
  0x1b   : > { %v1629_v46 = vld [vmem:[%s1726_s11 + $0x70] ss:$8 sps:$4 sm:$0xff]  }
  0x1c   : > { %1426 = vmatpush3.bf16.msra.mxu0 %v1578_v13  ;;  %1540 = vmatpush3.bf16.msra.mxu1 %v1578_v13  ;;  %v1630_v47 = vld [vmem:[%s1726_s11 + $0xf0] ss:$8 sps:$4 sm:$0xff]  }
  0x1d   : > { %1427 = vmatprep.subr.bf16.mxu0 %v1579_v14  ;;  %1533 = vmatprep.subr.bf16.mxu1 %v1579_v14 }
  0x20   : > { %1428 = vmatpush3.bf16.msra.mxu0 %v1580_v15  ;;  %1541 = vmatpush3.bf16.msra.mxu1 %v1580_v15 }
  0x21   : > { %1429 = vmatprep.subr.bf16.mxu0 %v1581_v16  ;;  %1534 = vmatprep.subr.bf16.mxu1 %v1581_v16 }
  0x24   : > { %1430 = vmatpush3.bf16.msra.mxu0 %v1582_v17  ;;  %1542 = vmatpush3.bf16.msra.mxu1 %v1582_v17 }
  0x27   : > { %649 = vmatmul.mubr.bf16.vlgmr.msra.gmra.mrb[0].mxu0 %v1583_v18  ;;  %713 = vmatmul.mubr.bf16.vlgmr.msra.gmra.mrb[0].mxu1 %v1586_v19 }
  0x28   : > { %656 = vmatprep.mubr.bf16.mxu0 %v1589_v20  ;;  %720 = vmatprep.mubr.bf16.mxu1 %v1591_v21 }
  0x2f   : > { %657 = vmatmul.mubr.bf16.gmra.mrb[4].mxu0 %v1593_v22  ;;  %721 = vmatmul.mubr.bf16.gmra.mrb[4].mxu1 %v1594_v23 }
  0x30   : > { %664 = vmatprep.mubr.bf16.mxu0 %v1595_v24  ;;  %728 = vmatprep.mubr.bf16.mxu1 %v1597_v25 }
  0x37   : > { %665 = vmatmul.mubr.bf16.gmra.mrb[8].mxu0 %v1599_v26  ;;  %729 = vmatmul.mubr.bf16.gmra.mrb[8].mxu1 %v1600_v27 }
  0x38   : > { %672 = vmatprep.mubr.bf16.mxu0 %v1601_v28  ;;  %736 = vmatprep.mubr.bf16.mxu1 %v1603_v29 }
  0x3f   : > { %673 = vmatmul.mubr.bf16.gmra.mrb[12].mxu0 %v1605_v30  ;;  %737 = vmatmul.mubr.bf16.gmra.mrb[12].mxu1 %v1606_v31 }
  0x40   : > { %680 = vmatprep.mubr.bf16.mxu0 %v1607_v32  ;;  %744 = vmatprep.mubr.bf16.mxu1 %v1609_v33 }
  0x47   : > { %681 = vmatmul.mubr.bf16.gmra.mrb[16].mxu0 %v1611_v34  ;;  %745 = vmatmul.mubr.bf16.gmra.mrb[16].mxu1 %v1612_v35 }
  0x48   : > { %688 = vmatprep.mubr.bf16.mxu0 %v1613_v36  ;;  %752 = vmatprep.mubr.bf16.mxu1 %v1615_v37 }
  0x4f   : > { %689 = vmatmul.mubr.bf16.gmra.mrb[20].mxu0 %v1617_v38  ;;  %753 = vmatmul.mubr.bf16.gmra.mrb[20].mxu1 %v1618_v39 }
  0x50   : > { %696 = vmatprep.mubr.bf16.mxu0 %v1619_v40  ;;  %760 = vmatprep.mubr.bf16.mxu1 %v1621_v41 }
  0x57   : > { %697 = vmatmul.mubr.bf16.gmra.mrb[24].mxu0 %v1623_v42  ;;  %761 = vmatmul.mubr.bf16.gmra.mrb[24].mxu1 %v1624_v43 }
  0x58   : > { %704 = vmatprep.mubr.bf16.mxu0 %v1625_v44  ;;  %768 = vmatprep.mubr.bf16.mxu1 %v1627_v45 }
  0x5f   : > { %705 = vmatmul.mubr.bf16.gmra.mrb[28].mxu0 %v1629_v46  ;;  %769 = vmatmul.mubr.bf16.gmra.mrb[28].mxu1 %v1630_v47 }
  0xfa   : > { %v1431_v48 = vpop.f32.mrb[0].mxu0  ;;  %v1479_v49 = vpop.f32.mrb[0].mxu1 }
  0xfb   : > { %v1432_v50 = vpop.f32.mrb[1].mxu0  ;;  %v1480_v52 = vpop.f32.mrb[1].mxu1 }
  0xfc   : > { %v1433_v53 = vadd.f32 %v1432_v50, %v1431_v48  ;;  %v1481_v54 = vadd.f32 %v1480_v52, %v1479_v49  ;;  %v1434_v55 = vpop.f32.mrb[2].mxu0  ;;  %v1482_v56 = vpop.f32.mrb[2].mxu1 }
  0xfd   : > { %v1435_v57 = vpop.f32.mrb[3].mxu0  ;;  %v1483_v58 = vpop.f32.mrb[3].mxu1 }
  0xfe   : > { %v883_v59 = vadd.f32 %v1433_v53, %v1784_v51  ;;  %v899_v60 = vadd.f32 %v1481_v54, %v1784_v51  ;;  %v1436_v61 = vadd.f32 %v1435_v57, %v1434_v55  ;;  %v1484_v62 = vadd.f32 %v1483_v58, %v1482_v56 }
 0x100   : > { %v884_v63 = vadd.f32 %v1436_v61, %v1784_v51  ;;  %v900_v0 = vadd.f32 %v1484_v62, %v1784_v51  ;;  %v915_v1 = vmax.f32 %v883_v59, 0.0  ;;  %v931_v2 = vmax.f32 %v899_v60, 0.0 }
 0x102   : > { %v916_v3 = vmax.f32 %v884_v63, 0.0  ;;  %v932_v4 = vmax.f32 %v900_v0, 0.0  ;;  %v1437_v5 = vpop.f32.mrb[4].mxu0  ;;  %v1485_v6 = vpop.f32.mrb[4].mxu1 }
 0x103   : > { %v1438_v7 = vpop.f32.mrb[5].mxu0  ;;  %v1486_v8 = vpop.f32.mrb[5].mxu1 }
 0x104   : > { %v1323_v9 = vpack.c.bf16 %v916_v3, %v915_v1  ;;  %v1363_v10 = vpack.c.bf16 %v932_v4, %v931_v2  ;;  %v1439_v11 = vadd.f32 %v1438_v7, %v1437_v5  ;;  %v1487_v12 = vadd.f32 %v1486_v8, %v1485_v6  ;;  %v1440_v13 = vpop.f32.mrb[6].mxu0  ;;  %v1488_v14 = vpop.f32.mrb[6].mxu1 }
 0x105   : > { %v1441_v15 = vpop.f32.mrb[7].mxu0  ;;  %v1489_v16 = vpop.f32.mrb[7].mxu1 }
 0x106   : > { %1324 = vst [vmem:[%s1794_s8] sm:$0xff] %v1323_v9   ;;  %1407 = vst [vmem:[%s1794_s8 + $0x40] sm:$0xff] %v1363_v10   ;;  %v885_v17 = vadd.f32 %v1439_v11, %v1784_v51  ;;  %v901_v18 = vadd.f32 %v1487_v12, %v1784_v51  ;;  %v1442_v19 = vadd.f32 %v1441_v15, %v1440_v13 }
 0x107   : > { %v1490_v20 = vadd.f32 %v1489_v16, %v1488_v14 }
 0x108   : > { %v886_v21 = vadd.f32 %v1442_v19, %v1784_v51  ;;  %v917_v23 = vmax.f32 %v885_v17, 0.0  ;;  %v933_v24 = vmax.f32 %v901_v18, 0.0 }
 0x109   : > { %v902_v22 = vadd.f32 %v1490_v20, %v1784_v51 }
 0x10a   : > { %v918_v25 = vmax.f32 %v886_v21, 0.0  ;;  %v1443_v27 = vpop.f32.mrb[8].mxu0  ;;  %v1491_v28 = vpop.f32.mrb[8].mxu1 }
 0x10b   : > { %v934_v26 = vmax.f32 %v902_v22, 0.0  ;;  %v1444_v29 = vpop.f32.mrb[9].mxu0  ;;  %v1492_v30 = vpop.f32.mrb[9].mxu1 }
 0x10c   : > { %v1328_v31 = vpack.c.bf16 %v918_v25, %v917_v23  ;;  %v1445_v33 = vadd.f32 %v1444_v29, %v1443_v27  ;;  %v1493_v34 = vadd.f32 %v1492_v30, %v1491_v28  ;;  %v1446_v35 = vpop.f32.mrb[10].mxu0  ;;  %v1494_v36 = vpop.f32.mrb[10].mxu1 }
 0x10d   : > { %v1368_v32 = vpack.c.bf16 %v934_v26, %v933_v24  ;;  %v1447_v37 = vpop.f32.mrb[11].mxu0  ;;  %v1495_v38 = vpop.f32.mrb[11].mxu1 }
 0x10e   : > { %1400 = vst [vmem:[%s1794_s8 + $0x8] sm:$0xff] %v1328_v31   ;;  %v887_v39 = vadd.f32 %v1445_v33, %v1784_v51  ;;  %v903_v40 = vadd.f32 %v1493_v34, %v1784_v51  ;;  %v1448_v41 = vadd.f32 %v1447_v37, %v1446_v35  ;;  %v1496_v42 = vadd.f32 %v1495_v38, %v1494_v36 }
 0x10f   : > { %1408 = vst [vmem:[%s1794_s8 + $0x48] sm:$0xff] %v1368_v32  }
 0x110   : > { %v888_v43 = vadd.f32 %v1448_v41, %v1784_v51  ;;  %v904_v44 = vadd.f32 %v1496_v42, %v1784_v51  ;;  %v919_v45 = vmax.f32 %v887_v39, 0.0  ;;  %v935_v46 = vmax.f32 %v903_v40, 0.0 }
 0x112   : > { %v920_v47 = vmax.f32 %v888_v43, 0.0  ;;  %v936_v48 = vmax.f32 %v904_v44, 0.0  ;;  %v1449_v49 = vpop.f32.mrb[12].mxu0  ;;  %v1497_v50 = vpop.f32.mrb[12].mxu1 }
 0x113   : > { %v1450_v52 = vpop.f32.mrb[13].mxu0  ;;  %v1498_v53 = vpop.f32.mrb[13].mxu1 }
 0x114   : > { %v1333_v54 = vpack.c.bf16 %v920_v47, %v919_v45  ;;  %v1373_v55 = vpack.c.bf16 %v936_v48, %v935_v46  ;;  %v1451_v56 = vadd.f32 %v1450_v52, %v1449_v49  ;;  %v1499_v57 = vadd.f32 %v1498_v53, %v1497_v50  ;;  %v1452_v58 = vpop.f32.mrb[14].mxu0  ;;  %v1500_v59 = vpop.f32.mrb[14].mxu1 }
 0x115   : > { %v1453_v60 = vpop.f32.mrb[15].mxu0  ;;  %v1501_v61 = vpop.f32.mrb[15].mxu1 }
 0x116   : > { %1401 = vst [vmem:[%s1794_s8 + $0x10] sm:$0xff] %v1333_v54   ;;  %1409 = vst [vmem:[%s1794_s8 + $0x50] sm:$0xff] %v1373_v55   ;;  %v889_v62 = vadd.f32 %v1451_v56, %v1784_v51  ;;  %v905_v63 = vadd.f32 %v1499_v57, %v1784_v51  ;;  %v1454_v0 = vadd.f32 %v1453_v60, %v1452_v58 }
 0x117   : > { %v1502_v1 = vadd.f32 %v1501_v61, %v1500_v59 }
 0x118   : > { %v890_v2 = vadd.f32 %v1454_v0, %v1784_v51  ;;  %v921_v4 = vmax.f32 %v889_v62, 0.0  ;;  %v937_v5 = vmax.f32 %v905_v63, 0.0 }
 0x119   : > { %v906_v3 = vadd.f32 %v1502_v1, %v1784_v51 }
 0x11a   : > { %v922_v6 = vmax.f32 %v890_v2, 0.0  ;;  %v1455_v8 = vpop.f32.mrb[16].mxu0  ;;  %v1503_v9 = vpop.f32.mrb[16].mxu1 }
 0x11b   : > { %v938_v7 = vmax.f32 %v906_v3, 0.0  ;;  %v1456_v10 = vpop.f32.mrb[17].mxu0  ;;  %v1504_v11 = vpop.f32.mrb[17].mxu1 }
 0x11c   : > { %v1338_v12 = vpack.c.bf16 %v922_v6, %v921_v4  ;;  %v1457_v14 = vadd.f32 %v1456_v10, %v1455_v8  ;;  %v1505_v15 = vadd.f32 %v1504_v11, %v1503_v9  ;;  %v1458_v16 = vpop.f32.mrb[18].mxu0  ;;  %v1506_v17 = vpop.f32.mrb[18].mxu1 }
 0x11d   : > { %v1378_v13 = vpack.c.bf16 %v938_v7, %v937_v5  ;;  %v1459_v18 = vpop.f32.mrb[19].mxu0  ;;  %v1507_v19 = vpop.f32.mrb[19].mxu1 }
 0x11e   : > { %1402 = vst [vmem:[%s1794_s8 + $0x18] sm:$0xff] %v1338_v12   ;;  %v891_v20 = vadd.f32 %v1457_v14, %v1784_v51  ;;  %v907_v21 = vadd.f32 %v1505_v15, %v1784_v51  ;;  %v1460_v22 = vadd.f32 %v1459_v18, %v1458_v16  ;;  %v1508_v23 = vadd.f32 %v1507_v19, %v1506_v17 }
 0x11f   : > { %1410 = vst [vmem:[%s1794_s8 + $0x58] sm:$0xff] %v1378_v13  }
 0x120   : > { %v892_v24 = vadd.f32 %v1460_v22, %v1784_v51  ;;  %v908_v25 = vadd.f32 %v1508_v23, %v1784_v51  ;;  %v923_v26 = vmax.f32 %v891_v20, 0.0  ;;  %v939_v27 = vmax.f32 %v907_v21, 0.0 }
 0x122   : > { %v924_v28 = vmax.f32 %v892_v24, 0.0  ;;  %v940_v29 = vmax.f32 %v908_v25, 0.0  ;;  %v1461_v30 = vpop.f32.mrb[20].mxu0  ;;  %v1509_v31 = vpop.f32.mrb[20].mxu1 }
 0x123   : > { %v1462_v32 = vpop.f32.mrb[21].mxu0  ;;  %v1510_v33 = vpop.f32.mrb[21].mxu1 }
 0x124   : > { %v1343_v34 = vpack.c.bf16 %v924_v28, %v923_v26  ;;  %v1383_v35 = vpack.c.bf16 %v940_v29, %v939_v27  ;;  %v1463_v36 = vadd.f32 %v1462_v32, %v1461_v30  ;;  %v1511_v37 = vadd.f32 %v1510_v33, %v1509_v31  ;;  %v1464_v38 = vpop.f32.mrb[22].mxu0  ;;  %v1512_v39 = vpop.f32.mrb[22].mxu1 }
 0x125   : > { %v1465_v40 = vpop.f32.mrb[23].mxu0  ;;  %v1513_v41 = vpop.f32.mrb[23].mxu1 }
 0x126   : > { %1403 = vst [vmem:[%s1794_s8 + $0x20] sm:$0xff] %v1343_v34   ;;  %1411 = vst [vmem:[%s1794_s8 + $0x60] sm:$0xff] %v1383_v35   ;;  %v893_v42 = vadd.f32 %v1463_v36, %v1784_v51  ;;  %v909_v43 = vadd.f32 %v1511_v37, %v1784_v51  ;;  %v1466_v44 = vadd.f32 %v1465_v40, %v1464_v38 }
 0x127   : > { %v1514_v45 = vadd.f32 %v1513_v41, %v1512_v39 }
 0x128   : > { %v894_v46 = vadd.f32 %v1466_v44, %v1784_v51  ;;  %v925_v48 = vmax.f32 %v893_v42, 0.0  ;;  %v941_v49 = vmax.f32 %v909_v43, 0.0 }
 0x129   : > { %v910_v47 = vadd.f32 %v1514_v45, %v1784_v51 }
 0x12a   : > { %v926_v50 = vmax.f32 %v894_v46, 0.0  ;;  %v1467_v53 = vpop.f32.mrb[24].mxu0  ;;  %v1515_v54 = vpop.f32.mrb[24].mxu1 }
 0x12b   : > { %v942_v52 = vmax.f32 %v910_v47, 0.0  ;;  %v1468_v55 = vpop.f32.mrb[25].mxu0  ;;  %v1516_v56 = vpop.f32.mrb[25].mxu1 }
 0x12c   : > { %v1348_v57 = vpack.c.bf16 %v926_v50, %v925_v48  ;;  %v1469_v59 = vadd.f32 %v1468_v55, %v1467_v53  ;;  %v1517_v60 = vadd.f32 %v1516_v56, %v1515_v54  ;;  %v1470_v61 = vpop.f32.mrb[26].mxu0  ;;  %v1518_v62 = vpop.f32.mrb[26].mxu1 }
 0x12d   : > { %v1388_v58 = vpack.c.bf16 %v942_v52, %v941_v49  ;;  %v1471_v63 = vpop.f32.mrb[27].mxu0  ;;  %v1519_v0 = vpop.f32.mrb[27].mxu1 }
 0x12e   : > { %1404 = vst [vmem:[%s1794_s8 + $0x28] sm:$0xff] %v1348_v57   ;;  %v895_v1 = vadd.f32 %v1469_v59, %v1784_v51  ;;  %v911_v2 = vadd.f32 %v1517_v60, %v1784_v51  ;;  %v1472_v3 = vadd.f32 %v1471_v63, %v1470_v61  ;;  %v1520_v4 = vadd.f32 %v1519_v0, %v1518_v62 }
 0x12f   : > { %1412 = vst [vmem:[%s1794_s8 + $0x68] sm:$0xff] %v1388_v58  }
 0x130   : > { %v896_v5 = vadd.f32 %v1472_v3, %v1784_v51  ;;  %v912_v6 = vadd.f32 %v1520_v4, %v1784_v51  ;;  %v927_v7 = vmax.f32 %v895_v1, 0.0  ;;  %v943_v8 = vmax.f32 %v911_v2, 0.0 }
 0x132   : > { %v928_v9 = vmax.f32 %v896_v5, 0.0  ;;  %v944_v10 = vmax.f32 %v912_v6, 0.0  ;;  %v1473_v11 = vpop.f32.mrb[28].mxu0  ;;  %v1521_v12 = vpop.f32.mrb[28].mxu1 }
 0x133   : > { %v1474_v13 = vpop.f32.mrb[29].mxu0  ;;  %v1522_v14 = vpop.f32.mrb[29].mxu1 }
 0x134   : > { %v1353_v15 = vpack.c.bf16 %v928_v9, %v927_v7  ;;  %v1393_v16 = vpack.c.bf16 %v944_v10, %v943_v8  ;;  %v1475_v17 = vadd.f32 %v1474_v13, %v1473_v11  ;;  %v1523_v18 = vadd.f32 %v1522_v14, %v1521_v12  ;;  %v1476_v19 = vpop.f32.mrb[30].mxu0  ;;  %v1524_v20 = vpop.f32.mrb[30].mxu1 }
 0x135   : > { %v1477_v21 = vpop.f32.mrb[31].mxu0  ;;  %v1525_v22 = vpop.f32.mrb[31].mxu1 }
 0x136   : > { %1405 = vst [vmem:[%s1794_s8 + $0x30] sm:$0xff] %v1353_v15   ;;  %1413 = vst [vmem:[%s1794_s8 + $0x70] sm:$0xff] %v1393_v16   ;;  %v897_v23 = vadd.f32 %v1475_v17, %v1784_v51  ;;  %v913_v24 = vadd.f32 %v1523_v18, %v1784_v51  ;;  %v1478_v25 = vadd.f32 %v1477_v21, %v1476_v19 }
 0x137   : > { %v1526_v26 = vadd.f32 %v1525_v22, %v1524_v20 }
 0x138   : > { %v898_v27 = vadd.f32 %v1478_v25, %v1784_v51  ;;  %v929_v29 = vmax.f32 %v897_v23, 0.0  ;;  %v945_v30 = vmax.f32 %v913_v24, 0.0 }
 0x139   : > { %v914_v28 = vadd.f32 %v1526_v26, %v1784_v51 }
 0x13a   : > { %v930_v31 = vmax.f32 %v898_v27, 0.0 }
 0x13b   : > { %v946_v32 = vmax.f32 %v914_v28, 0.0 }
 0x13c   : > { %v1358_v33 = vpack.c.bf16 %v930_v31, %v929_v29 }
 0x13d   : > { %v1398_v34 = vpack.c.bf16 %v946_v32, %v945_v30 }
 0x13e   : > { %1406 = vst [vmem:[%s1794_s8 + $0x38] sm:$0xff] %v1358_v33  }
 0x13f   : > { %1414 = vst [vmem:[%s1794_s8 + $0x78] sm:$0xff] %v1398_v34  }
 0x140 PF: > { %s13_s14 = sadd.s32 1, %s1653_s14   ;;  %s1853_s12 = smov %s1649_s13 }
 0x141   : > { %p10_p5 = scmp.ge.s32.totalorder %s13_s14, 4   ;;  %s1854_s13 = smov %s1856_s15 }
 0x143   :  { %12 = sbr.rel (!%p10_p5) target bundleno = 2 (0x2), region = 73 }

// kernel: _lambda_.19
= control target key start
LH: loop header
LB: loop body
LE: loop exit
PB: predicated region body
PF: predicated region fallthrough
CT: control target
= control target key end

     0   :  { %s2884_s12 = smov 0   ;;  %s3479_s0 = inlined_call_operand.vmem [shape: bf16[2,110,128], index: 0, kind: input, shape index: {}]   ;;  %s3480_s1 = inlined_call_operand.vmem [shape: bf16[9,128,128], index: 1, kind: input, shape index: {}]   ;;  %s3481_s2 = inlined_call_operand.vmem [shape: f32[1,128], index: 2, kind: input, shape index: {}]   ;;  %s3482_s3 = inlined_call_operand.vmem [shape: bf16[2,80,128], index: 3, kind: output, shape index: {}]  }
   0x1 LB: > { %s2008_s13 = sadd.s32 4294967295, %s2860_s12   ;;  %p2012_p0 = scmp.ge.s32.totalorder %s2860_s12, 1  ;;  %s2860_s12 = sphi %s2884_s12, %s13_s12  }
   0x2   : > { %p137_p1 = scmp.lt.s32.totalorder %s2860_s12, 3 }
   0x4   : > { %p138_p2 = pnand %p2012_p0, %p137_p1 }
   0x5   : > { %v2759_v0 = vld [vmem:[%s3480_s1 + $0x40] sm:$0xff] (!%p138_p2)   ;;  %v2862_v1 = vmov (!%p138_p2), 0.0   ;;  %v2761_v3 = vld [vmem:[%s3480_s1 + $0x48] sm:$0xff] (!%p138_p2)   ;;  %vm2863_vm0 = vmmov (!%p138_p2), 0   ;;  %p161_p3 = scmp.lt.s32.totalorder (!%p138_p2), %s2008_s13, 1  ;;  %v2763_v5 = vld [vmem:[%s3480_s1 + $0x50] sm:$0xff] (!%p138_p2)  }
   0x6   : > { %141 = sbr.rel (%p138_p2) target bundleno = 437 (0x1b5), region = 32  ;;  %2407 = vmatprep.subr.bf16.mxu0 (!%p138_p2), %v2862_v1  ;;  %2443 = vmatprep.subr.bf16.mxu1 (!%p138_p2), %v2862_v1  ;;  %v2760_v2 = vld [vmem:[%s3480_s1] sm:$0xff] (!%p138_p2)   ;;  %v2762_v4 = vld [vmem:[%s3480_s1 + $0x8] sm:$0xff] (!%p138_p2)   ;;  %v2764_v6 = vld [vmem:[%s3480_s1 + $0x10] sm:$0xff] (!%p138_p2)   ;;  %vm244_vm1 = vsmask.f32 (!%p138_p2), 7424 }
   0x7   : > { %2408 = vmatpush3.bf16.msra.mxu0 (!%p138_p2), %v2759_v0  ;;  %2423 = vmatprep.mubr.msk.bf16.mxu0 (!%p138_p2), %vm2863_vm0, %v2862_v1  ;;  %v2765_v7 = vld [vmem:[%s3480_s1 + $0x58] sm:$0xff] (!%p138_p2)   ;;  %v2767_v9 = vld [vmem:[%s3480_s1 + $0x60] sm:$0xff] (!%p138_p2)   ;;  %v2769_v13 = vld [vmem:[%s3480_s1 + $0x68] sm:$0xff] (!%p138_p2)   ;;  %vm562_vm2 = vcmask (!%p138_p2), 1046528   ;;  %vm934_vm3 = vsmask.f32 (!%p138_p2), 6400 }
   0x8   : > { %2444 = vmatpush3.bf16.msra.mxu1 (!%p138_p2), %v2760_v2  ;;  %2409 = vmatprep.subr.bf16.mxu0 (!%p138_p2), %v2862_v1  ;;  %v2766_v8 = vld [vmem:[%s3480_s1 + $0x18] sm:$0xff] (!%p138_p2)   ;;  %v2768_v10 = vld [vmem:[%s3480_s1 + $0x20] sm:$0xff] (!%p138_p2)   ;;  %v2770_v16 = vld [vmem:[%s3480_s1 + $0x28] sm:$0xff] (!%p138_p2)   ;;  %vm1145_vm4 = vcmask (!%p138_p2), 1045504   ;;  %vm1517_vm5 = vsmask.f32 (!%p138_p2), 5376 }
   0x9   : > { %2445 = vmatprep.subr.bf16.mxu1 (!%p138_p2), %v2862_v1  ;;  %2459 = vmatprep.mubr.msk.bf16.mxu1 (!%p138_p2), %vm2863_vm0, %v2862_v1  ;;  %v2771_v18 = vld [vmem:[%s3480_s1 + $0x70] sm:$0xff] (!%p138_p2)   ;;  %v2773_v23 = vld [vmem:[%s3480_s1 + $0x78] sm:$0xff] (!%p138_p2)   ;;  %v2777_v28 = vld [vmem:[%s3480_s1 + $0x80] sm:$0xff] (!%p138_p2)   ;;  %vm1728_vm6 = vcmask (!%p138_p2), 1044480  }
   0xa   : > { %v2772_v22 = vld [vmem:[%s3480_s1 + $0x30] sm:$0xff] (!%p138_p2)   ;;  %v2774_v24 = vld [vmem:[%s3480_s1 + $0x38] sm:$0xff] (!%p138_p2)   ;;  %v2780_v32 = vld [vmem:[%s3480_s1 + $0xc0] sm:$0xff] (!%p138_p2)  }
   0xb   : > { %2410 = vmatpush3.bf16.msra.mxu0 (!%p138_p2), %v2761_v3  ;;  %v2778_v34 = vld [vmem:[%s3480_s1 + $0x88] sm:$0xff] (!%p138_p2)   ;;  %v2781_v40 = vld [vmem:[%s3480_s1 + $0x90] sm:$0xff] (!%p138_p2)   ;;  %v2784_v44 = vld [vmem:[%s3480_s1 + $0x98] sm:$0xff] (!%p138_p2)  }
   0xc   : > { %2446 = vmatpush3.bf16.msra.mxu1 (!%p138_p2), %v2762_v4  ;;  %2411 = vmatprep.subr.bf16.mxu0 (!%p138_p2), %v2862_v1  ;;  %v2782_v37 = vld [vmem:[%s3480_s1 + $0xc8] sm:$0xff] (!%p138_p2)   ;;  %v2785_v42 = vld [vmem:[%s3480_s1 + $0xd0] sm:$0xff] (!%p138_p2)   ;;  %v2787_v47 = vld [vmem:[%s3480_s1 + $0xd8] sm:$0xff] (!%p138_p2)  }
   0xd   : > { %s3484_s13 = smov (!%p161_p3, %s2008_s13), 1  ;;  %2447 = vmatprep.subr.bf16.mxu1 %v2862_v1  ;;  %v2786_v48 = vld [vmem:[%s3480_s1 + $0xa0] sm:$0xff]   ;;  %v2790_v56 = vld [vmem:[%s3480_s1 + $0xa8] sm:$0xff]   ;;  %v2792_v61 = vld [vmem:[%s3480_s1 + $0xb0] sm:$0xff]  }
   0xe   : > { %s2747_s26 = smul.u32 56, %s3484_s13  ;;  %v2789_v52 = vld [vmem:[%s3480_s1 + $0xe0] sm:$0xff]   ;;  %v2791_v57 = vld [vmem:[%s3480_s1 + $0xe8] sm:$0xff]   ;;  %v2794_v62 = vld [vmem:[%s3480_s1 + $0xf0] sm:$0xff]  }
   0xf   : > { %2412 = vmatpush3.bf16.msra.mxu0 %v2763_v5  ;;  %v2795_v63 = vld [vmem:[%s3480_s1 + $0xb8] sm:$0xff]   ;;  %s2748_s18 = smul.u32 40, %s3484_s13 }
  0x10   : > { %2448 = vmatpush3.bf16.msra.mxu1 %v2764_v6  ;;  %2413 = vmatprep.subr.bf16.mxu0 %v2862_v1  ;;  %s2934_s6 = scalar_lea.vmem %s3479_s0, %s2747_s26  ;;  %v2796_v3 = vld [vmem:[%s3480_s1 + $0xf8] sm:$0xff]  }
  0x11   : > { %2449 = vmatprep.subr.bf16.mxu1 %v2862_v1  ;;  %v172_v11 = vld [vmem:[%s2934_s6] sm:$0xf]  ;;  %v2946_v12 = vld [vmem:[%s2934_s6 + $0x4] sm:$0xf]  ;;  %v2953_v15 = vld [vmem:[%s2934_s6 + $0x8] sm:$0xff]   ;;  %s3465_s21 = scalar_lea.vmem %s3482_s3, %s2748_s18 }
  0x12   : > { %v2031_v14 = vcombine.low %v172_v11, %v2946_v12  ;;  %v253_v21 = vshll.u32 %v2953_v15, 16  ;;  %v2976_v27 = vld [vmem:[%s2934_s6 + $0x10] sm:$0xff]   ;;  %v257_v30 = vshrl.u32 %v2953_v15, 16  ;;  %v2992_v33 = vld [vmem:[%s2934_s6 + $0x18] sm:$0xff]   ;;  %v3021_v45 = vld [vmem:[%s2934_s6 + $0x20] sm:$0xff]  }
  0x13   : > { %2414 = vmatpush3.bf16.msra.mxu0 %v2765_v7  ;;  %v261_v31 = vshll.u32 %v2976_v27, 16  ;;  %v269_v38 = vshll.u32 %v2992_v33, 16  ;;  %v265_v41 = vshrl.u32 %v2976_v27, 16  ;;  %v273_v50 = vshrl.u32 %v2992_v33, 16  ;;  %v541_v4 = vld [vmem:[%s2934_s6] sm:$0xe] }
  0x14   : > { %2450 = vmatpush3.bf16.msra.mxu1 %v2766_v8  ;;  %2415 = vmatprep.subr.bf16.mxu0 %v2862_v1  ;;  %v248_v17 = vshll.u32 %v2031_v14, 16  ;;  %v246_v19 = vshrl.u32 %v2031_v14, 16  ;;  %v255_v26 = vrot.slane %v253_v21, 1  ;;  %v277_v51 = vshll.u32 %v3021_v45, 16  ;;  %v710_v5 = vld [vmem:[%s2934_s6 + $0x4] sm:$0xe] }
  0x15   : > { %2451 = vmatprep.subr.bf16.mxu1 %v2862_v1  ;;  %v263_v36 = vrot.slane %v261_v31, 1  ;;  %v271_v43 = vrot.slane %v269_v38, 1  ;;  %v3044_v53 = vld [vmem:[%s2934_s6 + $0x28] ss:$0 sps:$4 sm:$0x11]   ;;  %v281_v59 = vshrl.u32 %v3021_v45, 16  ;;  %v2069_v8 = vcombine.low %v541_v4, %v2946_v12 }
  0x16   : > { %v250_v20 = vrot.slane %v248_v17, 1  ;;  %v259_v35 = vor.u32 %v257_v30, %v255_v26  ;;  %v279_v55 = vrot.slane %v277_v51, 1  ;;  %v285_v60 = vshll.u32 %v3044_v53, 16  ;;  %v3086_v6 = vld [vmem:[%s2934_s6 + $0x8] sm:$0xf]  ;;  %v2800_v17 = vld [vmem:[%s3480_s1 + $0x100] sm:$0xff]  }
  0x17   : > { %2416 = vmatpush3.bf16.msra.mxu0 %v2767_v9  ;;  %v267_v46 = vor.u32 %v265_v41, %v263_v36  ;;  %v275_v54 = vor.u32 %v273_v50, %v271_v43  ;;  %v3092_v9 = vcombine.low %v710_v5, %v3086_v6  ;;  %v563_v11 = vrot.slane %v2069_v8, 1  ;;  %v2807_v30 = vld [vmem:[%s3480_s1 + $0x118] sm:$0xff]   ;;  %v2814_v41 = vld [vmem:[%s3480_s1 + $0x168] sm:$0xff]  }
  0x18   : > { %2452 = vmatpush3.bf16.msra.mxu1 %v2768_v10  ;;  %2417 = vmatprep.subr.bf16.mxu0 %v2862_v1  ;;  %v251_v25 = vor.u32 %v250_v20, %v246_v19  ;;  %v264_v39 = vsel %vm244_vm1, %v259_v35, %v263_v36  ;;  %v283_v0 = vor.u32 %v281_v59, %v279_v55  ;;  %v287_v2 = vrot.slane %v285_v60, 1  ;;  %v3095_v10 = vld [vmem:[%s2934_s6 + $0xc] sm:$0xff]   ;;  %v3113_v19 = vld [vmem:[%s2934_s6 + $0x14] sm:$0xff]   ;;  %v3166_v36 = vld [vmem:[%s2934_s6 + $0x24] sm:$0xff]  }
  0x19   : > { %2453 = vmatprep.subr.bf16.mxu1 %v2862_v1  ;;  %v272_v49 = vsel %vm244_vm1, %v267_v46, %v271_v43  ;;  %v280_v58 = vsel %vm244_vm1, %v275_v54, %v279_v55  ;;  %v564_v12 = vrot.slane %v2953_v15, 1  ;;  %v2801_v20 = vld [vmem:[%s3480_s1 + $0x108] sm:$0xff]   ;;  %v566_v21 = vrot.slane %v2976_v27, 1  ;;  %v2817_v46 = vld [vmem:[%s3480_s1 + $0x170] sm:$0xff]   ;;  %v2819_v54 = vld [vmem:[%s3480_s1 + $0x178] sm:$0xff]  }
  0x1a   : > { %v256_v29 = vsel %vm244_vm1, %v251_v25, %v255_v26  ;;  %v288_v7 = vsel %vm244_vm1, %v283_v0, %v287_v2  ;;  %v2804_v25 = vld [vmem:[%s3480_s1 + $0x110] sm:$0xff]   ;;  %v570_v38 = vrot.slane %v3021_v45, 1  ;;  %v2816_v43 = vld [vmem:[%s2934_s6 + $0x2c] ss:$0 sps:$4 sm:$0x11]   ;;  %v944_v50 = vshrl.u32 %v3095_v10, 16 }
  0x1b   : > { %2418 = vmatpush3.bf16.msra.mxu0 %v2769_v13  ;;  %v766_v13 = vrot.slane %v3092_v9, 1  ;;  %v947_v51 = vshll.u32 %v3095_v10, 16  ;;  %v1124_v55 = vld [vmem:[%s2934_s6 + $0x4] sm:$0xc]  ;;  %v953_v2 = vshrl.u32 %v3113_v19, 16  ;;  %v1147_v5 = vrot.slane %v3095_v10, 2 }
  0x1c   : > { %2454 = vmatpush3.bf16.msra.mxu1 %v2770_v16  ;;  %2419 = vmatprep.subr.bf16.mxu0 %v2862_v1  ;;  %v565_v16 = vsel %vm562_vm2, %v563_v11, %v564_v12  ;;  %v946_v59 = vrot.slane %v944_v50, 1 }
  0x1d   : > { %2455 = vmatprep.subr.bf16.mxu1 %v2862_v1  ;;  %v949_v60 = vrot.slane %v947_v51, 2  ;;  %v955_v8 = vrot.slane %v953_v2, 1  ;;  %v3311_v51 = vld [vmem:[%s2934_s6 + $0x10] sm:$0xff]  }
  0x1f   : > { %2420 = vmatpush3.bf16.msra.mxu0 %v2771_v18  ;;  %v950_v0 = vor.u32 %v949_v60, %v946_v59  ;;  %v1530_v59 = vshll.u32 %v3311_v51, 16  ;;  %v2837_v60 = vld [vmem:[%s3480_s1 + $0x1f8] sm:$0xff]  }
  0x20   : > { %2456 = vmatpush3.bf16.msra.mxu1 %v2772_v22  ;;  %2421 = vmatprep.subr.bf16.mxu0 %v2862_v1  ;;  %v769_v22 = vrot.slane %v3113_v19, 1 }
  0x21   : > { %2457 = vmatprep.subr.bf16.mxu1 %v2862_v1 }
  0x23   : > { %2422 = vmatpush3.bf16.msra.mxu0 %v2773_v23  ;;  %v2805_v23 = vld [vmem:[%s3480_s1 + $0x148] sm:$0xff]  }
  0x24   : > { %2458 = vmatpush3.bf16.msra.mxu1 %v2774_v24  ;;  %2479 = vmatprep.subr.bf16.mxu0 %v2862_v1  ;;  %v567_v24 = vsel %vm562_vm2, %v564_v12, %v566_v21  ;;  %v2823_v12 = vld [vmem:[%s3480_s1 + $0x1c0] sm:$0xff]  }
  0x25   : > { %2515 = vmatprep.subr.bf16.mxu1 %v2862_v1 }
  0x26   : > { %2424 = vmatmul.mubr.bf16.vlgmr.msra.gmra.mrb[0].mxu0 %v256_v29  ;;  %v568_v29 = vrot.slane %v2992_v33, 1 }
  0x27   : > { %2460 = vmatmul.mubr.bf16.vlgmr.msra.gmra.mrb[0].mxu1 %v2031_v14  ;;  %2480 = vmatpush3.bf16.msra.mxu0 %v2777_v28  ;;  %v767_v14 = vrot.slane %v3095_v10, 1  ;;  %v2808_v28 = vld [vmem:[%s3480_s1 + $0x150] sm:$0xff]   ;;  %v2822_v10 = vld [vmem:[%s3480_s1 + $0x188] sm:$0xff]  }
  0x28   : > { %2481 = vmatprep.subr.bf16.mxu0 %v2862_v1  ;;  %2427 = vmatprep.mubr.msk.bf16.mxu0 %vm2863_vm0, %v2862_v1 }
  0x29   : > { %2463 = vmatprep.mubr.msk.bf16.mxu1 %vm2863_vm0, %v2862_v1  ;;  %2516 = vmatpush3.bf16.msra.mxu1 %v2780_v32  ;;  %v768_v18 = vsel %vm562_vm2, %v766_v13, %v767_v14  ;;  %v770_v26 = vsel %vm562_vm2, %v767_v14, %v769_v22  ;;  %v2810_v32 = vld [vmem:[%s3480_s1 + $0x158] sm:$0xff]  }
  0x2a   : > { %2517 = vmatprep.subr.bf16.mxu1 %v2862_v1 }
  0x2b   : > { %2482 = vmatpush3.bf16.msra.mxu0 %v2778_v34  ;;  %v2809_v34 = vld [vmem:[%s3480_s1 + $0x120] sm:$0xff]  }
  0x2c   : > { %2483 = vmatprep.subr.bf16.mxu0 %v2862_v1 }
  0x2d   : > { %2518 = vmatpush3.bf16.msra.mxu1 %v2782_v37  ;;  %v2812_v37 = vld [vmem:[%s3480_s1 + $0x160] sm:$0xff]  }
  0x2e   : > { %2428 = vmatmul.mubr.bf16.gmra.mrb[4].mxu0 %v264_v39  ;;  %2519 = vmatprep.subr.bf16.mxu1 %v2862_v1  ;;  %v2813_v39 = vld [vmem:[%s3480_s1 + $0x128] sm:$0xff]  }
  0x2f   : > { %2464 = vmatmul.mubr.bf16.gmra.mrb[4].mxu1 %v2953_v15  ;;  %2484 = vmatpush3.bf16.msra.mxu0 %v2781_v40  ;;  %v2803_v15 = vld [vmem:[%s3480_s1 + $0x140] sm:$0xff]   ;;  %v773_v40 = vrot.slane %v3166_v36, 1 }
  0x30   : > { %2431 = vmatprep.mubr.msk.bf16.mxu0 %vm2863_vm0, %v2862_v1  ;;  %2467 = vmatprep.mubr.msk.bf16.mxu1 %vm2863_vm0, %v2862_v1 }
  0x31   : > { %2485 = vmatprep.subr.bf16.mxu0 %v2862_v1  ;;  %2520 = vmatpush3.bf16.msra.mxu1 %v2785_v42  ;;  %v571_v42 = vsel %vm562_vm2, %v568_v29, %v570_v38 }
  0x32   : > { %2521 = vmatprep.subr.bf16.mxu1 %v2862_v1 }
  0x33   : > { %2486 = vmatpush3.bf16.msra.mxu0 %v2784_v44 }
  0x34   : > { %2487 = vmatprep.subr.bf16.mxu0 %v2862_v1 }
  0x35   : > { %2522 = vmatpush3.bf16.msra.mxu1 %v2787_v47  ;;  %v572_v47 = vrot.slane %v3044_v53, 1  ;;  %v2818_v53 = vld [vmem:[%s3480_s1 + $0x138] sm:$0xff]  }
  0x36   : > { %2432 = vmatmul.mubr.bf16.gmra.mrb[8].mxu0 %v272_v49  ;;  %2523 = vmatprep.subr.bf16.mxu1 %v2862_v1  ;;  %v939_v49 = vshll.u32 %v3092_v9, 16 }
  0x37   : > { %2468 = vmatmul.mubr.bf16.gmra.mrb[8].mxu1 %v2976_v27  ;;  %2488 = vmatpush3.bf16.msra.mxu0 %v2786_v48  ;;  %v3139_v27 = vld [vmem:[%s2934_s6 + $0x1c] sm:$0xff]   ;;  %v936_v48 = vshrl.u32 %v3092_v9, 16 }
  0x38   : > { %2435 = vmatprep.mubr.msk.bf16.mxu0 %vm2863_vm0, %v2862_v1  ;;  %2471 = vmatprep.mubr.msk.bf16.mxu1 %vm2863_vm0, %v2862_v1  ;;  %v771_v31 = vrot.slane %v3139_v27, 1  ;;  %v962_v14 = vshrl.u32 %v3139_v27, 16 }
  0x39   : > { %2489 = vmatprep.subr.bf16.mxu0 %v2862_v1  ;;  %2524 = vmatpush3.bf16.msra.mxu1 %v2789_v52  ;;  %v775_v52 = vrot.slane %v2816_v43, 1  ;;  %v2832_v43 = vld [vmem:[%s3480_s1 + $0x1e8] sm:$0xff]  }
  0x3a   : > { %2525 = vmatprep.subr.bf16.mxu1 %v2862_v1  ;;  %v772_v35 = vsel %vm562_vm2, %v769_v22, %v771_v31  ;;  %v774_v44 = vsel %vm562_vm2, %v771_v31, %v773_v40 }
  0x3b   : > { %2490 = vmatpush3.bf16.msra.mxu0 %v2790_v56  ;;  %v573_v56 = vsel %vm562_vm2, %v570_v38, %v572_v47 }
  0x3c   : > { %2491 = vmatprep.subr.bf16.mxu0 %v2862_v1 }
  0x3d   : > { %2526 = vmatpush3.bf16.msra.mxu1 %v2791_v57  ;;  %v938_v57 = vrot.slane %v936_v48, 1 }
  0x3e   : > { %2436 = vmatmul.mubr.bf16.gmra.mrb[12].mxu0 %v280_v58  ;;  %2527 = vmatprep.subr.bf16.mxu1 %v2862_v1  ;;  %v941_v58 = vrot.slane %v939_v49, 2 }
  0x3f   : > { %2472 = vmatmul.mubr.bf16.gmra.mrb[12].mxu1 %v2992_v33  ;;  %2439 = vmatprep.mubr.msk.bf16.mxu0 %vm2863_vm0, %v2862_v1  ;;  %v569_v33 = vsel %vm562_vm2, %v566_v21, %v568_v29  ;;  %v964_v21 = vrot.slane %v962_v14, 1  ;;  %v1151_v29 = vrot.slane %v3139_v27, 2 }
  0x40   : > { %2475 = vmatprep.mubr.msk.bf16.mxu1 %vm2863_vm0, %v2862_v1  ;;  %2492 = vmatpush3.bf16.msra.mxu0 %v2792_v61  ;;  %v776_v61 = vsel %vm562_vm2, %v773_v40, %v775_v52  ;;  %v2835_v52 = vld [vmem:[%s3480_s1 + $0x1f0] sm:$0xff]  }
  0x41   : > { %2528 = vmatpush3.bf16.msra.mxu1 %v2794_v62  ;;  %2493 = vmatprep.subr.bf16.mxu0 %v2862_v1  ;;  %v2149_v62 = vcombine.low %v1124_v55, %v3086_v6  ;;  %v2836_v55 = vld [vmem:[%s3480_s1 + $0x1b8] sm:$0xff]  }
  0x42   : > { %2529 = vmatprep.subr.bf16.mxu1 %v2862_v1 }
  0x43   : > { %v1146_v4 = vrot.slane %v2149_v62, 2 }
  0x44   : > { %2494 = vmatpush3.bf16.msra.mxu0 %v2795_v63  ;;  %v942_v63 = vor.u32 %v941_v58, %v938_v57  ;;  %v1527_v58 = vshrl.u32 %v3311_v51, 16 }
  0x45   : > { %2530 = vmatpush3.bf16.msra.mxu1 %v2796_v3  ;;  %2551 = vmatprep.subr.bf16.mxu0 %v2862_v1  ;;  %v956_v3 = vshll.u32 %v3113_v19, 16  ;;  %v1148_v11 = vsel %vm1145_vm4, %v1146_v4, %v1147_v5  ;;  %v3334_v4 = vld [vmem:[%s2934_s6 + $0x18] sm:$0xff]  }
  0x46   : > { %2440 = vmatmul.mubr.bf16.gmra.mrb[16].mxu0 %v288_v7  ;;  %2587 = vmatprep.subr.bf16.mxu1 %v2862_v1  ;;  %v951_v6 = vsel %vm934_vm3, %v942_v63, %v950_v0  ;;  %v2821_v7 = vld [vmem:[%s3480_s1 + $0x180] sm:$0xff]   ;;  %v1529_v2 = vrot.slane %v1527_v58, 2 }
  0x47   : > { %2476 = vmatmul.mubr.bf16.gmra.mrb[16].mxu1 %v3021_v45  ;;  %2495 = vmatprep.mubr.msk.bf16.mxu0 %vm2863_vm0, %v2862_v1  ;;  %v2815_v45 = vld [vmem:[%s3480_s1 + $0x130] sm:$0xff]   ;;  %v958_v9 = vrot.slane %v956_v3, 2  ;;  %v1532_v3 = vrot.slane %v1530_v59, 3 }
  0x48   : > { %2531 = vmatprep.mubr.msk.bf16.mxu1 %vm2863_vm0, %v2862_v1 }
  0x49   : > { %v959_v13 = vor.u32 %v958_v9, %v955_v8  ;;  %v1533_v8 = vor.u32 %v1532_v3, %v1529_v2  ;;  %v1536_v9 = vshrl.u32 %v3334_v4, 16 }
  0x4b   : > { %v1538_v14 = vrot.slane %v1536_v9, 2 }
  0x4e   : > { %2496 = vmatmul.mubr.bf16.vlgmr.msra.gmra.mrb[20].mxu0 %v565_v16  ;;  %v965_v16 = vshll.u32 %v3139_v27, 16 }
  0x4f   : > { %2532 = vmatmul.mubr.bf16.vlgmr.msra.gmra.mrb[20].mxu1 %v768_v18  ;;  %2552 = vmatpush3.bf16.msra.mxu0 %v2800_v17  ;;  %v1149_v17 = vrot.slane %v3113_v19, 2  ;;  %v2825_v18 = vld [vmem:[%s3480_s1 + $0x1c8] sm:$0xff]  }
  0x50   : > { %2553 = vmatprep.subr.bf16.mxu0 %v2862_v1  ;;  %2499 = vmatprep.mubr.msk.bf16.mxu0 %vm2863_vm0, %v2862_v1  ;;  %v967_v22 = vrot.slane %v965_v16, 2 }
  0x51   : > { %2535 = vmatprep.mubr.msk.bf16.mxu1 %vm2863_vm0, %v2862_v1  ;;  %2588 = vmatpush3.bf16.msra.mxu1 %v2803_v15  ;;  %v960_v15 = vsel %vm934_vm3, %v950_v0, %v959_v13  ;;  %v1150_v19 = vsel %vm1145_vm4, %v1147_v5, %v1149_v17  ;;  %v1152_v27 = vsel %vm1145_vm4, %v1149_v17, %v1151_v29  ;;  %v3351_v17 = vld [vmem:[%s2934_s6 + $0x20] sm:$0xff]  }
  0x52   : > { %2589 = vmatprep.subr.bf16.mxu1 %v2862_v1 }
  0x53   : > { %2554 = vmatpush3.bf16.msra.mxu0 %v2801_v20  ;;  %v2824_v20 = vld [vmem:[%s3480_s1 + $0x190] sm:$0xff]  }
  0x54   : > { %2555 = vmatprep.subr.bf16.mxu0 %v2862_v1 }
  0x55   : > { %2590 = vmatpush3.bf16.msra.mxu1 %v2805_v23  ;;  %v2827_v23 = vld [vmem:[%s3480_s1 + $0x1d0] sm:$0xff]  }
  0x56   : > { %2500 = vmatmul.mubr.bf16.gmra.mrb[24].mxu0 %v567_v24  ;;  %2591 = vmatprep.subr.bf16.mxu1 %v2862_v1  ;;  %v968_v24 = vor.u32 %v967_v22, %v964_v21  ;;  %v1545_v21 = vshrl.u32 %v3351_v17, 16  ;;  %v1548_v22 = vshll.u32 %v3351_v17, 16 }
  0x57   : > { %2536 = vmatmul.mubr.bf16.gmra.mrb[24].mxu1 %v770_v26  ;;  %2556 = vmatpush3.bf16.msra.mxu0 %v2804_v25  ;;  %v2826_v25 = vld [vmem:[%s3480_s1 + $0x198] sm:$0xff]   ;;  %v971_v26 = vshrl.u32 %v3166_v36, 16 }
  0x58   : > { %2503 = vmatprep.mubr.msk.bf16.mxu0 %vm2863_vm0, %v2862_v1  ;;  %2539 = vmatprep.mubr.msk.bf16.mxu1 %vm2863_vm0, %v2862_v1  ;;  %v969_v31 = vsel %vm934_vm3, %v959_v13, %v968_v24 }
  0x59   : > { %2557 = vmatprep.subr.bf16.mxu0 %v2862_v1  ;;  %2592 = vmatpush3.bf16.msra.mxu1 %v2808_v28  ;;  %v974_v28 = vshll.u32 %v3166_v36, 16 }
  0x5a   : > { %2593 = vmatprep.subr.bf16.mxu1 %v2862_v1 }
  0x5b   : > { %2558 = vmatpush3.bf16.msra.mxu0 %v2807_v30  ;;  %v2829_v30 = vld [vmem:[%s3480_s1 + $0x1d8] sm:$0xff]  }
  0x5c   : > { %2559 = vmatprep.subr.bf16.mxu0 %v2862_v1 }
  0x5d   : > { %2594 = vmatpush3.bf16.msra.mxu1 %v2810_v32  ;;  %v2828_v32 = vld [vmem:[%s3480_s1 + $0x1a0] sm:$0xff]  }
  0x5e   : > { %2504 = vmatmul.mubr.bf16.gmra.mrb[28].mxu0 %v569_v33  ;;  %2595 = vmatprep.subr.bf16.mxu1 %v2862_v1  ;;  %v973_v33 = vrot.slane %v971_v26, 1  ;;  %v1550_v26 = vrot.slane %v1548_v22, 3 }
  0x5f   : > { %2540 = vmatmul.mubr.bf16.gmra.mrb[28].mxu1 %v772_v35  ;;  %2560 = vmatpush3.bf16.msra.mxu0 %v2809_v34  ;;  %v976_v34 = vrot.slane %v974_v28, 2  ;;  %v2834_v35 = vld [vmem:[%s2934_s6 + $0x2c] ss:$0 sps:$4 sm:$0x33]  }
  0x60   : > { %2507 = vmatprep.mubr.msk.bf16.mxu0 %vm2863_vm0, %v2862_v1  ;;  %2543 = vmatprep.mubr.msk.bf16.mxu1 %vm2863_vm0, %v2862_v1  ;;  %v980_v40 = vshrl.u32 %v2834_v35, 16  ;;  %v3372_v28 = vld [vmem:[%s2934_s6 + $0x28] sm:$0xff]  }
  0x61   : > { %2561 = vmatprep.subr.bf16.mxu0 %v2862_v1  ;;  %2596 = vmatpush3.bf16.msra.mxu1 %v2812_v37  ;;  %v2830_v37 = vld [vmem:[%s3480_s1 + $0x1e0] sm:$0xff]   ;;  %v977_v38 = vor.u32 %v976_v34, %v973_v33  ;;  %v1557_v33 = vshll.u32 %v3372_v28, 16 }
  0x62   : > { %2597 = vmatprep.subr.bf16.mxu1 %v2862_v1  ;;  %v982_v47 = vrot.slane %v980_v40, 1  ;;  %v1356_v40 = vrot.slane %v3372_v28, 2 }
  0x63   : > { %2562 = vmatpush3.bf16.msra.mxu0 %v2813_v39  ;;  %v2831_v39 = vld [vmem:[%s3480_s1 + $0x1a8] sm:$0xff]  }
  0x64   : > { %2563 = vmatprep.subr.bf16.mxu0 %v2862_v1 }
  0x65   : > { %2598 = vmatpush3.bf16.msra.mxu1 %v2814_v41  ;;  %v983_v41 = vshll.u32 %v2834_v35, 16 }
  0x66   : > { %2508 = vmatmul.mubr.bf16.gmra.mrb[32].mxu0 %v571_v42  ;;  %2599 = vmatprep.subr.bf16.mxu1 %v2862_v1  ;;  %v1153_v42 = vrot.slane %v3166_v36, 2  ;;  %v2833_v36 = vld [vmem:[%s3480_s1 + $0x1b0] sm:$0xff]  }
  0x67   : > { %2544 = vmatmul.mubr.bf16.gmra.mrb[32].mxu1 %v774_v44  ;;  %2511 = vmatprep.mubr.msk.bf16.mxu0 %vm2863_vm0, %v2862_v1  ;;  %v1293_v44 = vld [vmem:[%s2934_s6 + $0x8] sm:$0xc]  ;;  %v985_v48 = vrot.slane %v983_v41, 2 }
  0x68   : > { %2547 = vmatprep.mubr.msk.bf16.mxu1 %vm2863_vm0, %v2862_v1  ;;  %2564 = vmatpush3.bf16.msra.mxu0 %v2815_v45  ;;  %v3300_v45 = vld [vmem:[%s2934_s6 + $0xc] sm:$0xf]  ;;  %v1154_v49 = vsel %vm1145_vm4, %v1151_v29, %v1153_v42  ;;  %v1354_v29 = vrot.slane %v3351_v17, 2 }
  0x69   : > { %2600 = vmatpush3.bf16.msra.mxu1 %v2817_v46  ;;  %2565 = vmatprep.subr.bf16.mxu0 %v2862_v1  ;;  %v978_v46 = vsel %vm934_vm3, %v968_v24, %v977_v38  ;;  %v2174_v50 = vcombine.low %v1293_v44, %v3300_v45  ;;  %v2848_v41 = vld [vmem:[%s3480_s1 + $0x228] sm:$0xff]  }
  0x6a   : > { %2601 = vmatprep.subr.bf16.mxu1 %v2862_v1 }
  0x6b   : > { %v1522_v57 = vshll.u32 %v2174_v50, 16  ;;  %v1349_v5 = vrot.slane %v2174_v50, 2 }
  0x6c   : > { %2566 = vmatpush3.bf16.msra.mxu0 %v2818_v53  ;;  %v986_v53 = vor.u32 %v985_v48, %v982_v47  ;;  %v2850_v47 = vld [vmem:[%s2934_s6 + $0x30] ss:$0 sps:$4 sm:$0x33]  }
  0x6d   : > { %2602 = vmatpush3.bf16.msra.mxu1 %v2819_v54  ;;  %2623 = vmatprep.subr.bf16.mxu0 %v2862_v1  ;;  %v1155_v54 = vrot.slane %v2834_v35, 2  ;;  %v1524_v0 = vrot.slane %v1522_v57, 3  ;;  %v2846_v35 = vld [vmem:[%s3480_s1 + $0x220] sm:$0xff]  }
  0x6e   : > { %2512 = vmatmul.mubr.bf16.gmra.mrb[36].mxu0 %v573_v56  ;;  %2659 = vmatprep.subr.bf16.mxu1 %v2862_v1  ;;  %v1519_v56 = vshrl.u32 %v2174_v50, 16 }
  0x6f   : > { %2548 = vmatmul.mubr.bf16.gmra.mrb[36].mxu1 %v776_v61  ;;  %2567 = vmatprep.mubr.msk.bf16.mxu0 %vm2863_vm0, %v2862_v1  ;;  %v987_v61 = vsel %vm934_vm3, %v977_v38, %v986_v53  ;;  %v1156_v62 = vsel %vm1145_vm4, %v1153_v42, %v1155_v54  ;;  %v1559_v38 = vrot.slane %v1557_v33, 3  ;;  %v2852_v54 = vld [vmem:[%s3480_s1 + $0x238] sm:$0xff]  }
  0x70   : > { %2603 = vmatprep.mubr.msk.bf16.mxu1 %vm2863_vm0, %v2862_v1  ;;  %v1521_v63 = vrot.slane %v1519_v56, 2 }
  0x76   : > { %2568 = vmatmul.mubr.bf16.vlgmr.msra.gmra.mrb[40].mxu0 %v951_v6  ;;  %v1350_v6 = vrot.slane %v3311_v51, 2 }
  0x77   : > { %2604 = vmatmul.mubr.bf16.vlgmr.msra.gmra.mrb[40].mxu1 %v1148_v11  ;;  %2624 = vmatpush3.bf16.msra.mxu0 %v2821_v7  ;;  %v1525_v7 = vor.u32 %v1524_v0, %v1521_v63  ;;  %v1539_v11 = vshll.u32 %v3334_v4, 16  ;;  %v1732_v0 = vrot.slane %v3334_v4, 3 }
  0x78   : > { %2625 = vmatprep.subr.bf16.mxu0 %v2862_v1  ;;  %2571 = vmatprep.mubr.msk.bf16.mxu0 %vm2863_vm0, %v2862_v1 }
  0x79   : > { %2607 = vmatprep.mubr.msk.bf16.mxu1 %vm2863_vm0, %v2862_v1  ;;  %2660 = vmatpush3.bf16.msra.mxu1 %v2823_v12  ;;  %v1351_v12 = vsel %vm1145_vm4, %v1349_v5, %v1350_v6  ;;  %v1534_v13 = vsel %vm1517_vm5, %v1525_v7, %v1533_v8  ;;  %v1541_v16 = vrot.slane %v1539_v11, 3 }
  0x7a   : > { %2661 = vmatprep.subr.bf16.mxu1 %v2862_v1 }
  0x7b   : > { %2626 = vmatpush3.bf16.msra.mxu0 %v2822_v10  ;;  %v2840_v10 = vld [vmem:[%s3480_s1 + $0x200] sm:$0xff]  }
  0x7c   : > { %2627 = vmatprep.subr.bf16.mxu0 %v2862_v1 }
  0x7d   : > { %2662 = vmatpush3.bf16.msra.mxu1 %v2825_v18  ;;  %v2841_v18 = vld [vmem:[%s3480_s1 + $0x208] sm:$0xff]  }
  0x7e   : > { %2572 = vmatmul.mubr.bf16.gmra.mrb[44].mxu0 %v960_v15  ;;  %2663 = vmatprep.subr.bf16.mxu1 %v2862_v1  ;;  %v1352_v15 = vrot.slane %v3334_v4, 2 }
  0x7f   : > { %2608 = vmatmul.mubr.bf16.gmra.mrb[44].mxu1 %v1150_v19  ;;  %2628 = vmatpush3.bf16.msra.mxu0 %v2824_v20  ;;  %v1542_v20 = vor.u32 %v1541_v16, %v1538_v14 }
  0x80   : > { %2575 = vmatprep.mubr.msk.bf16.mxu0 %vm2863_vm0, %v2862_v1  ;;  %2611 = vmatprep.mubr.msk.bf16.mxu1 %vm2863_vm0, %v2862_v1  ;;  %v1353_v19 = vsel %vm1145_vm4, %v1350_v6, %v1352_v15  ;;  %v1355_v34 = vsel %vm1145_vm4, %v1352_v15, %v1354_v29 }
  0x81   : > { %2629 = vmatprep.subr.bf16.mxu0 %v2862_v1  ;;  %2664 = vmatpush3.bf16.msra.mxu1 %v2827_v23  ;;  %v2843_v23 = vld [vmem:[%s3480_s1 + $0x210] sm:$0xff]   ;;  %v1543_v24 = vsel %vm1517_vm5, %v1533_v8, %v1542_v20 }
  0x82   : > { %2665 = vmatprep.subr.bf16.mxu1 %v2862_v1 }
  0x83   : > { %2630 = vmatpush3.bf16.msra.mxu0 %v2826_v25  ;;  %v1547_v25 = vrot.slane %v1545_v21, 2 }
  0x84   : > { %2631 = vmatprep.subr.bf16.mxu0 %v2862_v1 }
  0x85   : > { %2666 = vmatpush3.bf16.msra.mxu1 %v2829_v30  ;;  %v2845_v30 = vld [vmem:[%s3480_s1 + $0x218] sm:$0xff]  }
  0x86   : > { %2576 = vmatmul.mubr.bf16.gmra.mrb[48].mxu0 %v969_v31  ;;  %2667 = vmatprep.subr.bf16.mxu1 %v2862_v1  ;;  %v1551_v31 = vor.u32 %v1550_v26, %v1547_v25 }
  0x87   : > { %2612 = vmatmul.mubr.bf16.gmra.mrb[48].mxu1 %v1152_v27  ;;  %2632 = vmatpush3.bf16.msra.mxu0 %v2828_v32  ;;  %v1554_v32 = vshrl.u32 %v3372_v28, 16 }
  0x88   : > { %2579 = vmatprep.mubr.msk.bf16.mxu0 %vm2863_vm0, %v2862_v1  ;;  %2615 = vmatprep.mubr.msk.bf16.mxu1 %vm2863_vm0, %v2862_v1  ;;  %v1552_v27 = vsel %vm1517_vm5, %v1542_v20, %v1551_v31 }
  0x89   : > { %2633 = vmatprep.subr.bf16.mxu0 %v2862_v1  ;;  %2668 = vmatpush3.bf16.msra.mxu1 %v2830_v37  ;;  %v1556_v37 = vrot.slane %v1554_v32, 2 }
  0x8a   : > { %2669 = vmatprep.subr.bf16.mxu1 %v2862_v1 }
  0x8b   : > { %2634 = vmatpush3.bf16.msra.mxu0 %v2831_v39  ;;  %v3394_v39 = vld [vmem:[%s2934_s6 + $0x30] ss:$0 sps:$4 sm:$0x77]   ;;  %v1560_v42 = vor.u32 %v1559_v38, %v1556_v37 }
  0x8c   : > { %2635 = vmatprep.subr.bf16.mxu0 %v2862_v1  ;;  %v1566_v44 = vshll.u32 %v3394_v39, 16 }
  0x8d   : > { %2670 = vmatpush3.bf16.msra.mxu1 %v2832_v43  ;;  %v1563_v43 = vshrl.u32 %v3394_v39, 16  ;;  %v1561_v48 = vsel %vm1517_vm5, %v1551_v31, %v1560_v42 }
  0x8e   : > { %2580 = vmatmul.mubr.bf16.gmra.mrb[52].mxu0 %v978_v46  ;;  %2671 = vmatprep.subr.bf16.mxu1 %v2862_v1  ;;  %v1357_v46 = vsel %vm1145_vm4, %v1354_v29, %v1356_v40  ;;  %v1568_v50 = vrot.slane %v1566_v44, 3 }
  0x8f   : > { %2616 = vmatmul.mubr.bf16.gmra.mrb[52].mxu1 %v1154_v49  ;;  %2583 = vmatprep.mubr.msk.bf16.mxu0 %vm2863_vm0, %v2862_v1  ;;  %v2849_v49 = vld [vmem:[%s3480_s1 + $0x230] sm:$0xff]  }
  0x90   : > { %2619 = vmatprep.mubr.msk.bf16.mxu1 %vm2863_vm0, %v2862_v1  ;;  %2636 = vmatpush3.bf16.msra.mxu0 %v2833_v36  ;;  %v1565_v36 = vrot.slane %v1563_v43, 2 }
  0x91   : > { %2672 = vmatpush3.bf16.msra.mxu1 %v2835_v52  ;;  %2637 = vmatprep.subr.bf16.mxu0 %v2862_v1  ;;  %v1358_v52 = vrot.slane %v2850_v47, 2 }
  0x92   : > { %2673 = vmatprep.subr.bf16.mxu1 %v2862_v1  ;;  %v1569_v53 = vor.u32 %v1568_v50, %v1565_v36 }
  0x93   : > { %v1359_v56 = vsel %vm1145_vm4, %v1356_v40, %v1358_v52 }
  0x94   : > { %2638 = vmatpush3.bf16.msra.mxu0 %v2836_v55  ;;  %v1707_v55 = vld [vmem:[%s2934_s6 + $0x8] sm:$0x8]  ;;  %v1570_v58 = vsel %vm1517_vm5, %v1560_v42, %v1569_v53 }
  0x95   : > { %2674 = vmatpush3.bf16.msra.mxu1 %v2837_v60  ;;  %2695 = vmatprep.subr.bf16.mxu0 %v2862_v1  ;;  %v2229_v57 = vcombine.low %v1707_v55, %v3300_v45  ;;  %v1730_v60 = vrot.slane %v3311_v51, 3  ;;  %v1736_v45 = vrot.slane %v3372_v28, 3  ;;  %v1738_v51 = vrot.slane %v3394_v39, 3 }
  0x96   : > { %2584 = vmatmul.mubr.bf16.gmra.mrb[56].mxu0 %v987_v61  ;;  %2731 = vmatprep.subr.bf16.mxu1 %v2862_v1  ;;  %v1734_v61 = vrot.slane %v3351_v17, 3 }
  0x97   : > { %2620 = vmatmul.mubr.bf16.gmra.mrb[56].mxu1 %v1156_v62  ;;  %2639 = vmatprep.mubr.msk.bf16.mxu0 %vm2863_vm0, %v2862_v1  ;;  %v1729_v59 = vrot.slane %v2229_v57, 3  ;;  %v1733_v2 = vsel %vm1728_vm6, %v1730_v60, %v1732_v0  ;;  %v1739_v3 = vsel %vm1728_vm6, %v1736_v45, %v1738_v51 }
  0x98   : > { %2675 = vmatprep.mubr.msk.bf16.mxu1 %vm2863_vm0, %v2862_v1  ;;  %v1737_v63 = vsel %vm1728_vm6, %v1734_v61, %v1736_v45  ;;  %v1735_v5 = vsel %vm1728_vm6, %v1732_v0, %v1734_v61 }
  0x99   : > { %v1731_v62 = vsel %vm1728_vm6, %v1729_v59, %v1730_v60 }
  0x9e   : > { %2640 = vmatmul.mubr.bf16.vlgmr.msra.gmra.mrb[60].mxu0 %v1351_v12 }
  0x9f   : > { %2676 = vmatmul.mubr.bf16.vlgmr.msra.gmra.mrb[60].mxu1 %v1534_v13  ;;  %2696 = vmatpush3.bf16.msra.mxu0 %v2840_v10 }
  0xa0   : > { %2697 = vmatprep.subr.bf16.mxu0 %v2862_v1  ;;  %2643 = vmatprep.mubr.msk.bf16.mxu0 %vm2863_vm0, %v2862_v1 }
  0xa1   : > { %2679 = vmatprep.mubr.msk.bf16.mxu1 %vm2863_vm0, %v2862_v1  ;;  %2739 = vmatpush3.bf16.msra.mxu1 %v2840_v10 }
  0xa2   : > { %2732 = vmatprep.subr.bf16.mxu1 %v2862_v1 }
  0xa3   : > { %2698 = vmatpush3.bf16.msra.mxu0 %v2841_v18 }
  0xa4   : > { %2699 = vmatprep.subr.bf16.mxu0 %v2862_v1 }
  0xa5   : > { %2740 = vmatpush3.bf16.msra.mxu1 %v2841_v18 }
  0xa6   : > { %2644 = vmatmul.mubr.bf16.gmra.mrb[64].mxu0 %v1353_v19  ;;  %2733 = vmatprep.subr.bf16.mxu1 %v2862_v1 }
  0xa7   : > { %2680 = vmatmul.mubr.bf16.gmra.mrb[64].mxu1 %v1543_v24  ;;  %2700 = vmatpush3.bf16.msra.mxu0 %v2843_v23 }
  0xa8   : > { %2647 = vmatprep.mubr.msk.bf16.mxu0 %vm2863_vm0, %v2862_v1  ;;  %2683 = vmatprep.mubr.msk.bf16.mxu1 %vm2863_vm0, %v2862_v1 }
  0xa9   : > { %2701 = vmatprep.subr.bf16.mxu0 %v2862_v1  ;;  %2741 = vmatpush3.bf16.msra.mxu1 %v2843_v23 }
  0xaa   : > { %2734 = vmatprep.subr.bf16.mxu1 %v2862_v1 }
  0xab   : > { %2702 = vmatpush3.bf16.msra.mxu0 %v2845_v30 }
  0xac   : > { %2703 = vmatprep.subr.bf16.mxu0 %v2862_v1 }
  0xad   : > { %2742 = vmatpush3.bf16.msra.mxu1 %v2845_v30 }
  0xae   : > { %2648 = vmatmul.mubr.bf16.gmra.mrb[68].mxu0 %v1355_v34  ;;  %2735 = vmatprep.subr.bf16.mxu1 %v2862_v1 }
  0xaf   : > { %2684 = vmatmul.mubr.bf16.gmra.mrb[68].mxu1 %v1552_v27  ;;  %2704 = vmatpush3.bf16.msra.mxu0 %v2846_v35 }
  0xb0   : > { %2651 = vmatprep.mubr.msk.bf16.mxu0 %vm2863_vm0, %v2862_v1  ;;  %2687 = vmatprep.mubr.msk.bf16.mxu1 %vm2863_vm0, %v2862_v1 }
  0xb1   : > { %2743 = vmatpush3.bf16.msra.mxu1 %v2846_v35  ;;  %2705 = vmatprep.subr.bf16.mxu0 %v2862_v1 }
  0xb2   : > { %2736 = vmatprep.subr.bf16.mxu1 %v2862_v1 }
  0xb3   : > { %2706 = vmatpush3.bf16.msra.mxu0 %v2848_v41 }
  0xb4   : > { %2707 = vmatprep.subr.bf16.mxu0 %v2862_v1 }
  0xb5   : > { %2744 = vmatpush3.bf16.msra.mxu1 %v2848_v41 }
  0xb6   : > { %2652 = vmatmul.mubr.bf16.gmra.mrb[72].mxu0 %v1357_v46  ;;  %2737 = vmatprep.subr.bf16.mxu1 %v2862_v1 }
  0xb7   : > { %2688 = vmatmul.mubr.bf16.gmra.mrb[72].mxu1 %v1561_v48  ;;  %2655 = vmatprep.mubr.msk.bf16.mxu0 %vm2863_vm0, %v2862_v1 }
  0xb8   : > { %2691 = vmatprep.mubr.msk.bf16.mxu1 %vm2863_vm0, %v2862_v1  ;;  %2708 = vmatpush3.bf16.msra.mxu0 %v2849_v49 }
  0xb9   : > { %2745 = vmatpush3.bf16.msra.mxu1 %v2849_v49  ;;  %2709 = vmatprep.subr.bf16.mxu0 %v2862_v1 }
  0xba   : > { %2738 = vmatprep.subr.bf16.mxu1 %v2862_v1 }
  0xbc   : > { %2710 = vmatpush3.bf16.msra.mxu0 %v2852_v54 }
  0xbd   : > { %2746 = vmatpush3.bf16.msra.mxu1 %v2852_v54 }
  0xbe   : > { %2656 = vmatmul.mubr.bf16.gmra.mrb[76].mxu0 %v1359_v56 }
  0xbf   : > { %2692 = vmatmul.mubr.bf16.gmra.mrb[76].mxu1 %v1570_v58  ;;  %2711 = vmatprep.mubr.msk.bf16.mxu0 %vm2863_vm0, %v2862_v1 }
  0xc0   : > { %2723 = vmatprep.mubr.msk.bf16.mxu1 %vm2863_vm0, %v2862_v1 }
  0xc6   : > { %2712 = vmatmul.mubr.bf16.vlgmr.msra.gmra.mrb[80].mxu0 %v1731_v62 }
  0xc7   : > { %2724 = vmatmul.mubr.bf16.vlgmr.msra.gmra.mrb[80].mxu1 %v1737_v63  ;;  %2715 = vmatprep.mubr.msk.bf16.mxu0 %vm2863_vm0, %v2862_v1 }
  0xc8   : > { %2727 = vmatprep.mubr.msk.bf16.mxu1 %vm2863_vm0, %v2862_v1 }
  0xce   : > { %2716 = vmatmul.mubr.bf16.gmra.mrb[84].mxu0 %v1733_v2 }
  0xcf   : > { %2728 = vmatmul.mubr.bf16.gmra.mrb[84].mxu1 %v1739_v3  ;;  %2719 = vmatprep.mubr.msk.bf16.mxu0 %vm2863_vm0, %v2862_v1 }
  0xd6   : > { %2720 = vmatmul.mubr.bf16.gmra.mrb[88].mxu0 %v1735_v5 }
  0xf9   : > { %v376_v6 = vpop.f32.mrb[0].mxu0 }
  0xfa   : > { %v502_v7 = vpop.f32.mrb[0].mxu1  ;;  %v2425_v4 = vpop.f32.mrb[1].mxu0 }
  0xfb   : > { %v503_v8 = vadd.f32 %v502_v7, %v376_v6  ;;  %v2461_v9 = vpop.f32.mrb[1].mxu1  ;;  %v379_v11 = vpop.f32.mrb[2].mxu0 }
  0xfc   : > { %v505_v12 = vpop.f32.mrb[2].mxu1  ;;  %v2426_v10 = vpop.f32.mrb[3].mxu0 }
  0xfd   : > { %v506_v13 = vadd.f32 %v505_v12, %v379_v11  ;;  %v2462_v14 = vpop.f32.mrb[3].mxu1 }
 0x101   : > { %v384_v16 = vpop.f32.mrb[4].mxu0 }
 0x102   : > { %v510_v17 = vpop.f32.mrb[4].mxu1  ;;  %v2429_v18 = vpop.f32.mrb[5].mxu0 }
 0x103   : > { %v511_v15 = vadd.f32 %v510_v17, %v384_v16  ;;  %v2465_v20 = vpop.f32.mrb[5].mxu1  ;;  %v387_v21 = vpop.f32.mrb[6].mxu0 }
 0x104   : > { %v513_v1 = vpop.f32.mrb[6].mxu1  ;;  %v2430_v22 = vpop.f32.mrb[7].mxu0 }
 0x105   : > { %v514_v19 = vadd.f32 %v513_v1, %v387_v21  ;;  %v2466_v23 = vpop.f32.mrb[7].mxu1 }
 0x109   : > { %v392_v24 = vpop.f32.mrb[8].mxu0 }
 0x10a   : > { %v518_v25 = vpop.f32.mrb[8].mxu1  ;;  %v2433_v26 = vpop.f32.mrb[9].mxu0 }
 0x10b   : > { %v519_v28 = vadd.f32 %v518_v25, %v392_v24  ;;  %v2469_v29 = vpop.f32.mrb[9].mxu1  ;;  %v395_v30 = vpop.f32.mrb[10].mxu0 }
 0x10c   : > { %v521_v31 = vpop.f32.mrb[10].mxu1  ;;  %v2434_v32 = vpop.f32.mrb[11].mxu0 }
 0x10d   : > { %v522_v33 = vadd.f32 %v521_v31, %v395_v30  ;;  %v2470_v34 = vpop.f32.mrb[11].mxu1 }
 0x111   : > { %v400_v35 = vpop.f32.mrb[12].mxu0 }
 0x112   : > { %v526_v27 = vpop.f32.mrb[12].mxu1  ;;  %v2437_v37 = vpop.f32.mrb[13].mxu0 }
 0x113   : > { %v527_v38 = vadd.f32 %v526_v27, %v400_v35  ;;  %v2473_v39 = vpop.f32.mrb[13].mxu1  ;;  %v403_v40 = vpop.f32.mrb[14].mxu0 }
 0x114   : > { %v529_v41 = vpop.f32.mrb[14].mxu1  ;;  %v2438_v42 = vpop.f32.mrb[15].mxu0 }
 0x115   : > { %v530_v43 = vadd.f32 %v529_v41, %v403_v40  ;;  %v2474_v44 = vpop.f32.mrb[15].mxu1 }
 0x119   : > { %v408_v46 = vpop.f32.mrb[16].mxu0 }
 0x11a   : > { %v534_v47 = vpop.f32.mrb[16].mxu1  ;;  %v2441_v48 = vpop.f32.mrb[17].mxu0 }
 0x11b   : > { %v535_v49 = vadd.f32 %v534_v47, %v408_v46  ;;  %v2477_v36 = vpop.f32.mrb[17].mxu1  ;;  %v411_v50 = vpop.f32.mrb[18].mxu0 }
 0x11c   : > { %v537_v52 = vpop.f32.mrb[18].mxu1  ;;  %v2442_v53 = vpop.f32.mrb[19].mxu0 }
 0x11d   : > { %v538_v54 = vadd.f32 %v537_v52, %v411_v50  ;;  %v2478_v55 = vpop.f32.mrb[19].mxu1 }
 0x121   : > { %v661_v56 = vpop.f32.mrb[20].mxu0 }
 0x122   : > { %v700_v57 = vadd.f32 %v661_v56, %v503_v8  ;;  %v2497_v58 = vpop.f32.mrb[21].mxu0  ;;  %v864_v59 = vpop.f32.mrb[20].mxu1 }
 0x123   : > { %v664_v60 = vpop.f32.mrb[22].mxu0  ;;  %v2533_v61 = vpop.f32.mrb[21].mxu1 }
 0x124   : > { %v701_v45 = vadd.f32 %v664_v60, %v506_v13  ;;  %v903_v62 = vadd.f32 %v864_v59, %v700_v57  ;;  %v2498_v63 = vpop.f32.mrb[23].mxu0  ;;  %v867_v0 = vpop.f32.mrb[22].mxu1 }
 0x125   : > { %v2534_v51 = vpop.f32.mrb[23].mxu1 }
 0x126   : > { %v904_v2 = vadd.f32 %v867_v0, %v701_v45 }
 0x129   : > { %v669_v3 = vpop.f32.mrb[24].mxu0 }
 0x12a   : > { %v702_v5 = vadd.f32 %v669_v3, %v511_v15  ;;  %v2501_v6 = vpop.f32.mrb[25].mxu0  ;;  %v872_v7 = vpop.f32.mrb[24].mxu1 }
 0x12b   : > { %v672_v4 = vpop.f32.mrb[26].mxu0  ;;  %v2537_v9 = vpop.f32.mrb[25].mxu1 }
 0x12c   : > { %v703_v11 = vadd.f32 %v672_v4, %v514_v19  ;;  %v905_v12 = vadd.f32 %v872_v7, %v702_v5  ;;  %v2502_v10 = vpop.f32.mrb[27].mxu0  ;;  %v875_v8 = vpop.f32.mrb[26].mxu1 }
 0x12d   : > { %v2538_v14 = vpop.f32.mrb[27].mxu1 }
 0x12e   : > { %v906_v16 = vadd.f32 %v875_v8, %v703_v11 }
 0x131   : > { %v677_v17 = vpop.f32.mrb[28].mxu0 }
 0x132   : > { %v704_v18 = vadd.f32 %v677_v17, %v519_v28  ;;  %v2505_v13 = vpop.f32.mrb[29].mxu0  ;;  %v880_v20 = vpop.f32.mrb[28].mxu1 }
 0x133   : > { %v680_v21 = vpop.f32.mrb[30].mxu0  ;;  %v2541_v1 = vpop.f32.mrb[29].mxu1 }
 0x134   : > { %v705_v22 = vadd.f32 %v680_v21, %v522_v33  ;;  %v907_v23 = vadd.f32 %v880_v20, %v704_v18  ;;  %v2506_v24 = vpop.f32.mrb[31].mxu0  ;;  %v883_v15 = vpop.f32.mrb[30].mxu1 }
 0x135   : > { %v2542_v25 = vpop.f32.mrb[31].mxu1 }
 0x136   : > { %v908_v26 = vadd.f32 %v883_v15, %v705_v22 }
 0x139   : > { %v685_v29 = vpop.f32.mrb[32].mxu0 }
 0x13a   : > { %v706_v30 = vadd.f32 %v685_v29, %v527_v38  ;;  %v2509_v19 = vpop.f32.mrb[33].mxu0  ;;  %v888_v31 = vpop.f32.mrb[32].mxu1 }
 0x13b   : > { %v688_v32 = vpop.f32.mrb[34].mxu0  ;;  %v2545_v34 = vpop.f32.mrb[33].mxu1 }
 0x13c   : > { %v707_v35 = vadd.f32 %v688_v32, %v530_v43  ;;  %v909_v27 = vadd.f32 %v888_v31, %v706_v30  ;;  %v2510_v37 = vpop.f32.mrb[35].mxu0  ;;  %v891_v28 = vpop.f32.mrb[34].mxu1 }
 0x13d   : > { %v2546_v39 = vpop.f32.mrb[35].mxu1 }
 0x13e   : > { %v910_v40 = vadd.f32 %v891_v28, %v707_v35 }
 0x141   : > { %v693_v41 = vpop.f32.mrb[36].mxu0 }
 0x142   : > { %v708_v42 = vadd.f32 %v693_v41, %v535_v49  ;;  %v2513_v33 = vpop.f32.mrb[37].mxu0  ;;  %v896_v44 = vpop.f32.mrb[36].mxu1 }
 0x143   : > { %v696_v46 = vpop.f32.mrb[38].mxu0  ;;  %v2549_v47 = vpop.f32.mrb[37].mxu1 }
 0x144   : > { %v709_v48 = vadd.f32 %v696_v46, %v538_v54  ;;  %v911_v36 = vadd.f32 %v896_v44, %v708_v42  ;;  %v2514_v50 = vpop.f32.mrb[39].mxu0  ;;  %v899_v38 = vpop.f32.mrb[38].mxu1 }
 0x145   : > { %v2550_v52 = vpop.f32.mrb[39].mxu1 }
 0x146   : > { %v912_v53 = vadd.f32 %v899_v38, %v709_v48 }
 0x149   : > { %v1075_v55 = vpop.f32.mrb[40].mxu0 }
 0x14a   : > { %v1114_v56 = vadd.f32 %v1075_v55, %v903_v62  ;;  %v2569_v43 = vpop.f32.mrb[41].mxu0  ;;  %v1244_v57 = vpop.f32.mrb[40].mxu1 }
 0x14b   : > { %v1078_v58 = vpop.f32.mrb[42].mxu0  ;;  %v2605_v59 = vpop.f32.mrb[41].mxu1 }
 0x14c   : > { %v1115_v60 = vadd.f32 %v1078_v58, %v904_v2  ;;  %v1283_v61 = vadd.f32 %v1244_v57, %v1114_v56  ;;  %v2570_v45 = vpop.f32.mrb[43].mxu0  ;;  %v1247_v49 = vpop.f32.mrb[42].mxu1 }
 0x14d   : > { %v2606_v63 = vpop.f32.mrb[43].mxu1 }
 0x14e   : > { %v1284_v0 = vadd.f32 %v1247_v49, %v1115_v60 }
 0x151   : > { %v1083_v51 = vpop.f32.mrb[44].mxu0 }
 0x152   : > { %v1116_v3 = vadd.f32 %v1083_v51, %v905_v12  ;;  %v2573_v54 = vpop.f32.mrb[45].mxu0  ;;  %v1252_v5 = vpop.f32.mrb[44].mxu1 }
 0x153   : > { %v1086_v6 = vpop.f32.mrb[46].mxu0  ;;  %v2609_v7 = vpop.f32.mrb[45].mxu1 }
 0x154   : > { %v1117_v4 = vadd.f32 %v1086_v6, %v906_v16  ;;  %v1285_v9 = vadd.f32 %v1252_v5, %v1116_v3  ;;  %v2574_v11 = vpop.f32.mrb[47].mxu0  ;;  %v1255_v62 = vpop.f32.mrb[46].mxu1 }
 0x155   : > { %v2610_v10 = vpop.f32.mrb[47].mxu1 }
 0x156   : > { %v1286_v8 = vadd.f32 %v1255_v62, %v1117_v4 }
 0x159   : > { %v1091_v14 = vpop.f32.mrb[48].mxu0 }
 0x15a   : > { %v1118_v17 = vadd.f32 %v1091_v14, %v907_v23  ;;  %v2577_v2 = vpop.f32.mrb[49].mxu0  ;;  %v1260_v18 = vpop.f32.mrb[48].mxu1 }
 0x15b   : > { %v1094_v13 = vpop.f32.mrb[50].mxu0  ;;  %v2613_v20 = vpop.f32.mrb[49].mxu1 }
 0x15c   : > { %v1119_v21 = vadd.f32 %v1094_v13, %v908_v26  ;;  %v1287_v1 = vadd.f32 %v1260_v18, %v1118_v17  ;;  %v2578_v22 = vpop.f32.mrb[51].mxu0  ;;  %v1263_v12 = vpop.f32.mrb[50].mxu1 }
 0x15d   : > { %v2614_v24 = vpop.f32.mrb[51].mxu1 }
 0x15e   : > { %v1288_v15 = vadd.f32 %v1263_v12, %v1119_v21 }
 0x161   : > { %v1099_v25 = vpop.f32.mrb[52].mxu0 }
 0x162   : > { %v1120_v29 = vadd.f32 %v1099_v25, %v909_v27  ;;  %v2581_v16 = vpop.f32.mrb[53].mxu0  ;;  %v1268_v30 = vpop.f32.mrb[52].mxu1 }
 0x163   : > { %v1102_v19 = vpop.f32.mrb[54].mxu0  ;;  %v2617_v31 = vpop.f32.mrb[53].mxu1 }
 0x164   : > { %v1121_v32 = vadd.f32 %v1102_v19, %v910_v40  ;;  %v1289_v34 = vadd.f32 %v1268_v30, %v1120_v29  ;;  %v2582_v35 = vpop.f32.mrb[55].mxu0  ;;  %v1271_v23 = vpop.f32.mrb[54].mxu1 }
 0x165   : > { %v2618_v37 = vpop.f32.mrb[55].mxu1 }
 0x166   : > { %v1290_v28 = vadd.f32 %v1271_v23, %v1121_v32 }
 0x169   : > { %v1107_v39 = vpop.f32.mrb[56].mxu0 }
 0x16a   : > { %v1122_v41 = vadd.f32 %v1107_v39, %v911_v36  ;;  %v2585_v26 = vpop.f32.mrb[57].mxu0  ;;  %v1276_v42 = vpop.f32.mrb[56].mxu1 }
 0x16b   : > { %v1110_v33 = vpop.f32.mrb[58].mxu0  ;;  %v2621_v44 = vpop.f32.mrb[57].mxu1 }
 0x16c   : > { %v1123_v46 = vadd.f32 %v1110_v33, %v912_v53  ;;  %v1291_v47 = vadd.f32 %v1276_v42, %v1122_v41  ;;  %v2586_v48 = vpop.f32.mrb[59].mxu0  ;;  %v1279_v27 = vpop.f32.mrb[58].mxu1 }
 0x16d   : > { %v2622_v50 = vpop.f32.mrb[59].mxu1 }
 0x16e   : > { %v1292_v38 = vadd.f32 %v1279_v27, %v1123_v46 }
 0x171   : > { %v1447_v52 = vpop.f32.mrb[60].mxu0 }
 0x172   : > { %v1486_v55 = vadd.f32 %v1447_v52, %v1283_v61  ;;  %v2641_v40 = vpop.f32.mrb[61].mxu0  ;;  %v1658_v56 = vpop.f32.mrb[60].mxu1 }
 0x173   : > { %v1450_v43 = vpop.f32.mrb[62].mxu0  ;;  %v2677_v57 = vpop.f32.mrb[61].mxu1 }
 0x174   : > { %v1487_v58 = vadd.f32 %v1450_v43, %v1284_v0  ;;  %v1697_v59 = vadd.f32 %v1658_v56, %v1486_v55  ;;  %v2642_v60 = vpop.f32.mrb[63].mxu0  ;;  %v1661_v36 = vpop.f32.mrb[62].mxu1 }
 0x175   : > { %v2678_v45 = vpop.f32.mrb[63].mxu1 }
 0x176   : > { %v1698_v49 = vadd.f32 %v1661_v36, %v1487_v58 }
 0x179   : > { %v1455_v63 = vpop.f32.mrb[64].mxu0 }
 0x17a   : > { %v1488_v51 = vadd.f32 %v1455_v63, %v1285_v9  ;;  %v2645_v53 = vpop.f32.mrb[65].mxu0  ;;  %v1666_v3 = vpop.f32.mrb[64].mxu1 }
 0x17b   : > { %v1458_v54 = vpop.f32.mrb[66].mxu0  ;;  %v2681_v5 = vpop.f32.mrb[65].mxu1 }
 0x17c   : > { %v1489_v6 = vadd.f32 %v1458_v54, %v1286_v8  ;;  %v3450_v7 = vadd.f32 %v1666_v3, %v1488_v51  ;;  %v2646_v61 = vpop.f32.mrb[67].mxu0  ;;  %v1669_v4 = vpop.f32.mrb[66].mxu1 }
 0x17d   : > { %v2682_v11 = vpop.f32.mrb[67].mxu1 }
 0x17e   : > { %v3452_v62 = vadd.f32 %v1669_v4, %v1489_v6 }
 0x181   : > { %v1463_v0 = vpop.f32.mrb[68].mxu0 }
 0x182   : > { %v1490_v10 = vadd.f32 %v1463_v0, %v1287_v1  ;;  %v2649_v14 = vpop.f32.mrb[69].mxu0  ;;  %v1674_v17 = vpop.f32.mrb[68].mxu1 }
 0x183   : > { %v1466_v2 = vpop.f32.mrb[70].mxu0  ;;  %v2685_v18 = vpop.f32.mrb[69].mxu1 }
 0x184   : > { %v1491_v13 = vadd.f32 %v1466_v2, %v1288_v15  ;;  %v3454_v9 = vadd.f32 %v1674_v17, %v1490_v10  ;;  %v2650_v20 = vpop.f32.mrb[71].mxu0  ;;  %v1677_v21 = vpop.f32.mrb[70].mxu1 }
 0x185   : > { %v2686_v22 = vpop.f32.mrb[71].mxu1 }
 0x186   : > { %v3456_v8 = vadd.f32 %v1677_v21, %v1491_v13 }
 0x189   : > { %v1471_v12 = vpop.f32.mrb[72].mxu0 }
 0x18a   : > { %v1492_v24 = vadd.f32 %v1471_v12, %v1289_v34  ;;  %v2653_v25 = vpop.f32.mrb[73].mxu0  ;;  %v1682_v29 = vpop.f32.mrb[72].mxu1 }
 0x18b   : > { %v1474_v16 = vpop.f32.mrb[74].mxu0  ;;  %v2689_v30 = vpop.f32.mrb[73].mxu1 }
 0x18c   : > { %v1493_v19 = vadd.f32 %v1474_v16, %v1290_v28  ;;  %v1703_v1 = vadd.f32 %v1682_v29, %v1492_v24  ;;  %v2654_v31 = vpop.f32.mrb[75].mxu0  ;;  %v1685_v32 = vpop.f32.mrb[74].mxu1  ;;  %v2238_v28 = vld [vmem:[%s3481_s2] ss:$0 sm:$0xff] }
 0x18d   : > { %v2690_v35 = vpop.f32.mrb[75].mxu1 }
 0x18e   : > { %v1704_v23 = vadd.f32 %v1685_v32, %v1493_v19 }
 0x191   : > { %v1479_v15 = vpop.f32.mrb[76].mxu0 }
 0x192   : > { %v1494_v37 = vadd.f32 %v1479_v15, %v1291_v47  ;;  %v2657_v39 = vpop.f32.mrb[77].mxu0  ;;  %v1690_v41 = vpop.f32.mrb[76].mxu1 }
 0x193   : > { %v1482_v26 = vpop.f32.mrb[78].mxu0  ;;  %v2693_v42 = vpop.f32.mrb[77].mxu1 }
 0x194   : > { %v1495_v33 = vadd.f32 %v1482_v26, %v1292_v38  ;;  %v1705_v44 = vadd.f32 %v1690_v41, %v1494_v37  ;;  %v2658_v46 = vpop.f32.mrb[79].mxu0  ;;  %v1693_v34 = vpop.f32.mrb[78].mxu1 }
 0x195   : > { %v2694_v48 = vpop.f32.mrb[79].mxu1 }
 0x196   : > { %v1706_v27 = vadd.f32 %v1693_v34, %v1495_v33 }
 0x199   : > { %v1827_v50 = vpop.f32.mrb[80].mxu0 }
 0x19a   : > { %v1866_v52 = vadd.f32 %v1827_v50, %v1697_v59  ;;  %v1851_v55 = vpop.f32.mrb[80].mxu1  ;;  %v2713_v40 = vpop.f32.mrb[81].mxu0 }
 0x19b   : > { %v1872_v47 = vadd.f32 %v1851_v55, %v1703_v1  ;;  %v2725_v56 = vpop.f32.mrb[81].mxu1  ;;  %v1830_v43 = vpop.f32.mrb[82].mxu0 }
 0x19c   : > { %v1883_v57 = vadd.f32 %v2238_v28, %v1866_v52  ;;  %v1867_v58 = vadd.f32 %v1830_v43, %v1698_v49  ;;  %v1854_v38 = vpop.f32.mrb[82].mxu1  ;;  %v2714_v60 = vpop.f32.mrb[83].mxu0 }
 0x19d   : > { %v1889_v36 = vadd.f32 %v2238_v28, %v1872_v47  ;;  %v1873_v45 = vadd.f32 %v1854_v38, %v1704_v23  ;;  %v2726_v63 = vpop.f32.mrb[83].mxu1 }
 0x19e   : > { %v1884_v51 = vadd.f32 %v2238_v28, %v1867_v58  ;;  %v1893_v3 = vmax.f32 %v1883_v57, 0.0 }
 0x19f   : > { %v1890_v53 = vadd.f32 %v2238_v28, %v1873_v45  ;;  %v1899_v5 = vmax.f32 %v1889_v36, 0.0 }
 0x1a0   : > { %v1894_v54 = vmax.f32 %v1884_v51, 0.0 }
 0x1a1   : > { %v1900_v59 = vmax.f32 %v1890_v53, 0.0  ;;  %v1835_v49 = vpop.f32.mrb[84].mxu0 }
 0x1a2   : > { %v2264_v6 = vpack.c.bf16 %v1894_v54, %v1893_v3  ;;  %v1868_v61 = vadd.f32 %v1835_v49, %v3450_v7  ;;  %v1859_v4 = vpop.f32.mrb[84].mxu1  ;;  %v2717_v11 = vpop.f32.mrb[85].mxu0 }
 0x1a3   : > { %v2279_v0 = vpack.c.bf16 %v1900_v59, %v1899_v5  ;;  %v1874_v10 = vadd.f32 %v1859_v4, %v1705_v44  ;;  %v2729_v14 = vpop.f32.mrb[85].mxu1  ;;  %v1838_v17 = vpop.f32.mrb[86].mxu0 }
 0x1a4   : > { %2265 = vst [vmem:[%s3465_s21] sm:$0xff] %v2264_v6   ;;  %v1885_v2 = vadd.f32 %v2238_v28, %v1868_v61  ;;  %v1869_v18 = vadd.f32 %v1838_v17, %v3452_v62  ;;  %v1862_v13 = vpop.f32.mrb[86].mxu1  ;;  %v2718_v20 = vpop.f32.mrb[87].mxu0 }
 0x1a5   : > { %2288 = vst [vmem:[%s3465_s21 + $0x18] sm:$0xff] %v2279_v0   ;;  %v1891_v21 = vadd.f32 %v2238_v28, %v1874_v10  ;;  %v1875_v22 = vadd.f32 %v1862_v13, %v1706_v27  ;;  %v2730_v12 = vpop.f32.mrb[87].mxu1 }
 0x1a6   : > { %v1886_v24 = vadd.f32 %v2238_v28, %v1869_v18  ;;  %v1895_v25 = vmax.f32 %v1885_v2, 0.0 }
 0x1a7   : > { %v1892_v7 = vadd.f32 %v2238_v28, %v1875_v22  ;;  %v1901_v16 = vmax.f32 %v1891_v21, 0.0 }
 0x1a8   : > { %v1896_v29 = vmax.f32 %v1886_v24, 0.0 }
 0x1a9   : > { %v1902_v30 = vmax.f32 %v1892_v7, 0.0  ;;  %v1843_v19 = vpop.f32.mrb[88].mxu0 }
 0x1aa   : > { %v2269_v1 = vpack.c.bf16 %v1896_v29, %v1895_v25  ;;  %v1870_v31 = vadd.f32 %v1843_v19, %v3454_v9  ;;  %v2721_v62 = vpop.f32.mrb[89].mxu0 }
 0x1ab   : > { %v2284_v32 = vpack.c.bf16 %v1902_v30, %v1901_v16  ;;  %v1846_v35 = vpop.f32.mrb[90].mxu0 }
 0x1ac   : > { %2286 = vst [vmem:[%s3465_s21 + $0x8] sm:$0xff] %v2269_v1   ;;  %v1887_v23 = vadd.f32 %v2238_v28, %v1870_v31  ;;  %v1871_v15 = vadd.f32 %v1846_v35, %v3456_v8  ;;  %v2722_v37 = vpop.f32.mrb[91].mxu0 }
 0x1ad   : > { %2289 = vst [vmem:[%s3465_s21 + $0x20] sm:$0xff] %v2284_v32  }
 0x1ae   : > { %v1888_v39 = vadd.f32 %v2238_v28, %v1871_v15  ;;  %v1897_v41 = vmax.f32 %v1887_v23, 0.0 }
 0x1b0   : > { %v1898_v26 = vmax.f32 %v1888_v39, 0.0 }
 0x1b2   : > { %v2274_v42 = vpack.c.bf16 %v1898_v26, %v1897_v41 }
 0x1b4   : > { %2287 = vst [vmem:[%s3465_s21 + $0x10] sm:$0xff] %v2274_v42  }
 0x1b5 PF: > { %s13_s12 = sadd.s32 1, %s2860_s12  }
 0x1b6   : > { %p10_p4 = scmp.ge.s32.totalorder %s13_s12, 4  }
 0x1b8   :  { %12 = sbr.rel (!%p10_p4) target bundleno = 1 (0x1), region = 70 }

// kernel: _lambda_.20
= control target key start
LH: loop header
LB: loop body
LE: loop exit
PB: predicated region body
PF: predicated region fallthrough
CT: control target
= control target key end

     0   :  { %s3003_s15 = smov 0   ;;  %s3627_s0 = inlined_call_operand.vmem [shape: bf16[2,110,128], index: 0, kind: input, shape index: {}]   ;;  %s3628_s1 = inlined_call_operand.vmem [shape: bf16[9,128,128], index: 1, kind: input, shape index: {}]   ;;  %s3629_s2 = inlined_call_operand.vmem [shape: f32[1,128], index: 2, kind: input, shape index: {}]   ;;  %s3630_s3 = inlined_call_operand.vmem [shape: bf16[2,80,128], index: 3, kind: input, shape index: {}]   ;;  %s3631_s4 = inlined_call_operand.vmem [shape: bf16[2,80,128], index: 4, kind: output, shape index: {}]  }
   0x1 LB: > { %s2097_s16 = sadd.s32 4294967295, %s2974_s15   ;;  %p2101_p0 = scmp.ge.s32.totalorder %s2974_s15, 1  ;;  %s2974_s15 = sphi %s3003_s15, %s14_s15  }
   0x2   : > { %p172_p1 = scmp.lt.s32.totalorder %s2974_s15, 3 }
   0x4   : > { %p173_p2 = pnand %p2101_p0, %p172_p1 }
   0x5   : > { %v2873_v0 = vld [vmem:[%s3628_s1 + $0x40] sm:$0xff] (!%p173_p2)   ;;  %v2976_v1 = vmov (!%p173_p2), 0.0   ;;  %v2875_v3 = vld [vmem:[%s3628_s1 + $0x48] sm:$0xff] (!%p173_p2)   ;;  %vm2977_vm0 = vmmov (!%p173_p2), 0   ;;  %p203_p3 = scmp.lt.s32.totalorder (!%p173_p2), %s2097_s16, 1  ;;  %v2877_v5 = vld [vmem:[%s3628_s1 + $0x50] sm:$0xff] (!%p173_p2)  }
   0x6   : > { %176 = sbr.rel (%p173_p2) target bundleno = 439 (0x1b7), region = 36  ;;  %2521 = vmatprep.subr.bf16.mxu0 (!%p173_p2), %v2976_v1  ;;  %2557 = vmatprep.subr.bf16.mxu1 (!%p173_p2), %v2976_v1  ;;  %v2874_v2 = vld [vmem:[%s3628_s1] sm:$0xff] (!%p173_p2)   ;;  %v2876_v4 = vld [vmem:[%s3628_s1 + $0x8] sm:$0xff] (!%p173_p2)   ;;  %v2878_v6 = vld [vmem:[%s3628_s1 + $0x10] sm:$0xff] (!%p173_p2)   ;;  %vm291_vm1 = vsmask.f32 (!%p173_p2), 7424 }
   0x7   : > { %2522 = vmatpush3.bf16.msra.mxu0 (!%p173_p2), %v2873_v0  ;;  %2537 = vmatprep.mubr.msk.bf16.mxu0 (!%p173_p2), %vm2977_vm0, %v2976_v1  ;;  %v2879_v7 = vld [vmem:[%s3628_s1 + $0x58] sm:$0xff] (!%p173_p2)   ;;  %v2881_v9 = vld [vmem:[%s3628_s1 + $0x60] sm:$0xff] (!%p173_p2)   ;;  %v2883_v13 = vld [vmem:[%s3628_s1 + $0x68] sm:$0xff] (!%p173_p2)   ;;  %vm609_vm2 = vcmask (!%p173_p2), 1046528   ;;  %vm981_vm3 = vsmask.f32 (!%p173_p2), 6400 }
   0x8   : > { %2558 = vmatpush3.bf16.msra.mxu1 (!%p173_p2), %v2874_v2  ;;  %2523 = vmatprep.subr.bf16.mxu0 (!%p173_p2), %v2976_v1  ;;  %v2880_v8 = vld [vmem:[%s3628_s1 + $0x18] sm:$0xff] (!%p173_p2)   ;;  %v2882_v10 = vld [vmem:[%s3628_s1 + $0x20] sm:$0xff] (!%p173_p2)   ;;  %v2884_v16 = vld [vmem:[%s3628_s1 + $0x28] sm:$0xff] (!%p173_p2)   ;;  %vm1192_vm4 = vcmask (!%p173_p2), 1045504   ;;  %vm1564_vm5 = vsmask.f32 (!%p173_p2), 5376 }
   0x9   : > { %2559 = vmatprep.subr.bf16.mxu1 (!%p173_p2), %v2976_v1  ;;  %2573 = vmatprep.mubr.msk.bf16.mxu1 (!%p173_p2), %vm2977_vm0, %v2976_v1  ;;  %v2885_v18 = vld [vmem:[%s3628_s1 + $0x70] sm:$0xff] (!%p173_p2)   ;;  %v2887_v23 = vld [vmem:[%s3628_s1 + $0x78] sm:$0xff] (!%p173_p2)   ;;  %v2891_v28 = vld [vmem:[%s3628_s1 + $0x80] sm:$0xff] (!%p173_p2)   ;;  %vm1775_vm6 = vcmask (!%p173_p2), 1044480  }
   0xa   : > { %v2886_v22 = vld [vmem:[%s3628_s1 + $0x30] sm:$0xff] (!%p173_p2)   ;;  %v2888_v24 = vld [vmem:[%s3628_s1 + $0x38] sm:$0xff] (!%p173_p2)   ;;  %v2894_v32 = vld [vmem:[%s3628_s1 + $0xc0] sm:$0xff] (!%p173_p2)  }
   0xb   : > { %2524 = vmatpush3.bf16.msra.mxu0 (!%p173_p2), %v2875_v3  ;;  %v2892_v34 = vld [vmem:[%s3628_s1 + $0x88] sm:$0xff] (!%p173_p2)   ;;  %v2895_v40 = vld [vmem:[%s3628_s1 + $0x90] sm:$0xff] (!%p173_p2)   ;;  %v2898_v44 = vld [vmem:[%s3628_s1 + $0x98] sm:$0xff] (!%p173_p2)  }
   0xc   : > { %2560 = vmatpush3.bf16.msra.mxu1 (!%p173_p2), %v2876_v4  ;;  %2525 = vmatprep.subr.bf16.mxu0 (!%p173_p2), %v2976_v1  ;;  %v2896_v37 = vld [vmem:[%s3628_s1 + $0xc8] sm:$0xff] (!%p173_p2)   ;;  %v2899_v42 = vld [vmem:[%s3628_s1 + $0xd0] sm:$0xff] (!%p173_p2)   ;;  %v2901_v47 = vld [vmem:[%s3628_s1 + $0xd8] sm:$0xff] (!%p173_p2)  }
   0xd   : > { %s3633_s16 = smov (!%p203_p3, %s2097_s16), 1  ;;  %2561 = vmatprep.subr.bf16.mxu1 %v2976_v1  ;;  %v2900_v48 = vld [vmem:[%s3628_s1 + $0xa0] sm:$0xff]   ;;  %v2904_v56 = vld [vmem:[%s3628_s1 + $0xa8] sm:$0xff]   ;;  %v2906_v61 = vld [vmem:[%s3628_s1 + $0xb0] sm:$0xff]  }
   0xe   : > { %s2861_s29 = smul.u32 56, %s3633_s16  ;;  %v2903_v52 = vld [vmem:[%s3628_s1 + $0xe0] sm:$0xff]   ;;  %v2905_v57 = vld [vmem:[%s3628_s1 + $0xe8] sm:$0xff]   ;;  %v2908_v62 = vld [vmem:[%s3628_s1 + $0xf0] sm:$0xff]  }
   0xf   : > { %2526 = vmatpush3.bf16.msra.mxu0 %v2877_v5  ;;  %v2909_v63 = vld [vmem:[%s3628_s1 + $0xb8] sm:$0xff]  }
  0x10   : > { %2562 = vmatpush3.bf16.msra.mxu1 %v2878_v6  ;;  %2527 = vmatprep.subr.bf16.mxu0 %v2976_v1  ;;  %s3053_s10 = scalar_lea.vmem %s3627_s0, %s2861_s29  ;;  %v2910_v3 = vld [vmem:[%s3628_s1 + $0xf8] sm:$0xff]  }
  0x11   : > { %2563 = vmatprep.subr.bf16.mxu1 %v2976_v1  ;;  %v219_v11 = vld [vmem:[%s3053_s10] sm:$0xf]  ;;  %v3065_v12 = vld [vmem:[%s3053_s10 + $0x4] sm:$0xf]  ;;  %v3072_v15 = vld [vmem:[%s3053_s10 + $0x8] sm:$0xff]  }
  0x12   : > { %v2121_v14 = vcombine.low %v219_v11, %v3065_v12  ;;  %v300_v21 = vshll.u32 %v3072_v15, 16  ;;  %v3095_v27 = vld [vmem:[%s3053_s10 + $0x10] sm:$0xff]   ;;  %v304_v30 = vshrl.u32 %v3072_v15, 16  ;;  %v3111_v33 = vld [vmem:[%s3053_s10 + $0x18] sm:$0xff]   ;;  %v3140_v45 = vld [vmem:[%s3053_s10 + $0x20] sm:$0xff]  }
  0x13   : > { %2528 = vmatpush3.bf16.msra.mxu0 %v2879_v7  ;;  %v308_v31 = vshll.u32 %v3095_v27, 16  ;;  %v316_v38 = vshll.u32 %v3111_v33, 16  ;;  %v312_v41 = vshrl.u32 %v3095_v27, 16  ;;  %v320_v50 = vshrl.u32 %v3111_v33, 16  ;;  %v588_v4 = vld [vmem:[%s3053_s10] sm:$0xe] }
  0x14   : > { %2564 = vmatpush3.bf16.msra.mxu1 %v2880_v8  ;;  %2529 = vmatprep.subr.bf16.mxu0 %v2976_v1  ;;  %v295_v17 = vshll.u32 %v2121_v14, 16  ;;  %v293_v19 = vshrl.u32 %v2121_v14, 16  ;;  %v302_v26 = vrot.slane %v300_v21, 1  ;;  %v324_v51 = vshll.u32 %v3140_v45, 16  ;;  %v757_v5 = vld [vmem:[%s3053_s10 + $0x4] sm:$0xe] }
  0x15   : > { %2565 = vmatprep.subr.bf16.mxu1 %v2976_v1  ;;  %v310_v36 = vrot.slane %v308_v31, 1  ;;  %v318_v43 = vrot.slane %v316_v38, 1  ;;  %v3163_v53 = vld [vmem:[%s3053_s10 + $0x28] ss:$0 sps:$4 sm:$0x11]   ;;  %v328_v59 = vshrl.u32 %v3140_v45, 16  ;;  %v2159_v8 = vcombine.low %v588_v4, %v3065_v12 }
  0x16   : > { %v297_v20 = vrot.slane %v295_v17, 1  ;;  %v306_v35 = vor.u32 %v304_v30, %v302_v26  ;;  %v326_v55 = vrot.slane %v324_v51, 1  ;;  %v332_v60 = vshll.u32 %v3163_v53, 16  ;;  %v3205_v6 = vld [vmem:[%s3053_s10 + $0x8] sm:$0xf]  ;;  %v2914_v17 = vld [vmem:[%s3628_s1 + $0x100] sm:$0xff]  }
  0x17   : > { %2530 = vmatpush3.bf16.msra.mxu0 %v2881_v9  ;;  %v314_v46 = vor.u32 %v312_v41, %v310_v36  ;;  %v322_v54 = vor.u32 %v320_v50, %v318_v43  ;;  %v3211_v9 = vcombine.low %v757_v5, %v3205_v6  ;;  %v610_v11 = vrot.slane %v2159_v8, 1  ;;  %v2921_v30 = vld [vmem:[%s3628_s1 + $0x118] sm:$0xff]   ;;  %v2928_v41 = vld [vmem:[%s3628_s1 + $0x168] sm:$0xff]  }
  0x18   : > { %2566 = vmatpush3.bf16.msra.mxu1 %v2882_v10  ;;  %2531 = vmatprep.subr.bf16.mxu0 %v2976_v1  ;;  %v298_v25 = vor.u32 %v297_v20, %v293_v19  ;;  %v311_v39 = vsel %vm291_vm1, %v306_v35, %v310_v36  ;;  %v330_v0 = vor.u32 %v328_v59, %v326_v55  ;;  %v334_v2 = vrot.slane %v332_v60, 1  ;;  %v3214_v10 = vld [vmem:[%s3053_s10 + $0xc] sm:$0xff]   ;;  %v3232_v19 = vld [vmem:[%s3053_s10 + $0x14] sm:$0xff]   ;;  %v3285_v36 = vld [vmem:[%s3053_s10 + $0x24] sm:$0xff]  }
  0x19   : > { %2567 = vmatprep.subr.bf16.mxu1 %v2976_v1  ;;  %v319_v49 = vsel %vm291_vm1, %v314_v46, %v318_v43  ;;  %v327_v58 = vsel %vm291_vm1, %v322_v54, %v326_v55  ;;  %v611_v12 = vrot.slane %v3072_v15, 1  ;;  %v2915_v20 = vld [vmem:[%s3628_s1 + $0x108] sm:$0xff]   ;;  %v613_v21 = vrot.slane %v3095_v27, 1  ;;  %v2931_v46 = vld [vmem:[%s3628_s1 + $0x170] sm:$0xff]   ;;  %v2933_v54 = vld [vmem:[%s3628_s1 + $0x178] sm:$0xff]  }
  0x1a   : > { %v303_v29 = vsel %vm291_vm1, %v298_v25, %v302_v26  ;;  %v335_v7 = vsel %vm291_vm1, %v330_v0, %v334_v2  ;;  %v2918_v25 = vld [vmem:[%s3628_s1 + $0x110] sm:$0xff]   ;;  %v617_v38 = vrot.slane %v3140_v45, 1  ;;  %v2930_v43 = vld [vmem:[%s3053_s10 + $0x2c] ss:$0 sps:$4 sm:$0x11]   ;;  %v991_v50 = vshrl.u32 %v3214_v10, 16 }
  0x1b   : > { %2532 = vmatpush3.bf16.msra.mxu0 %v2883_v13  ;;  %v813_v13 = vrot.slane %v3211_v9, 1  ;;  %v994_v51 = vshll.u32 %v3214_v10, 16  ;;  %v1171_v55 = vld [vmem:[%s3053_s10 + $0x4] sm:$0xc]  ;;  %v1000_v2 = vshrl.u32 %v3232_v19, 16  ;;  %v1194_v5 = vrot.slane %v3214_v10, 2 }
  0x1c   : > { %2568 = vmatpush3.bf16.msra.mxu1 %v2884_v16  ;;  %2533 = vmatprep.subr.bf16.mxu0 %v2976_v1  ;;  %v612_v16 = vsel %vm609_vm2, %v610_v11, %v611_v12  ;;  %v993_v59 = vrot.slane %v991_v50, 1 }
  0x1d   : > { %2569 = vmatprep.subr.bf16.mxu1 %v2976_v1  ;;  %v996_v60 = vrot.slane %v994_v51, 2  ;;  %v1002_v8 = vrot.slane %v1000_v2, 1  ;;  %v3430_v51 = vld [vmem:[%s3053_s10 + $0x10] sm:$0xff]  }
  0x1f   : > { %2534 = vmatpush3.bf16.msra.mxu0 %v2885_v18  ;;  %v997_v0 = vor.u32 %v996_v60, %v993_v59  ;;  %v1577_v59 = vshll.u32 %v3430_v51, 16  ;;  %v2951_v60 = vld [vmem:[%s3628_s1 + $0x1f8] sm:$0xff]  }
  0x20   : > { %2570 = vmatpush3.bf16.msra.mxu1 %v2886_v22  ;;  %2535 = vmatprep.subr.bf16.mxu0 %v2976_v1  ;;  %v816_v22 = vrot.slane %v3232_v19, 1 }
  0x21   : > { %2571 = vmatprep.subr.bf16.mxu1 %v2976_v1 }
  0x23   : > { %2536 = vmatpush3.bf16.msra.mxu0 %v2887_v23  ;;  %v2919_v23 = vld [vmem:[%s3628_s1 + $0x148] sm:$0xff]  }
  0x24   : > { %2572 = vmatpush3.bf16.msra.mxu1 %v2888_v24  ;;  %2593 = vmatprep.subr.bf16.mxu0 %v2976_v1  ;;  %v614_v24 = vsel %vm609_vm2, %v611_v12, %v613_v21  ;;  %v2937_v12 = vld [vmem:[%s3628_s1 + $0x1c0] sm:$0xff]  }
  0x25   : > { %2629 = vmatprep.subr.bf16.mxu1 %v2976_v1 }
  0x26   : > { %2538 = vmatmul.mubr.bf16.vlgmr.msra.gmra.mrb[0].mxu0 %v303_v29  ;;  %v615_v29 = vrot.slane %v3111_v33, 1 }
  0x27   : > { %2574 = vmatmul.mubr.bf16.vlgmr.msra.gmra.mrb[0].mxu1 %v2121_v14  ;;  %2594 = vmatpush3.bf16.msra.mxu0 %v2891_v28  ;;  %v814_v14 = vrot.slane %v3214_v10, 1  ;;  %v2922_v28 = vld [vmem:[%s3628_s1 + $0x150] sm:$0xff]   ;;  %v2936_v10 = vld [vmem:[%s3628_s1 + $0x188] sm:$0xff]  }
  0x28   : > { %2595 = vmatprep.subr.bf16.mxu0 %v2976_v1  ;;  %2541 = vmatprep.mubr.msk.bf16.mxu0 %vm2977_vm0, %v2976_v1 }
  0x29   : > { %2577 = vmatprep.mubr.msk.bf16.mxu1 %vm2977_vm0, %v2976_v1  ;;  %2630 = vmatpush3.bf16.msra.mxu1 %v2894_v32  ;;  %v815_v18 = vsel %vm609_vm2, %v813_v13, %v814_v14  ;;  %v817_v26 = vsel %vm609_vm2, %v814_v14, %v816_v22  ;;  %v2924_v32 = vld [vmem:[%s3628_s1 + $0x158] sm:$0xff]  }
  0x2a   : > { %2631 = vmatprep.subr.bf16.mxu1 %v2976_v1 }
  0x2b   : > { %2596 = vmatpush3.bf16.msra.mxu0 %v2892_v34  ;;  %v2923_v34 = vld [vmem:[%s3628_s1 + $0x120] sm:$0xff]  }
  0x2c   : > { %2597 = vmatprep.subr.bf16.mxu0 %v2976_v1 }
  0x2d   : > { %2632 = vmatpush3.bf16.msra.mxu1 %v2896_v37  ;;  %v2926_v37 = vld [vmem:[%s3628_s1 + $0x160] sm:$0xff]  }
  0x2e   : > { %2542 = vmatmul.mubr.bf16.gmra.mrb[4].mxu0 %v311_v39  ;;  %2633 = vmatprep.subr.bf16.mxu1 %v2976_v1  ;;  %v2927_v39 = vld [vmem:[%s3628_s1 + $0x128] sm:$0xff]  }
  0x2f   : > { %2578 = vmatmul.mubr.bf16.gmra.mrb[4].mxu1 %v3072_v15  ;;  %2598 = vmatpush3.bf16.msra.mxu0 %v2895_v40  ;;  %v2917_v15 = vld [vmem:[%s3628_s1 + $0x140] sm:$0xff]   ;;  %v820_v40 = vrot.slane %v3285_v36, 1 }
  0x30   : > { %2545 = vmatprep.mubr.msk.bf16.mxu0 %vm2977_vm0, %v2976_v1  ;;  %2581 = vmatprep.mubr.msk.bf16.mxu1 %vm2977_vm0, %v2976_v1 }
  0x31   : > { %2599 = vmatprep.subr.bf16.mxu0 %v2976_v1  ;;  %2634 = vmatpush3.bf16.msra.mxu1 %v2899_v42  ;;  %v618_v42 = vsel %vm609_vm2, %v615_v29, %v617_v38 }
  0x32   : > { %2635 = vmatprep.subr.bf16.mxu1 %v2976_v1 }
  0x33   : > { %2600 = vmatpush3.bf16.msra.mxu0 %v2898_v44 }
  0x34   : > { %2601 = vmatprep.subr.bf16.mxu0 %v2976_v1 }
  0x35   : > { %2636 = vmatpush3.bf16.msra.mxu1 %v2901_v47  ;;  %v619_v47 = vrot.slane %v3163_v53, 1  ;;  %v2932_v53 = vld [vmem:[%s3628_s1 + $0x138] sm:$0xff]  }
  0x36   : > { %2546 = vmatmul.mubr.bf16.gmra.mrb[8].mxu0 %v319_v49  ;;  %2637 = vmatprep.subr.bf16.mxu1 %v2976_v1  ;;  %v986_v49 = vshll.u32 %v3211_v9, 16 }
  0x37   : > { %2582 = vmatmul.mubr.bf16.gmra.mrb[8].mxu1 %v3095_v27  ;;  %2602 = vmatpush3.bf16.msra.mxu0 %v2900_v48  ;;  %v3258_v27 = vld [vmem:[%s3053_s10 + $0x1c] sm:$0xff]   ;;  %v983_v48 = vshrl.u32 %v3211_v9, 16 }
  0x38   : > { %2549 = vmatprep.mubr.msk.bf16.mxu0 %vm2977_vm0, %v2976_v1  ;;  %2585 = vmatprep.mubr.msk.bf16.mxu1 %vm2977_vm0, %v2976_v1  ;;  %v818_v31 = vrot.slane %v3258_v27, 1  ;;  %v1009_v14 = vshrl.u32 %v3258_v27, 16 }
  0x39   : > { %2603 = vmatprep.subr.bf16.mxu0 %v2976_v1  ;;  %2638 = vmatpush3.bf16.msra.mxu1 %v2903_v52  ;;  %v822_v52 = vrot.slane %v2930_v43, 1  ;;  %v2946_v43 = vld [vmem:[%s3628_s1 + $0x1e8] sm:$0xff]  }
  0x3a   : > { %2639 = vmatprep.subr.bf16.mxu1 %v2976_v1  ;;  %v819_v35 = vsel %vm609_vm2, %v816_v22, %v818_v31  ;;  %v821_v44 = vsel %vm609_vm2, %v818_v31, %v820_v40 }
  0x3b   : > { %2604 = vmatpush3.bf16.msra.mxu0 %v2904_v56  ;;  %v620_v56 = vsel %vm609_vm2, %v617_v38, %v619_v47 }
  0x3c   : > { %2605 = vmatprep.subr.bf16.mxu0 %v2976_v1 }
  0x3d   : > { %2640 = vmatpush3.bf16.msra.mxu1 %v2905_v57  ;;  %v985_v57 = vrot.slane %v983_v48, 1 }
  0x3e   : > { %2550 = vmatmul.mubr.bf16.gmra.mrb[12].mxu0 %v327_v58  ;;  %2641 = vmatprep.subr.bf16.mxu1 %v2976_v1  ;;  %v988_v58 = vrot.slane %v986_v49, 2 }
  0x3f   : > { %2586 = vmatmul.mubr.bf16.gmra.mrb[12].mxu1 %v3111_v33  ;;  %2553 = vmatprep.mubr.msk.bf16.mxu0 %vm2977_vm0, %v2976_v1  ;;  %v616_v33 = vsel %vm609_vm2, %v613_v21, %v615_v29  ;;  %v1011_v21 = vrot.slane %v1009_v14, 1  ;;  %v1198_v29 = vrot.slane %v3258_v27, 2 }
  0x40   : > { %2589 = vmatprep.mubr.msk.bf16.mxu1 %vm2977_vm0, %v2976_v1  ;;  %2606 = vmatpush3.bf16.msra.mxu0 %v2906_v61  ;;  %v823_v61 = vsel %vm609_vm2, %v820_v40, %v822_v52  ;;  %v2949_v52 = vld [vmem:[%s3628_s1 + $0x1f0] sm:$0xff]  }
  0x41   : > { %2642 = vmatpush3.bf16.msra.mxu1 %v2908_v62  ;;  %2607 = vmatprep.subr.bf16.mxu0 %v2976_v1  ;;  %v2239_v62 = vcombine.low %v1171_v55, %v3205_v6  ;;  %v2950_v55 = vld [vmem:[%s3628_s1 + $0x1b8] sm:$0xff]  }
  0x42   : > { %2643 = vmatprep.subr.bf16.mxu1 %v2976_v1 }
  0x43   : > { %v1193_v4 = vrot.slane %v2239_v62, 2 }
  0x44   : > { %2608 = vmatpush3.bf16.msra.mxu0 %v2909_v63  ;;  %v989_v63 = vor.u32 %v988_v58, %v985_v57  ;;  %v1574_v58 = vshrl.u32 %v3430_v51, 16 }
  0x45   : > { %2644 = vmatpush3.bf16.msra.mxu1 %v2910_v3  ;;  %2665 = vmatprep.subr.bf16.mxu0 %v2976_v1  ;;  %v1003_v3 = vshll.u32 %v3232_v19, 16  ;;  %v1195_v11 = vsel %vm1192_vm4, %v1193_v4, %v1194_v5  ;;  %v3453_v4 = vld [vmem:[%s3053_s10 + $0x18] sm:$0xff]  }
  0x46   : > { %2554 = vmatmul.mubr.bf16.gmra.mrb[16].mxu0 %v335_v7  ;;  %2701 = vmatprep.subr.bf16.mxu1 %v2976_v1  ;;  %v998_v6 = vsel %vm981_vm3, %v989_v63, %v997_v0  ;;  %v2935_v7 = vld [vmem:[%s3628_s1 + $0x180] sm:$0xff]   ;;  %v1576_v2 = vrot.slane %v1574_v58, 2 }
  0x47   : > { %2590 = vmatmul.mubr.bf16.gmra.mrb[16].mxu1 %v3140_v45  ;;  %2609 = vmatprep.mubr.msk.bf16.mxu0 %vm2977_vm0, %v2976_v1  ;;  %v2929_v45 = vld [vmem:[%s3628_s1 + $0x130] sm:$0xff]   ;;  %v1005_v9 = vrot.slane %v1003_v3, 2  ;;  %v1579_v3 = vrot.slane %v1577_v59, 3 }
  0x48   : > { %2645 = vmatprep.mubr.msk.bf16.mxu1 %vm2977_vm0, %v2976_v1 }
  0x49   : > { %v1006_v13 = vor.u32 %v1005_v9, %v1002_v8  ;;  %v1580_v8 = vor.u32 %v1579_v3, %v1576_v2  ;;  %v1583_v9 = vshrl.u32 %v3453_v4, 16 }
  0x4b   : > { %v1585_v14 = vrot.slane %v1583_v9, 2 }
  0x4e   : > { %2610 = vmatmul.mubr.bf16.vlgmr.msra.gmra.mrb[20].mxu0 %v612_v16  ;;  %v1012_v16 = vshll.u32 %v3258_v27, 16 }
  0x4f   : > { %2646 = vmatmul.mubr.bf16.vlgmr.msra.gmra.mrb[20].mxu1 %v815_v18  ;;  %2666 = vmatpush3.bf16.msra.mxu0 %v2914_v17  ;;  %v1196_v17 = vrot.slane %v3232_v19, 2  ;;  %v2939_v18 = vld [vmem:[%s3628_s1 + $0x1c8] sm:$0xff]  }
  0x50   : > { %2667 = vmatprep.subr.bf16.mxu0 %v2976_v1  ;;  %2613 = vmatprep.mubr.msk.bf16.mxu0 %vm2977_vm0, %v2976_v1  ;;  %v1014_v22 = vrot.slane %v1012_v16, 2 }
  0x51   : > { %2649 = vmatprep.mubr.msk.bf16.mxu1 %vm2977_vm0, %v2976_v1  ;;  %2702 = vmatpush3.bf16.msra.mxu1 %v2917_v15  ;;  %v1007_v15 = vsel %vm981_vm3, %v997_v0, %v1006_v13  ;;  %v1197_v19 = vsel %vm1192_vm4, %v1194_v5, %v1196_v17  ;;  %v1199_v27 = vsel %vm1192_vm4, %v1196_v17, %v1198_v29  ;;  %v3470_v17 = vld [vmem:[%s3053_s10 + $0x20] sm:$0xff]  }
  0x52   : > { %2703 = vmatprep.subr.bf16.mxu1 %v2976_v1 }
  0x53   : > { %2668 = vmatpush3.bf16.msra.mxu0 %v2915_v20  ;;  %v2938_v20 = vld [vmem:[%s3628_s1 + $0x190] sm:$0xff]  }
  0x54   : > { %2669 = vmatprep.subr.bf16.mxu0 %v2976_v1 }
  0x55   : > { %2704 = vmatpush3.bf16.msra.mxu1 %v2919_v23  ;;  %v2941_v23 = vld [vmem:[%s3628_s1 + $0x1d0] sm:$0xff]  }
  0x56   : > { %2614 = vmatmul.mubr.bf16.gmra.mrb[24].mxu0 %v614_v24  ;;  %2705 = vmatprep.subr.bf16.mxu1 %v2976_v1  ;;  %v1015_v24 = vor.u32 %v1014_v22, %v1011_v21  ;;  %v1592_v21 = vshrl.u32 %v3470_v17, 16  ;;  %v1595_v22 = vshll.u32 %v3470_v17, 16 }
  0x57   : > { %2650 = vmatmul.mubr.bf16.gmra.mrb[24].mxu1 %v817_v26  ;;  %2670 = vmatpush3.bf16.msra.mxu0 %v2918_v25  ;;  %v2940_v25 = vld [vmem:[%s3628_s1 + $0x198] sm:$0xff]   ;;  %v1018_v26 = vshrl.u32 %v3285_v36, 16 }
  0x58   : > { %2617 = vmatprep.mubr.msk.bf16.mxu0 %vm2977_vm0, %v2976_v1  ;;  %2653 = vmatprep.mubr.msk.bf16.mxu1 %vm2977_vm0, %v2976_v1  ;;  %v1016_v31 = vsel %vm981_vm3, %v1006_v13, %v1015_v24 }
  0x59   : > { %2671 = vmatprep.subr.bf16.mxu0 %v2976_v1  ;;  %2706 = vmatpush3.bf16.msra.mxu1 %v2922_v28  ;;  %v1021_v28 = vshll.u32 %v3285_v36, 16 }
  0x5a   : > { %2707 = vmatprep.subr.bf16.mxu1 %v2976_v1 }
  0x5b   : > { %2672 = vmatpush3.bf16.msra.mxu0 %v2921_v30  ;;  %v2943_v30 = vld [vmem:[%s3628_s1 + $0x1d8] sm:$0xff]  }
  0x5c   : > { %2673 = vmatprep.subr.bf16.mxu0 %v2976_v1 }
  0x5d   : > { %2708 = vmatpush3.bf16.msra.mxu1 %v2924_v32  ;;  %v2942_v32 = vld [vmem:[%s3628_s1 + $0x1a0] sm:$0xff]  }
  0x5e   : > { %2618 = vmatmul.mubr.bf16.gmra.mrb[28].mxu0 %v616_v33  ;;  %2709 = vmatprep.subr.bf16.mxu1 %v2976_v1  ;;  %v1020_v33 = vrot.slane %v1018_v26, 1  ;;  %v1597_v26 = vrot.slane %v1595_v22, 3 }
  0x5f   : > { %2654 = vmatmul.mubr.bf16.gmra.mrb[28].mxu1 %v819_v35  ;;  %2674 = vmatpush3.bf16.msra.mxu0 %v2923_v34  ;;  %v1023_v34 = vrot.slane %v1021_v28, 2  ;;  %v2948_v35 = vld [vmem:[%s3053_s10 + $0x2c] ss:$0 sps:$4 sm:$0x33]  }
  0x60   : > { %2621 = vmatprep.mubr.msk.bf16.mxu0 %vm2977_vm0, %v2976_v1  ;;  %2657 = vmatprep.mubr.msk.bf16.mxu1 %vm2977_vm0, %v2976_v1  ;;  %v1027_v40 = vshrl.u32 %v2948_v35, 16  ;;  %v3491_v28 = vld [vmem:[%s3053_s10 + $0x28] sm:$0xff]  }
  0x61   : > { %2675 = vmatprep.subr.bf16.mxu0 %v2976_v1  ;;  %2710 = vmatpush3.bf16.msra.mxu1 %v2926_v37  ;;  %v2944_v37 = vld [vmem:[%s3628_s1 + $0x1e0] sm:$0xff]   ;;  %v1024_v38 = vor.u32 %v1023_v34, %v1020_v33  ;;  %v1604_v33 = vshll.u32 %v3491_v28, 16 }
  0x62   : > { %2711 = vmatprep.subr.bf16.mxu1 %v2976_v1  ;;  %v1029_v47 = vrot.slane %v1027_v40, 1  ;;  %v1403_v40 = vrot.slane %v3491_v28, 2 }
  0x63   : > { %2676 = vmatpush3.bf16.msra.mxu0 %v2927_v39  ;;  %v2945_v39 = vld [vmem:[%s3628_s1 + $0x1a8] sm:$0xff]  }
  0x64   : > { %2677 = vmatprep.subr.bf16.mxu0 %v2976_v1 }
  0x65   : > { %2712 = vmatpush3.bf16.msra.mxu1 %v2928_v41  ;;  %v1030_v41 = vshll.u32 %v2948_v35, 16 }
  0x66   : > { %2622 = vmatmul.mubr.bf16.gmra.mrb[32].mxu0 %v618_v42  ;;  %2713 = vmatprep.subr.bf16.mxu1 %v2976_v1  ;;  %v1200_v42 = vrot.slane %v3285_v36, 2  ;;  %v2947_v36 = vld [vmem:[%s3628_s1 + $0x1b0] sm:$0xff]  }
  0x67   : > { %2658 = vmatmul.mubr.bf16.gmra.mrb[32].mxu1 %v821_v44  ;;  %2625 = vmatprep.mubr.msk.bf16.mxu0 %vm2977_vm0, %v2976_v1  ;;  %v1340_v44 = vld [vmem:[%s3053_s10 + $0x8] sm:$0xc]  ;;  %v1032_v48 = vrot.slane %v1030_v41, 2 }
  0x68   : > { %2661 = vmatprep.mubr.msk.bf16.mxu1 %vm2977_vm0, %v2976_v1  ;;  %2678 = vmatpush3.bf16.msra.mxu0 %v2929_v45  ;;  %v3419_v45 = vld [vmem:[%s3053_s10 + $0xc] sm:$0xf]  ;;  %v1201_v49 = vsel %vm1192_vm4, %v1198_v29, %v1200_v42  ;;  %v1401_v29 = vrot.slane %v3470_v17, 2 }
  0x69   : > { %2714 = vmatpush3.bf16.msra.mxu1 %v2931_v46  ;;  %2679 = vmatprep.subr.bf16.mxu0 %v2976_v1  ;;  %v1025_v46 = vsel %vm981_vm3, %v1015_v24, %v1024_v38  ;;  %v2264_v50 = vcombine.low %v1340_v44, %v3419_v45  ;;  %v2962_v41 = vld [vmem:[%s3628_s1 + $0x228] sm:$0xff]  }
  0x6a   : > { %2715 = vmatprep.subr.bf16.mxu1 %v2976_v1 }
  0x6b   : > { %v1569_v57 = vshll.u32 %v2264_v50, 16  ;;  %v1396_v5 = vrot.slane %v2264_v50, 2 }
  0x6c   : > { %2680 = vmatpush3.bf16.msra.mxu0 %v2932_v53  ;;  %v1033_v53 = vor.u32 %v1032_v48, %v1029_v47  ;;  %v2964_v47 = vld [vmem:[%s3053_s10 + $0x30] ss:$0 sps:$4 sm:$0x33]  }
  0x6d   : > { %2716 = vmatpush3.bf16.msra.mxu1 %v2933_v54  ;;  %2737 = vmatprep.subr.bf16.mxu0 %v2976_v1  ;;  %v1202_v54 = vrot.slane %v2948_v35, 2  ;;  %v1571_v0 = vrot.slane %v1569_v57, 3  ;;  %v2960_v35 = vld [vmem:[%s3628_s1 + $0x220] sm:$0xff]  }
  0x6e   : > { %2626 = vmatmul.mubr.bf16.gmra.mrb[36].mxu0 %v620_v56  ;;  %2773 = vmatprep.subr.bf16.mxu1 %v2976_v1  ;;  %v1566_v56 = vshrl.u32 %v2264_v50, 16 }
  0x6f   : > { %2662 = vmatmul.mubr.bf16.gmra.mrb[36].mxu1 %v823_v61  ;;  %2681 = vmatprep.mubr.msk.bf16.mxu0 %vm2977_vm0, %v2976_v1  ;;  %v1034_v61 = vsel %vm981_vm3, %v1024_v38, %v1033_v53  ;;  %v1203_v62 = vsel %vm1192_vm4, %v1200_v42, %v1202_v54  ;;  %v1606_v38 = vrot.slane %v1604_v33, 3  ;;  %v2966_v54 = vld [vmem:[%s3628_s1 + $0x238] sm:$0xff]  }
  0x70   : > { %2717 = vmatprep.mubr.msk.bf16.mxu1 %vm2977_vm0, %v2976_v1  ;;  %v1568_v63 = vrot.slane %v1566_v56, 2 }
  0x76   : > { %2682 = vmatmul.mubr.bf16.vlgmr.msra.gmra.mrb[40].mxu0 %v998_v6  ;;  %v1397_v6 = vrot.slane %v3430_v51, 2 }
  0x77   : > { %2718 = vmatmul.mubr.bf16.vlgmr.msra.gmra.mrb[40].mxu1 %v1195_v11  ;;  %2738 = vmatpush3.bf16.msra.mxu0 %v2935_v7  ;;  %v1572_v7 = vor.u32 %v1571_v0, %v1568_v63  ;;  %v1586_v11 = vshll.u32 %v3453_v4, 16  ;;  %v1779_v0 = vrot.slane %v3453_v4, 3 }
  0x78   : > { %2739 = vmatprep.subr.bf16.mxu0 %v2976_v1  ;;  %2685 = vmatprep.mubr.msk.bf16.mxu0 %vm2977_vm0, %v2976_v1 }
  0x79   : > { %2721 = vmatprep.mubr.msk.bf16.mxu1 %vm2977_vm0, %v2976_v1  ;;  %2774 = vmatpush3.bf16.msra.mxu1 %v2937_v12  ;;  %v1398_v12 = vsel %vm1192_vm4, %v1396_v5, %v1397_v6  ;;  %v1581_v13 = vsel %vm1564_vm5, %v1572_v7, %v1580_v8  ;;  %v1588_v16 = vrot.slane %v1586_v11, 3 }
  0x7a   : > { %2775 = vmatprep.subr.bf16.mxu1 %v2976_v1 }
  0x7b   : > { %2740 = vmatpush3.bf16.msra.mxu0 %v2936_v10  ;;  %v2954_v10 = vld [vmem:[%s3628_s1 + $0x200] sm:$0xff]  }
  0x7c   : > { %2741 = vmatprep.subr.bf16.mxu0 %v2976_v1 }
  0x7d   : > { %2776 = vmatpush3.bf16.msra.mxu1 %v2939_v18  ;;  %v2955_v18 = vld [vmem:[%s3628_s1 + $0x208] sm:$0xff]  }
  0x7e   : > { %2686 = vmatmul.mubr.bf16.gmra.mrb[44].mxu0 %v1007_v15  ;;  %2777 = vmatprep.subr.bf16.mxu1 %v2976_v1  ;;  %v1399_v15 = vrot.slane %v3453_v4, 2 }
  0x7f   : > { %2722 = vmatmul.mubr.bf16.gmra.mrb[44].mxu1 %v1197_v19  ;;  %2742 = vmatpush3.bf16.msra.mxu0 %v2938_v20  ;;  %v1589_v20 = vor.u32 %v1588_v16, %v1585_v14 }
  0x80   : > { %2689 = vmatprep.mubr.msk.bf16.mxu0 %vm2977_vm0, %v2976_v1  ;;  %2725 = vmatprep.mubr.msk.bf16.mxu1 %vm2977_vm0, %v2976_v1  ;;  %v1400_v19 = vsel %vm1192_vm4, %v1397_v6, %v1399_v15  ;;  %v1402_v34 = vsel %vm1192_vm4, %v1399_v15, %v1401_v29 }
  0x81   : > { %2743 = vmatprep.subr.bf16.mxu0 %v2976_v1  ;;  %2778 = vmatpush3.bf16.msra.mxu1 %v2941_v23  ;;  %v2957_v23 = vld [vmem:[%s3628_s1 + $0x210] sm:$0xff]   ;;  %v1590_v24 = vsel %vm1564_vm5, %v1580_v8, %v1589_v20 }
  0x82   : > { %2779 = vmatprep.subr.bf16.mxu1 %v2976_v1 }
  0x83   : > { %2744 = vmatpush3.bf16.msra.mxu0 %v2940_v25  ;;  %v1594_v25 = vrot.slane %v1592_v21, 2 }
  0x84   : > { %2745 = vmatprep.subr.bf16.mxu0 %v2976_v1 }
  0x85   : > { %2780 = vmatpush3.bf16.msra.mxu1 %v2943_v30  ;;  %v2959_v30 = vld [vmem:[%s3628_s1 + $0x218] sm:$0xff]  }
  0x86   : > { %2690 = vmatmul.mubr.bf16.gmra.mrb[48].mxu0 %v1016_v31  ;;  %2781 = vmatprep.subr.bf16.mxu1 %v2976_v1  ;;  %v1598_v31 = vor.u32 %v1597_v26, %v1594_v25 }
  0x87   : > { %2726 = vmatmul.mubr.bf16.gmra.mrb[48].mxu1 %v1199_v27  ;;  %2746 = vmatpush3.bf16.msra.mxu0 %v2942_v32  ;;  %v1601_v32 = vshrl.u32 %v3491_v28, 16 }
  0x88   : > { %2693 = vmatprep.mubr.msk.bf16.mxu0 %vm2977_vm0, %v2976_v1  ;;  %2729 = vmatprep.mubr.msk.bf16.mxu1 %vm2977_vm0, %v2976_v1  ;;  %v1599_v27 = vsel %vm1564_vm5, %v1589_v20, %v1598_v31 }
  0x89   : > { %2747 = vmatprep.subr.bf16.mxu0 %v2976_v1  ;;  %2782 = vmatpush3.bf16.msra.mxu1 %v2944_v37  ;;  %v1603_v37 = vrot.slane %v1601_v32, 2 }
  0x8a   : > { %2783 = vmatprep.subr.bf16.mxu1 %v2976_v1 }
  0x8b   : > { %2748 = vmatpush3.bf16.msra.mxu0 %v2945_v39  ;;  %v3513_v39 = vld [vmem:[%s3053_s10 + $0x30] ss:$0 sps:$4 sm:$0x77]   ;;  %v1607_v42 = vor.u32 %v1606_v38, %v1603_v37 }
  0x8c   : > { %2749 = vmatprep.subr.bf16.mxu0 %v2976_v1  ;;  %v1613_v44 = vshll.u32 %v3513_v39, 16 }
  0x8d   : > { %2784 = vmatpush3.bf16.msra.mxu1 %v2946_v43  ;;  %v1610_v43 = vshrl.u32 %v3513_v39, 16  ;;  %v1608_v48 = vsel %vm1564_vm5, %v1598_v31, %v1607_v42 }
  0x8e   : > { %2694 = vmatmul.mubr.bf16.gmra.mrb[52].mxu0 %v1025_v46  ;;  %2785 = vmatprep.subr.bf16.mxu1 %v2976_v1  ;;  %v1404_v46 = vsel %vm1192_vm4, %v1401_v29, %v1403_v40  ;;  %v1615_v50 = vrot.slane %v1613_v44, 3 }
  0x8f   : > { %2730 = vmatmul.mubr.bf16.gmra.mrb[52].mxu1 %v1201_v49  ;;  %2697 = vmatprep.mubr.msk.bf16.mxu0 %vm2977_vm0, %v2976_v1  ;;  %v2963_v49 = vld [vmem:[%s3628_s1 + $0x230] sm:$0xff]  }
  0x90   : > { %2733 = vmatprep.mubr.msk.bf16.mxu1 %vm2977_vm0, %v2976_v1  ;;  %2750 = vmatpush3.bf16.msra.mxu0 %v2947_v36  ;;  %v1612_v36 = vrot.slane %v1610_v43, 2 }
  0x91   : > { %2786 = vmatpush3.bf16.msra.mxu1 %v2949_v52  ;;  %2751 = vmatprep.subr.bf16.mxu0 %v2976_v1  ;;  %v1405_v52 = vrot.slane %v2964_v47, 2 }
  0x92   : > { %2787 = vmatprep.subr.bf16.mxu1 %v2976_v1  ;;  %v1616_v53 = vor.u32 %v1615_v50, %v1612_v36 }
  0x93   : > { %v1406_v56 = vsel %vm1192_vm4, %v1403_v40, %v1405_v52 }
  0x94   : > { %2752 = vmatpush3.bf16.msra.mxu0 %v2950_v55  ;;  %v1754_v55 = vld [vmem:[%s3053_s10 + $0x8] sm:$0x8]  ;;  %v1617_v58 = vsel %vm1564_vm5, %v1607_v42, %v1616_v53  ;;  %s2862_s10 = smul.u32 40, %s3633_s16 }
  0x95   : > { %2788 = vmatpush3.bf16.msra.mxu1 %v2951_v60  ;;  %2809 = vmatprep.subr.bf16.mxu0 %v2976_v1  ;;  %v2319_v57 = vcombine.low %v1754_v55, %v3419_v45  ;;  %v1777_v60 = vrot.slane %v3430_v51, 3  ;;  %v1783_v45 = vrot.slane %v3491_v28, 3  ;;  %v1785_v51 = vrot.slane %v3513_v39, 3 }
  0x96   : > { %2698 = vmatmul.mubr.bf16.gmra.mrb[56].mxu0 %v1034_v61  ;;  %2845 = vmatprep.subr.bf16.mxu1 %v2976_v1  ;;  %v1781_v61 = vrot.slane %v3470_v17, 3  ;;  %s3585_s28 = scalar_lea.vmem %s3630_s3, %s2862_s10  ;;  %s3607_s7 = scalar_lea.vmem %s3631_s4, %s2862_s10 }
  0x97   : > { %2734 = vmatmul.mubr.bf16.gmra.mrb[56].mxu1 %v1203_v62  ;;  %2753 = vmatprep.mubr.msk.bf16.mxu0 %vm2977_vm0, %v2976_v1  ;;  %v1776_v59 = vrot.slane %v2319_v57, 3  ;;  %v1780_v2 = vsel %vm1775_vm6, %v1777_v60, %v1779_v0  ;;  %v1786_v3 = vsel %vm1775_vm6, %v1783_v45, %v1785_v51 }
  0x98   : > { %2789 = vmatprep.mubr.msk.bf16.mxu1 %vm2977_vm0, %v2976_v1  ;;  %v1784_v63 = vsel %vm1775_vm6, %v1781_v61, %v1783_v45  ;;  %v1782_v5 = vsel %vm1775_vm6, %v1779_v0, %v1781_v61 }
  0x99   : > { %v1778_v62 = vsel %vm1775_vm6, %v1776_v59, %v1777_v60 }
  0x9e   : > { %2754 = vmatmul.mubr.bf16.vlgmr.msra.gmra.mrb[60].mxu0 %v1398_v12 }
  0x9f   : > { %2790 = vmatmul.mubr.bf16.vlgmr.msra.gmra.mrb[60].mxu1 %v1581_v13  ;;  %2810 = vmatpush3.bf16.msra.mxu0 %v2954_v10 }
  0xa0   : > { %2811 = vmatprep.subr.bf16.mxu0 %v2976_v1  ;;  %2757 = vmatprep.mubr.msk.bf16.mxu0 %vm2977_vm0, %v2976_v1 }
  0xa1   : > { %2793 = vmatprep.mubr.msk.bf16.mxu1 %vm2977_vm0, %v2976_v1  ;;  %2853 = vmatpush3.bf16.msra.mxu1 %v2954_v10 }
  0xa2   : > { %2846 = vmatprep.subr.bf16.mxu1 %v2976_v1 }
  0xa3   : > { %2812 = vmatpush3.bf16.msra.mxu0 %v2955_v18 }
  0xa4   : > { %2813 = vmatprep.subr.bf16.mxu0 %v2976_v1 }
  0xa5   : > { %2854 = vmatpush3.bf16.msra.mxu1 %v2955_v18 }
  0xa6   : > { %2758 = vmatmul.mubr.bf16.gmra.mrb[64].mxu0 %v1400_v19  ;;  %2847 = vmatprep.subr.bf16.mxu1 %v2976_v1 }
  0xa7   : > { %2794 = vmatmul.mubr.bf16.gmra.mrb[64].mxu1 %v1590_v24  ;;  %2814 = vmatpush3.bf16.msra.mxu0 %v2957_v23 }
  0xa8   : > { %2761 = vmatprep.mubr.msk.bf16.mxu0 %vm2977_vm0, %v2976_v1  ;;  %2797 = vmatprep.mubr.msk.bf16.mxu1 %vm2977_vm0, %v2976_v1 }
  0xa9   : > { %2815 = vmatprep.subr.bf16.mxu0 %v2976_v1  ;;  %2855 = vmatpush3.bf16.msra.mxu1 %v2957_v23 }
  0xaa   : > { %2848 = vmatprep.subr.bf16.mxu1 %v2976_v1 }
  0xab   : > { %2816 = vmatpush3.bf16.msra.mxu0 %v2959_v30 }
  0xac   : > { %2817 = vmatprep.subr.bf16.mxu0 %v2976_v1 }
  0xad   : > { %2856 = vmatpush3.bf16.msra.mxu1 %v2959_v30 }
  0xae   : > { %2762 = vmatmul.mubr.bf16.gmra.mrb[68].mxu0 %v1402_v34  ;;  %2849 = vmatprep.subr.bf16.mxu1 %v2976_v1 }
  0xaf   : > { %2798 = vmatmul.mubr.bf16.gmra.mrb[68].mxu1 %v1599_v27  ;;  %2818 = vmatpush3.bf16.msra.mxu0 %v2960_v35 }
  0xb0   : > { %2765 = vmatprep.mubr.msk.bf16.mxu0 %vm2977_vm0, %v2976_v1  ;;  %2801 = vmatprep.mubr.msk.bf16.mxu1 %vm2977_vm0, %v2976_v1 }
  0xb1   : > { %2857 = vmatpush3.bf16.msra.mxu1 %v2960_v35  ;;  %2819 = vmatprep.subr.bf16.mxu0 %v2976_v1 }
  0xb2   : > { %2850 = vmatprep.subr.bf16.mxu1 %v2976_v1 }
  0xb3   : > { %2820 = vmatpush3.bf16.msra.mxu0 %v2962_v41 }
  0xb4   : > { %2821 = vmatprep.subr.bf16.mxu0 %v2976_v1 }
  0xb5   : > { %2858 = vmatpush3.bf16.msra.mxu1 %v2962_v41 }
  0xb6   : > { %2766 = vmatmul.mubr.bf16.gmra.mrb[72].mxu0 %v1404_v46  ;;  %2851 = vmatprep.subr.bf16.mxu1 %v2976_v1 }
  0xb7   : > { %2802 = vmatmul.mubr.bf16.gmra.mrb[72].mxu1 %v1608_v48  ;;  %2769 = vmatprep.mubr.msk.bf16.mxu0 %vm2977_vm0, %v2976_v1 }
  0xb8   : > { %2805 = vmatprep.mubr.msk.bf16.mxu1 %vm2977_vm0, %v2976_v1  ;;  %2822 = vmatpush3.bf16.msra.mxu0 %v2963_v49 }
  0xb9   : > { %2859 = vmatpush3.bf16.msra.mxu1 %v2963_v49  ;;  %2823 = vmatprep.subr.bf16.mxu0 %v2976_v1 }
  0xba   : > { %2852 = vmatprep.subr.bf16.mxu1 %v2976_v1 }
  0xbc   : > { %2824 = vmatpush3.bf16.msra.mxu0 %v2966_v54 }
  0xbd   : > { %2860 = vmatpush3.bf16.msra.mxu1 %v2966_v54 }
  0xbe   : > { %2770 = vmatmul.mubr.bf16.gmra.mrb[76].mxu0 %v1406_v56 }
  0xbf   : > { %2806 = vmatmul.mubr.bf16.gmra.mrb[76].mxu1 %v1617_v58  ;;  %2825 = vmatprep.mubr.msk.bf16.mxu0 %vm2977_vm0, %v2976_v1 }
  0xc0   : > { %2837 = vmatprep.mubr.msk.bf16.mxu1 %vm2977_vm0, %v2976_v1 }
  0xc6   : > { %2826 = vmatmul.mubr.bf16.vlgmr.msra.gmra.mrb[80].mxu0 %v1778_v62 }
  0xc7   : > { %2838 = vmatmul.mubr.bf16.vlgmr.msra.gmra.mrb[80].mxu1 %v1784_v63  ;;  %2829 = vmatprep.mubr.msk.bf16.mxu0 %vm2977_vm0, %v2976_v1 }
  0xc8   : > { %2841 = vmatprep.mubr.msk.bf16.mxu1 %vm2977_vm0, %v2976_v1 }
  0xce   : > { %2830 = vmatmul.mubr.bf16.gmra.mrb[84].mxu0 %v1780_v2 }
  0xcf   : > { %2842 = vmatmul.mubr.bf16.gmra.mrb[84].mxu1 %v1786_v3  ;;  %2833 = vmatprep.mubr.msk.bf16.mxu0 %vm2977_vm0, %v2976_v1 }
  0xd6   : > { %2834 = vmatmul.mubr.bf16.gmra.mrb[88].mxu0 %v1782_v5 }
  0xf9   : > { %v423_v6 = vpop.f32.mrb[0].mxu0 }
  0xfa   : > { %v549_v7 = vpop.f32.mrb[0].mxu1  ;;  %v2539_v4 = vpop.f32.mrb[1].mxu0 }
  0xfb   : > { %v550_v8 = vadd.f32 %v549_v7, %v423_v6  ;;  %v2575_v9 = vpop.f32.mrb[1].mxu1  ;;  %v426_v11 = vpop.f32.mrb[2].mxu0 }
  0xfc   : > { %v552_v12 = vpop.f32.mrb[2].mxu1  ;;  %v2540_v10 = vpop.f32.mrb[3].mxu0 }
  0xfd   : > { %v553_v13 = vadd.f32 %v552_v12, %v426_v11  ;;  %v2576_v14 = vpop.f32.mrb[3].mxu1 }
 0x101   : > { %v431_v16 = vpop.f32.mrb[4].mxu0 }
 0x102   : > { %v557_v17 = vpop.f32.mrb[4].mxu1  ;;  %v2543_v18 = vpop.f32.mrb[5].mxu0 }
 0x103   : > { %v558_v15 = vadd.f32 %v557_v17, %v431_v16  ;;  %v2579_v20 = vpop.f32.mrb[5].mxu1  ;;  %v434_v21 = vpop.f32.mrb[6].mxu0 }
 0x104   : > { %v560_v1 = vpop.f32.mrb[6].mxu1  ;;  %v2544_v22 = vpop.f32.mrb[7].mxu0 }
 0x105   : > { %v561_v19 = vadd.f32 %v560_v1, %v434_v21  ;;  %v2580_v23 = vpop.f32.mrb[7].mxu1 }
 0x109   : > { %v439_v24 = vpop.f32.mrb[8].mxu0 }
 0x10a   : > { %v565_v25 = vpop.f32.mrb[8].mxu1  ;;  %v2547_v26 = vpop.f32.mrb[9].mxu0 }
 0x10b   : > { %v566_v28 = vadd.f32 %v565_v25, %v439_v24  ;;  %v2583_v29 = vpop.f32.mrb[9].mxu1  ;;  %v442_v30 = vpop.f32.mrb[10].mxu0 }
 0x10c   : > { %v568_v31 = vpop.f32.mrb[10].mxu1  ;;  %v2548_v32 = vpop.f32.mrb[11].mxu0 }
 0x10d   : > { %v569_v33 = vadd.f32 %v568_v31, %v442_v30  ;;  %v2584_v34 = vpop.f32.mrb[11].mxu1 }
 0x111   : > { %v447_v35 = vpop.f32.mrb[12].mxu0 }
 0x112   : > { %v573_v27 = vpop.f32.mrb[12].mxu1  ;;  %v2551_v37 = vpop.f32.mrb[13].mxu0 }
 0x113   : > { %v574_v38 = vadd.f32 %v573_v27, %v447_v35  ;;  %v2587_v39 = vpop.f32.mrb[13].mxu1  ;;  %v450_v40 = vpop.f32.mrb[14].mxu0 }
 0x114   : > { %v576_v41 = vpop.f32.mrb[14].mxu1  ;;  %v2552_v42 = vpop.f32.mrb[15].mxu0 }
 0x115   : > { %v577_v43 = vadd.f32 %v576_v41, %v450_v40  ;;  %v2588_v44 = vpop.f32.mrb[15].mxu1 }
 0x119   : > { %v455_v46 = vpop.f32.mrb[16].mxu0 }
 0x11a   : > { %v581_v47 = vpop.f32.mrb[16].mxu1  ;;  %v2555_v48 = vpop.f32.mrb[17].mxu0 }
 0x11b   : > { %v582_v49 = vadd.f32 %v581_v47, %v455_v46  ;;  %v2591_v36 = vpop.f32.mrb[17].mxu1  ;;  %v458_v50 = vpop.f32.mrb[18].mxu0 }
 0x11c   : > { %v584_v52 = vpop.f32.mrb[18].mxu1  ;;  %v2556_v53 = vpop.f32.mrb[19].mxu0 }
 0x11d   : > { %v585_v54 = vadd.f32 %v584_v52, %v458_v50  ;;  %v2592_v55 = vpop.f32.mrb[19].mxu1 }
 0x121   : > { %v708_v56 = vpop.f32.mrb[20].mxu0 }
 0x122   : > { %v747_v57 = vadd.f32 %v708_v56, %v550_v8  ;;  %v2611_v58 = vpop.f32.mrb[21].mxu0  ;;  %v911_v59 = vpop.f32.mrb[20].mxu1 }
 0x123   : > { %v711_v60 = vpop.f32.mrb[22].mxu0  ;;  %v2647_v61 = vpop.f32.mrb[21].mxu1 }
 0x124   : > { %v748_v45 = vadd.f32 %v711_v60, %v553_v13  ;;  %v950_v62 = vadd.f32 %v911_v59, %v747_v57  ;;  %v2612_v63 = vpop.f32.mrb[23].mxu0  ;;  %v914_v0 = vpop.f32.mrb[22].mxu1 }
 0x125   : > { %v2648_v51 = vpop.f32.mrb[23].mxu1 }
 0x126   : > { %v951_v2 = vadd.f32 %v914_v0, %v748_v45 }
 0x129   : > { %v716_v3 = vpop.f32.mrb[24].mxu0 }
 0x12a   : > { %v749_v5 = vadd.f32 %v716_v3, %v558_v15  ;;  %v2615_v6 = vpop.f32.mrb[25].mxu0  ;;  %v919_v7 = vpop.f32.mrb[24].mxu1 }
 0x12b   : > { %v719_v4 = vpop.f32.mrb[26].mxu0  ;;  %v2651_v9 = vpop.f32.mrb[25].mxu1 }
 0x12c   : > { %v750_v11 = vadd.f32 %v719_v4, %v561_v19  ;;  %v952_v12 = vadd.f32 %v919_v7, %v749_v5  ;;  %v2616_v10 = vpop.f32.mrb[27].mxu0  ;;  %v922_v8 = vpop.f32.mrb[26].mxu1 }
 0x12d   : > { %v2652_v14 = vpop.f32.mrb[27].mxu1 }
 0x12e   : > { %v953_v16 = vadd.f32 %v922_v8, %v750_v11 }
 0x131   : > { %v724_v17 = vpop.f32.mrb[28].mxu0 }
 0x132   : > { %v751_v18 = vadd.f32 %v724_v17, %v566_v28  ;;  %v2619_v13 = vpop.f32.mrb[29].mxu0  ;;  %v927_v20 = vpop.f32.mrb[28].mxu1 }
 0x133   : > { %v727_v21 = vpop.f32.mrb[30].mxu0  ;;  %v2655_v1 = vpop.f32.mrb[29].mxu1 }
 0x134   : > { %v752_v22 = vadd.f32 %v727_v21, %v569_v33  ;;  %v954_v23 = vadd.f32 %v927_v20, %v751_v18  ;;  %v2620_v24 = vpop.f32.mrb[31].mxu0  ;;  %v930_v15 = vpop.f32.mrb[30].mxu1 }
 0x135   : > { %v2656_v25 = vpop.f32.mrb[31].mxu1 }
 0x136   : > { %v955_v26 = vadd.f32 %v930_v15, %v752_v22 }
 0x139   : > { %v732_v29 = vpop.f32.mrb[32].mxu0 }
 0x13a   : > { %v753_v30 = vadd.f32 %v732_v29, %v574_v38  ;;  %v2623_v19 = vpop.f32.mrb[33].mxu0  ;;  %v935_v31 = vpop.f32.mrb[32].mxu1 }
 0x13b   : > { %v735_v32 = vpop.f32.mrb[34].mxu0  ;;  %v2659_v34 = vpop.f32.mrb[33].mxu1 }
 0x13c   : > { %v754_v35 = vadd.f32 %v735_v32, %v577_v43  ;;  %v956_v27 = vadd.f32 %v935_v31, %v753_v30  ;;  %v2624_v37 = vpop.f32.mrb[35].mxu0  ;;  %v938_v28 = vpop.f32.mrb[34].mxu1 }
 0x13d   : > { %v2660_v39 = vpop.f32.mrb[35].mxu1 }
 0x13e   : > { %v957_v40 = vadd.f32 %v938_v28, %v754_v35 }
 0x141   : > { %v740_v41 = vpop.f32.mrb[36].mxu0 }
 0x142   : > { %v755_v42 = vadd.f32 %v740_v41, %v582_v49  ;;  %v2627_v33 = vpop.f32.mrb[37].mxu0  ;;  %v943_v44 = vpop.f32.mrb[36].mxu1 }
 0x143   : > { %v743_v46 = vpop.f32.mrb[38].mxu0  ;;  %v2663_v47 = vpop.f32.mrb[37].mxu1 }
 0x144   : > { %v756_v48 = vadd.f32 %v743_v46, %v585_v54  ;;  %v958_v36 = vadd.f32 %v943_v44, %v755_v42  ;;  %v2628_v50 = vpop.f32.mrb[39].mxu0  ;;  %v946_v38 = vpop.f32.mrb[38].mxu1 }
 0x145   : > { %v2664_v52 = vpop.f32.mrb[39].mxu1 }
 0x146   : > { %v959_v53 = vadd.f32 %v946_v38, %v756_v48 }
 0x149   : > { %v1122_v55 = vpop.f32.mrb[40].mxu0 }
 0x14a   : > { %v1161_v56 = vadd.f32 %v1122_v55, %v950_v62  ;;  %v2683_v43 = vpop.f32.mrb[41].mxu0  ;;  %v1291_v57 = vpop.f32.mrb[40].mxu1 }
 0x14b   : > { %v1125_v58 = vpop.f32.mrb[42].mxu0  ;;  %v2719_v59 = vpop.f32.mrb[41].mxu1 }
 0x14c   : > { %v1162_v60 = vadd.f32 %v1125_v58, %v951_v2  ;;  %v1330_v61 = vadd.f32 %v1291_v57, %v1161_v56  ;;  %v2684_v45 = vpop.f32.mrb[43].mxu0  ;;  %v1294_v49 = vpop.f32.mrb[42].mxu1 }
 0x14d   : > { %v2720_v63 = vpop.f32.mrb[43].mxu1 }
 0x14e   : > { %v1331_v0 = vadd.f32 %v1294_v49, %v1162_v60 }
 0x151   : > { %v1130_v51 = vpop.f32.mrb[44].mxu0 }
 0x152   : > { %v1163_v3 = vadd.f32 %v1130_v51, %v952_v12  ;;  %v2687_v54 = vpop.f32.mrb[45].mxu0  ;;  %v1299_v5 = vpop.f32.mrb[44].mxu1 }
 0x153   : > { %v1133_v6 = vpop.f32.mrb[46].mxu0  ;;  %v2723_v7 = vpop.f32.mrb[45].mxu1 }
 0x154   : > { %v1164_v4 = vadd.f32 %v1133_v6, %v953_v16  ;;  %v1332_v9 = vadd.f32 %v1299_v5, %v1163_v3  ;;  %v2688_v11 = vpop.f32.mrb[47].mxu0  ;;  %v1302_v62 = vpop.f32.mrb[46].mxu1 }
 0x155   : > { %v2724_v10 = vpop.f32.mrb[47].mxu1 }
 0x156   : > { %v1333_v8 = vadd.f32 %v1302_v62, %v1164_v4 }
 0x159   : > { %v1138_v14 = vpop.f32.mrb[48].mxu0 }
 0x15a   : > { %v1165_v17 = vadd.f32 %v1138_v14, %v954_v23  ;;  %v2691_v2 = vpop.f32.mrb[49].mxu0  ;;  %v1307_v18 = vpop.f32.mrb[48].mxu1 }
 0x15b   : > { %v1141_v13 = vpop.f32.mrb[50].mxu0  ;;  %v2727_v20 = vpop.f32.mrb[49].mxu1 }
 0x15c   : > { %v1166_v21 = vadd.f32 %v1141_v13, %v955_v26  ;;  %v1334_v1 = vadd.f32 %v1307_v18, %v1165_v17  ;;  %v2692_v22 = vpop.f32.mrb[51].mxu0  ;;  %v1310_v12 = vpop.f32.mrb[50].mxu1 }
 0x15d   : > { %v2728_v24 = vpop.f32.mrb[51].mxu1 }
 0x15e   : > { %v1335_v15 = vadd.f32 %v1310_v12, %v1166_v21 }
 0x161   : > { %v1146_v25 = vpop.f32.mrb[52].mxu0 }
 0x162   : > { %v1167_v29 = vadd.f32 %v1146_v25, %v956_v27  ;;  %v2695_v16 = vpop.f32.mrb[53].mxu0  ;;  %v1315_v30 = vpop.f32.mrb[52].mxu1 }
 0x163   : > { %v1149_v19 = vpop.f32.mrb[54].mxu0  ;;  %v2731_v31 = vpop.f32.mrb[53].mxu1 }
 0x164   : > { %v1168_v32 = vadd.f32 %v1149_v19, %v957_v40  ;;  %v1336_v34 = vadd.f32 %v1315_v30, %v1167_v29  ;;  %v2696_v35 = vpop.f32.mrb[55].mxu0  ;;  %v1318_v23 = vpop.f32.mrb[54].mxu1 }
 0x165   : > { %v2732_v37 = vpop.f32.mrb[55].mxu1 }
 0x166   : > { %v1337_v28 = vadd.f32 %v1318_v23, %v1168_v32 }
 0x169   : > { %v1154_v39 = vpop.f32.mrb[56].mxu0 }
 0x16a   : > { %v1169_v41 = vadd.f32 %v1154_v39, %v958_v36  ;;  %v2699_v26 = vpop.f32.mrb[57].mxu0  ;;  %v1323_v42 = vpop.f32.mrb[56].mxu1 }
 0x16b   : > { %v1157_v33 = vpop.f32.mrb[58].mxu0  ;;  %v2735_v44 = vpop.f32.mrb[57].mxu1 }
 0x16c   : > { %v1170_v46 = vadd.f32 %v1157_v33, %v959_v53  ;;  %v1338_v47 = vadd.f32 %v1323_v42, %v1169_v41  ;;  %v2700_v48 = vpop.f32.mrb[59].mxu0  ;;  %v1326_v27 = vpop.f32.mrb[58].mxu1 }
 0x16d   : > { %v2736_v50 = vpop.f32.mrb[59].mxu1 }
 0x16e   : > { %v1339_v38 = vadd.f32 %v1326_v27, %v1170_v46  ;;  %v2352_v27 = vld [vmem:[%s3585_s28] sm:$0xff]  }
 0x171   : > { %v1494_v52 = vpop.f32.mrb[60].mxu0 }
 0x172   : > { %v1533_v55 = vadd.f32 %v1494_v52, %v1330_v61  ;;  %v2755_v40 = vpop.f32.mrb[61].mxu0  ;;  %v1705_v56 = vpop.f32.mrb[60].mxu1 }
 0x173   : > { %v1497_v43 = vpop.f32.mrb[62].mxu0  ;;  %v2791_v57 = vpop.f32.mrb[61].mxu1 }
 0x174   : > { %v1534_v58 = vadd.f32 %v1497_v43, %v1331_v0  ;;  %v1744_v59 = vadd.f32 %v1705_v56, %v1533_v55  ;;  %v2756_v60 = vpop.f32.mrb[63].mxu0  ;;  %v1708_v36 = vpop.f32.mrb[62].mxu1  ;;  %v2353_v55 = vunpack.c.l.bf16 %v2352_v27 }
 0x175   : > { %v2792_v45 = vpop.f32.mrb[63].mxu1 }
 0x176   : > { %v3569_v49 = vadd.f32 %v1708_v36, %v1534_v58 }
 0x179   : > { %v1502_v63 = vpop.f32.mrb[64].mxu0 }
 0x17a   : > { %v1535_v53 = vadd.f32 %v1502_v63, %v1332_v9  ;;  %v2759_v51 = vpop.f32.mrb[65].mxu0  ;;  %v1713_v3 = vpop.f32.mrb[64].mxu1  ;;  %v2354_v63 = vunpack.c.h.bf16 %v2352_v27 }
 0x17b   : > { %v1505_v54 = vpop.f32.mrb[66].mxu0  ;;  %v2795_v5 = vpop.f32.mrb[65].mxu1 }
 0x17c   : > { %v1536_v6 = vadd.f32 %v1505_v54, %v1333_v8  ;;  %v3571_v7 = vadd.f32 %v1713_v3, %v1535_v53  ;;  %v2760_v61 = vpop.f32.mrb[67].mxu0  ;;  %v1716_v4 = vpop.f32.mrb[66].mxu1 }
 0x17d   : > { %v2796_v11 = vpop.f32.mrb[67].mxu1 }
 0x17e   : > { %v3573_v62 = vadd.f32 %v1716_v4, %v1536_v6 }
 0x181   : > { %v1510_v0 = vpop.f32.mrb[68].mxu0 }
 0x182   : > { %v1537_v10 = vadd.f32 %v1510_v0, %v1334_v1  ;;  %v2763_v14 = vpop.f32.mrb[69].mxu0  ;;  %v1721_v17 = vpop.f32.mrb[68].mxu1  ;;  %v2396_v0 = vld [vmem:[%s3585_s28 + $0x8] sm:$0xff]  }
 0x183   : > { %v1513_v2 = vpop.f32.mrb[70].mxu0  ;;  %v2799_v18 = vpop.f32.mrb[69].mxu1  ;;  %v2399_v14 = vld [vmem:[%s3585_s28 + $0x20] sm:$0xff]  }
 0x184   : > { %v1538_v13 = vadd.f32 %v1513_v2, %v1335_v15  ;;  %v3575_v9 = vadd.f32 %v1721_v17, %v1537_v10  ;;  %v2764_v20 = vpop.f32.mrb[71].mxu0  ;;  %v1724_v21 = vpop.f32.mrb[70].mxu1 }
 0x185   : > { %v2800_v8 = vpop.f32.mrb[71].mxu1  ;;  %v2357_v20 = vunpack.c.l.bf16 %v2396_v0 }
 0x186   : > { %v3577_v22 = vadd.f32 %v1724_v21, %v1538_v13 }
 0x189   : > { %v1518_v12 = vpop.f32.mrb[72].mxu0 }
 0x18a   : > { %v1539_v24 = vadd.f32 %v1518_v12, %v1336_v34  ;;  %v2767_v25 = vpop.f32.mrb[73].mxu0  ;;  %v1729_v29 = vpop.f32.mrb[72].mxu1 }
 0x18b   : > { %v1521_v16 = vpop.f32.mrb[74].mxu0  ;;  %v2803_v30 = vpop.f32.mrb[73].mxu1 }
 0x18c   : > { %v1540_v1 = vadd.f32 %v1521_v16, %v1337_v28  ;;  %v1750_v19 = vadd.f32 %v1729_v29, %v1539_v24  ;;  %v2768_v31 = vpop.f32.mrb[75].mxu0  ;;  %v1732_v32 = vpop.f32.mrb[74].mxu1  ;;  %v2369_v29 = vunpack.c.l.bf16 %v2399_v14 }
 0x18d   : > { %v2804_v15 = vpop.f32.mrb[75].mxu1  ;;  %v2358_v31 = vunpack.c.h.bf16 %v2396_v0 }
 0x18e   : > { %v1751_v35 = vadd.f32 %v1732_v32, %v1540_v1 }
 0x191   : > { %v1526_v23 = vpop.f32.mrb[76].mxu0 }
 0x192   : > { %v1541_v37 = vadd.f32 %v1526_v23, %v1338_v47  ;;  %v2771_v39 = vpop.f32.mrb[77].mxu0  ;;  %v1737_v41 = vpop.f32.mrb[76].mxu1  ;;  %v2398_v47 = vld [vmem:[%s3585_s28 + $0x18] sm:$0xff]  }
 0x193   : > { %v1529_v26 = vpop.f32.mrb[78].mxu0  ;;  %v2807_v42 = vpop.f32.mrb[77].mxu1  ;;  %v2365_v57 = vunpack.c.l.bf16 %v2398_v47  ;;  %v2370_v39 = vunpack.c.h.bf16 %v2399_v14 }
 0x194   : > { %v1542_v33 = vadd.f32 %v1529_v26, %v1339_v38  ;;  %v1752_v34 = vadd.f32 %v1737_v41, %v1541_v37  ;;  %v2772_v44 = vpop.f32.mrb[79].mxu0  ;;  %v1740_v46 = vpop.f32.mrb[78].mxu1  ;;  %v3592_v38 = vld [vmem:[%s3629_s2] ss:$0 sm:$0xff] }
 0x195   : > { %v2808_v28 = vpop.f32.mrb[79].mxu1  ;;  %v2397_v44 = vld [vmem:[%s3585_s28 + $0x10] sm:$0xff]  }
 0x196   : > { %v1753_v48 = vadd.f32 %v1740_v46, %v1542_v33 }
 0x199   : > { %v1874_v50 = vpop.f32.mrb[80].mxu0 }
 0x19a   : > { %v1913_v52 = vadd.f32 %v1874_v50, %v1744_v59  ;;  %v1898_v40 = vpop.f32.mrb[80].mxu1  ;;  %v2827_v56 = vpop.f32.mrb[81].mxu0  ;;  %v2366_v59 = vunpack.c.h.bf16 %v2398_v47  ;;  %v2361_v50 = vunpack.c.l.bf16 %v2397_v44 }
 0x19b   : > { %v1919_v43 = vadd.f32 %v1898_v40, %v1750_v19  ;;  %v2839_v58 = vpop.f32.mrb[81].mxu1  ;;  %v1877_v60 = vpop.f32.mrb[82].mxu0 }
 0x19c   : > { %v1930_v36 = vadd.f32 %v3592_v38, %v1913_v52  ;;  %v1914_v45 = vadd.f32 %v1877_v60, %v3569_v49  ;;  %v1901_v53 = vpop.f32.mrb[82].mxu1  ;;  %v2828_v51 = vpop.f32.mrb[83].mxu0  ;;  %v2362_v60 = vunpack.c.h.bf16 %v2397_v44 }
 0x19d   : > { %v1936_v3 = vadd.f32 %v3592_v38, %v1919_v43  ;;  %v1920_v54 = vadd.f32 %v1901_v53, %v1751_v35  ;;  %v2840_v5 = vpop.f32.mrb[83].mxu1 }
 0x19e   : > { %v1960_v6 = vadd.f32 %v2353_v55, %v1930_v36  ;;  %v1931_v61 = vadd.f32 %v3592_v38, %v1914_v45 }
 0x19f   : > { %v1966_v4 = vadd.f32 %v2365_v57, %v1936_v3  ;;  %v1937_v11 = vadd.f32 %v3592_v38, %v1920_v54 }
 0x1a0   : > { %v1961_v10 = vadd.f32 %v2354_v63, %v1931_v61  ;;  %v1970_v2 = vmax.f32 %v1960_v6, 0.0 }
 0x1a1   : > { %v1967_v17 = vadd.f32 %v2366_v59, %v1937_v11  ;;  %v1882_v49 = vpop.f32.mrb[84].mxu0  ;;  %v1976_v12 = vmax.f32 %v1966_v4, 0.0 }
 0x1a2   : > { %v1971_v18 = vmax.f32 %v1961_v10, 0.0  ;;  %v1915_v13 = vadd.f32 %v1882_v49, %v3571_v7  ;;  %v1906_v21 = vpop.f32.mrb[84].mxu1  ;;  %v2831_v8 = vpop.f32.mrb[85].mxu0 }
 0x1a3   : > { %v1977_v24 = vmax.f32 %v1967_v17, 0.0  ;;  %v1921_v25 = vadd.f32 %v1906_v21, %v1752_v34  ;;  %v2843_v16 = vpop.f32.mrb[85].mxu1  ;;  %v1885_v30 = vpop.f32.mrb[86].mxu0 }
 0x1a4   : > { %v2374_v1 = vpack.c.bf16 %v1971_v18, %v1970_v2  ;;  %v1932_v7 = vadd.f32 %v3592_v38, %v1915_v13  ;;  %v1916_v19 = vadd.f32 %v1885_v30, %v3573_v62  ;;  %v1909_v32 = vpop.f32.mrb[86].mxu1  ;;  %v2832_v15 = vpop.f32.mrb[87].mxu0 }
 0x1a5   : > { %v2389_v35 = vpack.c.bf16 %v1977_v24, %v1976_v12  ;;  %v1938_v23 = vadd.f32 %v3592_v38, %v1921_v25  ;;  %v1922_v37 = vadd.f32 %v1909_v32, %v1753_v48  ;;  %v2844_v41 = vpop.f32.mrb[87].mxu1 }
 0x1a6   : > { %2375 = vst [vmem:[%s3607_s7] sm:$0xff] %v2374_v1   ;;  %v1962_v26 = vadd.f32 %v2357_v20, %v1932_v7  ;;  %v1933_v42 = vadd.f32 %v3592_v38, %v1916_v19 }
 0x1a7   : > { %2402 = vst [vmem:[%s3607_s7 + $0x18] sm:$0xff] %v2389_v35   ;;  %v1968_v33 = vadd.f32 %v2369_v29, %v1938_v23  ;;  %v1939_v34 = vadd.f32 %v3592_v38, %v1922_v37 }
 0x1a8   : > { %v1963_v46 = vadd.f32 %v2358_v31, %v1933_v42  ;;  %v1972_v27 = vmax.f32 %v1962_v26, 0.0 }
 0x1a9   : > { %v1969_v62 = vadd.f32 %v2370_v39, %v1939_v34  ;;  %v1890_v28 = vpop.f32.mrb[88].mxu0  ;;  %v1978_v55 = vmax.f32 %v1968_v33, 0.0 }
 0x1aa   : > { %v1973_v47 = vmax.f32 %v1963_v46, 0.0  ;;  %v1917_v48 = vadd.f32 %v1890_v28, %v3575_v9  ;;  %v2835_v52 = vpop.f32.mrb[89].mxu0 }
 0x1ab   : > { %v1979_v40 = vmax.f32 %v1969_v62, 0.0  ;;  %v1893_v56 = vpop.f32.mrb[90].mxu0 }
 0x1ac   : > { %v2379_v43 = vpack.c.bf16 %v1973_v47, %v1972_v27  ;;  %v1934_v57 = vadd.f32 %v3592_v38, %v1917_v48  ;;  %v1918_v58 = vadd.f32 %v1893_v56, %v3577_v22  ;;  %v2836_v36 = vpop.f32.mrb[91].mxu0 }
 0x1ad   : > { %v2394_v45 = vpack.c.bf16 %v1979_v40, %v1978_v55 }
 0x1ae   : > { %2400 = vst [vmem:[%s3607_s7 + $0x8] sm:$0xff] %v2379_v43   ;;  %v1964_v63 = vadd.f32 %v2361_v50, %v1934_v57  ;;  %v1935_v53 = vadd.f32 %v3592_v38, %v1918_v58 }
 0x1af   : > { %2403 = vst [vmem:[%s3607_s7 + $0x20] sm:$0xff] %v2394_v45  }
 0x1b0   : > { %v1965_v9 = vadd.f32 %v2362_v60, %v1935_v53  ;;  %v1974_v51 = vmax.f32 %v1964_v63, 0.0 }
 0x1b2   : > { %v1975_v3 = vmax.f32 %v1965_v9, 0.0 }
 0x1b4   : > { %v2384_v54 = vpack.c.bf16 %v1975_v3, %v1974_v51 }
 0x1b6   : > { %2401 = vst [vmem:[%s3607_s7 + $0x10] sm:$0xff] %v2384_v54  }
 0x1b7 PF: > { %s14_s15 = sadd.s32 1, %s2974_s15  }
 0x1b8   : > { %p11_p4 = scmp.ge.s32.totalorder %s14_s15, 4  }
 0x1ba   :  { %13 = sbr.rel (!%p11_p4) target bundleno = 1 (0x1), region = 77 }

// kernel: _lambda_.23
= control target key start
LH: loop header
LB: loop body
LE: loop exit
PB: predicated region body
PF: predicated region fallthrough
CT: control target
= control target key end

     0   :  { %s2359_s1 = inlined_call_operand.vmem [shape: bf16[1152,256], index: 1, kind: input, shape index: {}]   ;;  %s2360_s0 = inlined_call_operand.vmem [shape: bf16[32,1152], index: 0, kind: input, shape index: {}]   ;;  %s2361_s2 = inlined_call_operand.vmem [shape: f32[1,256], index: 2, kind: input, shape index: {}]   ;;  %s2362_s3 = inlined_call_operand.vmem [shape: bf16[32,256], index: 3, kind: output, shape index: {}]  }
   0x1   :  { %v1595_v0 = vld [vmem:[%s2359_s1 + $0x4] ss:$8 sps:$4 sm:$0xff]   ;;  %v1599_v2 = vld [vmem:[%s2359_s1] ss:$8 sps:$4 sm:$0xff]   ;;  %v1601_v4 = vld [vmem:[%s2359_s1 + $0x14] ss:$8 sps:$4 sm:$0xff]  }
   0x2   :  { %v1597_v1 = vld [vmem:[%s2359_s1 + $0x204] ss:$8 sps:$4 sm:$0xff]   ;;  %1011 = vmatprep.subr.bf16.mxu1 %v1595_v0  ;;  %v1600_v3 = vld [vmem:[%s2359_s1 + $0x200] ss:$8 sps:$4 sm:$0xff]   ;;  %v1603_v5 = vld [vmem:[%s2359_s1 + $0x214] ss:$8 sps:$4 sm:$0xff]  }
   0x3   :  { %1117 = vmatprep.subr.bf16.mxu0 %v1597_v1  ;;  %1012 = vmatpush1.bf16.msra.mxu1 %v1599_v2  ;;  %v1605_v6 = vld [vmem:[%s2359_s1 + $0x10] ss:$8 sps:$4 sm:$0xff]   ;;  %v1607_v8 = vld [vmem:[%s2359_s1 + $0x24] ss:$8 sps:$4 sm:$0xff]   ;;  %v1611_v10 = vld [vmem:[%s2359_s1 + $0x20] ss:$8 sps:$4 sm:$0xff]  }
   0x4   :  { %1118 = vmatpush1.bf16.msra.mxu0 %v1600_v3  ;;  %1013 = vmatprep.subr.bf16.mxu1 %v1601_v4  ;;  %v1606_v7 = vld [vmem:[%s2359_s1 + $0x210] ss:$8 sps:$4 sm:$0xff]   ;;  %v1609_v9 = vld [vmem:[%s2359_s1 + $0x224] ss:$8 sps:$4 sm:$0xff]   ;;  %v1612_v11 = vld [vmem:[%s2359_s1 + $0x220] ss:$8 sps:$4 sm:$0xff]  }
   0x5   :  { %1119 = vmatprep.subr.bf16.mxu0 %v1603_v5  ;;  %v1613_v12 = vld [vmem:[%s2359_s1 + $0x34] ss:$8 sps:$4 sm:$0xff]   ;;  %v1617_v14 = vld [vmem:[%s2359_s1 + $0x30] ss:$8 sps:$4 sm:$0xff]   ;;  %v1619_v16 = vld [vmem:[%s2359_s1 + $0x44] ss:$8 sps:$4 sm:$0xff]  }
   0x6   :  { %v1615_v13 = vld [vmem:[%s2359_s1 + $0x234] ss:$8 sps:$4 sm:$0xff]   ;;  %v1618_v15 = vld [vmem:[%s2359_s1 + $0x230] ss:$8 sps:$4 sm:$0xff]   ;;  %v1621_v17 = vld [vmem:[%s2359_s1 + $0x244] ss:$8 sps:$4 sm:$0xff]  }
   0x7   :  { %1014 = vmatpush1.bf16.msra.mxu1 %v1605_v6  ;;  %v1623_v18 = vld [vmem:[%s2359_s1 + $0x40] ss:$8 sps:$4 sm:$0xff]   ;;  %v1625_v20 = vld [vmem:[%s2359_s1 + $0x54] ss:$8 sps:$4 sm:$0xff]   ;;  %v1629_v22 = vld [vmem:[%s2359_s1 + $0x50] ss:$8 sps:$4 sm:$0xff]  }
   0x8   :  { %1120 = vmatpush1.bf16.msra.mxu0 %v1606_v7  ;;  %1015 = vmatprep.subr.bf16.mxu1 %v1607_v8  ;;  %v1624_v19 = vld [vmem:[%s2359_s1 + $0x240] ss:$8 sps:$4 sm:$0xff]   ;;  %v1627_v21 = vld [vmem:[%s2359_s1 + $0x254] ss:$8 sps:$4 sm:$0xff]   ;;  %v1630_v23 = vld [vmem:[%s2359_s1 + $0x250] ss:$8 sps:$4 sm:$0xff]  }
   0x9   :  { %1121 = vmatprep.subr.bf16.mxu0 %v1609_v9  ;;  %v1631_v24 = vld [vmem:[%s2359_s1 + $0x64] ss:$8 sps:$4 sm:$0xff]   ;;  %v1635_v26 = vld [vmem:[%s2359_s1 + $0x60] ss:$8 sps:$4 sm:$0xff]   ;;  %v1637_v28 = vld [vmem:[%s2359_s1 + $0x74] ss:$8 sps:$4 sm:$0xff]  }
   0xa   :  { %v1633_v25 = vld [vmem:[%s2359_s1 + $0x264] ss:$8 sps:$4 sm:$0xff]   ;;  %v1636_v27 = vld [vmem:[%s2359_s1 + $0x260] ss:$8 sps:$4 sm:$0xff]   ;;  %v1639_v29 = vld [vmem:[%s2359_s1 + $0x274] ss:$8 sps:$4 sm:$0xff]  }
   0xb   :  { %1016 = vmatpush1.bf16.msra.mxu1 %v1611_v10  ;;  %v1641_v30 = vld [vmem:[%s2359_s1 + $0x70] ss:$8 sps:$4 sm:$0xff]   ;;  %v1643_v32 = vld [vmem:[%s2359_s1 + $0x84] ss:$8 sps:$4 sm:$0xff]   ;;  %v1647_v34 = vld [vmem:[%s2359_s1 + $0x80] ss:$8 sps:$4 sm:$0xff]  }
   0xc   :  { %1122 = vmatpush1.bf16.msra.mxu0 %v1612_v11  ;;  %1017 = vmatprep.subr.bf16.mxu1 %v1613_v12  ;;  %v1642_v31 = vld [vmem:[%s2359_s1 + $0x270] ss:$8 sps:$4 sm:$0xff]   ;;  %v1645_v33 = vld [vmem:[%s2359_s1 + $0x284] ss:$8 sps:$4 sm:$0xff]   ;;  %v1648_v35 = vld [vmem:[%s2359_s1 + $0x280] ss:$8 sps:$4 sm:$0xff]  }
   0xd   :  { %1123 = vmatprep.subr.bf16.mxu0 %v1615_v13  ;;  %v1649_v36 = vld [vmem:[%s2359_s1 + $0x94] ss:$8 sps:$4 sm:$0xff]   ;;  %v1653_v38 = vld [vmem:[%s2359_s1 + $0x90] ss:$8 sps:$4 sm:$0xff]   ;;  %v1655_v40 = vld [vmem:[%s2359_s1 + $0xa4] ss:$8 sps:$4 sm:$0xff]  }
   0xe   :  { %v1651_v37 = vld [vmem:[%s2359_s1 + $0x294] ss:$8 sps:$4 sm:$0xff]   ;;  %v1654_v39 = vld [vmem:[%s2359_s1 + $0x290] ss:$8 sps:$4 sm:$0xff]   ;;  %v1657_v41 = vld [vmem:[%s2359_s1 + $0x2a4] ss:$8 sps:$4 sm:$0xff]  }
   0xf   :  { %1018 = vmatpush1.bf16.msra.mxu1 %v1617_v14  ;;  %v1659_v42 = vld [vmem:[%s2359_s1 + $0xa0] ss:$8 sps:$4 sm:$0xff]   ;;  %v1661_v44 = vld [vmem:[%s2359_s1 + $0xb4] ss:$8 sps:$4 sm:$0xff]   ;;  %v1665_v46 = vld [vmem:[%s2359_s1 + $0xb0] ss:$8 sps:$4 sm:$0xff]  }
  0x10   :  { %1124 = vmatpush1.bf16.msra.mxu0 %v1618_v15  ;;  %1019 = vmatprep.subr.bf16.mxu1 %v1619_v16  ;;  %v1660_v43 = vld [vmem:[%s2359_s1 + $0x2a0] ss:$8 sps:$4 sm:$0xff]   ;;  %v1663_v45 = vld [vmem:[%s2359_s1 + $0x2b4] ss:$8 sps:$4 sm:$0xff]   ;;  %v1666_v47 = vld [vmem:[%s2359_s1 + $0x2b0] ss:$8 sps:$4 sm:$0xff]  }
  0x11   :  { %1125 = vmatprep.subr.bf16.mxu0 %v1621_v17  ;;  %v1693_v48 = vld [vmem:[%s2360_s0 + $0x4] ss:$36 sps:$4 sm:$0xff]   ;;  %v1699_v51 = vld [vmem:[%s2360_s0 + $0x14] ss:$36 sps:$4 sm:$0xff]  }
  0x12   :  { %v1667_v49 = vld [vmem:[%s2359_s1 + $0xc4] ss:$8 sps:$4 sm:$0xff]   ;;  %1043 = vmatprep.mubr.bf16.mxu1 %v1693_v48  ;;  %v1671_v52 = vld [vmem:[%s2359_s1 + $0xc0] ss:$8 sps:$4 sm:$0xff]   ;;  %v1673_v54 = vld [vmem:[%s2359_s1 + $0xd4] ss:$8 sps:$4 sm:$0xff]   ;;  %1149 = vmatprep.mubr.bf16.mxu0 %v1699_v51 }
  0x13   :  { %1020 = vmatpush1.bf16.msra.mxu1 %v1623_v18  ;;  %v1669_v50 = vld [vmem:[%s2359_s1 + $0x2c4] ss:$8 sps:$4 sm:$0xff]   ;;  %v1672_v53 = vld [vmem:[%s2359_s1 + $0x2c0] ss:$8 sps:$4 sm:$0xff]   ;;  %v1675_v55 = vld [vmem:[%s2359_s1 + $0x2d4] ss:$8 sps:$4 sm:$0xff]  }
  0x14   :  { %1126 = vmatpush1.bf16.msra.mxu0 %v1624_v19  ;;  %1021 = vmatprep.subr.bf16.mxu1 %v1625_v20  ;;  %v1677_v56 = vld [vmem:[%s2359_s1 + $0xd0] ss:$8 sps:$4 sm:$0xff]   ;;  %v1679_v58 = vld [vmem:[%s2359_s1 + $0xe4] ss:$8 sps:$4 sm:$0xff]   ;;  %v1683_v60 = vld [vmem:[%s2359_s1 + $0xe0] ss:$8 sps:$4 sm:$0xff]  }
  0x15   :  { %1127 = vmatprep.subr.bf16.mxu0 %v1627_v21  ;;  %v1678_v57 = vld [vmem:[%s2359_s1 + $0x2d0] ss:$8 sps:$4 sm:$0xff]   ;;  %v1681_v59 = vld [vmem:[%s2359_s1 + $0x2e4] ss:$8 sps:$4 sm:$0xff]   ;;  %v1684_v61 = vld [vmem:[%s2359_s1 + $0x2e0] ss:$8 sps:$4 sm:$0xff]  }
  0x16   :  { %v1685_v62 = vld [vmem:[%s2359_s1 + $0xf4] ss:$8 sps:$4 sm:$0xff]   ;;  %v1689_v0 = vld [vmem:[%s2359_s1 + $0xf0] ss:$8 sps:$4 sm:$0xff]   ;;  %v1696_v2 = vld [vmem:[%s2359_s1 + $0x104] ss:$8 sps:$4 sm:$0xff]  }
  0x17   :  { %1022 = vmatpush1.bf16.msra.mxu1 %v1629_v22  ;;  %v1687_v63 = vld [vmem:[%s2359_s1 + $0x2f4] ss:$8 sps:$4 sm:$0xff]   ;;  %v1690_v1 = vld [vmem:[%s2359_s1 + $0x2f0] ss:$8 sps:$4 sm:$0xff]   ;;  %v1702_v3 = vld [vmem:[%s2359_s1 + $0x304] ss:$8 sps:$4 sm:$0xff]  }
  0x18   :  { %1128 = vmatpush1.bf16.msra.mxu0 %v1630_v23  ;;  %1023 = vmatprep.subr.bf16.mxu1 %v1631_v24  ;;  %v1691_v4 = vld [vmem:[%s2360_s0] ss:$36 sps:$4 sm:$0xff]   ;;  %v1697_v6 = vld [vmem:[%s2360_s0 + $0x10] ss:$36 sps:$4 sm:$0xff]  }
  0x19   :  { %1129 = vmatprep.subr.bf16.mxu0 %v1633_v25  ;;  %v1694_v5 = vld [vmem:[%s2359_s1 + $0x100] ss:$8 sps:$4 sm:$0xff]   ;;  %v1705_v8 = vld [vmem:[%s2359_s1 + $0x114] ss:$8 sps:$4 sm:$0xff]   ;;  %v1703_v10 = vld [vmem:[%s2359_s1 + $0x110] ss:$8 sps:$4 sm:$0xff]  }
  0x1a   :  { %v1700_v7 = vld [vmem:[%s2359_s1 + $0x300] ss:$8 sps:$4 sm:$0xff]   ;;  %v1708_v9 = vld [vmem:[%s2359_s1 + $0x314] ss:$8 sps:$4 sm:$0xff]   ;;  %v1706_v11 = vld [vmem:[%s2359_s1 + $0x310] ss:$8 sps:$4 sm:$0xff]  }
  0x1b   :  { %1024 = vmatpush1.bf16.msra.mxu1 %v1635_v26  ;;  %v1711_v12 = vld [vmem:[%s2359_s1 + $0x124] ss:$8 sps:$4 sm:$0xff]   ;;  %v1709_v14 = vld [vmem:[%s2359_s1 + $0x120] ss:$8 sps:$4 sm:$0xff]   ;;  %v1717_v16 = vld [vmem:[%s2359_s1 + $0x134] ss:$8 sps:$4 sm:$0xff]  }
  0x1c   :  { %1130 = vmatpush1.bf16.msra.mxu0 %v1636_v27  ;;  %1025 = vmatprep.subr.bf16.mxu1 %v1637_v28  ;;  %v1714_v13 = vld [vmem:[%s2359_s1 + $0x324] ss:$8 sps:$4 sm:$0xff]   ;;  %v1712_v15 = vld [vmem:[%s2359_s1 + $0x320] ss:$8 sps:$4 sm:$0xff]   ;;  %v1720_v17 = vld [vmem:[%s2359_s1 + $0x334] ss:$8 sps:$4 sm:$0xff]  }
  0x1d   :  { %1131 = vmatprep.subr.bf16.mxu0 %v1639_v29  ;;  %v1715_v18 = vld [vmem:[%s2359_s1 + $0x130] ss:$8 sps:$4 sm:$0xff]   ;;  %v1723_v20 = vld [vmem:[%s2359_s1 + $0x144] ss:$8 sps:$4 sm:$0xff]   ;;  %v1721_v22 = vld [vmem:[%s2359_s1 + $0x140] ss:$8 sps:$4 sm:$0xff]  }
  0x1e   :  { %v1718_v19 = vld [vmem:[%s2359_s1 + $0x330] ss:$8 sps:$4 sm:$0xff]   ;;  %v1726_v21 = vld [vmem:[%s2359_s1 + $0x344] ss:$8 sps:$4 sm:$0xff]   ;;  %v1724_v23 = vld [vmem:[%s2359_s1 + $0x340] ss:$8 sps:$4 sm:$0xff]  }
  0x1f   :  { %1026 = vmatpush1.bf16.msra.mxu1 %v1641_v30  ;;  %v1729_v24 = vld [vmem:[%s2359_s1 + $0x154] ss:$8 sps:$4 sm:$0xff]   ;;  %v1727_v26 = vld [vmem:[%s2359_s1 + $0x150] ss:$8 sps:$4 sm:$0xff]   ;;  %v1735_v28 = vld [vmem:[%s2359_s1 + $0x164] ss:$8 sps:$4 sm:$0xff]  }
  0x20   :  { %1132 = vmatpush1.bf16.msra.mxu0 %v1642_v31  ;;  %1027 = vmatprep.subr.bf16.mxu1 %v1643_v32  ;;  %v1732_v25 = vld [vmem:[%s2359_s1 + $0x354] ss:$8 sps:$4 sm:$0xff]   ;;  %v1730_v27 = vld [vmem:[%s2359_s1 + $0x350] ss:$8 sps:$4 sm:$0xff]   ;;  %v1785_v31 = vld [vmem:[%s2360_s0 + $0x48] ss:$36 sps:$4 sm:$0xff]  }
  0x21   :  { %1133 = vmatprep.subr.bf16.mxu0 %v1645_v33  ;;  %v1781_v29 = vld [vmem:[%s2360_s0 + $0x4c] ss:$36 sps:$4 sm:$0xff]   ;;  %v1783_v30 = vld [vmem:[%s2360_s0 + $0x5c] ss:$36 sps:$4 sm:$0xff]  }
  0x22   :  { %v1738_v32 = vld [vmem:[%s2359_s1 + $0x364] ss:$8 sps:$4 sm:$0xff]   ;;  %v1789_v33 = vld [vmem:[%s2360_s0 + $0x58] ss:$36 sps:$4 sm:$0xff]  }
  0x23   :  { %1028 = vmatpush1.bf16.msra.mxu1 %v1647_v34  ;;  %v1733_v34 = vld [vmem:[%s2359_s1 + $0x160] ss:$8 sps:$4 sm:$0xff]   ;;  %v1751_v48 = vld [vmem:[%s2359_s1 + $0x190] ss:$8 sps:$4 sm:$0xff]   ;;  %v1762_v51 = vld [vmem:[%s2359_s1 + $0x3a4] ss:$8 sps:$4 sm:$0xff]  }
  0x24   :  { %1134 = vmatpush1.bf16.msra.mxu0 %v1648_v35  ;;  %1029 = vmatprep.subr.bf16.mxu1 %v1649_v36  ;;  %v1736_v35 = vld [vmem:[%s2359_s1 + $0x360] ss:$8 sps:$4 sm:$0xff]   ;;  %v1741_v36 = vld [vmem:[%s2359_s1 + $0x174] ss:$8 sps:$4 sm:$0xff]  }
  0x25   :  { %1135 = vmatprep.subr.bf16.mxu0 %v1651_v37  ;;  %v1744_v37 = vld [vmem:[%s2359_s1 + $0x374] ss:$8 sps:$4 sm:$0xff]  }
  0x27   :  { %1030 = vmatpush1.bf16.msra.mxu1 %v1653_v38  ;;  %v1739_v38 = vld [vmem:[%s2359_s1 + $0x170] ss:$8 sps:$4 sm:$0xff]  }
  0x28   :  { %1136 = vmatpush1.bf16.msra.mxu0 %v1654_v39  ;;  %1031 = vmatprep.subr.bf16.mxu1 %v1655_v40  ;;  %v1742_v39 = vld [vmem:[%s2359_s1 + $0x370] ss:$8 sps:$4 sm:$0xff]   ;;  %v1747_v40 = vld [vmem:[%s2359_s1 + $0x184] ss:$8 sps:$4 sm:$0xff]  }
  0x29   :  { %1137 = vmatprep.subr.bf16.mxu0 %v1657_v41  ;;  %v1801_v41 = vld [vmem:[%s2360_s0 + $0xc] ss:$36 sps:$4 sm:$0xff]  }
  0x2b   :  { %1032 = vmatpush1.bf16.msra.mxu1 %v1659_v42  ;;  %v1750_v42 = vld [vmem:[%s2359_s1 + $0x384] ss:$8 sps:$4 sm:$0xff]  }
  0x2c   :  { %1138 = vmatpush1.bf16.msra.mxu0 %v1660_v43  ;;  %1033 = vmatprep.subr.bf16.mxu1 %v1661_v44  ;;  %v1804_v43 = vld [vmem:[%s2360_s0 + $0x1c] ss:$36 sps:$4 sm:$0xff]  }
  0x2d   :  { %1139 = vmatprep.subr.bf16.mxu0 %v1663_v45  ;;  %v1745_v44 = vld [vmem:[%s2359_s1 + $0x180] ss:$8 sps:$4 sm:$0xff]  }
  0x2e   :  { %v1748_v45 = vld [vmem:[%s2359_s1 + $0x380] ss:$8 sps:$4 sm:$0xff]  }
  0x2f   :  { %1034 = vmatpush1.bf16.msra.mxu1 %v1665_v46  ;;  %v1753_v46 = vld [vmem:[%s2359_s1 + $0x194] ss:$8 sps:$4 sm:$0xff]  }
  0x30   :  { %1140 = vmatpush1.bf16.msra.mxu0 %v1666_v47  ;;  %1035 = vmatprep.subr.bf16.mxu1 %v1667_v49  ;;  %v1756_v47 = vld [vmem:[%s2359_s1 + $0x394] ss:$8 sps:$4 sm:$0xff]   ;;  %v1754_v49 = vld [vmem:[%s2359_s1 + $0x390] ss:$8 sps:$4 sm:$0xff]  }
  0x31   :  { %1141 = vmatprep.subr.bf16.mxu0 %v1669_v50  ;;  %v1759_v50 = vld [vmem:[%s2359_s1 + $0x1a4] ss:$8 sps:$4 sm:$0xff]  }
  0x33   :  { %1036 = vmatpush1.bf16.msra.mxu1 %v1671_v52  ;;  %v1757_v52 = vld [vmem:[%s2359_s1 + $0x1a0] ss:$8 sps:$4 sm:$0xff]  }
  0x34   :  { %1142 = vmatpush1.bf16.msra.mxu0 %v1672_v53  ;;  %1037 = vmatprep.subr.bf16.mxu1 %v1673_v54  ;;  %v1760_v53 = vld [vmem:[%s2359_s1 + $0x3a0] ss:$8 sps:$4 sm:$0xff]   ;;  %v1765_v54 = vld [vmem:[%s2359_s1 + $0x1b4] ss:$8 sps:$4 sm:$0xff]  }
  0x35   :  { %1143 = vmatprep.subr.bf16.mxu0 %v1675_v55  ;;  %v1768_v55 = vld [vmem:[%s2359_s1 + $0x3b4] ss:$8 sps:$4 sm:$0xff]  }
  0x37   :  { %1038 = vmatpush1.bf16.msra.mxu1 %v1677_v56  ;;  %v1763_v56 = vld [vmem:[%s2359_s1 + $0x1b0] ss:$8 sps:$4 sm:$0xff]  }
  0x38   :  { %1144 = vmatpush1.bf16.msra.mxu0 %v1678_v57  ;;  %1039 = vmatprep.subr.bf16.mxu1 %v1679_v58  ;;  %v1766_v57 = vld [vmem:[%s2359_s1 + $0x3b0] ss:$8 sps:$4 sm:$0xff]   ;;  %v1771_v58 = vld [vmem:[%s2359_s1 + $0x1c4] ss:$8 sps:$4 sm:$0xff]  }
  0x39   :  { %1145 = vmatprep.subr.bf16.mxu0 %v1681_v59  ;;  %v1774_v59 = vld [vmem:[%s2359_s1 + $0x3c4] ss:$8 sps:$4 sm:$0xff]  }
  0x3b   :  { %1040 = vmatpush1.bf16.msra.mxu1 %v1683_v60  ;;  %v1769_v60 = vld [vmem:[%s2359_s1 + $0x1c0] ss:$8 sps:$4 sm:$0xff]  }
  0x3c   :  { %1146 = vmatpush1.bf16.msra.mxu0 %v1684_v61  ;;  %1041 = vmatprep.subr.bf16.mxu1 %v1685_v62  ;;  %v1772_v61 = vld [vmem:[%s2359_s1 + $0x3c0] ss:$8 sps:$4 sm:$0xff]   ;;  %v1777_v62 = vld [vmem:[%s2359_s1 + $0x1d4] ss:$8 sps:$4 sm:$0xff]  }
  0x3d   :  { %1147 = vmatprep.subr.bf16.mxu0 %v1687_v63  ;;  %v1780_v63 = vld [vmem:[%s2359_s1 + $0x3d4] ss:$8 sps:$4 sm:$0xff]  }
  0x3f   :  { %1042 = vmatpush1.bf16.msra.mxu1 %v1689_v0  ;;  %v1775_v0 = vld [vmem:[%s2359_s1 + $0x1d0] ss:$8 sps:$4 sm:$0xff]  }
  0x40   :  { %1148 = vmatpush1.bf16.msra.mxu0 %v1690_v1  ;;  %1064 = vmatprep.subr.bf16.mxu1 %v1696_v2  ;;  %v1778_v1 = vld [vmem:[%s2359_s1 + $0x3d0] ss:$8 sps:$4 sm:$0xff]   ;;  %v1788_v2 = vld [vmem:[%s2359_s1 + $0x1e4] ss:$8 sps:$4 sm:$0xff]  }
  0x41   :  { %1170 = vmatprep.subr.bf16.mxu0 %v1702_v3  ;;  %v1792_v3 = vld [vmem:[%s2359_s1 + $0x3e4] ss:$8 sps:$4 sm:$0xff]  }
  0x42   :  { %1044 = vmatmul.mubr.bf16.vlgmr.msra.gmra.mrb[0].mxu1 %v1691_v4  ;;  %v1786_v4 = vld [vmem:[%s2359_s1 + $0x1e0] ss:$8 sps:$4 sm:$0xff]  }
  0x43   :  { %1150 = vmatmul.mubr.bf16.vlgmr.msra.gmra.mrb[0].mxu0 %v1697_v6  ;;  %1065 = vmatpush1.bf16.msra.mxu1 %v1694_v5  ;;  %v1790_v5 = vld [vmem:[%s2359_s1 + $0x3e0] ss:$8 sps:$4 sm:$0xff]   ;;  %v1795_v6 = vld [vmem:[%s2359_s1 + $0x1f4] ss:$8 sps:$4 sm:$0xff]  }
  0x44   :  { %1171 = vmatpush1.bf16.msra.mxu0 %v1700_v7  ;;  %1066 = vmatprep.subr.bf16.mxu1 %v1705_v8  ;;  %v1798_v7 = vld [vmem:[%s2359_s1 + $0x3f4] ss:$8 sps:$4 sm:$0xff]   ;;  %v1793_v8 = vld [vmem:[%s2359_s1 + $0x1f0] ss:$8 sps:$4 sm:$0xff]  }
  0x45   :  { %1172 = vmatprep.subr.bf16.mxu0 %v1708_v9  ;;  %1053 = vmatprep.mubr.bf16.mxu1 %v1781_v29  ;;  %v1796_v9 = vld [vmem:[%s2359_s1 + $0x3f0] ss:$8 sps:$4 sm:$0xff]   ;;  %v1831_v29 = vld [vmem:[%s2359_s1 + $0x464] ss:$8 sps:$4 sm:$0xff]  }
  0x46   :  { %1159 = vmatprep.mubr.bf16.mxu0 %v1783_v30  ;;  %v1829_v30 = vld [vmem:[%s2359_s1 + $0x460] ss:$8 sps:$4 sm:$0xff]  }
  0x47   :  { %1067 = vmatpush1.bf16.msra.mxu1 %v1703_v10  ;;  %v1807_v10 = vld [vmem:[%s2359_s1 + $0x404] ss:$8 sps:$4 sm:$0xff]  }
  0x48   :  { %1173 = vmatpush1.bf16.msra.mxu0 %v1706_v11  ;;  %1068 = vmatprep.subr.bf16.mxu1 %v1711_v12  ;;  %v1799_v11 = vld [vmem:[%s2360_s0 + $0x8] ss:$36 sps:$4 sm:$0xff]   ;;  %v1802_v12 = vld [vmem:[%s2360_s0 + $0x18] ss:$36 sps:$4 sm:$0xff]  }
  0x49   :  { %1174 = vmatprep.subr.bf16.mxu0 %v1714_v13  ;;  %v1805_v13 = vld [vmem:[%s2359_s1 + $0x400] ss:$8 sps:$4 sm:$0xff]  }
  0x4a   :  { %1054 = vmatmul.mubr.bf16.gmra.mrb[4].mxu1 %v1785_v31  ;;  %v1834_v31 = vld [vmem:[%s2359_s1 + $0x474] ss:$8 sps:$4 sm:$0xff]  }
  0x4b   :  { %1069 = vmatpush1.bf16.msra.mxu1 %v1709_v14  ;;  %1160 = vmatmul.mubr.bf16.gmra.mrb[4].mxu0 %v1789_v33  ;;  %v1810_v14 = vld [vmem:[%s2359_s1 + $0x414] ss:$8 sps:$4 sm:$0xff]   ;;  %v1835_v33 = vld [vmem:[%s2360_s0 + $0x20] ss:$36 sps:$4 sm:$0xff]  }
  0x4c   :  { %1175 = vmatpush1.bf16.msra.mxu0 %v1712_v15  ;;  %1070 = vmatprep.subr.bf16.mxu1 %v1717_v16  ;;  %v1811_v15 = vld [vmem:[%s2360_s0 + $0x54] ss:$36 sps:$4 sm:$0xff]   ;;  %v1813_v16 = vld [vmem:[%s2360_s0 + $0x64] ss:$36 sps:$4 sm:$0xff]  }
  0x4d   :  { %1176 = vmatprep.subr.bf16.mxu0 %v1720_v17  ;;  %1096 = vmatprep.mubr.bf16.mxu1 %v1801_v41  ;;  %v1808_v17 = vld [vmem:[%s2359_s1 + $0x410] ss:$8 sps:$4 sm:$0xff]  }
  0x4e   :  { %1202 = vmatprep.mubr.bf16.mxu0 %v1804_v43 }
  0x4f   :  { %1071 = vmatpush1.bf16.msra.mxu1 %v1715_v18  ;;  %v1819_v18 = vld [vmem:[%s2359_s1 + $0x424] ss:$8 sps:$4 sm:$0xff]  }
  0x50   :  { %1177 = vmatpush1.bf16.msra.mxu0 %v1718_v19  ;;  %1072 = vmatprep.subr.bf16.mxu1 %v1723_v20  ;;  %v1815_v19 = vld [vmem:[%s2360_s0 + $0x50] ss:$36 sps:$4 sm:$0xff]   ;;  %v1816_v20 = vld [vmem:[%s2360_s0 + $0x60] ss:$36 sps:$4 sm:$0xff]  }
  0x51   :  { %1178 = vmatprep.subr.bf16.mxu0 %v1726_v21  ;;  %v1817_v21 = vld [vmem:[%s2359_s1 + $0x420] ss:$8 sps:$4 sm:$0xff]  }
  0x53   :  { %1073 = vmatpush1.bf16.msra.mxu1 %v1721_v22  ;;  %v1822_v22 = vld [vmem:[%s2359_s1 + $0x434] ss:$8 sps:$4 sm:$0xff]  }
  0x54   :  { %1179 = vmatpush1.bf16.msra.mxu0 %v1724_v23  ;;  %1074 = vmatprep.subr.bf16.mxu1 %v1729_v24  ;;  %v1820_v23 = vld [vmem:[%s2359_s1 + $0x430] ss:$8 sps:$4 sm:$0xff]   ;;  %v1825_v24 = vld [vmem:[%s2359_s1 + $0x444] ss:$8 sps:$4 sm:$0xff]  }
  0x55   :  { %1180 = vmatprep.subr.bf16.mxu0 %v1732_v25  ;;  %v1837_v25 = vmov 0  }
  0x57   :  { %1075 = vmatpush1.bf16.msra.mxu1 %v1727_v26  ;;  %v1823_v26 = vld [vmem:[%s2359_s1 + $0x440] ss:$8 sps:$4 sm:$0xff]  }
  0x58   :  { %1181 = vmatpush1.bf16.msra.mxu0 %v1730_v27  ;;  %1076 = vmatprep.subr.bf16.mxu1 %v1735_v28  ;;  %v1828_v27 = vld [vmem:[%s2359_s1 + $0x454] ss:$8 sps:$4 sm:$0xff]   ;;  %v1826_v28 = vld [vmem:[%s2359_s1 + $0x450] ss:$8 sps:$4 sm:$0xff]  }
  0x59   :  { %1182 = vmatprep.subr.bf16.mxu0 %v1738_v32  ;;  %v1832_v32 = vld [vmem:[%s2359_s1 + $0x470] ss:$8 sps:$4 sm:$0xff]  }
  0x5b   :  { %1077 = vmatpush1.bf16.msra.mxu1 %v1733_v34  ;;  %v1836_v34 = vld [vmem:[%s2360_s0 + $0x68] ss:$36 sps:$4 sm:$0xff]  }
  0x5c   :  { %1183 = vmatpush1.bf16.msra.mxu0 %v1736_v35  ;;  %1078 = vmatprep.subr.bf16.mxu1 %v1741_v36 }
  0x5d   :  { %1184 = vmatprep.subr.bf16.mxu0 %v1744_v37 }
  0x5f   :  { %1079 = vmatpush1.bf16.msra.mxu1 %v1739_v38 }
  0x60   :  { %1185 = vmatpush1.bf16.msra.mxu0 %v1742_v39  ;;  %1080 = vmatprep.subr.bf16.mxu1 %v1747_v40 }
  0x61   :  { %1186 = vmatprep.subr.bf16.mxu0 %v1750_v42 }
  0x63   :  { %1081 = vmatpush1.bf16.msra.mxu1 %v1745_v44 }
  0x64   :  { %1187 = vmatpush1.bf16.msra.mxu0 %v1748_v45  ;;  %1082 = vmatprep.subr.bf16.mxu1 %v1753_v46 }
  0x65   :  { %1188 = vmatprep.subr.bf16.mxu0 %v1756_v47 }
  0x67   :  { %1083 = vmatpush1.bf16.msra.mxu1 %v1751_v48 }
  0x68   :  { %1189 = vmatpush1.bf16.msra.mxu0 %v1754_v49  ;;  %1084 = vmatprep.subr.bf16.mxu1 %v1759_v50 }
  0x69   :  { %1190 = vmatprep.subr.bf16.mxu0 %v1762_v51  ;;  %v1305_v51 = vlaneseq }
  0x6b   :  { %1085 = vmatpush1.bf16.msra.mxu1 %v1757_v52  ;;  %v1306_v52 = vshrl.u32 %v1305_v51, 7 }
  0x6c   :  { %1191 = vmatpush1.bf16.msra.mxu0 %v1760_v53  ;;  %1086 = vmatprep.subr.bf16.mxu1 %v1765_v54  ;;  %v1303_v54 = vld [vmem:[%s2361_s2] sm:$0x3] }
  0x6d   :  { %1192 = vmatprep.subr.bf16.mxu0 %v1768_v55  ;;  %v1307_v53 = vsub.s32 0, %v1306_v52  ;;  %v1311_v55 = vsub.s32 1, %v1306_v52 }
  0x6f   :  { %1087 = vmatpush1.bf16.msra.mxu1 %v1763_v56  ;;  %v1308_v56 = vrot.slane %v1303_v54, %v1307_v53 }
  0x70   :  { %1193 = vmatpush1.bf16.msra.mxu0 %v1766_v57  ;;  %1088 = vmatprep.subr.bf16.mxu1 %v1771_v58 }
  0x71   :  { %1194 = vmatprep.subr.bf16.mxu0 %v1774_v59  ;;  %v1312_v59 = vrot.slane %v1303_v54, %v1311_v55 }
  0x73   :  { %1089 = vmatpush1.bf16.msra.mxu1 %v1769_v60 }
  0x74   :  { %1195 = vmatpush1.bf16.msra.mxu0 %v1772_v61  ;;  %1090 = vmatprep.subr.bf16.mxu1 %v1777_v62 }
  0x75   :  { %1196 = vmatprep.subr.bf16.mxu0 %v1780_v63 }
  0x77   :  { %1091 = vmatpush1.bf16.msra.mxu1 %v1775_v0 }
  0x78   :  { %1197 = vmatpush1.bf16.msra.mxu0 %v1778_v1  ;;  %1092 = vmatprep.subr.bf16.mxu1 %v1788_v2 }
  0x79   :  { %1198 = vmatprep.subr.bf16.mxu0 %v1792_v3 }
  0x7b   :  { %1093 = vmatpush1.bf16.msra.mxu1 %v1786_v4 }
  0x7c   :  { %1199 = vmatpush1.bf16.msra.mxu0 %v1790_v5  ;;  %1094 = vmatprep.subr.bf16.mxu1 %v1795_v6 }
  0x7d   :  { %1200 = vmatprep.subr.bf16.mxu0 %v1798_v7 }
  0x7f   :  { %1095 = vmatpush1.bf16.msra.mxu1 %v1793_v8 }
  0x80   :  { %1201 = vmatpush1.bf16.msra.mxu0 %v1796_v9  ;;  %1546 = vmatprep.subr.bf16.mxu1 %v1807_v10 }
  0x81   :  { %1223 = vmatprep.subr.bf16.mxu0 %v1807_v10 }
  0x82   :  { %1097 = vmatmul.mubr.bf16.vlgmr.msra.gmra.mrb[0].mxu1 %v1799_v11 }
  0x83   :  { %1203 = vmatmul.mubr.bf16.vlgmr.msra.gmra.mrb[0].mxu0 %v1802_v12  ;;  %1554 = vmatpush1.bf16.msra.mxu1 %v1805_v13 }
  0x84   :  { %1224 = vmatpush1.bf16.msra.mxu0 %v1805_v13  ;;  %1547 = vmatprep.subr.bf16.mxu1 %v1810_v14 }
  0x85   :  { %1225 = vmatprep.subr.bf16.mxu0 %v1810_v14  ;;  %1106 = vmatprep.mubr.bf16.mxu1 %v1811_v15 }
  0x86   :  { %1212 = vmatprep.mubr.bf16.mxu0 %v1813_v16 }
  0x87   :  { %1555 = vmatpush1.bf16.msra.mxu1 %v1808_v17 }
  0x88   :  { %1226 = vmatpush1.bf16.msra.mxu0 %v1808_v17  ;;  %1548 = vmatprep.subr.bf16.mxu1 %v1819_v18 }
  0x89   :  { %1227 = vmatprep.subr.bf16.mxu0 %v1819_v18 }
  0x8a   :  { %1107 = vmatmul.mubr.bf16.gmra.mrb[4].mxu1 %v1815_v19 }
  0x8b   :  { %1213 = vmatmul.mubr.bf16.gmra.mrb[4].mxu0 %v1816_v20  ;;  %1556 = vmatpush1.bf16.msra.mxu1 %v1817_v21 }
  0x8c   :  { %1228 = vmatpush1.bf16.msra.mxu0 %v1817_v21  ;;  %1549 = vmatprep.subr.bf16.mxu1 %v1822_v22 }
  0x8d   :  { %1229 = vmatprep.subr.bf16.mxu0 %v1822_v22  ;;  %1255 = vmatprep.mubr.bf16.mxu0 %v1837_v25 }
  0x8e   :  { %1265 = vmatprep.mubr.bf16.mxu1 %v1837_v25 }
  0x8f   :  { %1557 = vmatpush1.bf16.msra.mxu1 %v1820_v23 }
  0x90   :  { %1230 = vmatpush1.bf16.msra.mxu0 %v1820_v23  ;;  %1550 = vmatprep.subr.bf16.mxu1 %v1825_v24 }
  0x91   :  { %1231 = vmatprep.subr.bf16.mxu0 %v1825_v24 }
  0x93   :  { %1558 = vmatpush1.bf16.msra.mxu1 %v1823_v26 }
  0x94   :  { %1232 = vmatpush1.bf16.msra.mxu0 %v1823_v26  ;;  %1551 = vmatprep.subr.bf16.mxu1 %v1828_v27 }
  0x95   :  { %1233 = vmatprep.subr.bf16.mxu0 %v1828_v27 }
  0x97   :  { %1559 = vmatpush1.bf16.msra.mxu1 %v1826_v28 }
  0x98   :  { %1234 = vmatpush1.bf16.msra.mxu0 %v1826_v28  ;;  %1552 = vmatprep.subr.bf16.mxu1 %v1831_v29 }
  0x99   :  { %1235 = vmatprep.subr.bf16.mxu0 %v1831_v29 }
  0x9b   :  { %1560 = vmatpush1.bf16.msra.mxu1 %v1829_v30 }
  0x9c   :  { %1236 = vmatpush1.bf16.msra.mxu0 %v1829_v30  ;;  %1553 = vmatprep.subr.bf16.mxu1 %v1834_v31 }
  0x9d   :  { %1237 = vmatprep.subr.bf16.mxu0 %v1834_v31 }
  0x9f   :  { %1561 = vmatpush1.bf16.msra.mxu1 %v1832_v32 }
  0xa0   :  { %1238 = vmatpush1.bf16.msra.mxu0 %v1832_v32 }
  0xa2   :  { %1266 = vmatmul.mubr.bf16.vlgmr.msra.gmra.mrb[8].mxu1 %v1836_v34 }
  0xa3   :  { %1256 = vmatmul.mubr.bf16.vlgmr.msra.gmra.mrb[0].mxu0 %v1835_v33 }
 0x155   :  { %v1098_v35 = vpop.f32.mrb[0].mxu1 }
 0x156   :  { %v1100_v36 = vpop.f32.mrb[1].mxu1 }
 0x157   :  { %v1102_v37 = vpop.f32.mrb[2].mxu1 }
 0x158   :  { %v1104_v38 = vpop.f32.mrb[3].mxu1 }
 0x15d   :  { %v1108_v39 = vpop.f32.mrb[4].mxu1 }
 0x15e   :  { %v1214_v40 = vpop.f32.mrb[4].mxu0  ;;  %v1110_v42 = vpop.f32.mrb[5].mxu1 }
 0x15f   :  { %v1566_v41 = vadd.f32 %v1214_v40, %v1108_v39  ;;  %v1216_v43 = vpop.f32.mrb[5].mxu0  ;;  %v1112_v45 = vpop.f32.mrb[6].mxu1 }
 0x160   :  { %v1568_v44 = vadd.f32 %v1216_v43, %v1110_v42  ;;  %v1218_v46 = vpop.f32.mrb[6].mxu0  ;;  %v1114_v48 = vpop.f32.mrb[7].mxu1 }
 0x161   :  { %v1570_v47 = vadd.f32 %v1218_v46, %v1112_v45  ;;  %v1220_v49 = vpop.f32.mrb[7].mxu0 }
 0x162   :  { %v1572_v50 = vadd.f32 %v1220_v49, %v1114_v48 }
 0x175   :  { %v1267_v58 = vpop.f32.mrb[8].mxu1 }
 0x176   :  { %v1257_v57 = vpop.f32.mrb[0].mxu0  ;;  %v1567_v61 = vadd.f32 %v1566_v41, %v1267_v58  ;;  %v1269_v63 = vpop.f32.mrb[9].mxu1 }
 0x177   :  { %v1562_v60 = vadd.f32 %v1257_v57, %v1098_v35  ;;  %v1259_v62 = vpop.f32.mrb[1].mxu0  ;;  %v1569_v1 = vadd.f32 %v1568_v44, %v1269_v63  ;;  %v1271_v3 = vpop.f32.mrb[10].mxu1 }
 0x178   :  { %v1563_v0 = vadd.f32 %v1259_v62, %v1100_v36  ;;  %v1261_v2 = vpop.f32.mrb[2].mxu0  ;;  %v1319_v5 = vadd.f32 %v1567_v61, %v1308_v56  ;;  %v1571_v7 = vadd.f32 %v1570_v47, %v1271_v3  ;;  %v1273_v9 = vpop.f32.mrb[11].mxu1 }
 0x179   :  { %v1315_v4 = vadd.f32 %v1562_v60, %v1308_v56  ;;  %v1564_v6 = vadd.f32 %v1261_v2, %v1102_v37  ;;  %v1263_v8 = vpop.f32.mrb[3].mxu0  ;;  %v1320_v11 = vadd.f32 %v1569_v1, %v1312_v59  ;;  %v1573_v13 = vadd.f32 %v1572_v50, %v1273_v9 }
 0x17a   :  { %v1316_v10 = vadd.f32 %v1563_v0, %v1312_v59  ;;  %v1565_v12 = vadd.f32 %v1263_v8, %v1104_v38  ;;  %v1332_v15 = vmax.f32 %v1319_v5, 0.0  ;;  %v1321_v17 = vadd.f32 %v1571_v7, %v1308_v56 }
 0x17b   :  { %v1328_v14 = vmax.f32 %v1315_v4, 0.0  ;;  %v1317_v16 = vadd.f32 %v1564_v6, %v1308_v56  ;;  %v1322_v19 = vadd.f32 %v1573_v13, %v1312_v59 }
 0x17c   :  { %v1318_v18 = vadd.f32 %v1565_v12, %v1312_v59  ;;  %v1544_v21 = vpack.c.bf16 %v1320_v11, %v1332_v15  ;;  %v1334_v23 = vmax.f32 %v1321_v17, 0.0 }
 0x17d   :  { %v1542_v20 = vpack.c.bf16 %v1316_v10, %v1328_v14  ;;  %v1330_v22 = vmax.f32 %v1317_v16, 0.0 }
 0x17e   :  { %1370 = vst [vmem:[%s2362_s3 + $0x10] sm:$0xff] %v1544_v21  ;;  %v1545_v25 = vpack.c.bf16 %v1322_v19, %v1334_v23 }
 0x17f   :  { %1368 = vst [vmem:[%s2362_s3] sm:$0xff] %v1542_v20  ;;  %v1543_v24 = vpack.c.bf16 %v1318_v18, %v1330_v22 }
 0x180   :  { %1371 = vst [vmem:[%s2362_s3 + $0x18] sm:$0xff] %v1545_v25 }
 0x181   :  { %1369 = vst [vmem:[%s2362_s3 + $0x8] sm:$0xff] %v1543_v24 }

// kernel: _lambda_.24
= control target key start
LH: loop header
LB: loop body
LE: loop exit
PB: predicated region body
PF: predicated region fallthrough
CT: control target
= control target key end

     0   :  { %s2138_s15 = smov 0   ;;  %s2449_s0 = inlined_call_operand.vmem [shape: bf16[2,42,128], index: 0, kind: input, shape index: {}]   ;;  %s2450_s1 = inlined_call_operand.vmem [shape: bf16[9,128,128], index: 1, kind: input, shape index: {}]   ;;  %s2451_s2 = inlined_call_operand.vmem [shape: f32[1,128], index: 2, kind: input, shape index: {}]   ;;  %s2452_s3 = inlined_call_operand.vmem [shape: bf16[2,24,128], index: 3, kind: input, shape index: {}]   ;;  %s2453_s4 = inlined_call_operand.vmem [shape: bf16[2,24,128], index: 4, kind: output, shape index: {}]  }
   0x1 LB: > { %s1501_s16 = sadd.s32 4294967295, %s2111_s15   ;;  %p1505_p0 = scmp.ge.s32.totalorder %s2111_s15, 1  ;;  %s2111_s15 = sphi %s2138_s15, %s14_s15  }
   0x2   : > { %p172_p1 = scmp.lt.s32.totalorder %s2111_s15, 3 }
   0x4   : > { %p173_p2 = pnand %p1505_p0, %p172_p1 }
   0x5   : > { %v2020_v0 = vld [vmem:[%s2450_s1 + $0x40] sm:$0xff] (!%p173_p2)   ;;  %p203_p3 = scmp.lt.s32.totalorder (!%p173_p2), %s1501_s16, 1  ;;  %v2022_v2 = vld [vmem:[%s2450_s1 + $0x48] sm:$0xff] (!%p173_p2)   ;;  %v2024_v4 = vld [vmem:[%s2450_s1 + $0x50] sm:$0xff] (!%p173_p2)   ;;  %vm266_vm0 = vsmask.f32 (!%p173_p2), 7424 }
   0x6   : > { %176 = sbr.rel (%p173_p2) target bundleno = 392 (0x188), region = 36  ;;  %v2021_v1 = vld [vmem:[%s2450_s1] sm:$0xff] (!%p173_p2)   ;;  %1830 = vmatprep.subr.bf16.mxu0 (!%p173_p2), %v2020_v0  ;;  %v2023_v3 = vld [vmem:[%s2450_s1 + $0x8] sm:$0xff] (!%p173_p2)   ;;  %v2025_v5 = vld [vmem:[%s2450_s1 + $0x10] sm:$0xff] (!%p173_p2)   ;;  %vm500_vm1 = vcmask (!%p173_p2), 1046528   ;;  %vm630_vm2 = vcmask (!%p173_p2), 1044480  }
   0x7   : > { %1850 = vmatprep.subr.bf16.mxu1 (!%p173_p2), %v2021_v1  ;;  %1831 = vmatpush3.bf16.msra.mxu0 (!%p173_p2), %v2020_v0  ;;  %v2026_v6 = vld [vmem:[%s2450_s1 + $0x58] sm:$0xff] (!%p173_p2)   ;;  %v2028_v8 = vld [vmem:[%s2450_s1 + $0x60] sm:$0xff] (!%p173_p2)   ;;  %v2030_v10 = vld [vmem:[%s2450_s1 + $0x68] sm:$0xff] (!%p173_p2)   ;;  %vm756_vm3 = vsmask.f32 (!%p173_p2), 4352  ;;  %vm1026_vm4 = vcmask (!%p173_p2), 1045504  }
   0x8   : > { %1851 = vmatpush3.bf16.msra.mxu1 (!%p173_p2), %v2021_v1  ;;  %1832 = vmatprep.subr.bf16.mxu0 (!%p173_p2), %v2022_v2  ;;  %v2027_v7 = vld [vmem:[%s2450_s1 + $0x18] sm:$0xff] (!%p173_p2)   ;;  %v2029_v9 = vld [vmem:[%s2450_s1 + $0x20] sm:$0xff] (!%p173_p2)   ;;  %v2031_v14 = vld [vmem:[%s2450_s1 + $0x28] sm:$0xff] (!%p173_p2)   ;;  %vm1152_vm5 = vsmask.f32 (!%p173_p2), 5376 }
   0x9   : > { %1852 = vmatprep.subr.bf16.mxu1 (!%p173_p2), %v2023_v3  ;;  %v2032_v20 = vld [vmem:[%s2450_s1 + $0x70] sm:$0xff] (!%p173_p2)   ;;  %v2034_v26 = vld [vmem:[%s2450_s1 + $0x78] sm:$0xff] (!%p173_p2)   ;;  %v2039_v30 = vld [vmem:[%s2450_s1 + $0x80] sm:$0xff] (!%p173_p2)  }
   0xa   : > { %v2033_v22 = vld [vmem:[%s2450_s1 + $0x30] sm:$0xff] (!%p173_p2)   ;;  %v2035_v27 = vld [vmem:[%s2450_s1 + $0x38] sm:$0xff] (!%p173_p2)   ;;  %v2040_v31 = vld [vmem:[%s2450_s1 + $0xc0] sm:$0xff] (!%p173_p2)  }
   0xb   : > { %1833 = vmatpush3.bf16.msra.mxu0 (!%p173_p2), %v2022_v2  ;;  %v2041_v34 = vld [vmem:[%s2450_s1 + $0x88] sm:$0xff] (!%p173_p2)   ;;  %v2043_v41 = vld [vmem:[%s2450_s1 + $0x90] sm:$0xff] (!%p173_p2)   ;;  %v2045_v49 = vld [vmem:[%s2450_s1 + $0x98] sm:$0xff] (!%p173_p2)  }
   0xc   : > { %1853 = vmatpush3.bf16.msra.mxu1 (!%p173_p2), %v2023_v3  ;;  %1834 = vmatprep.subr.bf16.mxu0 (!%p173_p2), %v2024_v4  ;;  %v2042_v35 = vld [vmem:[%s2450_s1 + $0xc8] sm:$0xff] (!%p173_p2)   ;;  %v2044_v44 = vld [vmem:[%s2450_s1 + $0xd0] sm:$0xff] (!%p173_p2)   ;;  %v2046_v51 = vld [vmem:[%s2450_s1 + $0xd8] sm:$0xff] (!%p173_p2)  }
   0xd   : > { %s2455_s16 = smov (!%p203_p3, %s1501_s16), 1  ;;  %1854 = vmatprep.subr.bf16.mxu1 %v2025_v5  ;;  %v2047_v52 = vld [vmem:[%s2450_s1 + $0xa0] sm:$0xff]   ;;  %v2049_v54 = vld [vmem:[%s2450_s1 + $0xa8] sm:$0xff]   ;;  %v2051_v56 = vld [vmem:[%s2450_s1 + $0xb0] sm:$0xff]  }
   0xe   : > { %s2010_s7 = smul.u32 24, %s2455_s16  ;;  %v2048_v53 = vld [vmem:[%s2450_s1 + $0xe0] sm:$0xff]   ;;  %v2050_v55 = vld [vmem:[%s2450_s1 + $0xe8] sm:$0xff]   ;;  %v2052_v61 = vld [vmem:[%s2450_s1 + $0xf0] sm:$0xff]  }
   0xf   : > { %1835 = vmatpush3.bf16.msra.mxu0 %v2024_v4  ;;  %v2053_v0 = vld [vmem:[%s2450_s1 + $0xb8] sm:$0xff]  }
  0x10   : > { %1855 = vmatpush3.bf16.msra.mxu1 %v2025_v5  ;;  %1836 = vmatprep.subr.bf16.mxu0 %v2026_v6  ;;  %s2182_s14 = scalar_lea.vmem %s2449_s0, %s2010_s7  ;;  %v2054_v1 = vld [vmem:[%s2450_s1 + $0xf8] sm:$0xff]  }
  0x11   : > { %1856 = vmatprep.subr.bf16.mxu1 %v2027_v7  ;;  %v219_v11 = vld [vmem:[%s2182_s14] sm:$0xf]  ;;  %v2189_v12 = vld [vmem:[%s2182_s14 + $0x4] sm:$0xf]  ;;  %v2192_v13 = vld [vmem:[%s2182_s14 + $0x8] sm:$0xf] }
  0x12   : > { %v238_v15 = vld [vmem:[%s2182_s14 + $0xc] sm:$0x1]  ;;  %v1525_v16 = vcombine.low %v219_v11, %v2189_v12  ;;  %v1535_v33 = vcombine.low %v2192_v13, %v2192_v13  ;;  %v479_v36 = vld [vmem:[%s2182_s14] sm:$0xe] }
  0x13   : > { %1837 = vmatpush3.bf16.msra.mxu0 %v2026_v6  ;;  %v2200_v17 = vcombine.low %v2192_v13, %v238_v15  ;;  %v1560_v37 = vcombine.low %v479_v36, %v2189_v12  ;;  %v605_v39 = vld [vmem:[%s2182_s14] sm:$0x8]  ;;  %v606_v40 = vld [vmem:[%s2182_s14 + $0xc] sm:$0x7]  ;;  %v1636_v15 = vcombine.low %v2189_v12, %v2192_v13 }
  0x14   : > { %1857 = vmatpush3.bf16.msra.mxu1 %v2027_v7  ;;  %1838 = vmatprep.subr.bf16.mxu0 %v2028_v8  ;;  %v268_v18 = vshrl.u32 %v1525_v16, 16  ;;  %v270_v19 = vshll.u32 %v1525_v16, 16  ;;  %v1585_v42 = vcombine.low %v605_v39, %v2189_v12  ;;  %v1586_v43 = vcombine.low %v2192_v13, %v606_v40  ;;  %v2273_v57 = vld [vmem:[%s2182_s14 + $0xc] sm:$0xf]  ;;  %v2056_v6 = vld [vmem:[%s2450_s1 + $0x100] sm:$0xff]   ;;  %v2064_v12 = vld [vmem:[%s2450_s1 + $0x118] sm:$0xff]  }
  0x15   : > { %1858 = vmatprep.subr.bf16.mxu1 %v2029_v9  ;;  %1866 = vmatprep.mubr.bf16.mxu1 %v1525_v16  ;;  %v275_v21 = vshll.u32 %v2200_v17, 16  ;;  %v279_v29 = vshrl.u32 %v2200_v17, 16  ;;  %v502_v38 = vrot.slane %v2200_v17, 1  ;;  %v501_v45 = vrot.slane %v1560_v37, 1  ;;  %v2059_v7 = vld [vmem:[%s2450_s1 + $0x140] sm:$0xff]   ;;  %v2061_v11 = vld [vmem:[%s2450_s1 + $0x148] sm:$0xff]  }
  0x16   : > { %v272_v23 = vrot.slane %v270_v19, 1  ;;  %v631_v46 = vrot.slane %v1585_v42, 3  ;;  %v2244_v47 = vrot.slane %v1586_v43, 3  ;;  %v758_v58 = vshrl.u32 %v1585_v42, 16  ;;  %v2062_v16 = vld [vmem:[%s2450_s1 + $0x110] sm:$0xff]   ;;  %v2072_v40 = vld [vmem:[%s2450_s1 + $0x138] sm:$0xff]  }
  0x17   : > { %1839 = vmatpush3.bf16.msra.mxu0 %v2028_v8  ;;  %v277_v24 = vrot.slane %v275_v21, 1  ;;  %v503_v48 = vsel %vm500_vm1, %v501_v45, %v502_v38  ;;  %v761_v59 = vshll.u32 %v1585_v42, 16  ;;  %v1611_v60 = vcombine.low %v2192_v13, %v2273_v57  ;;  %v2063_v17 = vld [vmem:[%s2450_s1 + $0x150] sm:$0xff]   ;;  %v2065_v13 = vld [vmem:[%s2450_s1 + $0x158] sm:$0xff]   ;;  %v2067_v21 = vld [vmem:[%s2450_s1 + $0x160] sm:$0xff]  }
  0x18   : > { %1859 = vmatpush3.bf16.msra.mxu1 %v2029_v9  ;;  %1840 = vmatprep.subr.bf16.mxu0 %v2030_v10  ;;  %v273_v25 = vor.u32 %v272_v23, %v268_v18  ;;  %v633_v50 = vsel %vm630_vm2, %v631_v46, %v2244_v47  ;;  %v760_v2 = vrot.slane %v758_v58, 3  ;;  %v997_v18 = vld [vmem:[%s2182_s14 + $0xc] sm:$0xf]  ;;  %v1131_v19 = vld [vmem:[%s2182_s14 + $0x10] sm:$0x7] }
  0x19   : > { %1860 = vmatprep.subr.bf16.mxu1 %v2031_v14  ;;  %v281_v32 = vor.u32 %v279_v29, %v277_v24  ;;  %v766_v62 = vshrl.u32 %v1611_v60, 16  ;;  %v769_v63 = vshll.u32 %v1611_v60, 16  ;;  %v763_v3 = vrot.slane %v761_v59, 4  ;;  %v996_v23 = vld [vmem:[%s2182_s14 + $0x8] sm:$0xf]  ;;  %v2081_v58 = vld [vmem:[%s2450_s1 + $0x190] sm:$0xff]  }
  0x1a   : > { %v278_v28 = vsel %vm266_vm0, %v273_v25, %v277_v24  ;;  %v1271_v24 = vld [vmem:[%s2182_s14 + $0x4] sm:$0x8]  ;;  %v2069_v29 = vld [vmem:[%s2450_s1 + $0x168] sm:$0xff]   ;;  %v2082_v59 = vld [vmem:[%s2450_s1 + $0x1d0] sm:$0xff]  }
  0x1b   : > { %1841 = vmatpush3.bf16.msra.mxu0 %v2030_v10  ;;  %1846 = vmatprep.mubr.bf16.mxu0 %v278_v28  ;;  %v768_v4 = vrot.slane %v766_v62, 3  ;;  %v771_v5 = vrot.slane %v769_v63, 4  ;;  %v764_v8 = vor.u32 %v763_v3, %v760_v2  ;;  %v2060_v10 = vld [vmem:[%s2450_s1 + $0x108] sm:$0xff]   ;;  %v1713_v25 = vcombine.low %v1271_v24, %v996_v23  ;;  %v995_v28 = vld [vmem:[%s2182_s14 + $0x4] sm:$0xc]  ;;  %v2083_v60 = vld [vmem:[%s2450_s1 + $0x198] sm:$0xff]  }
  0x1c   : > { %1861 = vmatpush3.bf16.msra.mxu1 %v2031_v14  ;;  %1842 = vmatprep.subr.bf16.mxu0 %v2032_v20  ;;  %v2085_v62 = vld [vmem:[%s2450_s1 + $0x1a0] sm:$0xff]   ;;  %v2089_v2 = vld [vmem:[%s2450_s1 + $0x1b0] sm:$0xff]  }
  0x1d   : > { %1862 = vmatprep.subr.bf16.mxu1 %v2033_v22  ;;  %v2292_v9 = vor.u32 %v771_v5, %v768_v4  ;;  %v2086_v63 = vld [vmem:[%s2450_s1 + $0x1e0] sm:$0xff]   ;;  %v2090_v3 = vld [vmem:[%s2450_s1 + $0x1f0] sm:$0xff]   ;;  %v2091_v4 = vld [vmem:[%s2450_s1 + $0x1b8] sm:$0xff]  }
  0x1e   : > { %v2092_v5 = vld [vmem:[%s2450_s1 + $0x1f8] sm:$0xff]  }
  0x1f   : > { %1843 = vmatpush3.bf16.msra.mxu0 %v2032_v20  ;;  %v773_v14 = vsel %vm756_vm3, %v764_v8, %v2292_v9  ;;  %v2066_v20 = vld [vmem:[%s2450_s1 + $0x120] sm:$0xff]   ;;  %v2098_v8 = vld [vmem:[%s2450_s1 + $0x210] sm:$0xff]  }
  0x20   : > { %1863 = vmatpush3.bf16.msra.mxu1 %v2033_v22  ;;  %1844 = vmatprep.subr.bf16.mxu0 %v2034_v26  ;;  %v2326_v22 = vcombine.low %v997_v18, %v1131_v19 }
  0x21   : > { %1864 = vmatprep.subr.bf16.mxu1 %v2035_v27 }
  0x22   : > { %v1165_v39 = vshll.u32 %v2326_v22, 16 }
  0x23   : > { %1845 = vmatpush3.bf16.msra.mxu0 %v2034_v26  ;;  %v1293_v26 = vrot.slane %v2326_v22, 3 }
  0x24   : > { %1865 = vmatpush3.bf16.msra.mxu1 %v2035_v27  ;;  %1870 = vmatprep.subr.bf16.mxu0 %v2039_v30  ;;  %v2068_v27 = vld [vmem:[%s2450_s1 + $0x128] sm:$0xff]   ;;  %v1167_v46 = vrot.slane %v1165_v39, 3 }
  0x25   : > { %1890 = vmatprep.subr.bf16.mxu1 %v2040_v31 }
  0x26   : > { %1847 = vmatmul.mubr.bf16.vlgmr.msra.gmra.mrb[0].mxu0 %v281_v32 }
  0x27   : > { %1867 = vmatmul.mubr.bf16.vlgmr.msra.gmra.mrb[0].mxu1 %v1535_v33  ;;  %1871 = vmatpush3.bf16.msra.mxu0 %v2039_v30  ;;  %v1292_v30 = vrot.slane %v1713_v25, 3  ;;  %v2070_v33 = vld [vmem:[%s2450_s1 + $0x130] sm:$0xff]  }
  0x28   : > { %1891 = vmatpush3.bf16.msra.mxu1 %v2040_v31  ;;  %1872 = vmatprep.subr.bf16.mxu0 %v2041_v34  ;;  %v1662_v31 = vcombine.low %v995_v28, %v996_v23 }
  0x29   : > { %1892 = vmatprep.subr.bf16.mxu1 %v2042_v35  ;;  %1886 = vmatprep.mubr.bf16.mxu0 %v503_v48  ;;  %v2341_v32 = vsel %vm630_vm2, %v1292_v30, %v1293_v26  ;;  %v2078_v48 = vld [vmem:[%s2450_s1 + $0x1c0] sm:$0xff]  }
  0x2a   : > { %1906 = vmatprep.mubr.bf16.mxu1 %v633_v50  ;;  %v1154_v36 = vshrl.u32 %v1662_v31, 16  ;;  %v1157_v37 = vshll.u32 %v1662_v31, 16 }
  0x2b   : > { %1873 = vmatpush3.bf16.msra.mxu0 %v2041_v34  ;;  %v2071_v34 = vld [vmem:[%s2450_s1 + $0x170] sm:$0xff]  }
  0x2c   : > { %1893 = vmatpush3.bf16.msra.mxu1 %v2042_v35  ;;  %1874 = vmatprep.subr.bf16.mxu0 %v2043_v41  ;;  %v998_v35 = vld [vmem:[%s2182_s14 + $0x10] sm:$0x3]  ;;  %v1156_v43 = vrot.slane %v1154_v36, 2  ;;  %s2011_s14 = smul.u32 12, %s2455_s16 }
  0x2d   : > { %1894 = vmatprep.subr.bf16.mxu1 %v2044_v44  ;;  %v1663_v42 = vcombine.low %v997_v18, %v998_v35 }
  0x2e   : > { %s212_s26 = scalar_lea.vmem %s2452_s3, %s2011_s14  ;;  %s217_s30 = scalar_lea.vmem %s2453_s4, %s2011_s14 }
  0x2f   : > { %1875 = vmatpush3.bf16.msra.mxu0 %v2043_v41  ;;  %v2073_v41 = vld [vmem:[%s2450_s1 + $0x178] sm:$0xff]   ;;  %v1028_v50 = vrot.slane %v1663_v42, 2 }
  0x30   : > { %1895 = vmatpush3.bf16.msra.mxu1 %v2044_v44  ;;  %1876 = vmatprep.subr.bf16.mxu0 %v2045_v49  ;;  %v1159_v44 = vrot.slane %v1157_v37, 3 }
  0x31   : > { %1896 = vmatprep.subr.bf16.mxu1 %v2046_v51 }
  0x33   : > { %1877 = vmatpush3.bf16.msra.mxu0 %v2045_v49  ;;  %v1027_v49 = vrot.slane %v1662_v31, 2 }
  0x34   : > { %1897 = vmatpush3.bf16.msra.mxu1 %v2046_v51  ;;  %1878 = vmatprep.subr.bf16.mxu0 %v2047_v52  ;;  %v1637_v51 = vcombine.low %v2273_v57, %v2273_v57 }
  0x35   : > { %1898 = vmatprep.subr.bf16.mxu1 %v2048_v53 }
  0x37   : > { %1879 = vmatpush3.bf16.msra.mxu0 %v2047_v52  ;;  %v1160_v52 = vor.u32 %v1159_v44, %v1156_v43 }
  0x38   : > { %1899 = vmatpush3.bf16.msra.mxu1 %v2048_v53  ;;  %1880 = vmatprep.subr.bf16.mxu0 %v2049_v54 }
  0x39   : > { %1900 = vmatprep.subr.bf16.mxu1 %v2050_v55 }
  0x3b   : > { %1881 = vmatpush3.bf16.msra.mxu0 %v2049_v54  ;;  %v2079_v54 = vld [vmem:[%s2450_s1 + $0x188] sm:$0xff]  }
  0x3c   : > { %1901 = vmatpush3.bf16.msra.mxu1 %v2050_v55  ;;  %1882 = vmatprep.subr.bf16.mxu0 %v2051_v56  ;;  %v2080_v55 = vld [vmem:[%s2450_s1 + $0x1c8] sm:$0xff]  }
  0x3d   : > { %1902 = vmatprep.subr.bf16.mxu1 %v2052_v61 }
  0x3f   : > { %1883 = vmatpush3.bf16.msra.mxu0 %v2051_v56  ;;  %v1029_v56 = vsel %vm1026_vm4, %v1027_v49, %v1028_v50 }
  0x40   : > { %1903 = vmatpush3.bf16.msra.mxu1 %v2052_v61  ;;  %1884 = vmatprep.subr.bf16.mxu0 %v2053_v0  ;;  %v2084_v61 = vld [vmem:[%s2450_s1 + $0x1d8] sm:$0xff]  }
  0x41   : > { %1904 = vmatprep.subr.bf16.mxu1 %v2054_v1 }
  0x43   : > { %1885 = vmatpush3.bf16.msra.mxu0 %v2053_v0  ;;  %v2087_v0 = vld [vmem:[%s2450_s1 + $0x1a8] sm:$0xff]  }
  0x44   : > { %1905 = vmatpush3.bf16.msra.mxu1 %v2054_v1  ;;  %1910 = vmatprep.subr.bf16.mxu0 %v2056_v6  ;;  %v2088_v1 = vld [vmem:[%s2450_s1 + $0x1e8] sm:$0xff]  }
  0x45   : > { %1930 = vmatprep.subr.bf16.mxu1 %v2059_v7 }
  0x46   : > { %1887 = vmatmul.mubr.bf16.vlgmr.msra.gmra.mrb[4].mxu0 %v502_v38  ;;  %v1162_v38 = vshrl.u32 %v2326_v22, 16 }
  0x47   : > { %1911 = vmatpush3.bf16.msra.mxu0 %v2056_v6  ;;  %1907 = vmatmul.mubr.bf16.vlgmr.msra.gmra.mrb[4].mxu1 %v2244_v47  ;;  %v2075_v47 = vld [vmem:[%s2450_s1 + $0x180] sm:$0xff]  }
  0x48   : > { %1931 = vmatpush3.bf16.msra.mxu1 %v2059_v7  ;;  %1912 = vmatprep.subr.bf16.mxu0 %v2060_v10  ;;  %v1164_v45 = vrot.slane %v1162_v38, 2  ;;  %v2096_v6 = vld [vmem:[%s2450_s1 + $0x200] sm:$0xff]   ;;  %v2097_v7 = vld [vmem:[%s2450_s1 + $0x208] sm:$0xff]  }
  0x49   : > { %1932 = vmatprep.subr.bf16.mxu1 %v2061_v11  ;;  %1926 = vmatprep.mubr.bf16.mxu0 %v773_v14  ;;  %v2102_v14 = vld [vmem:[%s2450_s1 + $0x230] sm:$0xff]  }
  0x4a   : > { %1946 = vmatprep.mubr.bf16.mxu1 %v1636_v15  ;;  %v1168_v53 = vor.u32 %v1167_v46, %v1164_v45  ;;  %v2103_v15 = vld [vmem:[%s2450_s1 + $0x238] sm:$0xff]  }
  0x4b   : > { %1913 = vmatpush3.bf16.msra.mxu0 %v2060_v10  ;;  %v2100_v10 = vld [vmem:[%s2450_s1 + $0x220] sm:$0xff]  }
  0x4c   : > { %1933 = vmatpush3.bf16.msra.mxu1 %v2061_v11  ;;  %1914 = vmatprep.subr.bf16.mxu0 %v2062_v16  ;;  %v1169_v57 = vsel %vm1152_vm5, %v1160_v52, %v1168_v53  ;;  %v2101_v11 = vld [vmem:[%s2450_s1 + $0x228] sm:$0xff]  }
  0x4d   : > { %1934 = vmatprep.subr.bf16.mxu1 %v2063_v17 }
  0x4f   : > { %1915 = vmatpush3.bf16.msra.mxu0 %v2062_v16 }
  0x50   : > { %1935 = vmatpush3.bf16.msra.mxu1 %v2063_v17  ;;  %1916 = vmatprep.subr.bf16.mxu0 %v2064_v12 }
  0x51   : > { %1936 = vmatprep.subr.bf16.mxu1 %v2065_v13 }
  0x53   : > { %1917 = vmatpush3.bf16.msra.mxu0 %v2064_v12 }
  0x54   : > { %1937 = vmatpush3.bf16.msra.mxu1 %v2065_v13  ;;  %1918 = vmatprep.subr.bf16.mxu0 %v2066_v20 }
  0x55   : > { %1938 = vmatprep.subr.bf16.mxu1 %v2067_v21 }
  0x57   : > { %1919 = vmatpush3.bf16.msra.mxu0 %v2066_v20 }
  0x58   : > { %1939 = vmatpush3.bf16.msra.mxu1 %v2067_v21  ;;  %1920 = vmatprep.subr.bf16.mxu0 %v2068_v27 }
  0x59   : > { %1940 = vmatprep.subr.bf16.mxu1 %v2069_v29 }
  0x5b   : > { %1921 = vmatpush3.bf16.msra.mxu0 %v2068_v27 }
  0x5c   : > { %1941 = vmatpush3.bf16.msra.mxu1 %v2069_v29  ;;  %1922 = vmatprep.subr.bf16.mxu0 %v2070_v33 }
  0x5d   : > { %1942 = vmatprep.subr.bf16.mxu1 %v2071_v34 }
  0x5f   : > { %1923 = vmatpush3.bf16.msra.mxu0 %v2070_v33 }
  0x60   : > { %1943 = vmatpush3.bf16.msra.mxu1 %v2071_v34  ;;  %1924 = vmatprep.subr.bf16.mxu0 %v2072_v40 }
  0x61   : > { %1944 = vmatprep.subr.bf16.mxu1 %v2073_v41 }
  0x63   : > { %1925 = vmatpush3.bf16.msra.mxu0 %v2072_v40 }
  0x64   : > { %1945 = vmatpush3.bf16.msra.mxu1 %v2073_v41  ;;  %1950 = vmatprep.subr.bf16.mxu0 %v2075_v47 }
  0x65   : > { %1970 = vmatprep.subr.bf16.mxu1 %v2078_v48 }
  0x66   : > { %1927 = vmatmul.mubr.bf16.vlgmr.msra.gmra.mrb[8].mxu0 %v2292_v9  ;;  %v2099_v9 = vld [vmem:[%s2450_s1 + $0x218] sm:$0xff]  }
  0x67   : > { %1951 = vmatpush3.bf16.msra.mxu0 %v2075_v47  ;;  %1947 = vmatmul.mubr.bf16.vlgmr.msra.gmra.mrb[8].mxu1 %v1637_v51 }
  0x68   : > { %1971 = vmatpush3.bf16.msra.mxu1 %v2078_v48  ;;  %1952 = vmatprep.subr.bf16.mxu0 %v2079_v54 }
  0x69   : > { %1972 = vmatprep.subr.bf16.mxu1 %v2080_v55  ;;  %1966 = vmatprep.mubr.bf16.mxu0 %v1029_v56 }
  0x6a   : > { %1986 = vmatprep.mubr.bf16.mxu1 %v1169_v57 }
  0x6b   : > { %1953 = vmatpush3.bf16.msra.mxu0 %v2079_v54 }
  0x6c   : > { %1973 = vmatpush3.bf16.msra.mxu1 %v2080_v55  ;;  %1954 = vmatprep.subr.bf16.mxu0 %v2081_v58 }
  0x6d   : > { %1974 = vmatprep.subr.bf16.mxu1 %v2082_v59 }
  0x6f   : > { %1955 = vmatpush3.bf16.msra.mxu0 %v2081_v58 }
  0x70   : > { %1975 = vmatpush3.bf16.msra.mxu1 %v2082_v59  ;;  %1956 = vmatprep.subr.bf16.mxu0 %v2083_v60 }
  0x71   : > { %1976 = vmatprep.subr.bf16.mxu1 %v2084_v61 }
  0x73   : > { %1957 = vmatpush3.bf16.msra.mxu0 %v2083_v60 }
  0x74   : > { %1977 = vmatpush3.bf16.msra.mxu1 %v2084_v61  ;;  %1958 = vmatprep.subr.bf16.mxu0 %v2085_v62 }
  0x75   : > { %1978 = vmatprep.subr.bf16.mxu1 %v2086_v63 }
  0x77   : > { %1959 = vmatpush3.bf16.msra.mxu0 %v2085_v62 }
  0x78   : > { %1979 = vmatpush3.bf16.msra.mxu1 %v2086_v63  ;;  %1960 = vmatprep.subr.bf16.mxu0 %v2087_v0 }
  0x79   : > { %1980 = vmatprep.subr.bf16.mxu1 %v2088_v1 }
  0x7b   : > { %1961 = vmatpush3.bf16.msra.mxu0 %v2087_v0 }
  0x7c   : > { %1981 = vmatpush3.bf16.msra.mxu1 %v2088_v1  ;;  %1962 = vmatprep.subr.bf16.mxu0 %v2089_v2 }
  0x7d   : > { %1982 = vmatprep.subr.bf16.mxu1 %v2090_v3 }
  0x7f   : > { %1963 = vmatpush3.bf16.msra.mxu0 %v2089_v2 }
  0x80   : > { %1983 = vmatpush3.bf16.msra.mxu1 %v2090_v3  ;;  %1964 = vmatprep.subr.bf16.mxu0 %v2091_v4  ;;  %v1408_v3 = vld [vmem:[%s212_s26 + $0x8] sm:$0xf] }
  0x81   : > { %1984 = vmatprep.subr.bf16.mxu1 %v2092_v5 }
  0x83   : > { %1965 = vmatpush3.bf16.msra.mxu0 %v2091_v4  ;;  %v1732_v4 = vld [vmem:[%s212_s26] sm:$0xff]  }
  0x84   : > { %1985 = vmatpush3.bf16.msra.mxu1 %v2092_v5  ;;  %1990 = vmatprep.subr.bf16.mxu0 %v2096_v6 }
  0x86   : > { %1967 = vmatmul.mubr.bf16.vlgmr.msra.gmra.mrb[12].mxu0 %v1028_v50 }
  0x87   : > { %1991 = vmatpush3.bf16.msra.mxu0 %v2096_v6  ;;  %1987 = vmatmul.mubr.bf16.vlgmr.msra.gmra.mrb[12].mxu1 %v1168_v53  ;;  %v1722_v6 = vld [vmem:[%s2451_s2] ss:$0 sm:$0xff] }
  0x88   : > { %1992 = vmatprep.subr.bf16.mxu0 %v2097_v7  ;;  %2006 = vmatprep.mubr.bf16.mxu0 %v2341_v32 }
  0x8b   : > { %1993 = vmatpush3.bf16.msra.mxu0 %v2097_v7 }
  0x8c   : > { %1994 = vmatprep.subr.bf16.mxu0 %v2098_v8 }
  0x8f   : > { %1995 = vmatpush3.bf16.msra.mxu0 %v2098_v8  ;;  %v1411_v8 = vunpack.c.l.bf16 %v1408_v3 }
  0x90   : > { %1996 = vmatprep.subr.bf16.mxu0 %v2099_v9 }
  0x93   : > { %1997 = vmatpush3.bf16.msra.mxu0 %v2099_v9 }
  0x94   : > { %1998 = vmatprep.subr.bf16.mxu0 %v2100_v10 }
  0x97   : > { %1999 = vmatpush3.bf16.msra.mxu0 %v2100_v10 }
  0x98   : > { %2000 = vmatprep.subr.bf16.mxu0 %v2101_v11 }
  0x9b   : > { %2001 = vmatpush3.bf16.msra.mxu0 %v2101_v11  ;;  %v1733_v11 = vunpack.c.l.bf16 %v1732_v4 }
  0x9c   : > { %2002 = vmatprep.subr.bf16.mxu0 %v2102_v14 }
  0x9f   : > { %2003 = vmatpush3.bf16.msra.mxu0 %v2102_v14 }
  0xa0   : > { %2004 = vmatprep.subr.bf16.mxu0 %v2103_v15 }
  0xa3   : > { %2005 = vmatpush3.bf16.msra.mxu0 %v2103_v15 }
  0xa6   : > { %2007 = vmatmul.mubr.bf16.vlgmr.msra.gmra.mrb[16].mxu0 %v1293_v26 }
  0xf9   : > { %v1848_v16 = vpop.f32.mrb[0].mxu0 }
  0xfa   : > { %v1868_v17 = vpop.f32.mrb[0].mxu1  ;;  %v366_v12 = vpop.f32.mrb[1].mxu0 }
  0xfb   : > { %v474_v13 = vadd.f32 %v1868_v17, %v1848_v16  ;;  %v465_v18 = vpop.f32.mrb[1].mxu1  ;;  %v1849_v19 = vpop.f32.mrb[2].mxu0 }
  0xfc   : > { %v466_v20 = vadd.f32 %v465_v18, %v366_v12  ;;  %v1869_v21 = vpop.f32.mrb[2].mxu1  ;;  %v369_v23 = vpop.f32.mrb[3].mxu0 }
  0xfd   : > { %v468_v24 = vpop.f32.mrb[3].mxu1 }
  0xfe   : > { %v469_v25 = vadd.f32 %v468_v24, %v369_v23 }
 0x119   : > { %v1888_v27 = vpop.f32.mrb[4].mxu0 }
 0x11a   : > { %v604_v28 = vadd.f32 %v1888_v27, %v474_v13  ;;  %v588_v29 = vpop.f32.mrb[5].mxu0  ;;  %v1908_v30 = vpop.f32.mrb[4].mxu1  ;;  %v1734_v13 = vunpack.c.h.bf16 %v1732_v4 }
 0x11b   : > { %v602_v31 = vadd.f32 %v588_v29, %v466_v20  ;;  %v1889_v32 = vpop.f32.mrb[6].mxu0  ;;  %v718_v33 = vpop.f32.mrb[5].mxu1 }
 0x11c   : > { %v734_v22 = vadd.f32 %v1908_v30, %v604_v28  ;;  %v591_v26 = vpop.f32.mrb[7].mxu0  ;;  %v1909_v34 = vpop.f32.mrb[6].mxu1 }
 0x11d   : > { %v603_v35 = vadd.f32 %v591_v26, %v469_v25  ;;  %v732_v36 = vadd.f32 %v718_v33, %v602_v31  ;;  %v721_v37 = vpop.f32.mrb[7].mxu1 }
 0x11f   : > { %v733_v38 = vadd.f32 %v721_v37, %v603_v35 }
 0x139   : > { %v1928_v39 = vpop.f32.mrb[8].mxu0 }
 0x13a   : > { %v874_v40 = vadd.f32 %v1928_v39, %v734_v22  ;;  %v858_v41 = vpop.f32.mrb[9].mxu0  ;;  %v1948_v42 = vpop.f32.mrb[8].mxu1 }
 0x13b   : > { %v872_v43 = vadd.f32 %v858_v41, %v732_v36  ;;  %v1929_v44 = vpop.f32.mrb[10].mxu0  ;;  %v978_v45 = vpop.f32.mrb[9].mxu1 }
 0x13c   : > { %v994_v46 = vadd.f32 %v1948_v42, %v874_v40  ;;  %v861_v47 = vpop.f32.mrb[11].mxu0  ;;  %v1949_v48 = vpop.f32.mrb[10].mxu1 }
 0x13d   : > { %v873_v49 = vadd.f32 %v861_v47, %v733_v38  ;;  %v992_v50 = vadd.f32 %v978_v45, %v872_v43  ;;  %v981_v51 = vpop.f32.mrb[11].mxu1 }
 0x13f   : > { %v993_v52 = vadd.f32 %v981_v51, %v873_v49 }
 0x159   : > { %v1968_v53 = vpop.f32.mrb[12].mxu0 }
 0x15a   : > { %v1130_v54 = vadd.f32 %v1968_v53, %v994_v46  ;;  %v1114_v55 = vpop.f32.mrb[13].mxu0  ;;  %v1988_v56 = vpop.f32.mrb[12].mxu1 }
 0x15b   : > { %v1128_v57 = vadd.f32 %v1114_v55, %v992_v50  ;;  %v1969_v58 = vpop.f32.mrb[14].mxu0  ;;  %v1254_v59 = vpop.f32.mrb[13].mxu1 }
 0x15c   : > { %v1270_v60 = vadd.f32 %v1988_v56, %v1130_v54  ;;  %v1117_v61 = vpop.f32.mrb[15].mxu0  ;;  %v1989_v62 = vpop.f32.mrb[14].mxu1 }
 0x15d   : > { %v1129_v63 = vadd.f32 %v1117_v61, %v993_v52  ;;  %v1268_v0 = vadd.f32 %v1254_v59, %v1128_v57  ;;  %v1257_v1 = vpop.f32.mrb[15].mxu1 }
 0x15f   : > { %v1269_v2 = vadd.f32 %v1257_v1, %v1129_v63 }
 0x179   : > { %v2008_v5 = vpop.f32.mrb[16].mxu0 }
 0x17a   : > { %v1395_v7 = vadd.f32 %v2008_v5, %v1270_v60  ;;  %v1379_v9 = vpop.f32.mrb[17].mxu0 }
 0x17b   : > { %v1393_v10 = vadd.f32 %v1379_v9, %v1268_v0  ;;  %v2009_v14 = vpop.f32.mrb[18].mxu0 }
 0x17c   : > { %v1405_v15 = vadd.f32 %v1722_v6, %v1395_v7  ;;  %v1382_v16 = vpop.f32.mrb[19].mxu0 }
 0x17d   : > { %v1403_v17 = vadd.f32 %v1722_v6, %v1393_v10  ;;  %v1394_v12 = vadd.f32 %v1382_v16, %v1269_v2 }
 0x17e   : > { %v1414_v18 = vadd.f32 %v1411_v8, %v1405_v15 }
 0x17f   : > { %v1412_v19 = vadd.f32 %v1733_v11, %v1403_v17  ;;  %v1404_v20 = vadd.f32 %v1722_v6, %v1394_v12 }
 0x180   : > { %v1417_v21 = vmax.f32 %v1414_v18, 0.0 }
 0x181   : > { %v1413_v23 = vadd.f32 %v1734_v13, %v1404_v20  ;;  %v1415_v25 = vmax.f32 %v1412_v19, 0.0 }
 0x182   : > { %v1730_v24 = vpack.c.bf16 %v1417_v21, %v1417_v21 }
 0x183   : > { %v1416_v27 = vmax.f32 %v1413_v23, 0.0 }
 0x184   : > { %1433 = vst [vmem:[%s217_s30 + $0x8] sm:$0xf] %v1730_v24 }
 0x185   : > { %v1738_v28 = vpack.c.bf16 %v1416_v27, %v1415_v25 }
 0x187   : > { %1739 = vst [vmem:[%s217_s30] sm:$0xff] %v1738_v28  }
 0x188 PF: > { %s14_s15 = sadd.s32 1, %s2111_s15  }
 0x189   : > { %p11_p4 = scmp.ge.s32.totalorder %s14_s15, 4  }
 0x18b   :  { %13 = sbr.rel (!%p11_p4) target bundleno = 1 (0x1), region = 77 }

// kernel: _lambda_.25
= control target key start
LH: loop header
LB: loop body
LE: loop exit
PB: predicated region body
PF: predicated region fallthrough
CT: control target
= control target key end

     0   :  { %s2060_s12 = smov 0   ;;  %s2368_s0 = inlined_call_operand.vmem [shape: bf16[2,42,128], index: 0, kind: input, shape index: {}]   ;;  %s2369_s1 = inlined_call_operand.vmem [shape: bf16[9,128,128], index: 1, kind: input, shape index: {}]   ;;  %s2370_s2 = inlined_call_operand.vmem [shape: f32[1,128], index: 2, kind: input, shape index: {}]   ;;  %s2371_s3 = inlined_call_operand.vmem [shape: bf16[2,24,128], index: 3, kind: output, shape index: {}]  }
   0x1 LB: > { %s1433_s13 = sadd.s32 4294967295, %s2038_s12   ;;  %p1437_p0 = scmp.ge.s32.totalorder %s2038_s12, 1  ;;  %s2038_s12 = sphi %s2060_s12, %s13_s12  }
   0x2   : > { %p137_p1 = scmp.lt.s32.totalorder %s2038_s12, 3 }
   0x4   : > { %p138_p2 = pnand %p1437_p0, %p137_p1 }
   0x5   : > { %v1947_v0 = vld [vmem:[%s2369_s1 + $0x40] sm:$0xff] (!%p138_p2)   ;;  %p161_p3 = scmp.lt.s32.totalorder (!%p138_p2), %s1433_s13, 1  ;;  %v1949_v2 = vld [vmem:[%s2369_s1 + $0x48] sm:$0xff] (!%p138_p2)   ;;  %v1951_v4 = vld [vmem:[%s2369_s1 + $0x50] sm:$0xff] (!%p138_p2)   ;;  %vm219_vm0 = vsmask.f32 (!%p138_p2), 7424 }
   0x6   : > { %141 = sbr.rel (%p138_p2) target bundleno = 390 (0x186), region = 32  ;;  %v1948_v1 = vld [vmem:[%s2369_s1] sm:$0xff] (!%p138_p2)   ;;  %1757 = vmatprep.subr.bf16.mxu0 (!%p138_p2), %v1947_v0  ;;  %v1950_v3 = vld [vmem:[%s2369_s1 + $0x8] sm:$0xff] (!%p138_p2)   ;;  %v1952_v5 = vld [vmem:[%s2369_s1 + $0x10] sm:$0xff] (!%p138_p2)   ;;  %vm453_vm1 = vcmask (!%p138_p2), 1046528   ;;  %vm583_vm2 = vcmask (!%p138_p2), 1044480  }
   0x7   : > { %1777 = vmatprep.subr.bf16.mxu1 (!%p138_p2), %v1948_v1  ;;  %1758 = vmatpush3.bf16.msra.mxu0 (!%p138_p2), %v1947_v0  ;;  %v1953_v6 = vld [vmem:[%s2369_s1 + $0x58] sm:$0xff] (!%p138_p2)   ;;  %v1955_v8 = vld [vmem:[%s2369_s1 + $0x60] sm:$0xff] (!%p138_p2)   ;;  %v1957_v10 = vld [vmem:[%s2369_s1 + $0x68] sm:$0xff] (!%p138_p2)   ;;  %vm709_vm3 = vsmask.f32 (!%p138_p2), 4352  ;;  %vm979_vm4 = vcmask (!%p138_p2), 1045504  }
   0x8   : > { %1778 = vmatpush3.bf16.msra.mxu1 (!%p138_p2), %v1948_v1  ;;  %1759 = vmatprep.subr.bf16.mxu0 (!%p138_p2), %v1949_v2  ;;  %v1954_v7 = vld [vmem:[%s2369_s1 + $0x18] sm:$0xff] (!%p138_p2)   ;;  %v1956_v9 = vld [vmem:[%s2369_s1 + $0x20] sm:$0xff] (!%p138_p2)   ;;  %v1958_v14 = vld [vmem:[%s2369_s1 + $0x28] sm:$0xff] (!%p138_p2)   ;;  %vm1105_vm5 = vsmask.f32 (!%p138_p2), 5376 }
   0x9   : > { %1779 = vmatprep.subr.bf16.mxu1 (!%p138_p2), %v1950_v3  ;;  %v1959_v20 = vld [vmem:[%s2369_s1 + $0x70] sm:$0xff] (!%p138_p2)   ;;  %v1961_v26 = vld [vmem:[%s2369_s1 + $0x78] sm:$0xff] (!%p138_p2)   ;;  %v1966_v30 = vld [vmem:[%s2369_s1 + $0x80] sm:$0xff] (!%p138_p2)  }
   0xa   : > { %v1960_v22 = vld [vmem:[%s2369_s1 + $0x30] sm:$0xff] (!%p138_p2)   ;;  %v1962_v27 = vld [vmem:[%s2369_s1 + $0x38] sm:$0xff] (!%p138_p2)   ;;  %v1967_v31 = vld [vmem:[%s2369_s1 + $0xc0] sm:$0xff] (!%p138_p2)  }
   0xb   : > { %1760 = vmatpush3.bf16.msra.mxu0 (!%p138_p2), %v1949_v2  ;;  %v1968_v34 = vld [vmem:[%s2369_s1 + $0x88] sm:$0xff] (!%p138_p2)   ;;  %v1970_v41 = vld [vmem:[%s2369_s1 + $0x90] sm:$0xff] (!%p138_p2)   ;;  %v1972_v49 = vld [vmem:[%s2369_s1 + $0x98] sm:$0xff] (!%p138_p2)  }
   0xc   : > { %1780 = vmatpush3.bf16.msra.mxu1 (!%p138_p2), %v1950_v3  ;;  %1761 = vmatprep.subr.bf16.mxu0 (!%p138_p2), %v1951_v4  ;;  %v1969_v35 = vld [vmem:[%s2369_s1 + $0xc8] sm:$0xff] (!%p138_p2)   ;;  %v1971_v44 = vld [vmem:[%s2369_s1 + $0xd0] sm:$0xff] (!%p138_p2)   ;;  %v1973_v51 = vld [vmem:[%s2369_s1 + $0xd8] sm:$0xff] (!%p138_p2)  }
   0xd   : > { %s2373_s13 = smov (!%p161_p3, %s1433_s13), 1  ;;  %1781 = vmatprep.subr.bf16.mxu1 %v1952_v5  ;;  %v1974_v52 = vld [vmem:[%s2369_s1 + $0xa0] sm:$0xff]   ;;  %v1976_v54 = vld [vmem:[%s2369_s1 + $0xa8] sm:$0xff]   ;;  %v1978_v56 = vld [vmem:[%s2369_s1 + $0xb0] sm:$0xff]  }
   0xe   : > { %s1937_s30 = smul.u32 24, %s2373_s13  ;;  %v1975_v53 = vld [vmem:[%s2369_s1 + $0xe0] sm:$0xff]   ;;  %v1977_v55 = vld [vmem:[%s2369_s1 + $0xe8] sm:$0xff]   ;;  %v1979_v61 = vld [vmem:[%s2369_s1 + $0xf0] sm:$0xff]  }
   0xf   : > { %1762 = vmatpush3.bf16.msra.mxu0 %v1951_v4  ;;  %v1980_v0 = vld [vmem:[%s2369_s1 + $0xb8] sm:$0xff]  }
  0x10   : > { %1782 = vmatpush3.bf16.msra.mxu1 %v1952_v5  ;;  %1763 = vmatprep.subr.bf16.mxu0 %v1953_v6  ;;  %s2104_s10 = scalar_lea.vmem %s2368_s0, %s1937_s30  ;;  %v1981_v1 = vld [vmem:[%s2369_s1 + $0xf8] sm:$0xff]  }
  0x11   : > { %1783 = vmatprep.subr.bf16.mxu1 %v1954_v7  ;;  %v172_v11 = vld [vmem:[%s2104_s10] sm:$0xf]  ;;  %v2111_v12 = vld [vmem:[%s2104_s10 + $0x4] sm:$0xf]  ;;  %v2114_v13 = vld [vmem:[%s2104_s10 + $0x8] sm:$0xf] }
  0x12   : > { %v191_v15 = vld [vmem:[%s2104_s10 + $0xc] sm:$0x1]  ;;  %v1456_v16 = vcombine.low %v172_v11, %v2111_v12  ;;  %v1466_v33 = vcombine.low %v2114_v13, %v2114_v13  ;;  %v432_v36 = vld [vmem:[%s2104_s10] sm:$0xe] }
  0x13   : > { %1764 = vmatpush3.bf16.msra.mxu0 %v1953_v6  ;;  %v2122_v17 = vcombine.low %v2114_v13, %v191_v15  ;;  %v1491_v37 = vcombine.low %v432_v36, %v2111_v12  ;;  %v558_v39 = vld [vmem:[%s2104_s10] sm:$0x8]  ;;  %v559_v40 = vld [vmem:[%s2104_s10 + $0xc] sm:$0x7]  ;;  %v1567_v15 = vcombine.low %v2111_v12, %v2114_v13 }
  0x14   : > { %1784 = vmatpush3.bf16.msra.mxu1 %v1954_v7  ;;  %1765 = vmatprep.subr.bf16.mxu0 %v1955_v8  ;;  %v221_v18 = vshrl.u32 %v1456_v16, 16  ;;  %v223_v19 = vshll.u32 %v1456_v16, 16  ;;  %v1516_v42 = vcombine.low %v558_v39, %v2111_v12  ;;  %v1517_v43 = vcombine.low %v2114_v13, %v559_v40  ;;  %v2195_v57 = vld [vmem:[%s2104_s10 + $0xc] sm:$0xf]  ;;  %v1983_v6 = vld [vmem:[%s2369_s1 + $0x100] sm:$0xff]   ;;  %v1991_v12 = vld [vmem:[%s2369_s1 + $0x118] sm:$0xff]  }
  0x15   : > { %1785 = vmatprep.subr.bf16.mxu1 %v1956_v9  ;;  %1793 = vmatprep.mubr.bf16.mxu1 %v1456_v16  ;;  %v228_v21 = vshll.u32 %v2122_v17, 16  ;;  %v232_v29 = vshrl.u32 %v2122_v17, 16  ;;  %v455_v38 = vrot.slane %v2122_v17, 1  ;;  %v454_v45 = vrot.slane %v1491_v37, 1  ;;  %v1986_v7 = vld [vmem:[%s2369_s1 + $0x140] sm:$0xff]   ;;  %v1988_v11 = vld [vmem:[%s2369_s1 + $0x148] sm:$0xff]  }
  0x16   : > { %v225_v23 = vrot.slane %v223_v19, 1  ;;  %v584_v46 = vrot.slane %v1516_v42, 3  ;;  %v2166_v47 = vrot.slane %v1517_v43, 3  ;;  %v711_v58 = vshrl.u32 %v1516_v42, 16  ;;  %v1989_v16 = vld [vmem:[%s2369_s1 + $0x110] sm:$0xff]   ;;  %v1999_v40 = vld [vmem:[%s2369_s1 + $0x138] sm:$0xff]  }
  0x17   : > { %1766 = vmatpush3.bf16.msra.mxu0 %v1955_v8  ;;  %v230_v24 = vrot.slane %v228_v21, 1  ;;  %v456_v48 = vsel %vm453_vm1, %v454_v45, %v455_v38  ;;  %v714_v59 = vshll.u32 %v1516_v42, 16  ;;  %v1542_v60 = vcombine.low %v2114_v13, %v2195_v57  ;;  %v1990_v17 = vld [vmem:[%s2369_s1 + $0x150] sm:$0xff]   ;;  %v1992_v13 = vld [vmem:[%s2369_s1 + $0x158] sm:$0xff]   ;;  %v1994_v21 = vld [vmem:[%s2369_s1 + $0x160] sm:$0xff]  }
  0x18   : > { %1786 = vmatpush3.bf16.msra.mxu1 %v1956_v9  ;;  %1767 = vmatprep.subr.bf16.mxu0 %v1957_v10  ;;  %v226_v25 = vor.u32 %v225_v23, %v221_v18  ;;  %v586_v50 = vsel %vm583_vm2, %v584_v46, %v2166_v47  ;;  %v713_v2 = vrot.slane %v711_v58, 3  ;;  %v950_v18 = vld [vmem:[%s2104_s10 + $0xc] sm:$0xf]  ;;  %v1084_v19 = vld [vmem:[%s2104_s10 + $0x10] sm:$0x7] }
  0x19   : > { %1787 = vmatprep.subr.bf16.mxu1 %v1958_v14  ;;  %v234_v32 = vor.u32 %v232_v29, %v230_v24  ;;  %v719_v62 = vshrl.u32 %v1542_v60, 16  ;;  %v722_v63 = vshll.u32 %v1542_v60, 16  ;;  %v716_v3 = vrot.slane %v714_v59, 4  ;;  %v949_v23 = vld [vmem:[%s2104_s10 + $0x8] sm:$0xf]  ;;  %v2008_v58 = vld [vmem:[%s2369_s1 + $0x190] sm:$0xff]  }
  0x1a   : > { %v231_v28 = vsel %vm219_vm0, %v226_v25, %v230_v24  ;;  %v1224_v24 = vld [vmem:[%s2104_s10 + $0x4] sm:$0x8]  ;;  %v1996_v29 = vld [vmem:[%s2369_s1 + $0x168] sm:$0xff]   ;;  %v2009_v59 = vld [vmem:[%s2369_s1 + $0x1d0] sm:$0xff]  }
  0x1b   : > { %1768 = vmatpush3.bf16.msra.mxu0 %v1957_v10  ;;  %1773 = vmatprep.mubr.bf16.mxu0 %v231_v28  ;;  %v721_v4 = vrot.slane %v719_v62, 3  ;;  %v724_v5 = vrot.slane %v722_v63, 4  ;;  %v717_v8 = vor.u32 %v716_v3, %v713_v2  ;;  %v1987_v10 = vld [vmem:[%s2369_s1 + $0x108] sm:$0xff]   ;;  %v1644_v25 = vcombine.low %v1224_v24, %v949_v23  ;;  %v948_v28 = vld [vmem:[%s2104_s10 + $0x4] sm:$0xc]  ;;  %v2010_v60 = vld [vmem:[%s2369_s1 + $0x198] sm:$0xff]  }
  0x1c   : > { %1788 = vmatpush3.bf16.msra.mxu1 %v1958_v14  ;;  %1769 = vmatprep.subr.bf16.mxu0 %v1959_v20  ;;  %v2012_v62 = vld [vmem:[%s2369_s1 + $0x1a0] sm:$0xff]   ;;  %v2016_v2 = vld [vmem:[%s2369_s1 + $0x1b0] sm:$0xff]  }
  0x1d   : > { %1789 = vmatprep.subr.bf16.mxu1 %v1960_v22  ;;  %v2214_v9 = vor.u32 %v724_v5, %v721_v4  ;;  %v2013_v63 = vld [vmem:[%s2369_s1 + $0x1e0] sm:$0xff]   ;;  %v2017_v3 = vld [vmem:[%s2369_s1 + $0x1f0] sm:$0xff]   ;;  %v2018_v4 = vld [vmem:[%s2369_s1 + $0x1b8] sm:$0xff]  }
  0x1e   : > { %v2019_v5 = vld [vmem:[%s2369_s1 + $0x1f8] sm:$0xff]  }
  0x1f   : > { %1770 = vmatpush3.bf16.msra.mxu0 %v1959_v20  ;;  %v726_v14 = vsel %vm709_vm3, %v717_v8, %v2214_v9  ;;  %v1993_v20 = vld [vmem:[%s2369_s1 + $0x120] sm:$0xff]   ;;  %v2025_v8 = vld [vmem:[%s2369_s1 + $0x210] sm:$0xff]  }
  0x20   : > { %1790 = vmatpush3.bf16.msra.mxu1 %v1960_v22  ;;  %1771 = vmatprep.subr.bf16.mxu0 %v1961_v26  ;;  %v2248_v22 = vcombine.low %v950_v18, %v1084_v19 }
  0x21   : > { %1791 = vmatprep.subr.bf16.mxu1 %v1962_v27 }
  0x22   : > { %v1118_v39 = vshll.u32 %v2248_v22, 16 }
  0x23   : > { %1772 = vmatpush3.bf16.msra.mxu0 %v1961_v26  ;;  %v1246_v26 = vrot.slane %v2248_v22, 3 }
  0x24   : > { %1792 = vmatpush3.bf16.msra.mxu1 %v1962_v27  ;;  %1797 = vmatprep.subr.bf16.mxu0 %v1966_v30  ;;  %v1995_v27 = vld [vmem:[%s2369_s1 + $0x128] sm:$0xff]   ;;  %v1120_v46 = vrot.slane %v1118_v39, 3 }
  0x25   : > { %1817 = vmatprep.subr.bf16.mxu1 %v1967_v31 }
  0x26   : > { %1774 = vmatmul.mubr.bf16.vlgmr.msra.gmra.mrb[0].mxu0 %v234_v32 }
  0x27   : > { %1794 = vmatmul.mubr.bf16.vlgmr.msra.gmra.mrb[0].mxu1 %v1466_v33  ;;  %1798 = vmatpush3.bf16.msra.mxu0 %v1966_v30  ;;  %v1245_v30 = vrot.slane %v1644_v25, 3  ;;  %v1997_v33 = vld [vmem:[%s2369_s1 + $0x130] sm:$0xff]  }
  0x28   : > { %1818 = vmatpush3.bf16.msra.mxu1 %v1967_v31  ;;  %1799 = vmatprep.subr.bf16.mxu0 %v1968_v34  ;;  %v1593_v31 = vcombine.low %v948_v28, %v949_v23 }
  0x29   : > { %1819 = vmatprep.subr.bf16.mxu1 %v1969_v35  ;;  %1813 = vmatprep.mubr.bf16.mxu0 %v456_v48  ;;  %v2263_v32 = vsel %vm583_vm2, %v1245_v30, %v1246_v26  ;;  %v2005_v48 = vld [vmem:[%s2369_s1 + $0x1c0] sm:$0xff]  }
  0x2a   : > { %1833 = vmatprep.mubr.bf16.mxu1 %v586_v50  ;;  %v1107_v36 = vshrl.u32 %v1593_v31, 16  ;;  %v1110_v37 = vshll.u32 %v1593_v31, 16 }
  0x2b   : > { %1800 = vmatpush3.bf16.msra.mxu0 %v1968_v34  ;;  %v1998_v34 = vld [vmem:[%s2369_s1 + $0x170] sm:$0xff]  }
  0x2c   : > { %1820 = vmatpush3.bf16.msra.mxu1 %v1969_v35  ;;  %1801 = vmatprep.subr.bf16.mxu0 %v1970_v41  ;;  %v951_v35 = vld [vmem:[%s2104_s10 + $0x10] sm:$0x3]  ;;  %v1109_v43 = vrot.slane %v1107_v36, 2  ;;  %s1938_s10 = smul.u32 12, %s2373_s13 }
  0x2d   : > { %1821 = vmatprep.subr.bf16.mxu1 %v1971_v44  ;;  %v1594_v42 = vcombine.low %v950_v18, %v951_v35 }
  0x2e   : > { %s170_s19 = scalar_lea.vmem %s2371_s3, %s1938_s10 }
  0x2f   : > { %1802 = vmatpush3.bf16.msra.mxu0 %v1970_v41  ;;  %v2000_v41 = vld [vmem:[%s2369_s1 + $0x178] sm:$0xff]   ;;  %v981_v50 = vrot.slane %v1594_v42, 2 }
  0x30   : > { %1822 = vmatpush3.bf16.msra.mxu1 %v1971_v44  ;;  %1803 = vmatprep.subr.bf16.mxu0 %v1972_v49  ;;  %v1112_v44 = vrot.slane %v1110_v37, 3 }
  0x31   : > { %1823 = vmatprep.subr.bf16.mxu1 %v1973_v51 }
  0x33   : > { %1804 = vmatpush3.bf16.msra.mxu0 %v1972_v49  ;;  %v980_v49 = vrot.slane %v1593_v31, 2 }
  0x34   : > { %1824 = vmatpush3.bf16.msra.mxu1 %v1973_v51  ;;  %1805 = vmatprep.subr.bf16.mxu0 %v1974_v52  ;;  %v1568_v51 = vcombine.low %v2195_v57, %v2195_v57 }
  0x35   : > { %1825 = vmatprep.subr.bf16.mxu1 %v1975_v53 }
  0x37   : > { %1806 = vmatpush3.bf16.msra.mxu0 %v1974_v52  ;;  %v1113_v52 = vor.u32 %v1112_v44, %v1109_v43 }
  0x38   : > { %1826 = vmatpush3.bf16.msra.mxu1 %v1975_v53  ;;  %1807 = vmatprep.subr.bf16.mxu0 %v1976_v54 }
  0x39   : > { %1827 = vmatprep.subr.bf16.mxu1 %v1977_v55 }
  0x3b   : > { %1808 = vmatpush3.bf16.msra.mxu0 %v1976_v54  ;;  %v2006_v54 = vld [vmem:[%s2369_s1 + $0x188] sm:$0xff]  }
  0x3c   : > { %1828 = vmatpush3.bf16.msra.mxu1 %v1977_v55  ;;  %1809 = vmatprep.subr.bf16.mxu0 %v1978_v56  ;;  %v2007_v55 = vld [vmem:[%s2369_s1 + $0x1c8] sm:$0xff]  }
  0x3d   : > { %1829 = vmatprep.subr.bf16.mxu1 %v1979_v61 }
  0x3f   : > { %1810 = vmatpush3.bf16.msra.mxu0 %v1978_v56  ;;  %v982_v56 = vsel %vm979_vm4, %v980_v49, %v981_v50 }
  0x40   : > { %1830 = vmatpush3.bf16.msra.mxu1 %v1979_v61  ;;  %1811 = vmatprep.subr.bf16.mxu0 %v1980_v0  ;;  %v2011_v61 = vld [vmem:[%s2369_s1 + $0x1d8] sm:$0xff]  }
  0x41   : > { %1831 = vmatprep.subr.bf16.mxu1 %v1981_v1 }
  0x43   : > { %1812 = vmatpush3.bf16.msra.mxu0 %v1980_v0  ;;  %v2014_v0 = vld [vmem:[%s2369_s1 + $0x1a8] sm:$0xff]  }
  0x44   : > { %1832 = vmatpush3.bf16.msra.mxu1 %v1981_v1  ;;  %1837 = vmatprep.subr.bf16.mxu0 %v1983_v6  ;;  %v2015_v1 = vld [vmem:[%s2369_s1 + $0x1e8] sm:$0xff]  }
  0x45   : > { %1857 = vmatprep.subr.bf16.mxu1 %v1986_v7 }
  0x46   : > { %1814 = vmatmul.mubr.bf16.vlgmr.msra.gmra.mrb[4].mxu0 %v455_v38  ;;  %v1115_v38 = vshrl.u32 %v2248_v22, 16 }
  0x47   : > { %1838 = vmatpush3.bf16.msra.mxu0 %v1983_v6  ;;  %1834 = vmatmul.mubr.bf16.vlgmr.msra.gmra.mrb[4].mxu1 %v2166_v47  ;;  %v2002_v47 = vld [vmem:[%s2369_s1 + $0x180] sm:$0xff]  }
  0x48   : > { %1858 = vmatpush3.bf16.msra.mxu1 %v1986_v7  ;;  %1839 = vmatprep.subr.bf16.mxu0 %v1987_v10  ;;  %v1117_v45 = vrot.slane %v1115_v38, 2  ;;  %v2023_v6 = vld [vmem:[%s2369_s1 + $0x200] sm:$0xff]   ;;  %v2024_v7 = vld [vmem:[%s2369_s1 + $0x208] sm:$0xff]  }
  0x49   : > { %1859 = vmatprep.subr.bf16.mxu1 %v1988_v11  ;;  %1853 = vmatprep.mubr.bf16.mxu0 %v726_v14  ;;  %v2029_v14 = vld [vmem:[%s2369_s1 + $0x230] sm:$0xff]  }
  0x4a   : > { %1873 = vmatprep.mubr.bf16.mxu1 %v1567_v15  ;;  %v1121_v53 = vor.u32 %v1120_v46, %v1117_v45  ;;  %v2030_v15 = vld [vmem:[%s2369_s1 + $0x238] sm:$0xff]  }
  0x4b   : > { %1840 = vmatpush3.bf16.msra.mxu0 %v1987_v10  ;;  %v2027_v10 = vld [vmem:[%s2369_s1 + $0x220] sm:$0xff]  }
  0x4c   : > { %1860 = vmatpush3.bf16.msra.mxu1 %v1988_v11  ;;  %1841 = vmatprep.subr.bf16.mxu0 %v1989_v16  ;;  %v1122_v57 = vsel %vm1105_vm5, %v1113_v52, %v1121_v53  ;;  %v2028_v11 = vld [vmem:[%s2369_s1 + $0x228] sm:$0xff]  }
  0x4d   : > { %1861 = vmatprep.subr.bf16.mxu1 %v1990_v17 }
  0x4f   : > { %1842 = vmatpush3.bf16.msra.mxu0 %v1989_v16 }
  0x50   : > { %1862 = vmatpush3.bf16.msra.mxu1 %v1990_v17  ;;  %1843 = vmatprep.subr.bf16.mxu0 %v1991_v12 }
  0x51   : > { %1863 = vmatprep.subr.bf16.mxu1 %v1992_v13 }
  0x53   : > { %1844 = vmatpush3.bf16.msra.mxu0 %v1991_v12 }
  0x54   : > { %1864 = vmatpush3.bf16.msra.mxu1 %v1992_v13  ;;  %1845 = vmatprep.subr.bf16.mxu0 %v1993_v20 }
  0x55   : > { %1865 = vmatprep.subr.bf16.mxu1 %v1994_v21 }
  0x57   : > { %1846 = vmatpush3.bf16.msra.mxu0 %v1993_v20 }
  0x58   : > { %1866 = vmatpush3.bf16.msra.mxu1 %v1994_v21  ;;  %1847 = vmatprep.subr.bf16.mxu0 %v1995_v27 }
  0x59   : > { %1867 = vmatprep.subr.bf16.mxu1 %v1996_v29 }
  0x5b   : > { %1848 = vmatpush3.bf16.msra.mxu0 %v1995_v27 }
  0x5c   : > { %1868 = vmatpush3.bf16.msra.mxu1 %v1996_v29  ;;  %1849 = vmatprep.subr.bf16.mxu0 %v1997_v33 }
  0x5d   : > { %1869 = vmatprep.subr.bf16.mxu1 %v1998_v34 }
  0x5f   : > { %1850 = vmatpush3.bf16.msra.mxu0 %v1997_v33 }
  0x60   : > { %1870 = vmatpush3.bf16.msra.mxu1 %v1998_v34  ;;  %1851 = vmatprep.subr.bf16.mxu0 %v1999_v40 }
  0x61   : > { %1871 = vmatprep.subr.bf16.mxu1 %v2000_v41 }
  0x63   : > { %1852 = vmatpush3.bf16.msra.mxu0 %v1999_v40 }
  0x64   : > { %1872 = vmatpush3.bf16.msra.mxu1 %v2000_v41  ;;  %1877 = vmatprep.subr.bf16.mxu0 %v2002_v47 }
  0x65   : > { %1897 = vmatprep.subr.bf16.mxu1 %v2005_v48 }
  0x66   : > { %1854 = vmatmul.mubr.bf16.vlgmr.msra.gmra.mrb[8].mxu0 %v2214_v9  ;;  %v2026_v9 = vld [vmem:[%s2369_s1 + $0x218] sm:$0xff]  }
  0x67   : > { %1878 = vmatpush3.bf16.msra.mxu0 %v2002_v47  ;;  %1874 = vmatmul.mubr.bf16.vlgmr.msra.gmra.mrb[8].mxu1 %v1568_v51 }
  0x68   : > { %1898 = vmatpush3.bf16.msra.mxu1 %v2005_v48  ;;  %1879 = vmatprep.subr.bf16.mxu0 %v2006_v54 }
  0x69   : > { %1899 = vmatprep.subr.bf16.mxu1 %v2007_v55  ;;  %1893 = vmatprep.mubr.bf16.mxu0 %v982_v56 }
  0x6a   : > { %1913 = vmatprep.mubr.bf16.mxu1 %v1122_v57 }
  0x6b   : > { %1880 = vmatpush3.bf16.msra.mxu0 %v2006_v54 }
  0x6c   : > { %1900 = vmatpush3.bf16.msra.mxu1 %v2007_v55  ;;  %1881 = vmatprep.subr.bf16.mxu0 %v2008_v58 }
  0x6d   : > { %1901 = vmatprep.subr.bf16.mxu1 %v2009_v59 }
  0x6f   : > { %1882 = vmatpush3.bf16.msra.mxu0 %v2008_v58 }
  0x70   : > { %1902 = vmatpush3.bf16.msra.mxu1 %v2009_v59  ;;  %1883 = vmatprep.subr.bf16.mxu0 %v2010_v60 }
  0x71   : > { %1903 = vmatprep.subr.bf16.mxu1 %v2011_v61 }
  0x73   : > { %1884 = vmatpush3.bf16.msra.mxu0 %v2010_v60 }
  0x74   : > { %1904 = vmatpush3.bf16.msra.mxu1 %v2011_v61  ;;  %1885 = vmatprep.subr.bf16.mxu0 %v2012_v62 }
  0x75   : > { %1905 = vmatprep.subr.bf16.mxu1 %v2013_v63 }
  0x77   : > { %1886 = vmatpush3.bf16.msra.mxu0 %v2012_v62 }
  0x78   : > { %1906 = vmatpush3.bf16.msra.mxu1 %v2013_v63  ;;  %1887 = vmatprep.subr.bf16.mxu0 %v2014_v0 }
  0x79   : > { %1907 = vmatprep.subr.bf16.mxu1 %v2015_v1 }
  0x7b   : > { %1888 = vmatpush3.bf16.msra.mxu0 %v2014_v0 }
  0x7c   : > { %1908 = vmatpush3.bf16.msra.mxu1 %v2015_v1  ;;  %1889 = vmatprep.subr.bf16.mxu0 %v2016_v2 }
  0x7d   : > { %1909 = vmatprep.subr.bf16.mxu1 %v2017_v3 }
  0x7f   : > { %1890 = vmatpush3.bf16.msra.mxu0 %v2016_v2 }
  0x80   : > { %1910 = vmatpush3.bf16.msra.mxu1 %v2017_v3  ;;  %1891 = vmatprep.subr.bf16.mxu0 %v2018_v4 }
  0x81   : > { %1911 = vmatprep.subr.bf16.mxu1 %v2019_v5 }
  0x83   : > { %1892 = vmatpush3.bf16.msra.mxu0 %v2018_v4  ;;  %v1653_v4 = vld [vmem:[%s2370_s2] ss:$0 sm:$0xff] }
  0x84   : > { %1912 = vmatpush3.bf16.msra.mxu1 %v2019_v5  ;;  %1917 = vmatprep.subr.bf16.mxu0 %v2023_v6 }
  0x86   : > { %1894 = vmatmul.mubr.bf16.vlgmr.msra.gmra.mrb[12].mxu0 %v981_v50 }
  0x87   : > { %1918 = vmatpush3.bf16.msra.mxu0 %v2023_v6  ;;  %1914 = vmatmul.mubr.bf16.vlgmr.msra.gmra.mrb[12].mxu1 %v1121_v53 }
  0x88   : > { %1919 = vmatprep.subr.bf16.mxu0 %v2024_v7  ;;  %1933 = vmatprep.mubr.bf16.mxu0 %v2263_v32 }
  0x8b   : > { %1920 = vmatpush3.bf16.msra.mxu0 %v2024_v7 }
  0x8c   : > { %1921 = vmatprep.subr.bf16.mxu0 %v2025_v8 }
  0x8f   : > { %1922 = vmatpush3.bf16.msra.mxu0 %v2025_v8 }
  0x90   : > { %1923 = vmatprep.subr.bf16.mxu0 %v2026_v9 }
  0x93   : > { %1924 = vmatpush3.bf16.msra.mxu0 %v2026_v9 }
  0x94   : > { %1925 = vmatprep.subr.bf16.mxu0 %v2027_v10 }
  0x97   : > { %1926 = vmatpush3.bf16.msra.mxu0 %v2027_v10 }
  0x98   : > { %1927 = vmatprep.subr.bf16.mxu0 %v2028_v11 }
  0x9b   : > { %1928 = vmatpush3.bf16.msra.mxu0 %v2028_v11 }
  0x9c   : > { %1929 = vmatprep.subr.bf16.mxu0 %v2029_v14 }
  0x9f   : > { %1930 = vmatpush3.bf16.msra.mxu0 %v2029_v14 }
  0xa0   : > { %1931 = vmatprep.subr.bf16.mxu0 %v2030_v15 }
  0xa3   : > { %1932 = vmatpush3.bf16.msra.mxu0 %v2030_v15 }
  0xa6   : > { %1934 = vmatmul.mubr.bf16.vlgmr.msra.gmra.mrb[16].mxu0 %v1246_v26 }
  0xf9   : > { %v1775_v16 = vpop.f32.mrb[0].mxu0 }
  0xfa   : > { %v1795_v17 = vpop.f32.mrb[0].mxu1  ;;  %v319_v12 = vpop.f32.mrb[1].mxu0 }
  0xfb   : > { %v427_v13 = vadd.f32 %v1795_v17, %v1775_v16  ;;  %v418_v18 = vpop.f32.mrb[1].mxu1  ;;  %v1776_v19 = vpop.f32.mrb[2].mxu0 }
  0xfc   : > { %v419_v20 = vadd.f32 %v418_v18, %v319_v12  ;;  %v1796_v21 = vpop.f32.mrb[2].mxu1  ;;  %v322_v23 = vpop.f32.mrb[3].mxu0 }
  0xfd   : > { %v421_v24 = vpop.f32.mrb[3].mxu1 }
  0xfe   : > { %v422_v25 = vadd.f32 %v421_v24, %v322_v23 }
 0x119   : > { %v1815_v27 = vpop.f32.mrb[4].mxu0 }
 0x11a   : > { %v557_v28 = vadd.f32 %v1815_v27, %v427_v13  ;;  %v541_v29 = vpop.f32.mrb[5].mxu0  ;;  %v1835_v30 = vpop.f32.mrb[4].mxu1 }
 0x11b   : > { %v555_v31 = vadd.f32 %v541_v29, %v419_v20  ;;  %v1816_v32 = vpop.f32.mrb[6].mxu0  ;;  %v671_v33 = vpop.f32.mrb[5].mxu1 }
 0x11c   : > { %v687_v22 = vadd.f32 %v1835_v30, %v557_v28  ;;  %v544_v26 = vpop.f32.mrb[7].mxu0  ;;  %v1836_v34 = vpop.f32.mrb[6].mxu1 }
 0x11d   : > { %v556_v35 = vadd.f32 %v544_v26, %v422_v25  ;;  %v685_v36 = vadd.f32 %v671_v33, %v555_v31  ;;  %v674_v37 = vpop.f32.mrb[7].mxu1 }
 0x11f   : > { %v686_v38 = vadd.f32 %v674_v37, %v556_v35 }
 0x139   : > { %v1855_v39 = vpop.f32.mrb[8].mxu0 }
 0x13a   : > { %v827_v40 = vadd.f32 %v1855_v39, %v687_v22  ;;  %v811_v41 = vpop.f32.mrb[9].mxu0  ;;  %v1875_v42 = vpop.f32.mrb[8].mxu1 }
 0x13b   : > { %v825_v43 = vadd.f32 %v811_v41, %v685_v36  ;;  %v1856_v44 = vpop.f32.mrb[10].mxu0  ;;  %v931_v45 = vpop.f32.mrb[9].mxu1 }
 0x13c   : > { %v947_v46 = vadd.f32 %v1875_v42, %v827_v40  ;;  %v814_v47 = vpop.f32.mrb[11].mxu0  ;;  %v1876_v48 = vpop.f32.mrb[10].mxu1 }
 0x13d   : > { %v826_v49 = vadd.f32 %v814_v47, %v686_v38  ;;  %v945_v50 = vadd.f32 %v931_v45, %v825_v43  ;;  %v934_v51 = vpop.f32.mrb[11].mxu1 }
 0x13f   : > { %v946_v52 = vadd.f32 %v934_v51, %v826_v49 }
 0x159   : > { %v1895_v53 = vpop.f32.mrb[12].mxu0 }
 0x15a   : > { %v1083_v54 = vadd.f32 %v1895_v53, %v947_v46  ;;  %v1067_v55 = vpop.f32.mrb[13].mxu0  ;;  %v1915_v56 = vpop.f32.mrb[12].mxu1 }
 0x15b   : > { %v1081_v57 = vadd.f32 %v1067_v55, %v945_v50  ;;  %v1896_v58 = vpop.f32.mrb[14].mxu0  ;;  %v1207_v59 = vpop.f32.mrb[13].mxu1 }
 0x15c   : > { %v1223_v60 = vadd.f32 %v1915_v56, %v1083_v54  ;;  %v1070_v61 = vpop.f32.mrb[15].mxu0  ;;  %v1916_v62 = vpop.f32.mrb[14].mxu1 }
 0x15d   : > { %v1082_v63 = vadd.f32 %v1070_v61, %v946_v52  ;;  %v1221_v0 = vadd.f32 %v1207_v59, %v1081_v57  ;;  %v1210_v1 = vpop.f32.mrb[15].mxu1 }
 0x15f   : > { %v1222_v2 = vadd.f32 %v1210_v1, %v1082_v63 }
 0x179   : > { %v1935_v3 = vpop.f32.mrb[16].mxu0 }
 0x17a   : > { %v1348_v5 = vadd.f32 %v1935_v3, %v1223_v60  ;;  %v1332_v6 = vpop.f32.mrb[17].mxu0 }
 0x17b   : > { %v1346_v7 = vadd.f32 %v1332_v6, %v1221_v0  ;;  %v1936_v8 = vpop.f32.mrb[18].mxu0 }
 0x17c   : > { %v1358_v9 = vadd.f32 %v1653_v4, %v1348_v5  ;;  %v1335_v10 = vpop.f32.mrb[19].mxu0 }
 0x17d   : > { %v1356_v11 = vadd.f32 %v1653_v4, %v1346_v7  ;;  %v1347_v14 = vadd.f32 %v1335_v10, %v1222_v2 }
 0x17e   : > { %v1361_v15 = vmax.f32 %v1358_v9, 0.0 }
 0x17f   : > { %v1357_v16 = vadd.f32 %v1653_v4, %v1347_v14  ;;  %v1359_v12 = vmax.f32 %v1356_v11, 0.0 }
 0x180   : > { %v1661_v17 = vpack.c.bf16 %v1361_v15, %v1361_v15 }
 0x181   : > { %v1360_v13 = vmax.f32 %v1357_v16, 0.0 }
 0x182   : > { %1377 = vst [vmem:[%s170_s19 + $0x8] sm:$0xf] %v1661_v17 }
 0x183   : > { %v1665_v18 = vpack.c.bf16 %v1360_v13, %v1359_v12 }
 0x185   : > { %1666 = vst [vmem:[%s170_s19] sm:$0xff] %v1665_v18  }
 0x186 PF: > { %s13_s12 = sadd.s32 1, %s2038_s12  }
 0x187   : > { %p10_p4 = scmp.ge.s32.totalorder %s13_s12, 4  }
 0x189   :  { %12 = sbr.rel (!%p10_p4) target bundleno = 1 (0x1), region = 70 }

// kernel: _lambda_.28
= control target key start
LH: loop header
LB: loop body
LE: loop exit
PB: predicated region body
PF: predicated region fallthrough
CT: control target
= control target key end

     0   :  { %s1919_s15 = smov 0   ;;  %s2269_s0 = inlined_call_operand.vmem [shape: bf16[2,20,128], index: 0, kind: input, shape index: {}]   ;;  %s2270_s1 = inlined_call_operand.vmem [shape: bf16[9,128,128], index: 1, kind: input, shape index: {}]   ;;  %s2271_s2 = inlined_call_operand.vmem [shape: f32[1,128], index: 2, kind: input, shape index: {}]   ;;  %s2272_s3 = inlined_call_operand.vmem [shape: bf16[2,8,128], index: 3, kind: input, shape index: {}]   ;;  %s2273_s4 = inlined_call_operand.vmem [shape: bf16[2,8,128], index: 4, kind: output, shape index: {}]  }
   0x1 LB: > { %s1315_s16 = sadd.s32 4294967295, %s1890_s15   ;;  %p1319_p0 = scmp.ge.s32.totalorder %s1890_s15, 1  ;;  %s1890_s15 = sphi %s1919_s15, %s14_s15  }
   0x2   : > { %p171_p1 = scmp.lt.s32.totalorder %s1890_s15, 3 }
   0x4   : > { %p172_p2 = pnand %p1319_p0, %p171_p1 }
   0x5   : > { %v1805_v0 = vld [vmem:[%s2270_s1 + $0x40] sm:$0xff] (!%p172_p2)   ;;  %v1892_v1 = vmov (!%p172_p2), 0.0   ;;  %v1807_v3 = vld [vmem:[%s2270_s1 + $0x48] sm:$0xff] (!%p172_p2)   ;;  %vm1893_vm0 = vmmov (!%p172_p2), 0   ;;  %p200_p3 = scmp.lt.s32.totalorder (!%p172_p2), %s1315_s16, 1  ;;  %v1809_v5 = vld [vmem:[%s2270_s1 + $0x50] sm:$0xff] (!%p172_p2)  }
   0x6   : > { %175 = sbr.rel (%p172_p2) target bundleno = 389 (0x185), region = 36  ;;  %1614 = vmatprep.subr.bf16.mxu0 (!%p172_p2), %v1892_v1  ;;  %1634 = vmatprep.subr.bf16.mxu1 (!%p172_p2), %v1892_v1  ;;  %v1806_v2 = vld [vmem:[%s2270_s1] sm:$0xff] (!%p172_p2)   ;;  %v1808_v4 = vld [vmem:[%s2270_s1 + $0x8] sm:$0xff] (!%p172_p2)   ;;  %v1810_v6 = vld [vmem:[%s2270_s1 + $0x10] sm:$0xff] (!%p172_p2)  }
   0x7   : > { %1615 = vmatpush3.bf16.msra.mxu0 (!%p172_p2), %v1805_v0  ;;  %1630 = vmatprep.mubr.msk.bf16.mxu0 (!%p172_p2), %vm1893_vm0, %v1892_v1  ;;  %v1811_v7 = vld [vmem:[%s2270_s1 + $0x58] sm:$0xff] (!%p172_p2)   ;;  %v1813_v9 = vld [vmem:[%s2270_s1 + $0x60] sm:$0xff] (!%p172_p2)   ;;  %v1815_v14 = vld [vmem:[%s2270_s1 + $0x68] sm:$0xff] (!%p172_p2)  }
   0x8   : > { %1635 = vmatpush3.bf16.msra.mxu1 (!%p172_p2), %v1806_v2  ;;  %1616 = vmatprep.subr.bf16.mxu0 (!%p172_p2), %v1892_v1  ;;  %v1812_v8 = vld [vmem:[%s2270_s1 + $0x18] sm:$0xff] (!%p172_p2)   ;;  %v1814_v10 = vld [vmem:[%s2270_s1 + $0x20] sm:$0xff] (!%p172_p2)   ;;  %v1816_v15 = vld [vmem:[%s2270_s1 + $0x28] sm:$0xff] (!%p172_p2)  }
   0x9   : > { %1636 = vmatprep.subr.bf16.mxu1 (!%p172_p2), %v1892_v1  ;;  %1650 = vmatprep.mubr.msk.bf16.mxu1 (!%p172_p2), %vm1893_vm0, %v1892_v1  ;;  %v1817_v17 = vld [vmem:[%s2270_s1 + $0x70] sm:$0xff] (!%p172_p2)   ;;  %v1819_v21 = vld [vmem:[%s2270_s1 + $0x78] sm:$0xff] (!%p172_p2)   ;;  %v1822_v24 = vld [vmem:[%s2270_s1 + $0x80] sm:$0xff] (!%p172_p2)  }
   0xa   : > { %v1818_v18 = vld [vmem:[%s2270_s1 + $0x30] sm:$0xff] (!%p172_p2)   ;;  %v1820_v22 = vld [vmem:[%s2270_s1 + $0x38] sm:$0xff] (!%p172_p2)   ;;  %v1823_v25 = vld [vmem:[%s2270_s1 + $0xc0] sm:$0xff] (!%p172_p2)  }
   0xb   : > { %1617 = vmatpush3.bf16.msra.mxu0 (!%p172_p2), %v1807_v3  ;;  %v1824_v26 = vld [vmem:[%s2270_s1 + $0x88] sm:$0xff] (!%p172_p2)   ;;  %v1826_v28 = vld [vmem:[%s2270_s1 + $0x90] sm:$0xff] (!%p172_p2)   ;;  %v1828_v30 = vld [vmem:[%s2270_s1 + $0x98] sm:$0xff] (!%p172_p2)  }
   0xc   : > { %1637 = vmatpush3.bf16.msra.mxu1 (!%p172_p2), %v1808_v4  ;;  %1618 = vmatprep.subr.bf16.mxu0 (!%p172_p2), %v1892_v1  ;;  %v1825_v27 = vld [vmem:[%s2270_s1 + $0xc8] sm:$0xff] (!%p172_p2)   ;;  %v1827_v29 = vld [vmem:[%s2270_s1 + $0xd0] sm:$0xff] (!%p172_p2)   ;;  %v1829_v31 = vld [vmem:[%s2270_s1 + $0xd8] sm:$0xff] (!%p172_p2)  }
   0xd   : > { %s2275_s16 = smov (!%p200_p3, %s1315_s16), 1  ;;  %1638 = vmatprep.subr.bf16.mxu1 %v1892_v1  ;;  %v1830_v32 = vld [vmem:[%s2270_s1 + $0xa0] sm:$0xff]   ;;  %v1832_v34 = vld [vmem:[%s2270_s1 + $0xa8] sm:$0xff]   ;;  %v1834_v36 = vld [vmem:[%s2270_s1 + $0xb0] sm:$0xff]  }
   0xe   : > { %s1794_s29 = smul.u32 12, %s2275_s16  ;;  %v1831_v33 = vld [vmem:[%s2270_s1 + $0xe0] sm:$0xff]   ;;  %v1833_v35 = vld [vmem:[%s2270_s1 + $0xe8] sm:$0xff]   ;;  %v1835_v37 = vld [vmem:[%s2270_s1 + $0xf0] sm:$0xff]  }
   0xf   : > { %1619 = vmatpush3.bf16.msra.mxu0 %v1809_v5  ;;  %v1836_v42 = vld [vmem:[%s2270_s1 + $0xb8] sm:$0xff]   ;;  %v1839_v46 = vld [vmem:[%s2270_s1 + $0x100] sm:$0xff]   ;;  %v1843_v49 = vld [vmem:[%s2270_s1 + $0x108] sm:$0xff]  }
  0x10   : > { %1639 = vmatpush3.bf16.msra.mxu1 %v1810_v6  ;;  %1620 = vmatprep.subr.bf16.mxu0 %v1892_v1  ;;  %s1969_s10 = scalar_lea.vmem %s2269_s0, %s1794_s29  ;;  %v1837_v44 = vld [vmem:[%s2270_s1 + $0xf8] sm:$0xff]   ;;  %v1842_v48 = vld [vmem:[%s2270_s1 + $0x140] sm:$0xff]   ;;  %v1844_v50 = vld [vmem:[%s2270_s1 + $0x148] sm:$0xff]  }
  0x11   : > { %1640 = vmatprep.subr.bf16.mxu1 %v1892_v1  ;;  %v214_v11 = vld [vmem:[%s1969_s10] sm:$0xf]  ;;  %v1981_v12 = vld [vmem:[%s1969_s10 + $0x4] sm:$0x1]  ;;  %v1845_v51 = vld [vmem:[%s2270_s1 + $0x110] sm:$0xff]  }
  0x12   : > { %v1339_v13 = vcombine.low %v214_v11, %v1981_v12  ;;  %v438_v38 = vld [vmem:[%s1969_s10] sm:$0xe]  ;;  %v551_v40 = vld [vmem:[%s1969_s10 + $0x4] sm:$0x3]  ;;  %v1846_v52 = vld [vmem:[%s2270_s1 + $0x150] sm:$0xff]  }
  0x13   : > { %1621 = vmatpush3.bf16.msra.mxu0 %v1811_v7  ;;  %v550_v39 = vld [vmem:[%s1969_s10] sm:$0xc]  ;;  %v1372_v41 = vcombine.low %v438_v38, %v1981_v12  ;;  %v1847_v53 = vld [vmem:[%s2270_s1 + $0x118] sm:$0xff]   ;;  %v665_v55 = vld [vmem:[%s1969_s10 + $0x4] sm:$0x7] }
  0x14   : > { %1641 = vmatpush3.bf16.msra.mxu1 %v1812_v8  ;;  %1622 = vmatprep.subr.bf16.mxu0 %v1892_v1  ;;  %v257_v16 = vshll.u32 %v1339_v13, 16  ;;  %v255_v19 = vshrl.u32 %v1339_v13, 16  ;;  %v1397_v43 = vcombine.low %v550_v39, %v551_v40  ;;  %v1848_v54 = vld [vmem:[%s2270_s1 + $0x158] sm:$0xff]   ;;  %v1849_v56 = vld [vmem:[%s2270_s1 + $0x120] sm:$0xff]   ;;  %v1422_v58 = vcombine.low %v550_v39, %v665_v55  ;;  %v1851_v59 = vld [vmem:[%s2270_s1 + $0x128] sm:$0xff]  }
  0x15   : > { %1642 = vmatprep.subr.bf16.mxu1 %v1892_v1  ;;  %v459_v45 = vrot.slane %v1372_v41, 1  ;;  %v1850_v57 = vld [vmem:[%s2270_s1 + $0x160] sm:$0xff]   ;;  %v1852_v60 = vld [vmem:[%s2270_s1 + $0x168] sm:$0xff]   ;;  %v1853_v63 = vld [vmem:[%s2270_s1 + $0x130] sm:$0xff]  }
  0x16   : > { %v259_v20 = vrot.slane %v257_v16, 1  ;;  %v574_v47 = vrot.slane %v1397_v43, 2  ;;  %v687_v61 = vshrl.u32 %v1422_v58, 16  ;;  %v690_v62 = vshll.u32 %v1422_v58, 16  ;;  %v1854_v0 = vld [vmem:[%s2270_s1 + $0x170] sm:$0xff]   ;;  %v1855_v5 = vld [vmem:[%s2270_s1 + $0x138] sm:$0xff]  }
  0x17   : > { %1623 = vmatpush3.bf16.msra.mxu0 %v1813_v9  ;;  %v784_v2 = vld [vmem:[%s1969_s10] sm:$0x8]  ;;  %v1856_v7 = vld [vmem:[%s2270_s1 + $0x178] sm:$0xff]   ;;  %v1860_v12 = vld [vmem:[%s2270_s1 + $0x188] sm:$0xff]  }
  0x18   : > { %1643 = vmatpush3.bf16.msra.mxu1 %v1814_v10  ;;  %1624 = vmatprep.subr.bf16.mxu0 %v1892_v1  ;;  %v260_v23 = vor.u32 %v259_v20, %v255_v19  ;;  %v689_v3 = vrot.slane %v687_v61, 2  ;;  %v692_v4 = vrot.slane %v690_v62, 3  ;;  %v1447_v6 = vcombine.low %v784_v2, %v665_v55  ;;  %v1857_v9 = vld [vmem:[%s2270_s1 + $0x180] sm:$0xff]   ;;  %v1861_v13 = vld [vmem:[%s2270_s1 + $0x1c8] sm:$0xff]   ;;  %v1864_v16 = vld [vmem:[%s2270_s1 + $0x198] sm:$0xff]  }
  0x19   : > { %1644 = vmatprep.subr.bf16.mxu1 %v1892_v1  ;;  %v1867_v19 = vld [vmem:[%s2270_s1 + $0x1e0] sm:$0xff]   ;;  %v1880_v39 = vld [vmem:[%s2270_s1 + $0x228] sm:$0xff]   ;;  %v1881_v40 = vld [vmem:[%s2270_s1 + $0x230] sm:$0xff]  }
  0x1a   : > { %v693_v8 = vor.u32 %v692_v4, %v689_v3  ;;  %v805_v10 = vrot.slane %v1447_v6, 3  ;;  %v1003_v20 = vld [vmem:[%s1969_s10 + $0x4] sm:$0xf]  ;;  %v1882_v43 = vld [vmem:[%s2270_s1 + $0x238] sm:$0xff]  }
  0x1b   : > { %1625 = vmatpush3.bf16.msra.mxu0 %v1815_v14  ;;  %v1862_v14 = vld [vmem:[%s2270_s1 + $0x190] sm:$0xff]   ;;  %v1879_v38 = vld [vmem:[%s2270_s1 + $0x220] sm:$0xff]  }
  0x1c   : > { %1645 = vmatpush3.bf16.msra.mxu1 %v1816_v15  ;;  %1626 = vmatprep.subr.bf16.mxu0 %v1892_v1  ;;  %v1863_v15 = vld [vmem:[%s2270_s1 + $0x1d0] sm:$0xff]   ;;  %v1124_v41 = vld [vmem:[%s1969_s10 + $0x4] sm:$0xe] }
  0x1d   : > { %1646 = vmatprep.subr.bf16.mxu1 %v1892_v1 }
  0x1f   : > { %1627 = vmatpush3.bf16.msra.mxu0 %v1817_v17  ;;  %v1865_v17 = vld [vmem:[%s2270_s1 + $0x1d8] sm:$0xff]  }
  0x20   : > { %1647 = vmatpush3.bf16.msra.mxu1 %v1818_v18  ;;  %1628 = vmatprep.subr.bf16.mxu0 %v1892_v1  ;;  %v1866_v18 = vld [vmem:[%s2270_s1 + $0x1a0] sm:$0xff]  }
  0x21   : > { %1648 = vmatprep.subr.bf16.mxu1 %v1892_v1 }
  0x23   : > { %1629 = vmatpush3.bf16.msra.mxu0 %v1819_v21  ;;  %v1004_v21 = vld [vmem:[%s1969_s10 + $0x8] sm:$0x1] }
  0x24   : > { %1649 = vmatpush3.bf16.msra.mxu1 %v1820_v22  ;;  %1654 = vmatprep.subr.bf16.mxu0 %v1892_v1  ;;  %v1868_v22 = vld [vmem:[%s2270_s1 + $0x1a8] sm:$0xff]  }
  0x25   : > { %1674 = vmatprep.subr.bf16.mxu1 %v1892_v1 }
  0x26   : > { %1631 = vmatmul.mubr.bf16.vlgmr.msra.gmra.mrb[0].mxu0 %v260_v23  ;;  %v1496_v23 = vcombine.low %v1003_v20, %v1004_v21 }
  0x27   : > { %1651 = vmatmul.mubr.bf16.vlgmr.msra.gmra.mrb[0].mxu1 %v214_v11  ;;  %1655 = vmatpush3.bf16.msra.mxu0 %v1822_v24  ;;  %v1859_v11 = vld [vmem:[%s2270_s1 + $0x1c0] sm:$0xff]   ;;  %v1869_v24 = vld [vmem:[%s2270_s1 + $0x1e8] sm:$0xff]  }
  0x28   : > { %1675 = vmatpush3.bf16.msra.mxu1 %v1823_v25  ;;  %1656 = vmatprep.subr.bf16.mxu0 %v1892_v1  ;;  %v1870_v25 = vld [vmem:[%s2270_s1 + $0x1b0] sm:$0xff]  }
  0x29   : > { %1676 = vmatprep.subr.bf16.mxu1 %v1892_v1  ;;  %1670 = vmatprep.mubr.msk.bf16.mxu0 %vm1893_vm0, %v1892_v1 }
  0x2a   : > { %1690 = vmatprep.mubr.msk.bf16.mxu1 %vm1893_vm0, %v1892_v1 }
  0x2b   : > { %1657 = vmatpush3.bf16.msra.mxu0 %v1824_v26  ;;  %v1030_v26 = vshll.u32 %v1496_v23, 16 }
  0x2c   : > { %1677 = vmatpush3.bf16.msra.mxu1 %v1825_v27  ;;  %1658 = vmatprep.subr.bf16.mxu0 %v1892_v1  ;;  %v1871_v27 = vld [vmem:[%s2270_s1 + $0x1f0] sm:$0xff]  }
  0x2d   : > { %1678 = vmatprep.subr.bf16.mxu1 %v1892_v1 }
  0x2f   : > { %1659 = vmatpush3.bf16.msra.mxu0 %v1826_v28  ;;  %v1872_v28 = vld [vmem:[%s2270_s1 + $0x1b8] sm:$0xff]  }
  0x30   : > { %1679 = vmatpush3.bf16.msra.mxu1 %v1827_v29  ;;  %1660 = vmatprep.subr.bf16.mxu0 %v1892_v1  ;;  %v1028_v29 = vshrl.u32 %v1496_v23, 16 }
  0x31   : > { %1680 = vmatprep.subr.bf16.mxu1 %v1892_v1 }
  0x33   : > { %1661 = vmatpush3.bf16.msra.mxu0 %v1828_v30  ;;  %v1032_v30 = vrot.slane %v1030_v26, 1 }
  0x34   : > { %1681 = vmatpush3.bf16.msra.mxu1 %v1829_v31  ;;  %1662 = vmatprep.subr.bf16.mxu0 %v1892_v1  ;;  %v1873_v31 = vld [vmem:[%s2270_s1 + $0x1f8] sm:$0xff]  }
  0x35   : > { %1682 = vmatprep.subr.bf16.mxu1 %v1892_v1 }
  0x37   : > { %1663 = vmatpush3.bf16.msra.mxu0 %v1830_v32  ;;  %v896_v32 = vld [vmem:[%s1969_s10 + $0x4] sm:$0xf]  ;;  %s1321_s10 = sshll.u32 %s2275_s16, 2 }
  0x38   : > { %1683 = vmatpush3.bf16.msra.mxu1 %v1831_v33  ;;  %1664 = vmatprep.subr.bf16.mxu0 %v1892_v1  ;;  %v1874_v33 = vld [vmem:[%s2270_s1 + $0x200] sm:$0xff]   ;;  %s208_s28 = scalar_lea.vmem %s2272_s3, %s1321_s10  ;;  %s212_s6 = scalar_lea.vmem %s2273_s4, %s1321_s10 }
  0x39   : > { %1684 = vmatprep.subr.bf16.mxu1 %v1892_v1  ;;  %v1244_v20 = vld [vmem:[%s208_s28] sm:$0xf] }
  0x3b   : > { %1665 = vmatpush3.bf16.msra.mxu0 %v1832_v34  ;;  %v1033_v34 = vor.u32 %v1032_v30, %v1028_v29 }
  0x3c   : > { %1685 = vmatpush3.bf16.msra.mxu1 %v1833_v35  ;;  %1666 = vmatprep.subr.bf16.mxu0 %v1892_v1  ;;  %v1876_v35 = vld [vmem:[%s2270_s1 + $0x208] sm:$0xff]  }
  0x3d   : > { %1686 = vmatprep.subr.bf16.mxu1 %v1892_v1 }
  0x3f   : > { %1667 = vmatpush3.bf16.msra.mxu0 %v1834_v36  ;;  %v1877_v36 = vld [vmem:[%s2270_s1 + $0x210] sm:$0xff]  }
  0x40   : > { %1687 = vmatpush3.bf16.msra.mxu1 %v1835_v37  ;;  %1668 = vmatprep.subr.bf16.mxu0 %v1892_v1  ;;  %v1878_v37 = vld [vmem:[%s2270_s1 + $0x218] sm:$0xff]  }
  0x41   : > { %1688 = vmatprep.subr.bf16.mxu1 %v1892_v1 }
  0x43   : > { %1669 = vmatpush3.bf16.msra.mxu0 %v1836_v42  ;;  %v1521_v42 = vcombine.low %v1124_v41, %v1004_v21 }
  0x44   : > { %1689 = vmatpush3.bf16.msra.mxu1 %v1837_v44  ;;  %1694 = vmatprep.subr.bf16.mxu0 %v1892_v1 }
  0x45   : > { %1714 = vmatprep.subr.bf16.mxu1 %v1892_v1  ;;  %v1145_v44 = vrot.slane %v1521_v42, 1 }
  0x46   : > { %1671 = vmatmul.mubr.bf16.vlgmr.msra.gmra.mrb[4].mxu0 %v459_v45 }
  0x47   : > { %1695 = vmatpush3.bf16.msra.mxu0 %v1839_v46  ;;  %1691 = vmatmul.mubr.bf16.vlgmr.msra.gmra.mrb[4].mxu1 %v574_v47 }
  0x48   : > { %1715 = vmatpush3.bf16.msra.mxu1 %v1842_v48  ;;  %1696 = vmatprep.subr.bf16.mxu0 %v1892_v1 }
  0x49   : > { %1716 = vmatprep.subr.bf16.mxu1 %v1892_v1  ;;  %1710 = vmatprep.mubr.msk.bf16.mxu0 %vm1893_vm0, %v1892_v1 }
  0x4a   : > { %1730 = vmatprep.mubr.msk.bf16.mxu1 %vm1893_vm0, %v1892_v1 }
  0x4b   : > { %1697 = vmatpush3.bf16.msra.mxu0 %v1843_v49 }
  0x4c   : > { %1717 = vmatpush3.bf16.msra.mxu1 %v1844_v50  ;;  %1698 = vmatprep.subr.bf16.mxu0 %v1892_v1 }
  0x4d   : > { %1718 = vmatprep.subr.bf16.mxu1 %v1892_v1 }
  0x4f   : > { %1699 = vmatpush3.bf16.msra.mxu0 %v1845_v51 }
  0x50   : > { %1719 = vmatpush3.bf16.msra.mxu1 %v1846_v52  ;;  %1700 = vmatprep.subr.bf16.mxu0 %v1892_v1 }
  0x51   : > { %1720 = vmatprep.subr.bf16.mxu1 %v1892_v1 }
  0x53   : > { %1701 = vmatpush3.bf16.msra.mxu0 %v1847_v53 }
  0x54   : > { %1721 = vmatpush3.bf16.msra.mxu1 %v1848_v54  ;;  %1702 = vmatprep.subr.bf16.mxu0 %v1892_v1 }
  0x55   : > { %1722 = vmatprep.subr.bf16.mxu1 %v1892_v1 }
  0x57   : > { %1703 = vmatpush3.bf16.msra.mxu0 %v1849_v56 }
  0x58   : > { %1723 = vmatpush3.bf16.msra.mxu1 %v1850_v57  ;;  %1704 = vmatprep.subr.bf16.mxu0 %v1892_v1 }
  0x59   : > { %1724 = vmatprep.subr.bf16.mxu1 %v1892_v1 }
  0x5b   : > { %1705 = vmatpush3.bf16.msra.mxu0 %v1851_v59 }
  0x5c   : > { %1725 = vmatpush3.bf16.msra.mxu1 %v1852_v60  ;;  %1706 = vmatprep.subr.bf16.mxu0 %v1892_v1 }
  0x5d   : > { %1726 = vmatprep.subr.bf16.mxu1 %v1892_v1 }
  0x5f   : > { %1707 = vmatpush3.bf16.msra.mxu0 %v1853_v63 }
  0x60   : > { %1727 = vmatpush3.bf16.msra.mxu1 %v1854_v0  ;;  %1708 = vmatprep.subr.bf16.mxu0 %v1892_v1 }
  0x61   : > { %1728 = vmatprep.subr.bf16.mxu1 %v1892_v1 }
  0x63   : > { %1709 = vmatpush3.bf16.msra.mxu0 %v1855_v5 }
  0x64   : > { %1729 = vmatpush3.bf16.msra.mxu1 %v1856_v7  ;;  %1734 = vmatprep.subr.bf16.mxu0 %v1892_v1 }
  0x65   : > { %1754 = vmatprep.subr.bf16.mxu1 %v1892_v1 }
  0x66   : > { %1711 = vmatmul.mubr.bf16.vlgmr.msra.gmra.mrb[8].mxu0 %v693_v8 }
  0x67   : > { %1735 = vmatpush3.bf16.msra.mxu0 %v1857_v9  ;;  %1731 = vmatmul.mubr.bf16.vlgmr.msra.gmra.mrb[8].mxu1 %v805_v10 }
  0x68   : > { %1755 = vmatpush3.bf16.msra.mxu1 %v1859_v11  ;;  %1736 = vmatprep.subr.bf16.mxu0 %v1892_v1 }
  0x69   : > { %1756 = vmatprep.subr.bf16.mxu1 %v1892_v1  ;;  %1750 = vmatprep.mubr.msk.bf16.mxu0 %vm1893_vm0, %v1892_v1 }
  0x6a   : > { %1770 = vmatprep.mubr.msk.bf16.mxu1 %vm1893_vm0, %v1892_v1 }
  0x6b   : > { %1737 = vmatpush3.bf16.msra.mxu0 %v1860_v12 }
  0x6c   : > { %1757 = vmatpush3.bf16.msra.mxu1 %v1861_v13  ;;  %1738 = vmatprep.subr.bf16.mxu0 %v1892_v1 }
  0x6d   : > { %1758 = vmatprep.subr.bf16.mxu1 %v1892_v1 }
  0x6f   : > { %1739 = vmatpush3.bf16.msra.mxu0 %v1862_v14 }
  0x70   : > { %1759 = vmatpush3.bf16.msra.mxu1 %v1863_v15  ;;  %1740 = vmatprep.subr.bf16.mxu0 %v1892_v1 }
  0x71   : > { %1760 = vmatprep.subr.bf16.mxu1 %v1892_v1 }
  0x73   : > { %1741 = vmatpush3.bf16.msra.mxu0 %v1864_v16 }
  0x74   : > { %1761 = vmatpush3.bf16.msra.mxu1 %v1865_v17  ;;  %1742 = vmatprep.subr.bf16.mxu0 %v1892_v1 }
  0x75   : > { %1762 = vmatprep.subr.bf16.mxu1 %v1892_v1 }
  0x77   : > { %1743 = vmatpush3.bf16.msra.mxu0 %v1866_v18 }
  0x78   : > { %1763 = vmatpush3.bf16.msra.mxu1 %v1867_v19  ;;  %1744 = vmatprep.subr.bf16.mxu0 %v1892_v1 }
  0x79   : > { %1764 = vmatprep.subr.bf16.mxu1 %v1892_v1 }
  0x7b   : > { %1745 = vmatpush3.bf16.msra.mxu0 %v1868_v22  ;;  %v1530_v22 = vld [vmem:[%s2271_s2] ss:$0 sm:$0xff] }
  0x7c   : > { %1765 = vmatpush3.bf16.msra.mxu1 %v1869_v24  ;;  %1746 = vmatprep.subr.bf16.mxu0 %v1892_v1  ;;  %v1245_v24 = vunpack.c.l.bf16 %v1244_v20 }
  0x7d   : > { %1766 = vmatprep.subr.bf16.mxu1 %v1892_v1 }
  0x7f   : > { %1747 = vmatpush3.bf16.msra.mxu0 %v1870_v25 }
  0x80   : > { %1767 = vmatpush3.bf16.msra.mxu1 %v1871_v27  ;;  %1748 = vmatprep.subr.bf16.mxu0 %v1892_v1 }
  0x81   : > { %1768 = vmatprep.subr.bf16.mxu1 %v1892_v1 }
  0x83   : > { %1749 = vmatpush3.bf16.msra.mxu0 %v1872_v28 }
  0x84   : > { %1769 = vmatpush3.bf16.msra.mxu1 %v1873_v31  ;;  %1774 = vmatprep.subr.bf16.mxu0 %v1892_v1 }
  0x86   : > { %1751 = vmatmul.mubr.bf16.vlgmr.msra.gmra.mrb[12].mxu0 %v896_v32 }
  0x87   : > { %1775 = vmatpush3.bf16.msra.mxu0 %v1874_v33  ;;  %1771 = vmatmul.mubr.bf16.vlgmr.msra.gmra.mrb[12].mxu1 %v1033_v34 }
  0x88   : > { %1776 = vmatprep.subr.bf16.mxu0 %v1892_v1  ;;  %1790 = vmatprep.mubr.msk.bf16.mxu0 %vm1893_vm0, %v1892_v1 }
  0x8b   : > { %1777 = vmatpush3.bf16.msra.mxu0 %v1876_v35 }
  0x8c   : > { %1778 = vmatprep.subr.bf16.mxu0 %v1892_v1 }
  0x8f   : > { %1779 = vmatpush3.bf16.msra.mxu0 %v1877_v36 }
  0x90   : > { %1780 = vmatprep.subr.bf16.mxu0 %v1892_v1 }
  0x93   : > { %1781 = vmatpush3.bf16.msra.mxu0 %v1878_v37 }
  0x94   : > { %1782 = vmatprep.subr.bf16.mxu0 %v1892_v1 }
  0x97   : > { %1783 = vmatpush3.bf16.msra.mxu0 %v1879_v38 }
  0x98   : > { %1784 = vmatprep.subr.bf16.mxu0 %v1892_v1 }
  0x9b   : > { %1785 = vmatpush3.bf16.msra.mxu0 %v1880_v39 }
  0x9c   : > { %1786 = vmatprep.subr.bf16.mxu0 %v1892_v1 }
  0x9f   : > { %1787 = vmatpush3.bf16.msra.mxu0 %v1881_v40 }
  0xa0   : > { %1788 = vmatprep.subr.bf16.mxu0 %v1892_v1 }
  0xa3   : > { %1789 = vmatpush3.bf16.msra.mxu0 %v1882_v43 }
  0xa6   : > { %1791 = vmatmul.mubr.bf16.vlgmr.msra.gmra.mrb[16].mxu0 %v1145_v44 }
  0xf9   : > { %v344_v45 = vpop.f32.mrb[0].mxu0 }
  0xfa   : > { %v1632_v46 = vpop.f32.mrb[1].mxu0  ;;  %v432_v47 = vpop.f32.mrb[0].mxu1 }
  0xfb   : > { %v433_v48 = vadd.f32 %v432_v47, %v344_v45  ;;  %v347_v49 = vpop.f32.mrb[2].mxu0  ;;  %v1652_v50 = vpop.f32.mrb[1].mxu1 }
  0xfc   : > { %v1633_v51 = vpop.f32.mrb[3].mxu0  ;;  %v435_v52 = vpop.f32.mrb[2].mxu1 }
  0xfd   : > { %v1653_v53 = vpop.f32.mrb[3].mxu1 }
 0x119   : > { %v543_v54 = vpop.f32.mrb[4].mxu0 }
 0x11a   : > { %v549_v55 = vadd.f32 %v543_v54, %v433_v48  ;;  %v1672_v56 = vpop.f32.mrb[5].mxu0  ;;  %v658_v57 = vpop.f32.mrb[4].mxu1 }
 0x11b   : > { %v546_v58 = vpop.f32.mrb[6].mxu0  ;;  %v1692_v59 = vpop.f32.mrb[5].mxu1 }
 0x11c   : > { %v664_v60 = vadd.f32 %v658_v57, %v549_v55  ;;  %v1673_v1 = vpop.f32.mrb[7].mxu0  ;;  %v661_v61 = vpop.f32.mrb[6].mxu1 }
 0x11d   : > { %v1693_v62 = vpop.f32.mrb[7].mxu1 }
 0x139   : > { %v777_v63 = vpop.f32.mrb[8].mxu0 }
 0x13a   : > { %v783_v0 = vadd.f32 %v777_v63, %v664_v60  ;;  %v1712_v2 = vpop.f32.mrb[9].mxu0  ;;  %v889_v3 = vpop.f32.mrb[8].mxu1 }
 0x13b   : > { %v780_v4 = vpop.f32.mrb[10].mxu0  ;;  %v1732_v5 = vpop.f32.mrb[9].mxu1 }
 0x13c   : > { %v895_v6 = vadd.f32 %v889_v3, %v783_v0  ;;  %v1713_v7 = vpop.f32.mrb[11].mxu0  ;;  %v892_v8 = vpop.f32.mrb[10].mxu1 }
 0x13d   : > { %v1733_v9 = vpop.f32.mrb[11].mxu1 }
 0x159   : > { %v996_v10 = vpop.f32.mrb[12].mxu0 }
 0x15a   : > { %v1002_v11 = vadd.f32 %v996_v10, %v895_v6  ;;  %v1752_v12 = vpop.f32.mrb[13].mxu0  ;;  %v1117_v13 = vpop.f32.mrb[12].mxu1 }
 0x15b   : > { %v999_v14 = vpop.f32.mrb[14].mxu0  ;;  %v1772_v15 = vpop.f32.mrb[13].mxu1 }
 0x15c   : > { %v1123_v16 = vadd.f32 %v1117_v13, %v1002_v11  ;;  %v1753_v17 = vpop.f32.mrb[15].mxu0  ;;  %v1120_v18 = vpop.f32.mrb[14].mxu1 }
 0x15d   : > { %v1773_v19 = vpop.f32.mrb[15].mxu1 }
 0x179   : > { %v1229_v21 = vpop.f32.mrb[16].mxu0 }
 0x17a   : > { %v1235_v23 = vadd.f32 %v1229_v21, %v1123_v16  ;;  %v1792_v25 = vpop.f32.mrb[17].mxu0 }
 0x17b   : > { %v1232_v26 = vpop.f32.mrb[18].mxu0 }
 0x17c   : > { %v1243_v27 = vadd.f32 %v1530_v22, %v1235_v23  ;;  %v1793_v28 = vpop.f32.mrb[19].mxu0 }
 0x17e   : > { %v1246_v29 = vadd.f32 %v1245_v24, %v1243_v27 }
 0x180   : > { %v1247_v30 = vmax.f32 %v1246_v29, 0.0 }
 0x182   : > { %v1248_v31 = vpack.c.bf16 %v1247_v30, %v1247_v30 }
 0x184   : > { %1249 = vst [vmem:[%s212_s6] sm:$0xf] %v1248_v31 }
 0x185 PF: > { %s14_s15 = sadd.s32 1, %s1890_s15  }
 0x186   : > { %p11_p4 = scmp.ge.s32.totalorder %s14_s15, 4  }
 0x188   :  { %13 = sbr.rel (!%p11_p4) target bundleno = 1 (0x1), region = 77 }

// kernel: _lambda_.27
= control target key start
LH: loop header
LB: loop body
LE: loop exit
PB: predicated region body
PF: predicated region fallthrough
CT: control target
= control target key end

     0   :  { %s2041_s1 = inlined_call_operand.vmem [shape: bf16[1152,256], index: 1, kind: input, shape index: {}]   ;;  %s2042_s0 = inlined_call_operand.vmem [shape: bf16[8,1152], index: 0, kind: input, shape index: {}]   ;;  %s2043_s2 = inlined_call_operand.vmem [shape: f32[1,256], index: 2, kind: input, shape index: {}]   ;;  %s2044_s3 = inlined_call_operand.vmem [shape: bf16[8,256], index: 3, kind: output, shape index: {}]  }
   0x1   :  { %v1330_v0 = vld [vmem:[%s2041_s1 + $0x4] ss:$8 sps:$4 sm:$0xff]   ;;  %v1334_v2 = vld [vmem:[%s2041_s1] ss:$8 sps:$4 sm:$0xff]   ;;  %v1336_v4 = vld [vmem:[%s2041_s1 + $0x14] ss:$8 sps:$4 sm:$0xff]  }
   0x2   :  { %v1332_v1 = vld [vmem:[%s2041_s1 + $0x104] ss:$8 sps:$4 sm:$0xff]   ;;  %924 = vmatprep.subr.bf16.mxu0 %v1330_v0  ;;  %v1335_v3 = vld [vmem:[%s2041_s1 + $0x100] ss:$8 sps:$4 sm:$0xff]   ;;  %v1338_v5 = vld [vmem:[%s2041_s1 + $0x114] ss:$8 sps:$4 sm:$0xff]  }
   0x3   :  { %965 = vmatprep.subr.bf16.mxu1 %v1332_v1  ;;  %925 = vmatpush1.bf16.msra.mxu0 %v1334_v2  ;;  %v1340_v6 = vld [vmem:[%s2041_s1 + $0x10] ss:$8 sps:$4 sm:$0xff]   ;;  %v1342_v8 = vld [vmem:[%s2041_s1 + $0x24] ss:$8 sps:$4 sm:$0xff]   ;;  %v1346_v10 = vld [vmem:[%s2041_s1 + $0x20] ss:$8 sps:$4 sm:$0xff]  }
   0x4   :  { %966 = vmatpush1.bf16.msra.mxu1 %v1335_v3  ;;  %926 = vmatprep.subr.bf16.mxu0 %v1336_v4  ;;  %v1341_v7 = vld [vmem:[%s2041_s1 + $0x110] ss:$8 sps:$4 sm:$0xff]   ;;  %v1344_v9 = vld [vmem:[%s2041_s1 + $0x124] ss:$8 sps:$4 sm:$0xff]   ;;  %v1347_v11 = vld [vmem:[%s2041_s1 + $0x120] ss:$8 sps:$4 sm:$0xff]  }
   0x5   :  { %967 = vmatprep.subr.bf16.mxu1 %v1338_v5  ;;  %v1348_v12 = vld [vmem:[%s2041_s1 + $0x34] ss:$8 sps:$4 sm:$0xff]   ;;  %v1352_v14 = vld [vmem:[%s2041_s1 + $0x30] ss:$8 sps:$4 sm:$0xff]   ;;  %v1354_v16 = vld [vmem:[%s2041_s1 + $0x44] ss:$8 sps:$4 sm:$0xff]  }
   0x6   :  { %v1350_v13 = vld [vmem:[%s2041_s1 + $0x134] ss:$8 sps:$4 sm:$0xff]   ;;  %v1353_v15 = vld [vmem:[%s2041_s1 + $0x130] ss:$8 sps:$4 sm:$0xff]   ;;  %v1356_v17 = vld [vmem:[%s2041_s1 + $0x144] ss:$8 sps:$4 sm:$0xff]  }
   0x7   :  { %927 = vmatpush1.bf16.msra.mxu0 %v1340_v6  ;;  %v1358_v18 = vld [vmem:[%s2041_s1 + $0x40] ss:$8 sps:$4 sm:$0xff]   ;;  %v1360_v20 = vld [vmem:[%s2041_s1 + $0x54] ss:$8 sps:$4 sm:$0xff]   ;;  %v1364_v22 = vld [vmem:[%s2041_s1 + $0x50] ss:$8 sps:$4 sm:$0xff]  }
   0x8   :  { %968 = vmatpush1.bf16.msra.mxu1 %v1341_v7  ;;  %928 = vmatprep.subr.bf16.mxu0 %v1342_v8  ;;  %v1359_v19 = vld [vmem:[%s2041_s1 + $0x140] ss:$8 sps:$4 sm:$0xff]   ;;  %v1362_v21 = vld [vmem:[%s2041_s1 + $0x154] ss:$8 sps:$4 sm:$0xff]   ;;  %v1365_v23 = vld [vmem:[%s2041_s1 + $0x150] ss:$8 sps:$4 sm:$0xff]  }
   0x9   :  { %969 = vmatprep.subr.bf16.mxu1 %v1344_v9  ;;  %v1366_v24 = vld [vmem:[%s2041_s1 + $0x64] ss:$8 sps:$4 sm:$0xff]   ;;  %v1370_v26 = vld [vmem:[%s2041_s1 + $0x60] ss:$8 sps:$4 sm:$0xff]   ;;  %v1372_v28 = vld [vmem:[%s2041_s1 + $0x74] ss:$8 sps:$4 sm:$0xff]  }
   0xa   :  { %v1368_v25 = vld [vmem:[%s2041_s1 + $0x164] ss:$8 sps:$4 sm:$0xff]   ;;  %v1371_v27 = vld [vmem:[%s2041_s1 + $0x160] ss:$8 sps:$4 sm:$0xff]   ;;  %v1374_v29 = vld [vmem:[%s2041_s1 + $0x174] ss:$8 sps:$4 sm:$0xff]  }
   0xb   :  { %929 = vmatpush1.bf16.msra.mxu0 %v1346_v10  ;;  %v1376_v30 = vld [vmem:[%s2041_s1 + $0x70] ss:$8 sps:$4 sm:$0xff]   ;;  %v1378_v32 = vld [vmem:[%s2041_s1 + $0x84] ss:$8 sps:$4 sm:$0xff]   ;;  %v1382_v34 = vld [vmem:[%s2041_s1 + $0x80] ss:$8 sps:$4 sm:$0xff]  }
   0xc   :  { %970 = vmatpush1.bf16.msra.mxu1 %v1347_v11  ;;  %930 = vmatprep.subr.bf16.mxu0 %v1348_v12  ;;  %v1377_v31 = vld [vmem:[%s2041_s1 + $0x170] ss:$8 sps:$4 sm:$0xff]   ;;  %v1380_v33 = vld [vmem:[%s2041_s1 + $0x184] ss:$8 sps:$4 sm:$0xff]   ;;  %v1383_v35 = vld [vmem:[%s2041_s1 + $0x180] ss:$8 sps:$4 sm:$0xff]  }
   0xd   :  { %971 = vmatprep.subr.bf16.mxu1 %v1350_v13  ;;  %v1384_v36 = vld [vmem:[%s2041_s1 + $0x94] ss:$8 sps:$4 sm:$0xff]   ;;  %v1388_v38 = vld [vmem:[%s2041_s1 + $0x90] ss:$8 sps:$4 sm:$0xff]   ;;  %v1390_v40 = vld [vmem:[%s2041_s1 + $0xa4] ss:$8 sps:$4 sm:$0xff]  }
   0xe   :  { %v1386_v37 = vld [vmem:[%s2041_s1 + $0x194] ss:$8 sps:$4 sm:$0xff]   ;;  %v1389_v39 = vld [vmem:[%s2041_s1 + $0x190] ss:$8 sps:$4 sm:$0xff]   ;;  %v1392_v41 = vld [vmem:[%s2041_s1 + $0x1a4] ss:$8 sps:$4 sm:$0xff]  }
   0xf   :  { %931 = vmatpush1.bf16.msra.mxu0 %v1352_v14  ;;  %v1394_v42 = vld [vmem:[%s2041_s1 + $0xa0] ss:$8 sps:$4 sm:$0xff]   ;;  %v1396_v44 = vld [vmem:[%s2041_s1 + $0xb4] ss:$8 sps:$4 sm:$0xff]   ;;  %v1400_v49 = vld [vmem:[%s2041_s1 + $0xb0] ss:$8 sps:$4 sm:$0xff]  }
  0x10   :  { %972 = vmatpush1.bf16.msra.mxu1 %v1353_v15  ;;  %932 = vmatprep.subr.bf16.mxu0 %v1354_v16  ;;  %v1395_v43 = vld [vmem:[%s2041_s1 + $0x1a0] ss:$8 sps:$4 sm:$0xff]   ;;  %v1398_v45 = vld [vmem:[%s2041_s1 + $0x1b4] ss:$8 sps:$4 sm:$0xff]   ;;  %v1401_v50 = vld [vmem:[%s2041_s1 + $0x1b0] ss:$8 sps:$4 sm:$0xff]  }
  0x11   :  { %973 = vmatprep.subr.bf16.mxu1 %v1356_v17  ;;  %v23_v46 = vld [vmem:[%s2042_s0] sm:$0xff]  ;;  %v24_v48 = vld [vmem:[%s2042_s0 + $0x8] sm:$0xff]  ;;  %v1408_v56 = vld [vmem:[%s2041_s1 + $0xd4] ss:$8 sps:$4 sm:$0xff]  }
  0x12   :  { %v1175_v47 = vcombine.high %v23_v46, %v23_v46  ;;  %v1177_v51 = vcombine.high %v24_v48, %v24_v48  ;;  %v1402_v52 = vld [vmem:[%s2041_s1 + $0xc4] ss:$8 sps:$4 sm:$0xff]   ;;  %v1406_v54 = vld [vmem:[%s2041_s1 + $0xc0] ss:$8 sps:$4 sm:$0xff]   ;;  %v1410_v57 = vld [vmem:[%s2041_s1 + $0x1d4] ss:$8 sps:$4 sm:$0xff]   ;;  %v1174_v6 = vcombine.low %v23_v46, %v23_v46  ;;  %v1176_v7 = vcombine.low %v24_v48, %v24_v48 }
  0x13   :  { %933 = vmatpush1.bf16.msra.mxu0 %v1358_v18  ;;  %v1404_v53 = vld [vmem:[%s2041_s1 + $0x1c4] ss:$8 sps:$4 sm:$0xff]   ;;  %v1407_v55 = vld [vmem:[%s2041_s1 + $0x1c0] ss:$8 sps:$4 sm:$0xff]   ;;  %v1412_v58 = vld [vmem:[%s2041_s1 + $0xd0] ss:$8 sps:$4 sm:$0xff]  }
  0x14   :  { %974 = vmatpush1.bf16.msra.mxu1 %v1359_v19  ;;  %934 = vmatprep.subr.bf16.mxu0 %v1360_v20  ;;  %v1413_v59 = vld [vmem:[%s2041_s1 + $0x1d0] ss:$8 sps:$4 sm:$0xff]   ;;  %v1414_v60 = vld [vmem:[%s2041_s1 + $0xe4] ss:$8 sps:$4 sm:$0xff]   ;;  %v1418_v62 = vld [vmem:[%s2041_s1 + $0xe0] ss:$8 sps:$4 sm:$0xff]  }
  0x15   :  { %975 = vmatprep.subr.bf16.mxu1 %v1362_v21  ;;  %956 = vmatprep.mubr.bf16.mxu0 %v1175_v47  ;;  %v1416_v61 = vld [vmem:[%s2041_s1 + $0x1e4] ss:$8 sps:$4 sm:$0xff]   ;;  %v1419_v63 = vld [vmem:[%s2041_s1 + $0x1e0] ss:$8 sps:$4 sm:$0xff]   ;;  %v1420_v0 = vld [vmem:[%s2041_s1 + $0xf4] ss:$8 sps:$4 sm:$0xff]  }
  0x16   :  { %997 = vmatprep.mubr.bf16.mxu1 %v1177_v51  ;;  %v1422_v1 = vld [vmem:[%s2041_s1 + $0x1f4] ss:$8 sps:$4 sm:$0xff]   ;;  %v1424_v2 = vld [vmem:[%s2041_s1 + $0xf0] ss:$8 sps:$4 sm:$0xff]   ;;  %v1432_v4 = vld [vmem:[%s2041_s1 + $0x204] ss:$8 sps:$4 sm:$0xff]  }
  0x17   :  { %935 = vmatpush1.bf16.msra.mxu0 %v1364_v22  ;;  %v1425_v3 = vld [vmem:[%s2041_s1 + $0x1f0] ss:$8 sps:$4 sm:$0xff]   ;;  %v1435_v5 = vld [vmem:[%s2041_s1 + $0x304] ss:$8 sps:$4 sm:$0xff]   ;;  %v1430_v8 = vld [vmem:[%s2041_s1 + $0x200] ss:$8 sps:$4 sm:$0xff]  }
  0x18   :  { %976 = vmatpush1.bf16.msra.mxu1 %v1365_v23  ;;  %936 = vmatprep.subr.bf16.mxu0 %v1366_v24  ;;  %v1433_v9 = vld [vmem:[%s2041_s1 + $0x300] ss:$8 sps:$4 sm:$0xff]   ;;  %v1438_v10 = vld [vmem:[%s2041_s1 + $0x214] ss:$8 sps:$4 sm:$0xff]   ;;  %v1436_v12 = vld [vmem:[%s2041_s1 + $0x210] ss:$8 sps:$4 sm:$0xff]  }
  0x19   :  { %977 = vmatprep.subr.bf16.mxu1 %v1368_v25  ;;  %v1441_v11 = vld [vmem:[%s2041_s1 + $0x314] ss:$8 sps:$4 sm:$0xff]   ;;  %v1439_v13 = vld [vmem:[%s2041_s1 + $0x310] ss:$8 sps:$4 sm:$0xff]   ;;  %v1444_v14 = vld [vmem:[%s2041_s1 + $0x224] ss:$8 sps:$4 sm:$0xff]  }
  0x1a   :  { %v1447_v15 = vld [vmem:[%s2041_s1 + $0x324] ss:$8 sps:$4 sm:$0xff]   ;;  %v1442_v16 = vld [vmem:[%s2041_s1 + $0x220] ss:$8 sps:$4 sm:$0xff]   ;;  %v1450_v18 = vld [vmem:[%s2041_s1 + $0x234] ss:$8 sps:$4 sm:$0xff]  }
  0x1b   :  { %937 = vmatpush1.bf16.msra.mxu0 %v1370_v26  ;;  %v1445_v17 = vld [vmem:[%s2041_s1 + $0x320] ss:$8 sps:$4 sm:$0xff]   ;;  %v1453_v19 = vld [vmem:[%s2041_s1 + $0x334] ss:$8 sps:$4 sm:$0xff]   ;;  %v1448_v20 = vld [vmem:[%s2041_s1 + $0x230] ss:$8 sps:$4 sm:$0xff]  }
  0x1c   :  { %978 = vmatpush1.bf16.msra.mxu1 %v1371_v27  ;;  %938 = vmatprep.subr.bf16.mxu0 %v1372_v28  ;;  %v1451_v21 = vld [vmem:[%s2041_s1 + $0x330] ss:$8 sps:$4 sm:$0xff]   ;;  %v1456_v22 = vld [vmem:[%s2041_s1 + $0x244] ss:$8 sps:$4 sm:$0xff]   ;;  %v1454_v24 = vld [vmem:[%s2041_s1 + $0x240] ss:$8 sps:$4 sm:$0xff]  }
  0x1d   :  { %979 = vmatprep.subr.bf16.mxu1 %v1374_v29  ;;  %v1459_v23 = vld [vmem:[%s2041_s1 + $0x344] ss:$8 sps:$4 sm:$0xff]   ;;  %v1457_v25 = vld [vmem:[%s2041_s1 + $0x340] ss:$8 sps:$4 sm:$0xff]   ;;  %v1462_v26 = vld [vmem:[%s2041_s1 + $0x254] ss:$8 sps:$4 sm:$0xff]  }
  0x1e   :  { %v1465_v27 = vld [vmem:[%s2041_s1 + $0x354] ss:$8 sps:$4 sm:$0xff]   ;;  %v1460_v28 = vld [vmem:[%s2041_s1 + $0x250] ss:$8 sps:$4 sm:$0xff]   ;;  %v1495_v51 = vld [vmem:[%s2041_s1 + $0x3a4] ss:$8 sps:$4 sm:$0xff]  }
  0x1f   :  { %939 = vmatpush1.bf16.msra.mxu0 %v1376_v30  ;;  %v1463_v29 = vld [vmem:[%s2041_s1 + $0x350] ss:$8 sps:$4 sm:$0xff]   ;;  %v1468_v30 = vld [vmem:[%s2041_s1 + $0x264] ss:$8 sps:$4 sm:$0xff]   ;;  %v1486_v46 = vld [vmem:[%s2041_s1 + $0x294] ss:$8 sps:$4 sm:$0xff]  }
  0x20   :  { %980 = vmatpush1.bf16.msra.mxu1 %v1377_v31  ;;  %940 = vmatprep.subr.bf16.mxu0 %v1378_v32  ;;  %v1471_v31 = vld [vmem:[%s2041_s1 + $0x364] ss:$8 sps:$4 sm:$0xff]   ;;  %v1855_v32 = vld [vmem:[%s2042_s0 + $0x10] sm:$0xff] }
  0x21   :  { %981 = vmatprep.subr.bf16.mxu1 %v1380_v33  ;;  %v1466_v33 = vld [vmem:[%s2041_s1 + $0x260] ss:$8 sps:$4 sm:$0xff]   ;;  %v1489_v47 = vld [vmem:[%s2041_s1 + $0x394] ss:$8 sps:$4 sm:$0xff]   ;;  %v1484_v48 = vld [vmem:[%s2041_s1 + $0x290] ss:$8 sps:$4 sm:$0xff]  }
  0x23   :  { %941 = vmatpush1.bf16.msra.mxu0 %v1382_v34  ;;  %v1469_v34 = vld [vmem:[%s2041_s1 + $0x360] ss:$8 sps:$4 sm:$0xff]  }
  0x24   :  { %982 = vmatpush1.bf16.msra.mxu1 %v1383_v35  ;;  %942 = vmatprep.subr.bf16.mxu0 %v1384_v36  ;;  %v1179_v35 = vcombine.high %v1855_v32, %v1855_v32  ;;  %v1868_v36 = vld [vmem:[%s2042_s0 + $0x18] sm:$0xff] }
  0x25   :  { %983 = vmatprep.subr.bf16.mxu1 %v1386_v37  ;;  %v1474_v37 = vld [vmem:[%s2041_s1 + $0x274] ss:$8 sps:$4 sm:$0xff]  }
  0x27   :  { %943 = vmatpush1.bf16.msra.mxu0 %v1388_v38  ;;  %v1181_v38 = vcombine.high %v1868_v36, %v1868_v36 }
  0x28   :  { %984 = vmatpush1.bf16.msra.mxu1 %v1389_v39  ;;  %944 = vmatprep.subr.bf16.mxu0 %v1390_v40  ;;  %v1477_v39 = vld [vmem:[%s2041_s1 + $0x374] ss:$8 sps:$4 sm:$0xff]   ;;  %v1472_v40 = vld [vmem:[%s2041_s1 + $0x270] ss:$8 sps:$4 sm:$0xff]  }
  0x29   :  { %985 = vmatprep.subr.bf16.mxu1 %v1392_v41  ;;  %v1475_v41 = vld [vmem:[%s2041_s1 + $0x370] ss:$8 sps:$4 sm:$0xff]  }
  0x2b   :  { %945 = vmatpush1.bf16.msra.mxu0 %v1394_v42  ;;  %v1480_v42 = vld [vmem:[%s2041_s1 + $0x284] ss:$8 sps:$4 sm:$0xff]  }
  0x2c   :  { %986 = vmatpush1.bf16.msra.mxu1 %v1395_v43  ;;  %946 = vmatprep.subr.bf16.mxu0 %v1396_v44  ;;  %v1483_v43 = vld [vmem:[%s2041_s1 + $0x384] ss:$8 sps:$4 sm:$0xff]   ;;  %v1478_v44 = vld [vmem:[%s2041_s1 + $0x280] ss:$8 sps:$4 sm:$0xff]  }
  0x2d   :  { %987 = vmatprep.subr.bf16.mxu1 %v1398_v45  ;;  %v1481_v45 = vld [vmem:[%s2041_s1 + $0x380] ss:$8 sps:$4 sm:$0xff]  }
  0x2f   :  { %947 = vmatpush1.bf16.msra.mxu0 %v1400_v49  ;;  %v1487_v49 = vld [vmem:[%s2041_s1 + $0x390] ss:$8 sps:$4 sm:$0xff]  }
  0x30   :  { %988 = vmatpush1.bf16.msra.mxu1 %v1401_v50  ;;  %948 = vmatprep.subr.bf16.mxu0 %v1402_v52  ;;  %v1492_v50 = vld [vmem:[%s2041_s1 + $0x2a4] ss:$8 sps:$4 sm:$0xff]   ;;  %v1490_v52 = vld [vmem:[%s2041_s1 + $0x2a0] ss:$8 sps:$4 sm:$0xff]  }
  0x31   :  { %989 = vmatprep.subr.bf16.mxu1 %v1404_v53  ;;  %v1493_v53 = vld [vmem:[%s2041_s1 + $0x3a0] ss:$8 sps:$4 sm:$0xff]  }
  0x33   :  { %949 = vmatpush1.bf16.msra.mxu0 %v1406_v54  ;;  %v1498_v54 = vld [vmem:[%s2041_s1 + $0x2b4] ss:$8 sps:$4 sm:$0xff]  }
  0x34   :  { %990 = vmatpush1.bf16.msra.mxu1 %v1407_v55  ;;  %950 = vmatprep.subr.bf16.mxu0 %v1408_v56  ;;  %v1501_v55 = vld [vmem:[%s2041_s1 + $0x3b4] ss:$8 sps:$4 sm:$0xff]   ;;  %v1496_v56 = vld [vmem:[%s2041_s1 + $0x2b0] ss:$8 sps:$4 sm:$0xff]  }
  0x35   :  { %991 = vmatprep.subr.bf16.mxu1 %v1410_v57  ;;  %v1499_v57 = vld [vmem:[%s2041_s1 + $0x3b0] ss:$8 sps:$4 sm:$0xff]  }
  0x37   :  { %951 = vmatpush1.bf16.msra.mxu0 %v1412_v58  ;;  %v1504_v58 = vld [vmem:[%s2041_s1 + $0x2c4] ss:$8 sps:$4 sm:$0xff]  }
  0x38   :  { %992 = vmatpush1.bf16.msra.mxu1 %v1413_v59  ;;  %952 = vmatprep.subr.bf16.mxu0 %v1414_v60  ;;  %v1507_v59 = vld [vmem:[%s2041_s1 + $0x3c4] ss:$8 sps:$4 sm:$0xff]   ;;  %v1502_v60 = vld [vmem:[%s2041_s1 + $0x2c0] ss:$8 sps:$4 sm:$0xff]  }
  0x39   :  { %993 = vmatprep.subr.bf16.mxu1 %v1416_v61  ;;  %v1505_v61 = vld [vmem:[%s2041_s1 + $0x3c0] ss:$8 sps:$4 sm:$0xff]  }
  0x3b   :  { %953 = vmatpush1.bf16.msra.mxu0 %v1418_v62  ;;  %v1510_v62 = vld [vmem:[%s2041_s1 + $0x2d4] ss:$8 sps:$4 sm:$0xff]  }
  0x3c   :  { %994 = vmatpush1.bf16.msra.mxu1 %v1419_v63  ;;  %954 = vmatprep.subr.bf16.mxu0 %v1420_v0  ;;  %v1513_v63 = vld [vmem:[%s2041_s1 + $0x3d4] ss:$8 sps:$4 sm:$0xff]   ;;  %v1508_v0 = vld [vmem:[%s2041_s1 + $0x2d0] ss:$8 sps:$4 sm:$0xff]  }
  0x3d   :  { %995 = vmatprep.subr.bf16.mxu1 %v1422_v1  ;;  %v1511_v1 = vld [vmem:[%s2041_s1 + $0x3d0] ss:$8 sps:$4 sm:$0xff]  }
  0x3f   :  { %955 = vmatpush1.bf16.msra.mxu0 %v1424_v2  ;;  %v1516_v2 = vld [vmem:[%s2041_s1 + $0x2e4] ss:$8 sps:$4 sm:$0xff]  }
  0x40   :  { %996 = vmatpush1.bf16.msra.mxu1 %v1425_v3  ;;  %1006 = vmatprep.subr.bf16.mxu0 %v1432_v4  ;;  %v1519_v3 = vld [vmem:[%s2041_s1 + $0x3e4] ss:$8 sps:$4 sm:$0xff]   ;;  %v1514_v4 = vld [vmem:[%s2041_s1 + $0x2e0] ss:$8 sps:$4 sm:$0xff]  }
  0x41   :  { %1047 = vmatprep.subr.bf16.mxu1 %v1435_v5  ;;  %v1517_v5 = vld [vmem:[%s2041_s1 + $0x3e0] ss:$8 sps:$4 sm:$0xff]  }
  0x42   :  { %957 = vmatmul.mubr.bf16.vlgmr.msra.gmra.mrb[0].mxu0 %v1174_v6  ;;  %v1522_v6 = vld [vmem:[%s2041_s1 + $0x2f4] ss:$8 sps:$4 sm:$0xff]  }
  0x43   :  { %998 = vmatmul.mubr.bf16.vlgmr.msra.gmra.mrb[0].mxu1 %v1176_v7  ;;  %1007 = vmatpush1.bf16.msra.mxu0 %v1430_v8  ;;  %v1525_v7 = vld [vmem:[%s2041_s1 + $0x3f4] ss:$8 sps:$4 sm:$0xff]   ;;  %v1520_v8 = vld [vmem:[%s2041_s1 + $0x2f0] ss:$8 sps:$4 sm:$0xff]  }
  0x44   :  { %1048 = vmatpush1.bf16.msra.mxu1 %v1433_v9  ;;  %1008 = vmatprep.subr.bf16.mxu0 %v1438_v10  ;;  %v1523_v9 = vld [vmem:[%s2041_s1 + $0x3f0] ss:$8 sps:$4 sm:$0xff]   ;;  %v1530_v10 = vld [vmem:[%s2041_s1 + $0x404] ss:$8 sps:$4 sm:$0xff]  }
  0x45   :  { %1049 = vmatprep.subr.bf16.mxu1 %v1441_v11  ;;  %1038 = vmatprep.mubr.bf16.mxu0 %v1179_v35  ;;  %v1178_v11 = vcombine.low %v1855_v32, %v1855_v32 }
  0x46   :  { %1079 = vmatprep.mubr.bf16.mxu1 %v1181_v38 }
  0x47   :  { %1009 = vmatpush1.bf16.msra.mxu0 %v1436_v12  ;;  %v1180_v12 = vcombine.low %v1868_v36, %v1868_v36 }
  0x48   :  { %1050 = vmatpush1.bf16.msra.mxu1 %v1439_v13  ;;  %1010 = vmatprep.subr.bf16.mxu0 %v1444_v14  ;;  %v1528_v13 = vld [vmem:[%s2041_s1 + $0x400] ss:$8 sps:$4 sm:$0xff]   ;;  %v1535_v14 = vld [vmem:[%s2041_s1 + $0x414] ss:$8 sps:$4 sm:$0xff]  }
  0x49   :  { %1051 = vmatprep.subr.bf16.mxu1 %v1447_v15  ;;  %v1533_v15 = vld [vmem:[%s2041_s1 + $0x410] ss:$8 sps:$4 sm:$0xff]  }
  0x4b   :  { %1011 = vmatpush1.bf16.msra.mxu0 %v1442_v16  ;;  %v1555_v16 = vmov 0  }
  0x4c   :  { %1052 = vmatpush1.bf16.msra.mxu1 %v1445_v17  ;;  %1012 = vmatprep.subr.bf16.mxu0 %v1450_v18  ;;  %v1538_v17 = vld [vmem:[%s2041_s1 + $0x424] ss:$8 sps:$4 sm:$0xff]   ;;  %v1536_v18 = vld [vmem:[%s2041_s1 + $0x420] ss:$8 sps:$4 sm:$0xff]  }
  0x4d   :  { %1053 = vmatprep.subr.bf16.mxu1 %v1453_v19  ;;  %v1541_v19 = vld [vmem:[%s2041_s1 + $0x434] ss:$8 sps:$4 sm:$0xff]  }
  0x4f   :  { %1013 = vmatpush1.bf16.msra.mxu0 %v1448_v20  ;;  %v1539_v20 = vld [vmem:[%s2041_s1 + $0x430] ss:$8 sps:$4 sm:$0xff]  }
  0x50   :  { %1054 = vmatpush1.bf16.msra.mxu1 %v1451_v21  ;;  %1014 = vmatprep.subr.bf16.mxu0 %v1456_v22  ;;  %v1544_v21 = vld [vmem:[%s2041_s1 + $0x444] ss:$8 sps:$4 sm:$0xff]   ;;  %v1542_v22 = vld [vmem:[%s2041_s1 + $0x440] ss:$8 sps:$4 sm:$0xff]  }
  0x51   :  { %1055 = vmatprep.subr.bf16.mxu1 %v1459_v23  ;;  %v1547_v23 = vld [vmem:[%s2041_s1 + $0x454] ss:$8 sps:$4 sm:$0xff]  }
  0x53   :  { %1015 = vmatpush1.bf16.msra.mxu0 %v1454_v24  ;;  %v1545_v24 = vld [vmem:[%s2041_s1 + $0x450] ss:$8 sps:$4 sm:$0xff]  }
  0x54   :  { %1056 = vmatpush1.bf16.msra.mxu1 %v1457_v25  ;;  %1016 = vmatprep.subr.bf16.mxu0 %v1462_v26  ;;  %v1550_v25 = vld [vmem:[%s2041_s1 + $0x464] ss:$8 sps:$4 sm:$0xff]   ;;  %v1548_v26 = vld [vmem:[%s2041_s1 + $0x460] ss:$8 sps:$4 sm:$0xff]  }
  0x55   :  { %1057 = vmatprep.subr.bf16.mxu1 %v1465_v27  ;;  %v1553_v27 = vld [vmem:[%s2041_s1 + $0x474] ss:$8 sps:$4 sm:$0xff]  }
  0x57   :  { %1017 = vmatpush1.bf16.msra.mxu0 %v1460_v28  ;;  %v1551_v28 = vld [vmem:[%s2041_s1 + $0x470] ss:$8 sps:$4 sm:$0xff]  }
  0x58   :  { %1058 = vmatpush1.bf16.msra.mxu1 %v1463_v29  ;;  %1018 = vmatprep.subr.bf16.mxu0 %v1468_v30  ;;  %v1554_v29 = vld [vmem:[%s2042_s0 + $0x20] ss:$0 sps:$4 sm:$0xff]  }
  0x59   :  { %1059 = vmatprep.subr.bf16.mxu1 %v1471_v31 }
  0x5b   :  { %1019 = vmatpush1.bf16.msra.mxu0 %v1466_v33 }
  0x5c   :  { %1060 = vmatpush1.bf16.msra.mxu1 %v1469_v34  ;;  %1020 = vmatprep.subr.bf16.mxu0 %v1474_v37 }
  0x5d   :  { %1061 = vmatprep.subr.bf16.mxu1 %v1477_v39 }
  0x5f   :  { %1021 = vmatpush1.bf16.msra.mxu0 %v1472_v40 }
  0x60   :  { %1062 = vmatpush1.bf16.msra.mxu1 %v1475_v41  ;;  %1022 = vmatprep.subr.bf16.mxu0 %v1480_v42 }
  0x61   :  { %1063 = vmatprep.subr.bf16.mxu1 %v1483_v43 }
  0x63   :  { %1023 = vmatpush1.bf16.msra.mxu0 %v1478_v44 }
  0x64   :  { %1064 = vmatpush1.bf16.msra.mxu1 %v1481_v45  ;;  %1024 = vmatprep.subr.bf16.mxu0 %v1486_v46 }
  0x65   :  { %1065 = vmatprep.subr.bf16.mxu1 %v1489_v47 }
  0x67   :  { %1025 = vmatpush1.bf16.msra.mxu0 %v1484_v48 }
  0x68   :  { %1066 = vmatpush1.bf16.msra.mxu1 %v1487_v49  ;;  %1026 = vmatprep.subr.bf16.mxu0 %v1492_v50 }
  0x69   :  { %1067 = vmatprep.subr.bf16.mxu1 %v1495_v51 }
  0x6b   :  { %1027 = vmatpush1.bf16.msra.mxu0 %v1490_v52  ;;  %v1140_v52 = vlaneseq }
  0x6c   :  { %1068 = vmatpush1.bf16.msra.mxu1 %v1493_v53  ;;  %1028 = vmatprep.subr.bf16.mxu0 %v1498_v54 }
  0x6d   :  { %1069 = vmatprep.subr.bf16.mxu1 %v1501_v55  ;;  %v1141_v53 = vshrl.u32 %v1140_v52, 7  ;;  %v1138_v55 = vld [vmem:[%s2043_s2] sm:$0x3] }
  0x6f   :  { %1029 = vmatpush1.bf16.msra.mxu0 %v1496_v56  ;;  %v1142_v54 = vsub.s32 0, %v1141_v53  ;;  %v1146_v56 = vsub.s32 1, %v1141_v53 }
  0x70   :  { %1070 = vmatpush1.bf16.msra.mxu1 %v1499_v57  ;;  %1030 = vmatprep.subr.bf16.mxu0 %v1504_v58 }
  0x71   :  { %1071 = vmatprep.subr.bf16.mxu1 %v1507_v59  ;;  %v1143_v57 = vrot.slane %v1138_v55, %v1142_v54  ;;  %v1147_v59 = vrot.slane %v1138_v55, %v1146_v56 }
  0x73   :  { %1031 = vmatpush1.bf16.msra.mxu0 %v1502_v60 }
  0x74   :  { %1072 = vmatpush1.bf16.msra.mxu1 %v1505_v61  ;;  %1032 = vmatprep.subr.bf16.mxu0 %v1510_v62 }
  0x75   :  { %1073 = vmatprep.subr.bf16.mxu1 %v1513_v63 }
  0x77   :  { %1033 = vmatpush1.bf16.msra.mxu0 %v1508_v0 }
  0x78   :  { %1074 = vmatpush1.bf16.msra.mxu1 %v1511_v1  ;;  %1034 = vmatprep.subr.bf16.mxu0 %v1516_v2 }
  0x79   :  { %1075 = vmatprep.subr.bf16.mxu1 %v1519_v3 }
  0x7b   :  { %1035 = vmatpush1.bf16.msra.mxu0 %v1514_v4 }
  0x7c   :  { %1076 = vmatpush1.bf16.msra.mxu1 %v1517_v5  ;;  %1036 = vmatprep.subr.bf16.mxu0 %v1522_v6 }
  0x7d   :  { %1077 = vmatprep.subr.bf16.mxu1 %v1525_v7 }
  0x7f   :  { %1037 = vmatpush1.bf16.msra.mxu0 %v1520_v8 }
  0x80   :  { %1078 = vmatpush1.bf16.msra.mxu1 %v1523_v9  ;;  %1088 = vmatprep.subr.bf16.mxu0 %v1530_v10 }
  0x82   :  { %1039 = vmatmul.mubr.bf16.vlgmr.msra.gmra.mrb[4].mxu0 %v1178_v11 }
  0x83   :  { %1080 = vmatmul.mubr.bf16.vlgmr.msra.gmra.mrb[4].mxu1 %v1180_v12  ;;  %1089 = vmatpush1.bf16.msra.mxu0 %v1528_v13 }
  0x84   :  { %1120 = vmatprep.mubr.bf16.mxu0 %v1555_v16  ;;  %1090 = vmatprep.subr.bf16.mxu0 %v1535_v14 }
  0x87   :  { %1091 = vmatpush1.bf16.msra.mxu0 %v1533_v15 }
  0x88   :  { %1092 = vmatprep.subr.bf16.mxu0 %v1538_v17 }
  0x8b   :  { %1093 = vmatpush1.bf16.msra.mxu0 %v1536_v18 }
  0x8c   :  { %1094 = vmatprep.subr.bf16.mxu0 %v1541_v19 }
  0x8f   :  { %1095 = vmatpush1.bf16.msra.mxu0 %v1539_v20 }
  0x90   :  { %1096 = vmatprep.subr.bf16.mxu0 %v1544_v21 }
  0x93   :  { %1097 = vmatpush1.bf16.msra.mxu0 %v1542_v22 }
  0x94   :  { %1098 = vmatprep.subr.bf16.mxu0 %v1547_v23 }
  0x97   :  { %1099 = vmatpush1.bf16.msra.mxu0 %v1545_v24 }
  0x98   :  { %1100 = vmatprep.subr.bf16.mxu0 %v1550_v25 }
  0x9b   :  { %1101 = vmatpush1.bf16.msra.mxu0 %v1548_v26 }
  0x9c   :  { %1102 = vmatprep.subr.bf16.mxu0 %v1553_v27 }
  0x9f   :  { %1103 = vmatpush1.bf16.msra.mxu0 %v1551_v28 }
  0xa2   :  { %1121 = vmatmul.mubr.bf16.vlgmr.msra.gmra.mrb[8].mxu0 %v1554_v29 }
 0x115   :  { %v958_v30 = vpop.f32.mrb[0].mxu0 }
 0x116   :  { %v999_v31 = vpop.f32.mrb[0].mxu1  ;;  %v960_v33 = vpop.f32.mrb[1].mxu0 }
 0x117   :  { %v1000_v32 = vadd.f32 %v999_v31, %v958_v30  ;;  %v1001_v34 = vpop.f32.mrb[1].mxu1  ;;  %v962_v36 = vpop.f32.mrb[2].mxu0 }
 0x118   :  { %v1002_v35 = vadd.f32 %v1001_v34, %v960_v33  ;;  %v1003_v37 = vpop.f32.mrb[2].mxu1  ;;  %v963_v38 = vpop.f32.mrb[3].mxu0 }
 0x119   :  { %v1004_v39 = vpop.f32.mrb[3].mxu1 }
 0x155   :  { %v1040_v40 = vpop.f32.mrb[4].mxu0 }
 0x156   :  { %v1081_v41 = vpop.f32.mrb[4].mxu1  ;;  %v1041_v42 = vadd.f32 %v1040_v40, %v1000_v32  ;;  %v1042_v43 = vpop.f32.mrb[5].mxu0 }
 0x157   :  { %v1083_v44 = vpop.f32.mrb[5].mxu1  ;;  %v1043_v45 = vadd.f32 %v1042_v43, %v1002_v35  ;;  %v1044_v46 = vpop.f32.mrb[6].mxu0 }
 0x158   :  { %v1085_v47 = vpop.f32.mrb[6].mxu1  ;;  %v1082_v48 = vadd.f32 %v1081_v41, %v1041_v42  ;;  %v1045_v49 = vpop.f32.mrb[7].mxu0 }
 0x159   :  { %v1086_v50 = vpop.f32.mrb[7].mxu1  ;;  %v1084_v51 = vadd.f32 %v1083_v44, %v1043_v45 }
 0x175   :  { %v1122_v58 = vpop.f32.mrb[8].mxu0 }
 0x176   :  { %v1123_v60 = vadd.f32 %v1122_v58, %v1082_v48  ;;  %v1124_v61 = vpop.f32.mrb[9].mxu0 }
 0x177   :  { %v1125_v62 = vadd.f32 %v1124_v61, %v1084_v51  ;;  %v1126_v63 = vpop.f32.mrb[10].mxu0 }
 0x178   :  { %v1150_v0 = vadd.f32 %v1143_v57, %v1123_v60  ;;  %v1127_v1 = vpop.f32.mrb[11].mxu0 }
 0x179   :  { %v1151_v2 = vadd.f32 %v1147_v59, %v1125_v62 }
 0x17a   :  { %v1157_v3 = vmax.f32 %v1150_v0, 0.0 }
 0x17c   :  { %v1328_v4 = vpack.c.bf16 %v1151_v2, %v1157_v3 }
 0x17e   :  { %1169 = vst [vmem:[%s2044_s3] sm:$0xff] %v1328_v4 }

// kernel: _lambda_.29
= control target key start
LH: loop header
LB: loop body
LE: loop exit
PB: predicated region body
PF: predicated region fallthrough
CT: control target
= control target key end

     0   :  { %s1854_s12 = smov 0   ;;  %s2201_s0 = inlined_call_operand.vmem [shape: bf16[2,20,128], index: 0, kind: input, shape index: {}]   ;;  %s2202_s1 = inlined_call_operand.vmem [shape: bf16[9,128,128], index: 1, kind: input, shape index: {}]   ;;  %s2203_s2 = inlined_call_operand.vmem [shape: f32[1,128], index: 2, kind: input, shape index: {}]   ;;  %s2204_s3 = inlined_call_operand.vmem [shape: bf16[2,8,128], index: 3, kind: output, shape index: {}]  }
   0x1 LB: > { %s1256_s13 = sadd.s32 4294967295, %s1830_s12   ;;  %p1260_p0 = scmp.ge.s32.totalorder %s1830_s12, 1  ;;  %s1830_s12 = sphi %s1854_s12, %s13_s12  }
   0x2   : > { %p137_p1 = scmp.lt.s32.totalorder %s1830_s12, 3 }
   0x4   : > { %p138_p2 = pnand %p1260_p0, %p137_p1 }
   0x5   : > { %v1745_v0 = vld [vmem:[%s2202_s1 + $0x40] sm:$0xff] (!%p138_p2)   ;;  %v1832_v1 = vmov (!%p138_p2), 0.0   ;;  %v1747_v3 = vld [vmem:[%s2202_s1 + $0x48] sm:$0xff] (!%p138_p2)   ;;  %vm1833_vm0 = vmmov (!%p138_p2), 0   ;;  %p160_p3 = scmp.lt.s32.totalorder (!%p138_p2), %s1256_s13, 1  ;;  %v1749_v5 = vld [vmem:[%s2202_s1 + $0x50] sm:$0xff] (!%p138_p2)  }
   0x6   : > { %141 = sbr.rel (%p138_p2) target bundleno = 387 (0x183), region = 32  ;;  %1554 = vmatprep.subr.bf16.mxu0 (!%p138_p2), %v1832_v1  ;;  %1574 = vmatprep.subr.bf16.mxu1 (!%p138_p2), %v1832_v1  ;;  %v1746_v2 = vld [vmem:[%s2202_s1] sm:$0xff] (!%p138_p2)   ;;  %v1748_v4 = vld [vmem:[%s2202_s1 + $0x8] sm:$0xff] (!%p138_p2)   ;;  %v1750_v6 = vld [vmem:[%s2202_s1 + $0x10] sm:$0xff] (!%p138_p2)  }
   0x7   : > { %1555 = vmatpush3.bf16.msra.mxu0 (!%p138_p2), %v1745_v0  ;;  %1570 = vmatprep.mubr.msk.bf16.mxu0 (!%p138_p2), %vm1833_vm0, %v1832_v1  ;;  %v1751_v7 = vld [vmem:[%s2202_s1 + $0x58] sm:$0xff] (!%p138_p2)   ;;  %v1753_v9 = vld [vmem:[%s2202_s1 + $0x60] sm:$0xff] (!%p138_p2)   ;;  %v1755_v14 = vld [vmem:[%s2202_s1 + $0x68] sm:$0xff] (!%p138_p2)  }
   0x8   : > { %1575 = vmatpush3.bf16.msra.mxu1 (!%p138_p2), %v1746_v2  ;;  %1556 = vmatprep.subr.bf16.mxu0 (!%p138_p2), %v1832_v1  ;;  %v1752_v8 = vld [vmem:[%s2202_s1 + $0x18] sm:$0xff] (!%p138_p2)   ;;  %v1754_v10 = vld [vmem:[%s2202_s1 + $0x20] sm:$0xff] (!%p138_p2)   ;;  %v1756_v15 = vld [vmem:[%s2202_s1 + $0x28] sm:$0xff] (!%p138_p2)  }
   0x9   : > { %1576 = vmatprep.subr.bf16.mxu1 (!%p138_p2), %v1832_v1  ;;  %1590 = vmatprep.mubr.msk.bf16.mxu1 (!%p138_p2), %vm1833_vm0, %v1832_v1  ;;  %v1757_v17 = vld [vmem:[%s2202_s1 + $0x70] sm:$0xff] (!%p138_p2)   ;;  %v1759_v21 = vld [vmem:[%s2202_s1 + $0x78] sm:$0xff] (!%p138_p2)   ;;  %v1762_v24 = vld [vmem:[%s2202_s1 + $0x80] sm:$0xff] (!%p138_p2)  }
   0xa   : > { %v1758_v18 = vld [vmem:[%s2202_s1 + $0x30] sm:$0xff] (!%p138_p2)   ;;  %v1760_v22 = vld [vmem:[%s2202_s1 + $0x38] sm:$0xff] (!%p138_p2)   ;;  %v1763_v25 = vld [vmem:[%s2202_s1 + $0xc0] sm:$0xff] (!%p138_p2)  }
   0xb   : > { %1557 = vmatpush3.bf16.msra.mxu0 (!%p138_p2), %v1747_v3  ;;  %v1764_v26 = vld [vmem:[%s2202_s1 + $0x88] sm:$0xff] (!%p138_p2)   ;;  %v1766_v28 = vld [vmem:[%s2202_s1 + $0x90] sm:$0xff] (!%p138_p2)   ;;  %v1768_v30 = vld [vmem:[%s2202_s1 + $0x98] sm:$0xff] (!%p138_p2)  }
   0xc   : > { %1577 = vmatpush3.bf16.msra.mxu1 (!%p138_p2), %v1748_v4  ;;  %1558 = vmatprep.subr.bf16.mxu0 (!%p138_p2), %v1832_v1  ;;  %v1765_v27 = vld [vmem:[%s2202_s1 + $0xc8] sm:$0xff] (!%p138_p2)   ;;  %v1767_v29 = vld [vmem:[%s2202_s1 + $0xd0] sm:$0xff] (!%p138_p2)   ;;  %v1769_v31 = vld [vmem:[%s2202_s1 + $0xd8] sm:$0xff] (!%p138_p2)  }
   0xd   : > { %s2206_s13 = smov (!%p160_p3, %s1256_s13), 1  ;;  %1578 = vmatprep.subr.bf16.mxu1 %v1832_v1  ;;  %v1770_v32 = vld [vmem:[%s2202_s1 + $0xa0] sm:$0xff]   ;;  %v1772_v34 = vld [vmem:[%s2202_s1 + $0xa8] sm:$0xff]   ;;  %v1774_v36 = vld [vmem:[%s2202_s1 + $0xb0] sm:$0xff]  }
   0xe   : > { %s1734_s26 = smul.u32 12, %s2206_s13  ;;  %v1771_v33 = vld [vmem:[%s2202_s1 + $0xe0] sm:$0xff]   ;;  %v1773_v35 = vld [vmem:[%s2202_s1 + $0xe8] sm:$0xff]   ;;  %v1775_v37 = vld [vmem:[%s2202_s1 + $0xf0] sm:$0xff]   ;;  %s1262_s18 = sshll.u32 %s2206_s13, 2 }
   0xf   : > { %1559 = vmatpush3.bf16.msra.mxu0 %v1749_v5  ;;  %v1776_v42 = vld [vmem:[%s2202_s1 + $0xb8] sm:$0xff]   ;;  %v1779_v46 = vld [vmem:[%s2202_s1 + $0x100] sm:$0xff]   ;;  %v1783_v49 = vld [vmem:[%s2202_s1 + $0x108] sm:$0xff]   ;;  %s168_s21 = scalar_lea.vmem %s2204_s3, %s1262_s18 }
  0x10   : > { %1579 = vmatpush3.bf16.msra.mxu1 %v1750_v6  ;;  %1560 = vmatprep.subr.bf16.mxu0 %v1832_v1  ;;  %s1904_s6 = scalar_lea.vmem %s2201_s0, %s1734_s26  ;;  %v1777_v44 = vld [vmem:[%s2202_s1 + $0xf8] sm:$0xff]   ;;  %v1782_v48 = vld [vmem:[%s2202_s1 + $0x140] sm:$0xff]   ;;  %v1784_v50 = vld [vmem:[%s2202_s1 + $0x148] sm:$0xff]  }
  0x11   : > { %1580 = vmatprep.subr.bf16.mxu1 %v1832_v1  ;;  %v170_v11 = vld [vmem:[%s1904_s6] sm:$0xf]  ;;  %v1916_v12 = vld [vmem:[%s1904_s6 + $0x4] sm:$0x1]  ;;  %v1785_v51 = vld [vmem:[%s2202_s1 + $0x110] sm:$0xff]  }
  0x12   : > { %v1279_v13 = vcombine.low %v170_v11, %v1916_v12  ;;  %v394_v38 = vld [vmem:[%s1904_s6] sm:$0xe]  ;;  %v507_v40 = vld [vmem:[%s1904_s6 + $0x4] sm:$0x3]  ;;  %v1786_v52 = vld [vmem:[%s2202_s1 + $0x150] sm:$0xff]  }
  0x13   : > { %1561 = vmatpush3.bf16.msra.mxu0 %v1751_v7  ;;  %v506_v39 = vld [vmem:[%s1904_s6] sm:$0xc]  ;;  %v1312_v41 = vcombine.low %v394_v38, %v1916_v12  ;;  %v1787_v53 = vld [vmem:[%s2202_s1 + $0x118] sm:$0xff]   ;;  %v621_v55 = vld [vmem:[%s1904_s6 + $0x4] sm:$0x7] }
  0x14   : > { %1581 = vmatpush3.bf16.msra.mxu1 %v1752_v8  ;;  %1562 = vmatprep.subr.bf16.mxu0 %v1832_v1  ;;  %v213_v16 = vshll.u32 %v1279_v13, 16  ;;  %v211_v19 = vshrl.u32 %v1279_v13, 16  ;;  %v1337_v43 = vcombine.low %v506_v39, %v507_v40  ;;  %v1788_v54 = vld [vmem:[%s2202_s1 + $0x158] sm:$0xff]   ;;  %v1789_v56 = vld [vmem:[%s2202_s1 + $0x120] sm:$0xff]   ;;  %v1362_v58 = vcombine.low %v506_v39, %v621_v55  ;;  %v1791_v59 = vld [vmem:[%s2202_s1 + $0x128] sm:$0xff]  }
  0x15   : > { %1582 = vmatprep.subr.bf16.mxu1 %v1832_v1  ;;  %v415_v45 = vrot.slane %v1312_v41, 1  ;;  %v1790_v57 = vld [vmem:[%s2202_s1 + $0x160] sm:$0xff]   ;;  %v1792_v60 = vld [vmem:[%s2202_s1 + $0x168] sm:$0xff]   ;;  %v1793_v63 = vld [vmem:[%s2202_s1 + $0x130] sm:$0xff]  }
  0x16   : > { %v215_v20 = vrot.slane %v213_v16, 1  ;;  %v530_v47 = vrot.slane %v1337_v43, 2  ;;  %v643_v61 = vshrl.u32 %v1362_v58, 16  ;;  %v646_v62 = vshll.u32 %v1362_v58, 16  ;;  %v1794_v0 = vld [vmem:[%s2202_s1 + $0x170] sm:$0xff]   ;;  %v1795_v5 = vld [vmem:[%s2202_s1 + $0x138] sm:$0xff]  }
  0x17   : > { %1563 = vmatpush3.bf16.msra.mxu0 %v1753_v9  ;;  %v740_v2 = vld [vmem:[%s1904_s6] sm:$0x8]  ;;  %v1796_v7 = vld [vmem:[%s2202_s1 + $0x178] sm:$0xff]   ;;  %v1800_v12 = vld [vmem:[%s2202_s1 + $0x188] sm:$0xff]  }
  0x18   : > { %1583 = vmatpush3.bf16.msra.mxu1 %v1754_v10  ;;  %1564 = vmatprep.subr.bf16.mxu0 %v1832_v1  ;;  %v216_v23 = vor.u32 %v215_v20, %v211_v19  ;;  %v645_v3 = vrot.slane %v643_v61, 2  ;;  %v648_v4 = vrot.slane %v646_v62, 3  ;;  %v1387_v6 = vcombine.low %v740_v2, %v621_v55  ;;  %v1797_v9 = vld [vmem:[%s2202_s1 + $0x180] sm:$0xff]   ;;  %v1801_v13 = vld [vmem:[%s2202_s1 + $0x1c8] sm:$0xff]   ;;  %v1804_v16 = vld [vmem:[%s2202_s1 + $0x198] sm:$0xff]  }
  0x19   : > { %1584 = vmatprep.subr.bf16.mxu1 %v1832_v1  ;;  %v1807_v19 = vld [vmem:[%s2202_s1 + $0x1e0] sm:$0xff]   ;;  %v1820_v39 = vld [vmem:[%s2202_s1 + $0x228] sm:$0xff]   ;;  %v1821_v40 = vld [vmem:[%s2202_s1 + $0x230] sm:$0xff]  }
  0x1a   : > { %v649_v8 = vor.u32 %v648_v4, %v645_v3  ;;  %v761_v10 = vrot.slane %v1387_v6, 3  ;;  %v959_v20 = vld [vmem:[%s1904_s6 + $0x4] sm:$0xf]  ;;  %v1822_v43 = vld [vmem:[%s2202_s1 + $0x238] sm:$0xff]  }
  0x1b   : > { %1565 = vmatpush3.bf16.msra.mxu0 %v1755_v14  ;;  %v1802_v14 = vld [vmem:[%s2202_s1 + $0x190] sm:$0xff]   ;;  %v1819_v38 = vld [vmem:[%s2202_s1 + $0x220] sm:$0xff]  }
  0x1c   : > { %1585 = vmatpush3.bf16.msra.mxu1 %v1756_v15  ;;  %1566 = vmatprep.subr.bf16.mxu0 %v1832_v1  ;;  %v1803_v15 = vld [vmem:[%s2202_s1 + $0x1d0] sm:$0xff]   ;;  %v1080_v41 = vld [vmem:[%s1904_s6 + $0x4] sm:$0xe] }
  0x1d   : > { %1586 = vmatprep.subr.bf16.mxu1 %v1832_v1 }
  0x1f   : > { %1567 = vmatpush3.bf16.msra.mxu0 %v1757_v17  ;;  %v1805_v17 = vld [vmem:[%s2202_s1 + $0x1d8] sm:$0xff]  }
  0x20   : > { %1587 = vmatpush3.bf16.msra.mxu1 %v1758_v18  ;;  %1568 = vmatprep.subr.bf16.mxu0 %v1832_v1  ;;  %v1806_v18 = vld [vmem:[%s2202_s1 + $0x1a0] sm:$0xff]  }
  0x21   : > { %1588 = vmatprep.subr.bf16.mxu1 %v1832_v1 }
  0x23   : > { %1569 = vmatpush3.bf16.msra.mxu0 %v1759_v21  ;;  %v960_v21 = vld [vmem:[%s1904_s6 + $0x8] sm:$0x1] }
  0x24   : > { %1589 = vmatpush3.bf16.msra.mxu1 %v1760_v22  ;;  %1594 = vmatprep.subr.bf16.mxu0 %v1832_v1  ;;  %v1808_v22 = vld [vmem:[%s2202_s1 + $0x1a8] sm:$0xff]  }
  0x25   : > { %1614 = vmatprep.subr.bf16.mxu1 %v1832_v1 }
  0x26   : > { %1571 = vmatmul.mubr.bf16.vlgmr.msra.gmra.mrb[0].mxu0 %v216_v23  ;;  %v1436_v23 = vcombine.low %v959_v20, %v960_v21 }
  0x27   : > { %1591 = vmatmul.mubr.bf16.vlgmr.msra.gmra.mrb[0].mxu1 %v170_v11  ;;  %1595 = vmatpush3.bf16.msra.mxu0 %v1762_v24  ;;  %v1799_v11 = vld [vmem:[%s2202_s1 + $0x1c0] sm:$0xff]   ;;  %v1809_v24 = vld [vmem:[%s2202_s1 + $0x1e8] sm:$0xff]  }
  0x28   : > { %1615 = vmatpush3.bf16.msra.mxu1 %v1763_v25  ;;  %1596 = vmatprep.subr.bf16.mxu0 %v1832_v1  ;;  %v1810_v25 = vld [vmem:[%s2202_s1 + $0x1b0] sm:$0xff]  }
  0x29   : > { %1616 = vmatprep.subr.bf16.mxu1 %v1832_v1  ;;  %1610 = vmatprep.mubr.msk.bf16.mxu0 %vm1833_vm0, %v1832_v1 }
  0x2a   : > { %1630 = vmatprep.mubr.msk.bf16.mxu1 %vm1833_vm0, %v1832_v1 }
  0x2b   : > { %1597 = vmatpush3.bf16.msra.mxu0 %v1764_v26  ;;  %v986_v26 = vshll.u32 %v1436_v23, 16 }
  0x2c   : > { %1617 = vmatpush3.bf16.msra.mxu1 %v1765_v27  ;;  %1598 = vmatprep.subr.bf16.mxu0 %v1832_v1  ;;  %v1811_v27 = vld [vmem:[%s2202_s1 + $0x1f0] sm:$0xff]  }
  0x2d   : > { %1618 = vmatprep.subr.bf16.mxu1 %v1832_v1 }
  0x2f   : > { %1599 = vmatpush3.bf16.msra.mxu0 %v1766_v28  ;;  %v1812_v28 = vld [vmem:[%s2202_s1 + $0x1b8] sm:$0xff]  }
  0x30   : > { %1619 = vmatpush3.bf16.msra.mxu1 %v1767_v29  ;;  %1600 = vmatprep.subr.bf16.mxu0 %v1832_v1  ;;  %v984_v29 = vshrl.u32 %v1436_v23, 16 }
  0x31   : > { %1620 = vmatprep.subr.bf16.mxu1 %v1832_v1 }
  0x33   : > { %1601 = vmatpush3.bf16.msra.mxu0 %v1768_v30  ;;  %v988_v30 = vrot.slane %v986_v26, 1 }
  0x34   : > { %1621 = vmatpush3.bf16.msra.mxu1 %v1769_v31  ;;  %1602 = vmatprep.subr.bf16.mxu0 %v1832_v1  ;;  %v1813_v31 = vld [vmem:[%s2202_s1 + $0x1f8] sm:$0xff]  }
  0x35   : > { %1622 = vmatprep.subr.bf16.mxu1 %v1832_v1 }
  0x37   : > { %1603 = vmatpush3.bf16.msra.mxu0 %v1770_v32  ;;  %v852_v32 = vld [vmem:[%s1904_s6 + $0x4] sm:$0xf] }
  0x38   : > { %1623 = vmatpush3.bf16.msra.mxu1 %v1771_v33  ;;  %1604 = vmatprep.subr.bf16.mxu0 %v1832_v1  ;;  %v1814_v33 = vld [vmem:[%s2202_s1 + $0x200] sm:$0xff]  }
  0x39   : > { %1624 = vmatprep.subr.bf16.mxu1 %v1832_v1 }
  0x3b   : > { %1605 = vmatpush3.bf16.msra.mxu0 %v1772_v34  ;;  %v989_v34 = vor.u32 %v988_v30, %v984_v29 }
  0x3c   : > { %1625 = vmatpush3.bf16.msra.mxu1 %v1773_v35  ;;  %1606 = vmatprep.subr.bf16.mxu0 %v1832_v1  ;;  %v1816_v35 = vld [vmem:[%s2202_s1 + $0x208] sm:$0xff]  }
  0x3d   : > { %1626 = vmatprep.subr.bf16.mxu1 %v1832_v1 }
  0x3f   : > { %1607 = vmatpush3.bf16.msra.mxu0 %v1774_v36  ;;  %v1817_v36 = vld [vmem:[%s2202_s1 + $0x210] sm:$0xff]  }
  0x40   : > { %1627 = vmatpush3.bf16.msra.mxu1 %v1775_v37  ;;  %1608 = vmatprep.subr.bf16.mxu0 %v1832_v1  ;;  %v1818_v37 = vld [vmem:[%s2202_s1 + $0x218] sm:$0xff]  }
  0x41   : > { %1628 = vmatprep.subr.bf16.mxu1 %v1832_v1 }
  0x43   : > { %1609 = vmatpush3.bf16.msra.mxu0 %v1776_v42  ;;  %v1461_v42 = vcombine.low %v1080_v41, %v960_v21  ;;  %v1470_v21 = vld [vmem:[%s2203_s2] ss:$0 sm:$0xff] }
  0x44   : > { %1629 = vmatpush3.bf16.msra.mxu1 %v1777_v44  ;;  %1634 = vmatprep.subr.bf16.mxu0 %v1832_v1 }
  0x45   : > { %1654 = vmatprep.subr.bf16.mxu1 %v1832_v1  ;;  %v1101_v44 = vrot.slane %v1461_v42, 1 }
  0x46   : > { %1611 = vmatmul.mubr.bf16.vlgmr.msra.gmra.mrb[4].mxu0 %v415_v45 }
  0x47   : > { %1635 = vmatpush3.bf16.msra.mxu0 %v1779_v46  ;;  %1631 = vmatmul.mubr.bf16.vlgmr.msra.gmra.mrb[4].mxu1 %v530_v47 }
  0x48   : > { %1655 = vmatpush3.bf16.msra.mxu1 %v1782_v48  ;;  %1636 = vmatprep.subr.bf16.mxu0 %v1832_v1 }
  0x49   : > { %1656 = vmatprep.subr.bf16.mxu1 %v1832_v1  ;;  %1650 = vmatprep.mubr.msk.bf16.mxu0 %vm1833_vm0, %v1832_v1 }
  0x4a   : > { %1670 = vmatprep.mubr.msk.bf16.mxu1 %vm1833_vm0, %v1832_v1 }
  0x4b   : > { %1637 = vmatpush3.bf16.msra.mxu0 %v1783_v49 }
  0x4c   : > { %1657 = vmatpush3.bf16.msra.mxu1 %v1784_v50  ;;  %1638 = vmatprep.subr.bf16.mxu0 %v1832_v1 }
  0x4d   : > { %1658 = vmatprep.subr.bf16.mxu1 %v1832_v1 }
  0x4f   : > { %1639 = vmatpush3.bf16.msra.mxu0 %v1785_v51 }
  0x50   : > { %1659 = vmatpush3.bf16.msra.mxu1 %v1786_v52  ;;  %1640 = vmatprep.subr.bf16.mxu0 %v1832_v1 }
  0x51   : > { %1660 = vmatprep.subr.bf16.mxu1 %v1832_v1 }
  0x53   : > { %1641 = vmatpush3.bf16.msra.mxu0 %v1787_v53 }
  0x54   : > { %1661 = vmatpush3.bf16.msra.mxu1 %v1788_v54  ;;  %1642 = vmatprep.subr.bf16.mxu0 %v1832_v1 }
  0x55   : > { %1662 = vmatprep.subr.bf16.mxu1 %v1832_v1 }
  0x57   : > { %1643 = vmatpush3.bf16.msra.mxu0 %v1789_v56 }
  0x58   : > { %1663 = vmatpush3.bf16.msra.mxu1 %v1790_v57  ;;  %1644 = vmatprep.subr.bf16.mxu0 %v1832_v1 }
  0x59   : > { %1664 = vmatprep.subr.bf16.mxu1 %v1832_v1 }
  0x5b   : > { %1645 = vmatpush3.bf16.msra.mxu0 %v1791_v59 }
  0x5c   : > { %1665 = vmatpush3.bf16.msra.mxu1 %v1792_v60  ;;  %1646 = vmatprep.subr.bf16.mxu0 %v1832_v1 }
  0x5d   : > { %1666 = vmatprep.subr.bf16.mxu1 %v1832_v1 }
  0x5f   : > { %1647 = vmatpush3.bf16.msra.mxu0 %v1793_v63 }
  0x60   : > { %1667 = vmatpush3.bf16.msra.mxu1 %v1794_v0  ;;  %1648 = vmatprep.subr.bf16.mxu0 %v1832_v1 }
  0x61   : > { %1668 = vmatprep.subr.bf16.mxu1 %v1832_v1 }
  0x63   : > { %1649 = vmatpush3.bf16.msra.mxu0 %v1795_v5 }
  0x64   : > { %1669 = vmatpush3.bf16.msra.mxu1 %v1796_v7  ;;  %1674 = vmatprep.subr.bf16.mxu0 %v1832_v1 }
  0x65   : > { %1694 = vmatprep.subr.bf16.mxu1 %v1832_v1 }
  0x66   : > { %1651 = vmatmul.mubr.bf16.vlgmr.msra.gmra.mrb[8].mxu0 %v649_v8 }
  0x67   : > { %1675 = vmatpush3.bf16.msra.mxu0 %v1797_v9  ;;  %1671 = vmatmul.mubr.bf16.vlgmr.msra.gmra.mrb[8].mxu1 %v761_v10 }
  0x68   : > { %1695 = vmatpush3.bf16.msra.mxu1 %v1799_v11  ;;  %1676 = vmatprep.subr.bf16.mxu0 %v1832_v1 }
  0x69   : > { %1696 = vmatprep.subr.bf16.mxu1 %v1832_v1  ;;  %1690 = vmatprep.mubr.msk.bf16.mxu0 %vm1833_vm0, %v1832_v1 }
  0x6a   : > { %1710 = vmatprep.mubr.msk.bf16.mxu1 %vm1833_vm0, %v1832_v1 }
  0x6b   : > { %1677 = vmatpush3.bf16.msra.mxu0 %v1800_v12 }
  0x6c   : > { %1697 = vmatpush3.bf16.msra.mxu1 %v1801_v13  ;;  %1678 = vmatprep.subr.bf16.mxu0 %v1832_v1 }
  0x6d   : > { %1698 = vmatprep.subr.bf16.mxu1 %v1832_v1 }
  0x6f   : > { %1679 = vmatpush3.bf16.msra.mxu0 %v1802_v14 }
  0x70   : > { %1699 = vmatpush3.bf16.msra.mxu1 %v1803_v15  ;;  %1680 = vmatprep.subr.bf16.mxu0 %v1832_v1 }
  0x71   : > { %1700 = vmatprep.subr.bf16.mxu1 %v1832_v1 }
  0x73   : > { %1681 = vmatpush3.bf16.msra.mxu0 %v1804_v16 }
  0x74   : > { %1701 = vmatpush3.bf16.msra.mxu1 %v1805_v17  ;;  %1682 = vmatprep.subr.bf16.mxu0 %v1832_v1 }
  0x75   : > { %1702 = vmatprep.subr.bf16.mxu1 %v1832_v1 }
  0x77   : > { %1683 = vmatpush3.bf16.msra.mxu0 %v1806_v18 }
  0x78   : > { %1703 = vmatpush3.bf16.msra.mxu1 %v1807_v19  ;;  %1684 = vmatprep.subr.bf16.mxu0 %v1832_v1 }
  0x79   : > { %1704 = vmatprep.subr.bf16.mxu1 %v1832_v1 }
  0x7b   : > { %1685 = vmatpush3.bf16.msra.mxu0 %v1808_v22 }
  0x7c   : > { %1705 = vmatpush3.bf16.msra.mxu1 %v1809_v24  ;;  %1686 = vmatprep.subr.bf16.mxu0 %v1832_v1 }
  0x7d   : > { %1706 = vmatprep.subr.bf16.mxu1 %v1832_v1 }
  0x7f   : > { %1687 = vmatpush3.bf16.msra.mxu0 %v1810_v25 }
  0x80   : > { %1707 = vmatpush3.bf16.msra.mxu1 %v1811_v27  ;;  %1688 = vmatprep.subr.bf16.mxu0 %v1832_v1 }
  0x81   : > { %1708 = vmatprep.subr.bf16.mxu1 %v1832_v1 }
  0x83   : > { %1689 = vmatpush3.bf16.msra.mxu0 %v1812_v28 }
  0x84   : > { %1709 = vmatpush3.bf16.msra.mxu1 %v1813_v31  ;;  %1714 = vmatprep.subr.bf16.mxu0 %v1832_v1 }
  0x86   : > { %1691 = vmatmul.mubr.bf16.vlgmr.msra.gmra.mrb[12].mxu0 %v852_v32 }
  0x87   : > { %1715 = vmatpush3.bf16.msra.mxu0 %v1814_v33  ;;  %1711 = vmatmul.mubr.bf16.vlgmr.msra.gmra.mrb[12].mxu1 %v989_v34 }
  0x88   : > { %1716 = vmatprep.subr.bf16.mxu0 %v1832_v1  ;;  %1730 = vmatprep.mubr.msk.bf16.mxu0 %vm1833_vm0, %v1832_v1 }
  0x8b   : > { %1717 = vmatpush3.bf16.msra.mxu0 %v1816_v35 }
  0x8c   : > { %1718 = vmatprep.subr.bf16.mxu0 %v1832_v1 }
  0x8f   : > { %1719 = vmatpush3.bf16.msra.mxu0 %v1817_v36 }
  0x90   : > { %1720 = vmatprep.subr.bf16.mxu0 %v1832_v1 }
  0x93   : > { %1721 = vmatpush3.bf16.msra.mxu0 %v1818_v37 }
  0x94   : > { %1722 = vmatprep.subr.bf16.mxu0 %v1832_v1 }
  0x97   : > { %1723 = vmatpush3.bf16.msra.mxu0 %v1819_v38 }
  0x98   : > { %1724 = vmatprep.subr.bf16.mxu0 %v1832_v1 }
  0x9b   : > { %1725 = vmatpush3.bf16.msra.mxu0 %v1820_v39 }
  0x9c   : > { %1726 = vmatprep.subr.bf16.mxu0 %v1832_v1 }
  0x9f   : > { %1727 = vmatpush3.bf16.msra.mxu0 %v1821_v40 }
  0xa0   : > { %1728 = vmatprep.subr.bf16.mxu0 %v1832_v1 }
  0xa3   : > { %1729 = vmatpush3.bf16.msra.mxu0 %v1822_v43 }
  0xa6   : > { %1731 = vmatmul.mubr.bf16.vlgmr.msra.gmra.mrb[16].mxu0 %v1101_v44 }
  0xf9   : > { %v300_v45 = vpop.f32.mrb[0].mxu0 }
  0xfa   : > { %v1572_v46 = vpop.f32.mrb[1].mxu0  ;;  %v388_v47 = vpop.f32.mrb[0].mxu1 }
  0xfb   : > { %v389_v48 = vadd.f32 %v388_v47, %v300_v45  ;;  %v303_v49 = vpop.f32.mrb[2].mxu0  ;;  %v1592_v50 = vpop.f32.mrb[1].mxu1 }
  0xfc   : > { %v1573_v51 = vpop.f32.mrb[3].mxu0  ;;  %v391_v52 = vpop.f32.mrb[2].mxu1 }
  0xfd   : > { %v1593_v53 = vpop.f32.mrb[3].mxu1 }
 0x119   : > { %v499_v54 = vpop.f32.mrb[4].mxu0 }
 0x11a   : > { %v505_v55 = vadd.f32 %v499_v54, %v389_v48  ;;  %v1612_v56 = vpop.f32.mrb[5].mxu0  ;;  %v614_v57 = vpop.f32.mrb[4].mxu1 }
 0x11b   : > { %v502_v58 = vpop.f32.mrb[6].mxu0  ;;  %v1632_v59 = vpop.f32.mrb[5].mxu1 }
 0x11c   : > { %v620_v60 = vadd.f32 %v614_v57, %v505_v55  ;;  %v1613_v1 = vpop.f32.mrb[7].mxu0  ;;  %v617_v61 = vpop.f32.mrb[6].mxu1 }
 0x11d   : > { %v1633_v62 = vpop.f32.mrb[7].mxu1 }
 0x139   : > { %v733_v63 = vpop.f32.mrb[8].mxu0 }
 0x13a   : > { %v739_v0 = vadd.f32 %v733_v63, %v620_v60  ;;  %v1652_v2 = vpop.f32.mrb[9].mxu0  ;;  %v845_v3 = vpop.f32.mrb[8].mxu1 }
 0x13b   : > { %v736_v4 = vpop.f32.mrb[10].mxu0  ;;  %v1672_v5 = vpop.f32.mrb[9].mxu1 }
 0x13c   : > { %v851_v6 = vadd.f32 %v845_v3, %v739_v0  ;;  %v1653_v7 = vpop.f32.mrb[11].mxu0  ;;  %v848_v8 = vpop.f32.mrb[10].mxu1 }
 0x13d   : > { %v1673_v9 = vpop.f32.mrb[11].mxu1 }
 0x159   : > { %v952_v10 = vpop.f32.mrb[12].mxu0 }
 0x15a   : > { %v958_v11 = vadd.f32 %v952_v10, %v851_v6  ;;  %v1692_v12 = vpop.f32.mrb[13].mxu0  ;;  %v1073_v13 = vpop.f32.mrb[12].mxu1 }
 0x15b   : > { %v955_v14 = vpop.f32.mrb[14].mxu0  ;;  %v1712_v15 = vpop.f32.mrb[13].mxu1 }
 0x15c   : > { %v1079_v16 = vadd.f32 %v1073_v13, %v958_v11  ;;  %v1693_v17 = vpop.f32.mrb[15].mxu0  ;;  %v1076_v18 = vpop.f32.mrb[14].mxu1 }
 0x15d   : > { %v1713_v19 = vpop.f32.mrb[15].mxu1 }
 0x179   : > { %v1185_v20 = vpop.f32.mrb[16].mxu0 }
 0x17a   : > { %v1191_v22 = vadd.f32 %v1185_v20, %v1079_v16  ;;  %v1732_v23 = vpop.f32.mrb[17].mxu0 }
 0x17b   : > { %v1188_v24 = vpop.f32.mrb[18].mxu0 }
 0x17c   : > { %v1199_v25 = vadd.f32 %v1470_v21, %v1191_v22  ;;  %v1733_v26 = vpop.f32.mrb[19].mxu0 }
 0x17e   : > { %v1200_v27 = vmax.f32 %v1199_v25, 0.0 }
 0x180   : > { %v1201_v28 = vpack.c.bf16 %v1200_v27, %v1200_v27 }
 0x182   : > { %1202 = vst [vmem:[%s168_s21] sm:$0xf] %v1201_v28 }
 0x183 PF: > { %s13_s12 = sadd.s32 1, %s1830_s12  }
 0x184   : > { %p10_p4 = scmp.ge.s32.totalorder %s13_s12, 4  }
 0x186   :  { %12 = sbr.rel (!%p10_p4) target bundleno = 1 (0x1), region = 70 }

// kernel: _lambda_.35
= control target key start
LH: loop header
LB: loop body
LE: loop exit
PB: predicated region body
PF: predicated region fallthrough
CT: control target
= control target key end

     0   :  { %v236_v1 = vmov 0.0   ;;  %vm237_vm0 = vmmov 0   ;;  %s304_s0 = inlined_call_operand.vmem [shape: bf16[2,1,128], index: 0, kind: input, shape index: {}]   ;;  %s305_s1 = inlined_call_operand.vmem [shape: bf16[128,128], index: 1, kind: input, shape index: {}]   ;;  %s306_s2 = inlined_call_operand.vmem [shape: f32[1,128], index: 2, kind: input, shape index: {}]   ;;  %s307_s3 = inlined_call_operand.hbm [shape: f32[2,128], index: 3, kind: output, shape index: {}]  }
   0x1   :  { %v202_v0 = vld [vmem:[%s305_s1] sm:$0xff]   ;;  %179 = vmatprep.subr.bf16.mxu0 %v236_v1  ;;  %v203_v2 = vld [vmem:[%s305_s1 + $0x8] sm:$0xff]   ;;  %195 = vmatprep.mubr.msk.bf16.mxu0 %vm237_vm0, %v236_v1  ;;  %v204_v3 = vld [vmem:[%s305_s1 + $0x10] sm:$0xff]  }
   0x2   :  { %180 = vmatpush3.bf16.msra.mxu0 %v202_v0  ;;  %v205_v4 = vld [vmem:[%s305_s1 + $0x18] sm:$0xff]  }
   0x3   :  { %181 = vmatprep.subr.bf16.mxu0 %v236_v1 }
   0x6   :  { %182 = vmatpush3.bf16.msra.mxu0 %v203_v2 }
   0x7   :  { %183 = vmatprep.subr.bf16.mxu0 %v236_v1 }
   0xa   :  { %184 = vmatpush3.bf16.msra.mxu0 %v204_v3 }
   0xb   :  { %8 = vsyncpa [#allocation3], 0  ;;  %185 = vmatprep.subr.bf16.mxu0 %v236_v1  ;;  %v206_v5 = vld [vmem:[%s305_s1 + $0x20] sm:$0xff]   ;;  %v207_v7 = vld [vmem:[%s305_s1 + $0x28] sm:$0xff]   ;;  %vm52_vm1 = vcmask 1041409   ;;  %s238_s6 = smov [#allocation2]  }
   0xc   :  { %v211_v6 = vld [vmem:[%s304_s0 + $0x1] ss:$0 sps:$4 sm:$0x11]   ;;  %v210_v8 = vld [vmem:[%s304_s0] ss:$0 sps:$4 sm:$0x11]  }
   0xd   :  { %v50_v9 = vunpack.c.l.b16 %v211_v6  ;;  %v208_v10 = vld [vmem:[%s305_s1 + $0x30] sm:$0xff]   ;;  %v49_v11 = vunpack.c.l.b16 %v210_v8  ;;  %v209_v13 = vld [vmem:[%s305_s1 + $0x38] sm:$0xff]   ;;  %v161_v16 = vld [vmem:[%s306_s2] ss:$0 sm:$0xff]  ;;  %s151_s7 = sshll.u32 %s238_s6, 4  ;;  %s152_s7 = int_to_ptr.vmem [resolvable:$true] %s151_s7 }
   0xe   :  { %186 = vmatpush3.bf16.msra.mxu0 %v205_v4  ;;  %s212_s8 = scalar_lea.vmem %s152_s7, 32  ;;  %p217_p1 = scmp.lt.s32.totalorder %s152_s7, %s152_s7 }
   0xf   :  { %187 = vmatprep.subr.bf16.mxu0 %v236_v1  ;;  %v51_v12 = vrot.slane %v50_v9, 7  ;;  %p213_p0 = scmp.ne.s32.totalorder %s152_s7, %s212_s8  ;;  %p218_p2 = scmp.lt.s32.totalorder %s212_s8, %s212_s8 }
  0x11   :  { %v53_v14 = vsel %vm52_vm1, %v51_v12, %v49_v11  ;;  %p219_p3 = por %p218_p2, %p217_p1 }
  0x12   :  { %188 = vmatpush3.bf16.msra.mxu0 %v206_v5  ;;  %v54_v15 = vpack.c.b16 %v53_v14, %v53_v14 }
  0x13   :  { %189 = vmatprep.subr.bf16.mxu0 %v236_v1  ;;  %p220_p4 = pnand %p219_p3, %p213_p0 }
  0x16   :  { %190 = vmatpush3.bf16.msra.mxu0 %v207_v7 }
  0x17   :  { %191 = vmatprep.subr.bf16.mxu0 %v236_v1 }
  0x1a   :  { %192 = vmatpush3.bf16.msra.mxu0 %v208_v10 }
  0x1b   :  { %193 = vmatprep.subr.bf16.mxu0 %v236_v1 }
  0x1e   :  { %194 = vmatpush3.bf16.msra.mxu0 %v209_v13 }
  0x21   :  { %196 = vmatmul.mubr.bf16.vlgmr.msra.gmra.mrb[0].mxu0 %v54_v15 }
  0xf4   :  { %v138_v17 = vpop.f32.mrb[0].mxu0 }
  0xf5   :  { %v139_v18 = vadd.f32 %v161_v16, %v138_v17  ;;  %v197_v19 = vpop.f32.mrb[1].mxu0 }
  0xf6   :  { %v141_v20 = vpop.f32.mrb[2].mxu0 }
  0xf7   :  { %144 = vst [vmem:[#allocation2] sm:$0x3] %v139_v18  ;;  %v198_v21 = vpop.f32.mrb[3].mxu0 }
  0xf8   :  { %223 = shalt.err (!%p220_p4)
}
  0xf9   :  { %s224_s2 = scalar_lea.hbm %s307_s3, 32 }
  0xfa   :  { %p225_p5 = scmp.ne.s32.totalorder %s307_s3, %s224_s2  ;;  %p228_p6 = scmp.lt.u32.totalorder %s224_s2, %s307_s3 }
  0xfc   :  { %p230_p7 = pnand %p228_p6, %p225_p5 }
  0xfe   :  { %233 = shalt.err (!%p230_p7)
}
  0xff   :  { %154 = dma.vmem_to_hbm [thread:$0]  %s152_s7, 32, %s307_s3, [#allocation3]  }
 0x100   :  { %234 = dma.done.wait [#allocation3], 32  }
 0x101   :  { %235 = vsyncadd [#allocation3], 4294967264 }
 0x102   :  { %158 = vsyncpa [#allocation3], 1 }

// kernel: _lambda_.32
= control target key start
LH: loop header
LB: loop body
LE: loop exit
PB: predicated region body
PF: predicated region fallthrough
CT: control target
= control target key end

     0   :  { %s1909_s15 = smov 0   ;;  %s2249_s0 = inlined_call_operand.vmem [shape: bf16[2,12,128], index: 0, kind: input, shape index: {}]   ;;  %s2250_s1 = inlined_call_operand.vmem [shape: bf16[9,128,128], index: 1, kind: input, shape index: {}]   ;;  %s2251_s2 = inlined_call_operand.vmem [shape: f32[1,128], index: 2, kind: input, shape index: {}]   ;;  %s2252_s3 = inlined_call_operand.vmem [shape: bf16[2,3,128], index: 3, kind: input, shape index: {}]   ;;  %s2253_s4 = inlined_call_operand.vmem [shape: bf16[2,3,128], index: 4, kind: output, shape index: {}]  }
   0x1 LB: > { %s1310_s16 = sadd.s32 4294967295, %s1880_s15   ;;  %p1314_p0 = scmp.ge.s32.totalorder %s1880_s15, 1  ;;  %s1880_s15 = sphi %s1909_s15, %s14_s15  }
   0x2   : > { %p171_p1 = scmp.lt.s32.totalorder %s1880_s15, 3 }
   0x4   : > { %p172_p2 = pnand %p1314_p0, %p171_p1 }
   0x5   : > { %v1798_v0 = vld [vmem:[%s2250_s1 + $0x40] sm:$0xff] (!%p172_p2)   ;;  %v1882_v1 = vmov (!%p172_p2), 0.0   ;;  %v1800_v3 = vld [vmem:[%s2250_s1 + $0x48] sm:$0xff] (!%p172_p2)   ;;  %vm1883_vm0 = vmmov (!%p172_p2), 0   ;;  %p200_p3 = scmp.lt.s32.totalorder (!%p172_p2), %s1310_s16, 1  ;;  %v1802_v5 = vld [vmem:[%s2250_s1 + $0x50] sm:$0xff] (!%p172_p2)  }
   0x6   : > { %175 = sbr.rel (%p172_p2) target bundleno = 390 (0x186), region = 36  ;;  %1608 = vmatprep.subr.bf16.mxu0 (!%p172_p2), %v1882_v1  ;;  %1628 = vmatprep.subr.bf16.mxu1 (!%p172_p2), %v1882_v1  ;;  %v1799_v2 = vld [vmem:[%s2250_s1] sm:$0xff] (!%p172_p2)   ;;  %v1801_v4 = vld [vmem:[%s2250_s1 + $0x8] sm:$0xff] (!%p172_p2)   ;;  %v1803_v6 = vld [vmem:[%s2250_s1 + $0x10] sm:$0xff] (!%p172_p2)   ;;  %vm1239_vm1 = vcmask (!%p172_p2), 1041408  }
   0x7   : > { %1609 = vmatpush3.bf16.msra.mxu0 (!%p172_p2), %v1798_v0  ;;  %1624 = vmatprep.mubr.msk.bf16.mxu0 (!%p172_p2), %vm1883_vm0, %v1882_v1  ;;  %v1804_v7 = vld [vmem:[%s2250_s1 + $0x58] sm:$0xff] (!%p172_p2)   ;;  %v1806_v9 = vld [vmem:[%s2250_s1 + $0x60] sm:$0xff] (!%p172_p2)   ;;  %v1808_v13 = vld [vmem:[%s2250_s1 + $0x68] sm:$0xff] (!%p172_p2)   ;;  %vm1240_vm2 = vsmask.f32 (!%p172_p2), 1280 }
   0x8   : > { %1629 = vmatpush3.bf16.msra.mxu1 (!%p172_p2), %v1799_v2  ;;  %1610 = vmatprep.subr.bf16.mxu0 (!%p172_p2), %v1882_v1  ;;  %v1805_v8 = vld [vmem:[%s2250_s1 + $0x18] sm:$0xff] (!%p172_p2)   ;;  %v1807_v10 = vld [vmem:[%s2250_s1 + $0x20] sm:$0xff] (!%p172_p2)   ;;  %v1809_v14 = vld [vmem:[%s2250_s1 + $0x28] sm:$0xff] (!%p172_p2)  }
   0x9   : > { %1630 = vmatprep.subr.bf16.mxu1 (!%p172_p2), %v1882_v1  ;;  %1644 = vmatprep.mubr.msk.bf16.mxu1 (!%p172_p2), %vm1883_vm0, %v1882_v1  ;;  %v1810_v16 = vld [vmem:[%s2250_s1 + $0x70] sm:$0xff] (!%p172_p2)   ;;  %v1812_v20 = vld [vmem:[%s2250_s1 + $0x78] sm:$0xff] (!%p172_p2)   ;;  %v1815_v23 = vld [vmem:[%s2250_s1 + $0x80] sm:$0xff] (!%p172_p2)  }
   0xa   : > { %v1811_v17 = vld [vmem:[%s2250_s1 + $0x30] sm:$0xff] (!%p172_p2)   ;;  %v1813_v21 = vld [vmem:[%s2250_s1 + $0x38] sm:$0xff] (!%p172_p2)   ;;  %v1816_v24 = vld [vmem:[%s2250_s1 + $0xc0] sm:$0xff] (!%p172_p2)  }
   0xb   : > { %1611 = vmatpush3.bf16.msra.mxu0 (!%p172_p2), %v1800_v3  ;;  %v1817_v25 = vld [vmem:[%s2250_s1 + $0x88] sm:$0xff] (!%p172_p2)   ;;  %v1819_v27 = vld [vmem:[%s2250_s1 + $0x90] sm:$0xff] (!%p172_p2)   ;;  %v1821_v29 = vld [vmem:[%s2250_s1 + $0x98] sm:$0xff] (!%p172_p2)  }
   0xc   : > { %1631 = vmatpush3.bf16.msra.mxu1 (!%p172_p2), %v1801_v4  ;;  %1612 = vmatprep.subr.bf16.mxu0 (!%p172_p2), %v1882_v1  ;;  %v1818_v26 = vld [vmem:[%s2250_s1 + $0xc8] sm:$0xff] (!%p172_p2)   ;;  %v1820_v28 = vld [vmem:[%s2250_s1 + $0xd0] sm:$0xff] (!%p172_p2)   ;;  %v1822_v30 = vld [vmem:[%s2250_s1 + $0xd8] sm:$0xff] (!%p172_p2)  }
   0xd   : > { %s2255_s16 = smov (!%p200_p3, %s1310_s16), 1  ;;  %1632 = vmatprep.subr.bf16.mxu1 %v1882_v1  ;;  %v1823_v31 = vld [vmem:[%s2250_s1 + $0xa0] sm:$0xff]   ;;  %v1825_v34 = vld [vmem:[%s2250_s1 + $0xa8] sm:$0xff]   ;;  %v1827_v36 = vld [vmem:[%s2250_s1 + $0xb0] sm:$0xff]  }
   0xe   : > { %s1526_s5 = sshll.u32 %s2255_s16, 3  ;;  %v1824_v32 = vld [vmem:[%s2250_s1 + $0xe0] sm:$0xff]   ;;  %v1826_v35 = vld [vmem:[%s2250_s1 + $0xe8] sm:$0xff]   ;;  %v1828_v39 = vld [vmem:[%s2250_s1 + $0xf0] sm:$0xff]  }
   0xf   : > { %1613 = vmatpush3.bf16.msra.mxu0 %v1802_v5  ;;  %s1959_s10 = scalar_lea.vmem %s2249_s0, %s1526_s5  ;;  %v1829_v40 = vld [vmem:[%s2250_s1 + $0xb8] sm:$0xff]   ;;  %v1832_v45 = vld [vmem:[%s2250_s1 + $0x100] sm:$0xff]   ;;  %v1834_v48 = vld [vmem:[%s2250_s1 + $0x108] sm:$0xff]  }
  0x10   : > { %1633 = vmatpush3.bf16.msra.mxu1 %v1803_v6  ;;  %1614 = vmatprep.subr.bf16.mxu0 %v1882_v1  ;;  %v214_v11 = vld [vmem:[%s1959_s10] sm:$0x3]  ;;  %v1830_v43 = vld [vmem:[%s2250_s1 + $0xf8] sm:$0xff]   ;;  %v1835_v49 = vld [vmem:[%s2250_s1 + $0x148] sm:$0xff]  }
  0x11   : > { %1634 = vmatprep.subr.bf16.mxu1 %v1882_v1  ;;  %v1335_v12 = vcombine.low %v214_v11, %v214_v11  ;;  %v1831_v33 = vld [vmem:[%s1959_s10] ss:$0 sps:$4 sm:$0x66]   ;;  %v1836_v50 = vld [vmem:[%s2250_s1 + $0x110] sm:$0xff]   ;;  %v1838_v52 = vld [vmem:[%s2250_s1 + $0x118] sm:$0xff]  }
  0x12   : > { %v565_v37 = vshrl.u32 %v1831_v33, 16  ;;  %v568_v38 = vshll.u32 %v1831_v33, 16  ;;  %v456_v44 = vrot.slane %v1831_v33, 1  ;;  %v1833_v47 = vld [vmem:[%s2250_s1 + $0x140] sm:$0xff]   ;;  %v1837_v51 = vld [vmem:[%s2250_s1 + $0x150] sm:$0xff]   ;;  %v1839_v53 = vld [vmem:[%s2250_s1 + $0x158] sm:$0xff]  }
  0x13   : > { %1615 = vmatpush3.bf16.msra.mxu0 %v1804_v7  ;;  %v254_v15 = vshll.u32 %v1335_v12, 16  ;;  %v252_v18 = vshrl.u32 %v1335_v12, 16  ;;  %v1840_v54 = vld [vmem:[%s2250_s1 + $0x120] sm:$0xff]   ;;  %v1842_v56 = vld [vmem:[%s2250_s1 + $0x128] sm:$0xff]   ;;  %v1844_v59 = vld [vmem:[%s2250_s1 + $0x130] sm:$0xff]  }
  0x14   : > { %1635 = vmatpush3.bf16.msra.mxu1 %v1805_v8  ;;  %1616 = vmatprep.subr.bf16.mxu0 %v1882_v1  ;;  %v567_v41 = vrot.slane %v565_v37, 1  ;;  %v570_v42 = vrot.slane %v568_v38, 2  ;;  %v1841_v55 = vld [vmem:[%s2250_s1 + $0x160] sm:$0xff]   ;;  %v1843_v58 = vld [vmem:[%s2250_s1 + $0x168] sm:$0xff]   ;;  %v1845_v62 = vld [vmem:[%s2250_s1 + $0x170] sm:$0xff]  }
  0x15   : > { %1636 = vmatprep.subr.bf16.mxu1 %v1882_v1  ;;  %v256_v19 = vrot.slane %v254_v15, 1  ;;  %v1848_v57 = vld [vmem:[%s1959_s10] ss:$0 sps:$4 sm:$0xcc]   ;;  %v1846_v63 = vld [vmem:[%s2250_s1 + $0x138] sm:$0xff]   ;;  %v1851_v8 = vld [vmem:[%s2250_s1 + $0x188] sm:$0xff]  }
  0x16   : > { %v571_v46 = vor.u32 %v570_v42, %v567_v41  ;;  %v792_v60 = vshrl.u32 %v1848_v57, 16  ;;  %v795_v61 = vshll.u32 %v1848_v57, 16  ;;  %v1847_v3 = vld [vmem:[%s2250_s1 + $0x178] sm:$0xff]   ;;  %v683_v4 = vrot.slane %v1848_v57, 2  ;;  %v1849_v5 = vld [vmem:[%s2250_s1 + $0x180] sm:$0xff]   ;;  %vm1241_vm3 = vmand %vm1239_vm1, %vm1240_vm2 }
  0x17   : > { %1617 = vmatpush3.bf16.msra.mxu0 %v1806_v9  ;;  %v257_v22 = vor.u32 %v256_v19, %v252_v18  ;;  %v1850_v7 = vld [vmem:[%s2250_s1 + $0x1c0] sm:$0xff]   ;;  %v1852_v9 = vld [vmem:[%s2250_s1 + $0x1c8] sm:$0xff]   ;;  %v1855_v12 = vld [vmem:[%s2250_s1 + $0x198] sm:$0xff]  }
  0x18   : > { %1637 = vmatpush3.bf16.msra.mxu1 %v1807_v10  ;;  %1618 = vmatprep.subr.bf16.mxu0 %v1882_v1  ;;  %v794_v0 = vrot.slane %v792_v60, 2  ;;  %v797_v2 = vrot.slane %v795_v61, 3  ;;  %v1853_v10 = vld [vmem:[%s2250_s1 + $0x190] sm:$0xff]   ;;  %v1858_v15 = vld [vmem:[%s2250_s1 + $0x1e0] sm:$0xff]   ;;  %v1860_v18 = vld [vmem:[%s2250_s1 + $0x1e8] sm:$0xff]  }
  0x19   : > { %1638 = vmatprep.subr.bf16.mxu1 %v1882_v1  ;;  %v1861_v19 = vld [vmem:[%s2250_s1 + $0x1b0] sm:$0xff]   ;;  %v1870_v33 = vld [vmem:[%s2250_s1 + $0x220] sm:$0xff]  }
  0x1a   : > { %v798_v6 = vor.u32 %v797_v2, %v794_v0  ;;  %v1119_v37 = vld [vmem:[%s1959_s10 + $0x4] sm:$0x3] }
  0x1b   : > { %1619 = vmatpush3.bf16.msra.mxu0 %v1808_v13  ;;  %v1856_v13 = vld [vmem:[%s2250_s1 + $0x1d8] sm:$0xff]  }
  0x1c   : > { %1639 = vmatpush3.bf16.msra.mxu1 %v1809_v14  ;;  %1620 = vmatprep.subr.bf16.mxu0 %v1882_v1  ;;  %v1857_v14 = vld [vmem:[%s2250_s1 + $0x1a0] sm:$0xff]  }
  0x1d   : > { %1640 = vmatprep.subr.bf16.mxu1 %v1882_v1 }
  0x1f   : > { %1621 = vmatpush3.bf16.msra.mxu0 %v1810_v16  ;;  %v1859_v16 = vld [vmem:[%s2250_s1 + $0x1a8] sm:$0xff]  }
  0x20   : > { %1641 = vmatpush3.bf16.msra.mxu1 %v1811_v17  ;;  %1622 = vmatprep.subr.bf16.mxu0 %v1882_v1  ;;  %v1865_v17 = vld [vmem:[%s1959_s10] sm:$0x18]   ;;  %s1317_s10 = sshll.u32 %s2255_s16, 1 }
  0x21   : > { %1642 = vmatprep.subr.bf16.mxu1 %v1882_v1  ;;  %s208_s28 = scalar_lea.vmem %s2252_s3, %s1317_s10  ;;  %s212_s16 = scalar_lea.vmem %s2253_s4, %s1317_s10 }
  0x23   : > { %1623 = vmatpush3.bf16.msra.mxu0 %v1812_v20  ;;  %v1022_v20 = vshrl.u32 %v1865_v17, 16 }
  0x24   : > { %1643 = vmatpush3.bf16.msra.mxu1 %v1813_v21  ;;  %1648 = vmatprep.subr.bf16.mxu0 %v1882_v1  ;;  %v1025_v21 = vshll.u32 %v1865_v17, 16 }
  0x25   : > { %1668 = vmatprep.subr.bf16.mxu1 %v1882_v1 }
  0x26   : > { %1625 = vmatmul.mubr.bf16.vlgmr.msra.gmra.mrb[0].mxu0 %v257_v22  ;;  %v1862_v22 = vld [vmem:[%s2250_s1 + $0x1f0] sm:$0xff]  }
  0x27   : > { %1645 = vmatmul.mubr.bf16.vlgmr.msra.gmra.mrb[0].mxu1 %v214_v11  ;;  %1649 = vmatpush3.bf16.msra.mxu0 %v1815_v23  ;;  %v1854_v11 = vld [vmem:[%s2250_s1 + $0x1d0] sm:$0xff]   ;;  %v1863_v23 = vld [vmem:[%s2250_s1 + $0x1b8] sm:$0xff]  }
  0x28   : > { %1669 = vmatpush3.bf16.msra.mxu1 %v1816_v24  ;;  %1650 = vmatprep.subr.bf16.mxu0 %v1882_v1  ;;  %v1024_v24 = vrot.slane %v1022_v20, 3 }
  0x29   : > { %1670 = vmatprep.subr.bf16.mxu1 %v1882_v1  ;;  %1664 = vmatprep.mubr.msk.bf16.mxu0 %vm1883_vm0, %v1882_v1 }
  0x2a   : > { %1684 = vmatprep.mubr.msk.bf16.mxu1 %vm1883_vm0, %v1882_v1 }
  0x2b   : > { %1651 = vmatpush3.bf16.msra.mxu0 %v1817_v25  ;;  %v1027_v25 = vrot.slane %v1025_v21, 4 }
  0x2c   : > { %1671 = vmatpush3.bf16.msra.mxu1 %v1818_v26  ;;  %1652 = vmatprep.subr.bf16.mxu0 %v1882_v1  ;;  %v1864_v26 = vld [vmem:[%s2250_s1 + $0x1f8] sm:$0xff]  }
  0x2d   : > { %1672 = vmatprep.subr.bf16.mxu1 %v1882_v1 }
  0x2f   : > { %1653 = vmatpush3.bf16.msra.mxu0 %v1819_v27  ;;  %v913_v27 = vrot.slane %v1865_v17, 3 }
  0x30   : > { %1673 = vmatpush3.bf16.msra.mxu1 %v1820_v28  ;;  %1654 = vmatprep.subr.bf16.mxu0 %v1882_v1  ;;  %v1866_v28 = vld [vmem:[%s2250_s1 + $0x200] sm:$0xff]  }
  0x31   : > { %1674 = vmatprep.subr.bf16.mxu1 %v1882_v1 }
  0x33   : > { %1655 = vmatpush3.bf16.msra.mxu0 %v1821_v29  ;;  %v1028_v29 = vor.u32 %v1027_v25, %v1024_v24  ;;  %v1242_v24 = vld [vmem:[%s212_s16] sm:$0x3] }
  0x34   : > { %1675 = vmatpush3.bf16.msra.mxu1 %v1822_v30  ;;  %1656 = vmatprep.subr.bf16.mxu0 %v1882_v1  ;;  %v1867_v30 = vld [vmem:[%s2250_s1 + $0x208] sm:$0xff]  }
  0x35   : > { %1676 = vmatprep.subr.bf16.mxu1 %v1882_v1 }
  0x37   : > { %1657 = vmatpush3.bf16.msra.mxu0 %v1823_v31  ;;  %v1868_v31 = vld [vmem:[%s2250_s1 + $0x210] sm:$0xff]  }
  0x38   : > { %1677 = vmatpush3.bf16.msra.mxu1 %v1824_v32  ;;  %1658 = vmatprep.subr.bf16.mxu0 %v1882_v1  ;;  %v1869_v32 = vld [vmem:[%s2250_s1 + $0x218] sm:$0xff]  }
  0x39   : > { %1678 = vmatprep.subr.bf16.mxu1 %v1882_v1 }
  0x3b   : > { %1659 = vmatpush3.bf16.msra.mxu0 %v1825_v34  ;;  %v1871_v34 = vld [vmem:[%s2250_s1 + $0x228] sm:$0xff]  }
  0x3c   : > { %1679 = vmatpush3.bf16.msra.mxu1 %v1826_v35  ;;  %1660 = vmatprep.subr.bf16.mxu0 %v1882_v1  ;;  %v1872_v35 = vld [vmem:[%s2250_s1 + $0x230] sm:$0xff]  }
  0x3d   : > { %1680 = vmatprep.subr.bf16.mxu1 %v1882_v1 }
  0x3f   : > { %1661 = vmatpush3.bf16.msra.mxu0 %v1827_v36  ;;  %v1873_v36 = vld [vmem:[%s2250_s1 + $0x238] sm:$0xff]  }
  0x40   : > { %1681 = vmatpush3.bf16.msra.mxu1 %v1828_v39  ;;  %1662 = vmatprep.subr.bf16.mxu0 %v1882_v1 }
  0x41   : > { %1682 = vmatprep.subr.bf16.mxu1 %v1882_v1 }
  0x43   : > { %1663 = vmatpush3.bf16.msra.mxu0 %v1829_v40 }
  0x44   : > { %1683 = vmatpush3.bf16.msra.mxu1 %v1830_v43  ;;  %1688 = vmatprep.subr.bf16.mxu0 %v1882_v1 }
  0x45   : > { %1708 = vmatprep.subr.bf16.mxu1 %v1882_v1 }
  0x46   : > { %1665 = vmatmul.mubr.bf16.vlgmr.msra.gmra.mrb[4].mxu0 %v456_v44 }
  0x47   : > { %1689 = vmatpush3.bf16.msra.mxu0 %v1832_v45  ;;  %1685 = vmatmul.mubr.bf16.vlgmr.msra.gmra.mrb[4].mxu1 %v571_v46 }
  0x48   : > { %1709 = vmatpush3.bf16.msra.mxu1 %v1833_v47  ;;  %1690 = vmatprep.subr.bf16.mxu0 %v1882_v1 }
  0x49   : > { %1710 = vmatprep.subr.bf16.mxu1 %v1882_v1  ;;  %1704 = vmatprep.mubr.msk.bf16.mxu0 %vm1883_vm0, %v1882_v1 }
  0x4a   : > { %1724 = vmatprep.mubr.msk.bf16.mxu1 %vm1883_vm0, %v1882_v1 }
  0x4b   : > { %1691 = vmatpush3.bf16.msra.mxu0 %v1834_v48 }
  0x4c   : > { %1711 = vmatpush3.bf16.msra.mxu1 %v1835_v49  ;;  %1692 = vmatprep.subr.bf16.mxu0 %v1882_v1 }
  0x4d   : > { %1712 = vmatprep.subr.bf16.mxu1 %v1882_v1 }
  0x4f   : > { %1693 = vmatpush3.bf16.msra.mxu0 %v1836_v50 }
  0x50   : > { %1713 = vmatpush3.bf16.msra.mxu1 %v1837_v51  ;;  %1694 = vmatprep.subr.bf16.mxu0 %v1882_v1 }
  0x51   : > { %1714 = vmatprep.subr.bf16.mxu1 %v1882_v1 }
  0x53   : > { %1695 = vmatpush3.bf16.msra.mxu0 %v1838_v52 }
  0x54   : > { %1715 = vmatpush3.bf16.msra.mxu1 %v1839_v53  ;;  %1696 = vmatprep.subr.bf16.mxu0 %v1882_v1 }
  0x55   : > { %1716 = vmatprep.subr.bf16.mxu1 %v1882_v1 }
  0x57   : > { %1697 = vmatpush3.bf16.msra.mxu0 %v1840_v54 }
  0x58   : > { %1717 = vmatpush3.bf16.msra.mxu1 %v1841_v55  ;;  %1698 = vmatprep.subr.bf16.mxu0 %v1882_v1 }
  0x59   : > { %1718 = vmatprep.subr.bf16.mxu1 %v1882_v1 }
  0x5b   : > { %1699 = vmatpush3.bf16.msra.mxu0 %v1842_v56 }
  0x5c   : > { %1719 = vmatpush3.bf16.msra.mxu1 %v1843_v58  ;;  %1700 = vmatprep.subr.bf16.mxu0 %v1882_v1 }
  0x5d   : > { %1720 = vmatprep.subr.bf16.mxu1 %v1882_v1 }
  0x5f   : > { %1701 = vmatpush3.bf16.msra.mxu0 %v1844_v59 }
  0x60   : > { %1721 = vmatpush3.bf16.msra.mxu1 %v1845_v62  ;;  %1702 = vmatprep.subr.bf16.mxu0 %v1882_v1 }
  0x61   : > { %1722 = vmatprep.subr.bf16.mxu1 %v1882_v1 }
  0x63   : > { %1703 = vmatpush3.bf16.msra.mxu0 %v1846_v63 }
  0x64   : > { %1723 = vmatpush3.bf16.msra.mxu1 %v1847_v3  ;;  %1728 = vmatprep.subr.bf16.mxu0 %v1882_v1 }
  0x65   : > { %1748 = vmatprep.subr.bf16.mxu1 %v1882_v1 }
  0x66   : > { %1705 = vmatmul.mubr.bf16.vlgmr.msra.gmra.mrb[8].mxu0 %v683_v4 }
  0x67   : > { %1729 = vmatpush3.bf16.msra.mxu0 %v1849_v5  ;;  %1725 = vmatmul.mubr.bf16.vlgmr.msra.gmra.mrb[8].mxu1 %v798_v6 }
  0x68   : > { %1749 = vmatpush3.bf16.msra.mxu1 %v1850_v7  ;;  %1730 = vmatprep.subr.bf16.mxu0 %v1882_v1 }
  0x69   : > { %1750 = vmatprep.subr.bf16.mxu1 %v1882_v1  ;;  %1744 = vmatprep.mubr.msk.bf16.mxu0 %vm1883_vm0, %v1882_v1 }
  0x6a   : > { %1764 = vmatprep.mubr.msk.bf16.mxu1 %vm1883_vm0, %v1882_v1 }
  0x6b   : > { %1731 = vmatpush3.bf16.msra.mxu0 %v1851_v8 }
  0x6c   : > { %1751 = vmatpush3.bf16.msra.mxu1 %v1852_v9  ;;  %1732 = vmatprep.subr.bf16.mxu0 %v1882_v1 }
  0x6d   : > { %1752 = vmatprep.subr.bf16.mxu1 %v1882_v1 }
  0x6f   : > { %1733 = vmatpush3.bf16.msra.mxu0 %v1853_v10 }
  0x70   : > { %1753 = vmatpush3.bf16.msra.mxu1 %v1854_v11  ;;  %1734 = vmatprep.subr.bf16.mxu0 %v1882_v1 }
  0x71   : > { %1754 = vmatprep.subr.bf16.mxu1 %v1882_v1 }
  0x73   : > { %1735 = vmatpush3.bf16.msra.mxu0 %v1855_v12 }
  0x74   : > { %1755 = vmatpush3.bf16.msra.mxu1 %v1856_v13  ;;  %1736 = vmatprep.subr.bf16.mxu0 %v1882_v1  ;;  %v1234_v13 = vld [vmem:[%s208_s28] sm:$0x3] }
  0x75   : > { %1756 = vmatprep.subr.bf16.mxu1 %v1882_v1  ;;  %v1235_v17 = vunpack.c.l.bf16 %v1234_v13 }
  0x77   : > { %1737 = vmatpush3.bf16.msra.mxu0 %v1857_v14 }
  0x78   : > { %1757 = vmatpush3.bf16.msra.mxu1 %v1858_v15  ;;  %1738 = vmatprep.subr.bf16.mxu0 %v1882_v1  ;;  %v1523_v15 = vld [vmem:[%s2251_s2] ss:$0 sm:$0xff] }
  0x79   : > { %1758 = vmatprep.subr.bf16.mxu1 %v1882_v1 }
  0x7b   : > { %1739 = vmatpush3.bf16.msra.mxu0 %v1859_v16 }
  0x7c   : > { %1759 = vmatpush3.bf16.msra.mxu1 %v1860_v18  ;;  %1740 = vmatprep.subr.bf16.mxu0 %v1882_v1 }
  0x7d   : > { %1760 = vmatprep.subr.bf16.mxu1 %v1882_v1 }
  0x7f   : > { %1741 = vmatpush3.bf16.msra.mxu0 %v1861_v19 }
  0x80   : > { %1761 = vmatpush3.bf16.msra.mxu1 %v1862_v22  ;;  %1742 = vmatprep.subr.bf16.mxu0 %v1882_v1 }
  0x81   : > { %1762 = vmatprep.subr.bf16.mxu1 %v1882_v1 }
  0x83   : > { %1743 = vmatpush3.bf16.msra.mxu0 %v1863_v23 }
  0x84   : > { %1763 = vmatpush3.bf16.msra.mxu1 %v1864_v26  ;;  %1768 = vmatprep.subr.bf16.mxu0 %v1882_v1 }
  0x86   : > { %1745 = vmatmul.mubr.bf16.vlgmr.msra.gmra.mrb[12].mxu0 %v913_v27 }
  0x87   : > { %1769 = vmatpush3.bf16.msra.mxu0 %v1866_v28  ;;  %1765 = vmatmul.mubr.bf16.vlgmr.msra.gmra.mrb[12].mxu1 %v1028_v29 }
  0x88   : > { %1770 = vmatprep.subr.bf16.mxu0 %v1882_v1  ;;  %1784 = vmatprep.mubr.msk.bf16.mxu0 %vm1883_vm0, %v1882_v1 }
  0x8b   : > { %1771 = vmatpush3.bf16.msra.mxu0 %v1867_v30 }
  0x8c   : > { %1772 = vmatprep.subr.bf16.mxu0 %v1882_v1 }
  0x8f   : > { %1773 = vmatpush3.bf16.msra.mxu0 %v1868_v31 }
  0x90   : > { %1774 = vmatprep.subr.bf16.mxu0 %v1882_v1 }
  0x93   : > { %1775 = vmatpush3.bf16.msra.mxu0 %v1869_v32 }
  0x94   : > { %1776 = vmatprep.subr.bf16.mxu0 %v1882_v1 }
  0x97   : > { %1777 = vmatpush3.bf16.msra.mxu0 %v1870_v33 }
  0x98   : > { %1778 = vmatprep.subr.bf16.mxu0 %v1882_v1 }
  0x9b   : > { %1779 = vmatpush3.bf16.msra.mxu0 %v1871_v34 }
  0x9c   : > { %1780 = vmatprep.subr.bf16.mxu0 %v1882_v1 }
  0x9f   : > { %1781 = vmatpush3.bf16.msra.mxu0 %v1872_v35 }
  0xa0   : > { %1782 = vmatprep.subr.bf16.mxu0 %v1882_v1 }
  0xa3   : > { %1783 = vmatpush3.bf16.msra.mxu0 %v1873_v36 }
  0xa6   : > { %1785 = vmatmul.mubr.bf16.vlgmr.msra.gmra.mrb[16].mxu0 %v1119_v37 }
  0xf9   : > { %v341_v38 = vpop.f32.mrb[0].mxu0 }
  0xfa   : > { %v1626_v39 = vpop.f32.mrb[1].mxu0  ;;  %v429_v40 = vpop.f32.mrb[0].mxu1 }
  0xfb   : > { %v430_v41 = vadd.f32 %v429_v40, %v341_v38  ;;  %v344_v42 = vpop.f32.mrb[2].mxu0  ;;  %v1646_v43 = vpop.f32.mrb[1].mxu1 }
  0xfc   : > { %v1627_v44 = vpop.f32.mrb[3].mxu0  ;;  %v432_v45 = vpop.f32.mrb[2].mxu1 }
  0xfd   : > { %v1647_v46 = vpop.f32.mrb[3].mxu1 }
 0x119   : > { %v540_v47 = vpop.f32.mrb[4].mxu0 }
 0x11a   : > { %v546_v48 = vadd.f32 %v540_v47, %v430_v41  ;;  %v1666_v49 = vpop.f32.mrb[5].mxu0  ;;  %v655_v50 = vpop.f32.mrb[4].mxu1 }
 0x11b   : > { %v543_v51 = vpop.f32.mrb[6].mxu0  ;;  %v1686_v52 = vpop.f32.mrb[5].mxu1 }
 0x11c   : > { %v661_v53 = vadd.f32 %v655_v50, %v546_v48  ;;  %v1667_v1 = vpop.f32.mrb[7].mxu0  ;;  %v658_v54 = vpop.f32.mrb[6].mxu1 }
 0x11d   : > { %v1687_v55 = vpop.f32.mrb[7].mxu1 }
 0x139   : > { %v767_v56 = vpop.f32.mrb[8].mxu0 }
 0x13a   : > { %v773_v57 = vadd.f32 %v767_v56, %v661_v53  ;;  %v1706_v58 = vpop.f32.mrb[9].mxu0  ;;  %v882_v59 = vpop.f32.mrb[8].mxu1 }
 0x13b   : > { %v770_v60 = vpop.f32.mrb[10].mxu0  ;;  %v1726_v61 = vpop.f32.mrb[9].mxu1 }
 0x13c   : > { %v888_v62 = vadd.f32 %v882_v59, %v773_v57  ;;  %v1707_v63 = vpop.f32.mrb[11].mxu0  ;;  %v885_v0 = vpop.f32.mrb[10].mxu1 }
 0x13d   : > { %v1727_v2 = vpop.f32.mrb[11].mxu1 }
 0x159   : > { %v997_v3 = vpop.f32.mrb[12].mxu0 }
 0x15a   : > { %v1003_v4 = vadd.f32 %v997_v3, %v888_v62  ;;  %v1746_v5 = vpop.f32.mrb[13].mxu0  ;;  %v1112_v6 = vpop.f32.mrb[12].mxu1 }
 0x15b   : > { %v1000_v7 = vpop.f32.mrb[14].mxu0  ;;  %v1766_v8 = vpop.f32.mrb[13].mxu1 }
 0x15c   : > { %v1118_v9 = vadd.f32 %v1112_v6, %v1003_v4  ;;  %v1747_v10 = vpop.f32.mrb[15].mxu0  ;;  %v1115_v11 = vpop.f32.mrb[14].mxu1 }
 0x15d   : > { %v1767_v12 = vpop.f32.mrb[15].mxu1 }
 0x179   : > { %v1219_v14 = vpop.f32.mrb[16].mxu0 }
 0x17a   : > { %v1225_v16 = vadd.f32 %v1219_v14, %v1118_v9  ;;  %v1786_v18 = vpop.f32.mrb[17].mxu0 }
 0x17b   : > { %v1222_v19 = vpop.f32.mrb[18].mxu0 }
 0x17c   : > { %v1233_v20 = vadd.f32 %v1523_v15, %v1225_v16  ;;  %v1787_v21 = vpop.f32.mrb[19].mxu0 }
 0x17e   : > { %v1236_v22 = vadd.f32 %v1235_v17, %v1233_v20 }
 0x180   : > { %v1237_v23 = vmax.f32 %v1236_v22, 0.0 }
 0x182   : > { %v1238_v25 = vpack.c.bf16 %v1237_v23, %v1237_v23 }
 0x184   : > { %v1243_v26 = vsel %vm1241_vm3, %v1238_v25, %v1242_v24 }
 0x185   : > { %1244 = vst [vmem:[%s212_s16] sm:$0x3] %v1243_v26 }
 0x186 PF: > { %s14_s15 = sadd.s32 1, %s1880_s15  }
 0x187   : > { %p11_p4 = scmp.ge.s32.totalorder %s14_s15, 4  }
 0x189   :  { %13 = sbr.rel (!%p11_p4) target bundleno = 1 (0x1), region = 77 }

// kernel: _lambda_.33
= control target key start
LH: loop header
LB: loop body
LE: loop exit
PB: predicated region body
PF: predicated region fallthrough
CT: control target
= control target key end

     0   :  { %s1844_s12 = smov 0   ;;  %s2181_s0 = inlined_call_operand.vmem [shape: bf16[2,12,128], index: 0, kind: input, shape index: {}]   ;;  %s2182_s1 = inlined_call_operand.vmem [shape: bf16[9,128,128], index: 1, kind: input, shape index: {}]   ;;  %s2183_s2 = inlined_call_operand.vmem [shape: f32[1,128], index: 2, kind: input, shape index: {}]   ;;  %s2184_s3 = inlined_call_operand.vmem [shape: bf16[2,3,128], index: 3, kind: output, shape index: {}]  }
   0x1 LB: > { %s1251_s13 = sadd.s32 4294967295, %s1820_s12   ;;  %p1255_p0 = scmp.ge.s32.totalorder %s1820_s12, 1  ;;  %s1820_s12 = sphi %s1844_s12, %s13_s12  }
   0x2   : > { %p137_p1 = scmp.lt.s32.totalorder %s1820_s12, 3 }
   0x4   : > { %p138_p2 = pnand %p1255_p0, %p137_p1 }
   0x5   : > { %v1738_v0 = vld [vmem:[%s2182_s1 + $0x40] sm:$0xff] (!%p138_p2)   ;;  %v1822_v1 = vmov (!%p138_p2), 0.0   ;;  %v1740_v3 = vld [vmem:[%s2182_s1 + $0x48] sm:$0xff] (!%p138_p2)   ;;  %vm1823_vm0 = vmmov (!%p138_p2), 0   ;;  %p160_p3 = scmp.lt.s32.totalorder (!%p138_p2), %s1251_s13, 1  ;;  %v1742_v5 = vld [vmem:[%s2182_s1 + $0x50] sm:$0xff] (!%p138_p2)  }
   0x6   : > { %141 = sbr.rel (%p138_p2) target bundleno = 388 (0x184), region = 32  ;;  %1548 = vmatprep.subr.bf16.mxu0 (!%p138_p2), %v1822_v1  ;;  %1568 = vmatprep.subr.bf16.mxu1 (!%p138_p2), %v1822_v1  ;;  %v1739_v2 = vld [vmem:[%s2182_s1] sm:$0xff] (!%p138_p2)   ;;  %v1741_v4 = vld [vmem:[%s2182_s1 + $0x8] sm:$0xff] (!%p138_p2)   ;;  %v1743_v6 = vld [vmem:[%s2182_s1 + $0x10] sm:$0xff] (!%p138_p2)   ;;  %vm1192_vm1 = vcmask (!%p138_p2), 1041408  }
   0x7   : > { %1549 = vmatpush3.bf16.msra.mxu0 (!%p138_p2), %v1738_v0  ;;  %1564 = vmatprep.mubr.msk.bf16.mxu0 (!%p138_p2), %vm1823_vm0, %v1822_v1  ;;  %v1744_v7 = vld [vmem:[%s2182_s1 + $0x58] sm:$0xff] (!%p138_p2)   ;;  %v1746_v9 = vld [vmem:[%s2182_s1 + $0x60] sm:$0xff] (!%p138_p2)   ;;  %v1748_v13 = vld [vmem:[%s2182_s1 + $0x68] sm:$0xff] (!%p138_p2)   ;;  %vm1193_vm2 = vsmask.f32 (!%p138_p2), 1280 }
   0x8   : > { %1569 = vmatpush3.bf16.msra.mxu1 (!%p138_p2), %v1739_v2  ;;  %1550 = vmatprep.subr.bf16.mxu0 (!%p138_p2), %v1822_v1  ;;  %v1745_v8 = vld [vmem:[%s2182_s1 + $0x18] sm:$0xff] (!%p138_p2)   ;;  %v1747_v10 = vld [vmem:[%s2182_s1 + $0x20] sm:$0xff] (!%p138_p2)   ;;  %v1749_v14 = vld [vmem:[%s2182_s1 + $0x28] sm:$0xff] (!%p138_p2)  }
   0x9   : > { %1570 = vmatprep.subr.bf16.mxu1 (!%p138_p2), %v1822_v1  ;;  %1584 = vmatprep.mubr.msk.bf16.mxu1 (!%p138_p2), %vm1823_vm0, %v1822_v1  ;;  %v1750_v16 = vld [vmem:[%s2182_s1 + $0x70] sm:$0xff] (!%p138_p2)   ;;  %v1752_v20 = vld [vmem:[%s2182_s1 + $0x78] sm:$0xff] (!%p138_p2)   ;;  %v1755_v23 = vld [vmem:[%s2182_s1 + $0x80] sm:$0xff] (!%p138_p2)  }
   0xa   : > { %v1751_v17 = vld [vmem:[%s2182_s1 + $0x30] sm:$0xff] (!%p138_p2)   ;;  %v1753_v21 = vld [vmem:[%s2182_s1 + $0x38] sm:$0xff] (!%p138_p2)   ;;  %v1756_v24 = vld [vmem:[%s2182_s1 + $0xc0] sm:$0xff] (!%p138_p2)  }
   0xb   : > { %1551 = vmatpush3.bf16.msra.mxu0 (!%p138_p2), %v1740_v3  ;;  %v1757_v25 = vld [vmem:[%s2182_s1 + $0x88] sm:$0xff] (!%p138_p2)   ;;  %v1759_v27 = vld [vmem:[%s2182_s1 + $0x90] sm:$0xff] (!%p138_p2)   ;;  %v1761_v29 = vld [vmem:[%s2182_s1 + $0x98] sm:$0xff] (!%p138_p2)  }
   0xc   : > { %1571 = vmatpush3.bf16.msra.mxu1 (!%p138_p2), %v1741_v4  ;;  %1552 = vmatprep.subr.bf16.mxu0 (!%p138_p2), %v1822_v1  ;;  %v1758_v26 = vld [vmem:[%s2182_s1 + $0xc8] sm:$0xff] (!%p138_p2)   ;;  %v1760_v28 = vld [vmem:[%s2182_s1 + $0xd0] sm:$0xff] (!%p138_p2)   ;;  %v1762_v30 = vld [vmem:[%s2182_s1 + $0xd8] sm:$0xff] (!%p138_p2)  }
   0xd   : > { %s2186_s13 = smov (!%p160_p3, %s1251_s13), 1  ;;  %1572 = vmatprep.subr.bf16.mxu1 %v1822_v1  ;;  %v1763_v31 = vld [vmem:[%s2182_s1 + $0xa0] sm:$0xff]   ;;  %v1765_v34 = vld [vmem:[%s2182_s1 + $0xa8] sm:$0xff]   ;;  %v1767_v36 = vld [vmem:[%s2182_s1 + $0xb0] sm:$0xff]  }
   0xe   : > { %s1466_s28 = sshll.u32 %s2186_s13, 3  ;;  %v1764_v32 = vld [vmem:[%s2182_s1 + $0xe0] sm:$0xff]   ;;  %v1766_v35 = vld [vmem:[%s2182_s1 + $0xe8] sm:$0xff]   ;;  %v1768_v39 = vld [vmem:[%s2182_s1 + $0xf0] sm:$0xff]  }
   0xf   : > { %1553 = vmatpush3.bf16.msra.mxu0 %v1742_v5  ;;  %s1894_s6 = scalar_lea.vmem %s2181_s0, %s1466_s28  ;;  %v1769_v40 = vld [vmem:[%s2182_s1 + $0xb8] sm:$0xff]   ;;  %v1772_v45 = vld [vmem:[%s2182_s1 + $0x100] sm:$0xff]   ;;  %v1774_v48 = vld [vmem:[%s2182_s1 + $0x108] sm:$0xff]  }
  0x10   : > { %1573 = vmatpush3.bf16.msra.mxu1 %v1743_v6  ;;  %1554 = vmatprep.subr.bf16.mxu0 %v1822_v1  ;;  %v170_v11 = vld [vmem:[%s1894_s6] sm:$0x3]  ;;  %v1770_v43 = vld [vmem:[%s2182_s1 + $0xf8] sm:$0xff]   ;;  %v1775_v49 = vld [vmem:[%s2182_s1 + $0x148] sm:$0xff]  }
  0x11   : > { %1574 = vmatprep.subr.bf16.mxu1 %v1822_v1  ;;  %v1275_v12 = vcombine.low %v170_v11, %v170_v11  ;;  %v1771_v33 = vld [vmem:[%s1894_s6] ss:$0 sps:$4 sm:$0x66]   ;;  %v1776_v50 = vld [vmem:[%s2182_s1 + $0x110] sm:$0xff]   ;;  %v1778_v52 = vld [vmem:[%s2182_s1 + $0x118] sm:$0xff]  }
  0x12   : > { %v521_v37 = vshrl.u32 %v1771_v33, 16  ;;  %v524_v38 = vshll.u32 %v1771_v33, 16  ;;  %v412_v44 = vrot.slane %v1771_v33, 1  ;;  %v1773_v47 = vld [vmem:[%s2182_s1 + $0x140] sm:$0xff]   ;;  %v1777_v51 = vld [vmem:[%s2182_s1 + $0x150] sm:$0xff]   ;;  %v1779_v53 = vld [vmem:[%s2182_s1 + $0x158] sm:$0xff]  }
  0x13   : > { %1555 = vmatpush3.bf16.msra.mxu0 %v1744_v7  ;;  %v210_v15 = vshll.u32 %v1275_v12, 16  ;;  %v208_v18 = vshrl.u32 %v1275_v12, 16  ;;  %v1780_v54 = vld [vmem:[%s2182_s1 + $0x120] sm:$0xff]   ;;  %v1782_v56 = vld [vmem:[%s2182_s1 + $0x128] sm:$0xff]   ;;  %v1784_v59 = vld [vmem:[%s2182_s1 + $0x130] sm:$0xff]  }
  0x14   : > { %1575 = vmatpush3.bf16.msra.mxu1 %v1745_v8  ;;  %1556 = vmatprep.subr.bf16.mxu0 %v1822_v1  ;;  %v523_v41 = vrot.slane %v521_v37, 1  ;;  %v526_v42 = vrot.slane %v524_v38, 2  ;;  %v1781_v55 = vld [vmem:[%s2182_s1 + $0x160] sm:$0xff]   ;;  %v1783_v58 = vld [vmem:[%s2182_s1 + $0x168] sm:$0xff]   ;;  %v1785_v62 = vld [vmem:[%s2182_s1 + $0x170] sm:$0xff]  }
  0x15   : > { %1576 = vmatprep.subr.bf16.mxu1 %v1822_v1  ;;  %v212_v19 = vrot.slane %v210_v15, 1  ;;  %v1788_v57 = vld [vmem:[%s1894_s6] ss:$0 sps:$4 sm:$0xcc]   ;;  %v1786_v63 = vld [vmem:[%s2182_s1 + $0x138] sm:$0xff]   ;;  %v1791_v8 = vld [vmem:[%s2182_s1 + $0x188] sm:$0xff]  }
  0x16   : > { %v527_v46 = vor.u32 %v526_v42, %v523_v41  ;;  %v748_v60 = vshrl.u32 %v1788_v57, 16  ;;  %v751_v61 = vshll.u32 %v1788_v57, 16  ;;  %v1787_v3 = vld [vmem:[%s2182_s1 + $0x178] sm:$0xff]   ;;  %v639_v4 = vrot.slane %v1788_v57, 2  ;;  %v1789_v5 = vld [vmem:[%s2182_s1 + $0x180] sm:$0xff]   ;;  %vm1194_vm3 = vmand %vm1192_vm1, %vm1193_vm2 }
  0x17   : > { %1557 = vmatpush3.bf16.msra.mxu0 %v1746_v9  ;;  %v213_v22 = vor.u32 %v212_v19, %v208_v18  ;;  %v1790_v7 = vld [vmem:[%s2182_s1 + $0x1c0] sm:$0xff]   ;;  %v1792_v9 = vld [vmem:[%s2182_s1 + $0x1c8] sm:$0xff]   ;;  %v1795_v12 = vld [vmem:[%s2182_s1 + $0x198] sm:$0xff]  }
  0x18   : > { %1577 = vmatpush3.bf16.msra.mxu1 %v1747_v10  ;;  %1558 = vmatprep.subr.bf16.mxu0 %v1822_v1  ;;  %v750_v0 = vrot.slane %v748_v60, 2  ;;  %v753_v2 = vrot.slane %v751_v61, 3  ;;  %v1793_v10 = vld [vmem:[%s2182_s1 + $0x190] sm:$0xff]   ;;  %v1798_v15 = vld [vmem:[%s2182_s1 + $0x1e0] sm:$0xff]   ;;  %v1800_v18 = vld [vmem:[%s2182_s1 + $0x1e8] sm:$0xff]  }
  0x19   : > { %1578 = vmatprep.subr.bf16.mxu1 %v1822_v1  ;;  %v1801_v19 = vld [vmem:[%s2182_s1 + $0x1b0] sm:$0xff]   ;;  %v1810_v33 = vld [vmem:[%s2182_s1 + $0x220] sm:$0xff]  }
  0x1a   : > { %v754_v6 = vor.u32 %v753_v2, %v750_v0  ;;  %v1075_v37 = vld [vmem:[%s1894_s6 + $0x4] sm:$0x3] }
  0x1b   : > { %1559 = vmatpush3.bf16.msra.mxu0 %v1748_v13  ;;  %v1796_v13 = vld [vmem:[%s2182_s1 + $0x1d8] sm:$0xff]  }
  0x1c   : > { %1579 = vmatpush3.bf16.msra.mxu1 %v1749_v14  ;;  %1560 = vmatprep.subr.bf16.mxu0 %v1822_v1  ;;  %v1797_v14 = vld [vmem:[%s2182_s1 + $0x1a0] sm:$0xff]  }
  0x1d   : > { %1580 = vmatprep.subr.bf16.mxu1 %v1822_v1 }
  0x1f   : > { %1561 = vmatpush3.bf16.msra.mxu0 %v1750_v16  ;;  %v1799_v16 = vld [vmem:[%s2182_s1 + $0x1a8] sm:$0xff]  }
  0x20   : > { %1581 = vmatpush3.bf16.msra.mxu1 %v1751_v17  ;;  %1562 = vmatprep.subr.bf16.mxu0 %v1822_v1  ;;  %v1805_v17 = vld [vmem:[%s1894_s6] sm:$0x18]   ;;  %s1258_s6 = sshll.u32 %s2186_s13, 1 }
  0x21   : > { %1582 = vmatprep.subr.bf16.mxu1 %v1822_v1  ;;  %s168_s21 = scalar_lea.vmem %s2184_s3, %s1258_s6 }
  0x23   : > { %1563 = vmatpush3.bf16.msra.mxu0 %v1752_v20  ;;  %v978_v20 = vshrl.u32 %v1805_v17, 16 }
  0x24   : > { %1583 = vmatpush3.bf16.msra.mxu1 %v1753_v21  ;;  %1588 = vmatprep.subr.bf16.mxu0 %v1822_v1  ;;  %v981_v21 = vshll.u32 %v1805_v17, 16 }
  0x25   : > { %1608 = vmatprep.subr.bf16.mxu1 %v1822_v1 }
  0x26   : > { %1565 = vmatmul.mubr.bf16.vlgmr.msra.gmra.mrb[0].mxu0 %v213_v22  ;;  %v1802_v22 = vld [vmem:[%s2182_s1 + $0x1f0] sm:$0xff]  }
  0x27   : > { %1585 = vmatmul.mubr.bf16.vlgmr.msra.gmra.mrb[0].mxu1 %v170_v11  ;;  %1589 = vmatpush3.bf16.msra.mxu0 %v1755_v23  ;;  %v1794_v11 = vld [vmem:[%s2182_s1 + $0x1d0] sm:$0xff]   ;;  %v1803_v23 = vld [vmem:[%s2182_s1 + $0x1b8] sm:$0xff]  }
  0x28   : > { %1609 = vmatpush3.bf16.msra.mxu1 %v1756_v24  ;;  %1590 = vmatprep.subr.bf16.mxu0 %v1822_v1  ;;  %v980_v24 = vrot.slane %v978_v20, 3 }
  0x29   : > { %1610 = vmatprep.subr.bf16.mxu1 %v1822_v1  ;;  %1604 = vmatprep.mubr.msk.bf16.mxu0 %vm1823_vm0, %v1822_v1 }
  0x2a   : > { %1624 = vmatprep.mubr.msk.bf16.mxu1 %vm1823_vm0, %v1822_v1 }
  0x2b   : > { %1591 = vmatpush3.bf16.msra.mxu0 %v1757_v25  ;;  %v983_v25 = vrot.slane %v981_v21, 4  ;;  %v1195_v21 = vld [vmem:[%s168_s21] sm:$0x3] }
  0x2c   : > { %1611 = vmatpush3.bf16.msra.mxu1 %v1758_v26  ;;  %1592 = vmatprep.subr.bf16.mxu0 %v1822_v1  ;;  %v1804_v26 = vld [vmem:[%s2182_s1 + $0x1f8] sm:$0xff]  }
  0x2d   : > { %1612 = vmatprep.subr.bf16.mxu1 %v1822_v1 }
  0x2f   : > { %1593 = vmatpush3.bf16.msra.mxu0 %v1759_v27  ;;  %v869_v27 = vrot.slane %v1805_v17, 3 }
  0x30   : > { %1613 = vmatpush3.bf16.msra.mxu1 %v1760_v28  ;;  %1594 = vmatprep.subr.bf16.mxu0 %v1822_v1  ;;  %v1806_v28 = vld [vmem:[%s2182_s1 + $0x200] sm:$0xff]  }
  0x31   : > { %1614 = vmatprep.subr.bf16.mxu1 %v1822_v1 }
  0x33   : > { %1595 = vmatpush3.bf16.msra.mxu0 %v1761_v29  ;;  %v984_v29 = vor.u32 %v983_v25, %v980_v24 }
  0x34   : > { %1615 = vmatpush3.bf16.msra.mxu1 %v1762_v30  ;;  %1596 = vmatprep.subr.bf16.mxu0 %v1822_v1  ;;  %v1807_v30 = vld [vmem:[%s2182_s1 + $0x208] sm:$0xff]  }
  0x35   : > { %1616 = vmatprep.subr.bf16.mxu1 %v1822_v1 }
  0x37   : > { %1597 = vmatpush3.bf16.msra.mxu0 %v1763_v31  ;;  %v1808_v31 = vld [vmem:[%s2182_s1 + $0x210] sm:$0xff]  }
  0x38   : > { %1617 = vmatpush3.bf16.msra.mxu1 %v1764_v32  ;;  %1598 = vmatprep.subr.bf16.mxu0 %v1822_v1  ;;  %v1809_v32 = vld [vmem:[%s2182_s1 + $0x218] sm:$0xff]  }
  0x39   : > { %1618 = vmatprep.subr.bf16.mxu1 %v1822_v1 }
  0x3b   : > { %1599 = vmatpush3.bf16.msra.mxu0 %v1765_v34  ;;  %v1811_v34 = vld [vmem:[%s2182_s1 + $0x228] sm:$0xff]  }
  0x3c   : > { %1619 = vmatpush3.bf16.msra.mxu1 %v1766_v35  ;;  %1600 = vmatprep.subr.bf16.mxu0 %v1822_v1  ;;  %v1812_v35 = vld [vmem:[%s2182_s1 + $0x230] sm:$0xff]  }
  0x3d   : > { %1620 = vmatprep.subr.bf16.mxu1 %v1822_v1 }
  0x3f   : > { %1601 = vmatpush3.bf16.msra.mxu0 %v1767_v36  ;;  %v1813_v36 = vld [vmem:[%s2182_s1 + $0x238] sm:$0xff]  }
  0x40   : > { %1621 = vmatpush3.bf16.msra.mxu1 %v1768_v39  ;;  %1602 = vmatprep.subr.bf16.mxu0 %v1822_v1 }
  0x41   : > { %1622 = vmatprep.subr.bf16.mxu1 %v1822_v1 }
  0x43   : > { %1603 = vmatpush3.bf16.msra.mxu0 %v1769_v40 }
  0x44   : > { %1623 = vmatpush3.bf16.msra.mxu1 %v1770_v43  ;;  %1628 = vmatprep.subr.bf16.mxu0 %v1822_v1 }
  0x45   : > { %1648 = vmatprep.subr.bf16.mxu1 %v1822_v1 }
  0x46   : > { %1605 = vmatmul.mubr.bf16.vlgmr.msra.gmra.mrb[4].mxu0 %v412_v44 }
  0x47   : > { %1629 = vmatpush3.bf16.msra.mxu0 %v1772_v45  ;;  %1625 = vmatmul.mubr.bf16.vlgmr.msra.gmra.mrb[4].mxu1 %v527_v46 }
  0x48   : > { %1649 = vmatpush3.bf16.msra.mxu1 %v1773_v47  ;;  %1630 = vmatprep.subr.bf16.mxu0 %v1822_v1 }
  0x49   : > { %1650 = vmatprep.subr.bf16.mxu1 %v1822_v1  ;;  %1644 = vmatprep.mubr.msk.bf16.mxu0 %vm1823_vm0, %v1822_v1 }
  0x4a   : > { %1664 = vmatprep.mubr.msk.bf16.mxu1 %vm1823_vm0, %v1822_v1 }
  0x4b   : > { %1631 = vmatpush3.bf16.msra.mxu0 %v1774_v48 }
  0x4c   : > { %1651 = vmatpush3.bf16.msra.mxu1 %v1775_v49  ;;  %1632 = vmatprep.subr.bf16.mxu0 %v1822_v1 }
  0x4d   : > { %1652 = vmatprep.subr.bf16.mxu1 %v1822_v1 }
  0x4f   : > { %1633 = vmatpush3.bf16.msra.mxu0 %v1776_v50 }
  0x50   : > { %1653 = vmatpush3.bf16.msra.mxu1 %v1777_v51  ;;  %1634 = vmatprep.subr.bf16.mxu0 %v1822_v1 }
  0x51   : > { %1654 = vmatprep.subr.bf16.mxu1 %v1822_v1 }
  0x53   : > { %1635 = vmatpush3.bf16.msra.mxu0 %v1778_v52 }
  0x54   : > { %1655 = vmatpush3.bf16.msra.mxu1 %v1779_v53  ;;  %1636 = vmatprep.subr.bf16.mxu0 %v1822_v1 }
  0x55   : > { %1656 = vmatprep.subr.bf16.mxu1 %v1822_v1 }
  0x57   : > { %1637 = vmatpush3.bf16.msra.mxu0 %v1780_v54 }
  0x58   : > { %1657 = vmatpush3.bf16.msra.mxu1 %v1781_v55  ;;  %1638 = vmatprep.subr.bf16.mxu0 %v1822_v1 }
  0x59   : > { %1658 = vmatprep.subr.bf16.mxu1 %v1822_v1 }
  0x5b   : > { %1639 = vmatpush3.bf16.msra.mxu0 %v1782_v56 }
  0x5c   : > { %1659 = vmatpush3.bf16.msra.mxu1 %v1783_v58  ;;  %1640 = vmatprep.subr.bf16.mxu0 %v1822_v1 }
  0x5d   : > { %1660 = vmatprep.subr.bf16.mxu1 %v1822_v1 }
  0x5f   : > { %1641 = vmatpush3.bf16.msra.mxu0 %v1784_v59 }
  0x60   : > { %1661 = vmatpush3.bf16.msra.mxu1 %v1785_v62  ;;  %1642 = vmatprep.subr.bf16.mxu0 %v1822_v1 }
  0x61   : > { %1662 = vmatprep.subr.bf16.mxu1 %v1822_v1 }
  0x63   : > { %1643 = vmatpush3.bf16.msra.mxu0 %v1786_v63 }
  0x64   : > { %1663 = vmatpush3.bf16.msra.mxu1 %v1787_v3  ;;  %1668 = vmatprep.subr.bf16.mxu0 %v1822_v1 }
  0x65   : > { %1688 = vmatprep.subr.bf16.mxu1 %v1822_v1 }
  0x66   : > { %1645 = vmatmul.mubr.bf16.vlgmr.msra.gmra.mrb[8].mxu0 %v639_v4 }
  0x67   : > { %1669 = vmatpush3.bf16.msra.mxu0 %v1789_v5  ;;  %1665 = vmatmul.mubr.bf16.vlgmr.msra.gmra.mrb[8].mxu1 %v754_v6 }
  0x68   : > { %1689 = vmatpush3.bf16.msra.mxu1 %v1790_v7  ;;  %1670 = vmatprep.subr.bf16.mxu0 %v1822_v1 }
  0x69   : > { %1690 = vmatprep.subr.bf16.mxu1 %v1822_v1  ;;  %1684 = vmatprep.mubr.msk.bf16.mxu0 %vm1823_vm0, %v1822_v1 }
  0x6a   : > { %1704 = vmatprep.mubr.msk.bf16.mxu1 %vm1823_vm0, %v1822_v1 }
  0x6b   : > { %1671 = vmatpush3.bf16.msra.mxu0 %v1791_v8 }
  0x6c   : > { %1691 = vmatpush3.bf16.msra.mxu1 %v1792_v9  ;;  %1672 = vmatprep.subr.bf16.mxu0 %v1822_v1 }
  0x6d   : > { %1692 = vmatprep.subr.bf16.mxu1 %v1822_v1 }
  0x6f   : > { %1673 = vmatpush3.bf16.msra.mxu0 %v1793_v10 }
  0x70   : > { %1693 = vmatpush3.bf16.msra.mxu1 %v1794_v11  ;;  %1674 = vmatprep.subr.bf16.mxu0 %v1822_v1 }
  0x71   : > { %1694 = vmatprep.subr.bf16.mxu1 %v1822_v1 }
  0x73   : > { %1675 = vmatpush3.bf16.msra.mxu0 %v1795_v12 }
  0x74   : > { %1695 = vmatpush3.bf16.msra.mxu1 %v1796_v13  ;;  %1676 = vmatprep.subr.bf16.mxu0 %v1822_v1 }
  0x75   : > { %1696 = vmatprep.subr.bf16.mxu1 %v1822_v1 }
  0x77   : > { %1677 = vmatpush3.bf16.msra.mxu0 %v1797_v14  ;;  %v1463_v14 = vld [vmem:[%s2183_s2] ss:$0 sm:$0xff] }
  0x78   : > { %1697 = vmatpush3.bf16.msra.mxu1 %v1798_v15  ;;  %1678 = vmatprep.subr.bf16.mxu0 %v1822_v1 }
  0x79   : > { %1698 = vmatprep.subr.bf16.mxu1 %v1822_v1 }
  0x7b   : > { %1679 = vmatpush3.bf16.msra.mxu0 %v1799_v16 }
  0x7c   : > { %1699 = vmatpush3.bf16.msra.mxu1 %v1800_v18  ;;  %1680 = vmatprep.subr.bf16.mxu0 %v1822_v1 }
  0x7d   : > { %1700 = vmatprep.subr.bf16.mxu1 %v1822_v1 }
  0x7f   : > { %1681 = vmatpush3.bf16.msra.mxu0 %v1801_v19 }
  0x80   : > { %1701 = vmatpush3.bf16.msra.mxu1 %v1802_v22  ;;  %1682 = vmatprep.subr.bf16.mxu0 %v1822_v1 }
  0x81   : > { %1702 = vmatprep.subr.bf16.mxu1 %v1822_v1 }
  0x83   : > { %1683 = vmatpush3.bf16.msra.mxu0 %v1803_v23 }
  0x84   : > { %1703 = vmatpush3.bf16.msra.mxu1 %v1804_v26  ;;  %1708 = vmatprep.subr.bf16.mxu0 %v1822_v1 }
  0x86   : > { %1685 = vmatmul.mubr.bf16.vlgmr.msra.gmra.mrb[12].mxu0 %v869_v27 }
  0x87   : > { %1709 = vmatpush3.bf16.msra.mxu0 %v1806_v28  ;;  %1705 = vmatmul.mubr.bf16.vlgmr.msra.gmra.mrb[12].mxu1 %v984_v29 }
  0x88   : > { %1710 = vmatprep.subr.bf16.mxu0 %v1822_v1  ;;  %1724 = vmatprep.mubr.msk.bf16.mxu0 %vm1823_vm0, %v1822_v1 }
  0x8b   : > { %1711 = vmatpush3.bf16.msra.mxu0 %v1807_v30 }
  0x8c   : > { %1712 = vmatprep.subr.bf16.mxu0 %v1822_v1 }
  0x8f   : > { %1713 = vmatpush3.bf16.msra.mxu0 %v1808_v31 }
  0x90   : > { %1714 = vmatprep.subr.bf16.mxu0 %v1822_v1 }
  0x93   : > { %1715 = vmatpush3.bf16.msra.mxu0 %v1809_v32 }
  0x94   : > { %1716 = vmatprep.subr.bf16.mxu0 %v1822_v1 }
  0x97   : > { %1717 = vmatpush3.bf16.msra.mxu0 %v1810_v33 }
  0x98   : > { %1718 = vmatprep.subr.bf16.mxu0 %v1822_v1 }
  0x9b   : > { %1719 = vmatpush3.bf16.msra.mxu0 %v1811_v34 }
  0x9c   : > { %1720 = vmatprep.subr.bf16.mxu0 %v1822_v1 }
  0x9f   : > { %1721 = vmatpush3.bf16.msra.mxu0 %v1812_v35 }
  0xa0   : > { %1722 = vmatprep.subr.bf16.mxu0 %v1822_v1 }
  0xa3   : > { %1723 = vmatpush3.bf16.msra.mxu0 %v1813_v36 }
  0xa6   : > { %1725 = vmatmul.mubr.bf16.vlgmr.msra.gmra.mrb[16].mxu0 %v1075_v37 }
  0xf9   : > { %v297_v38 = vpop.f32.mrb[0].mxu0 }
  0xfa   : > { %v1566_v39 = vpop.f32.mrb[1].mxu0  ;;  %v385_v40 = vpop.f32.mrb[0].mxu1 }
  0xfb   : > { %v386_v41 = vadd.f32 %v385_v40, %v297_v38  ;;  %v300_v42 = vpop.f32.mrb[2].mxu0  ;;  %v1586_v43 = vpop.f32.mrb[1].mxu1 }
  0xfc   : > { %v1567_v44 = vpop.f32.mrb[3].mxu0  ;;  %v388_v45 = vpop.f32.mrb[2].mxu1 }
  0xfd   : > { %v1587_v46 = vpop.f32.mrb[3].mxu1 }
 0x119   : > { %v496_v47 = vpop.f32.mrb[4].mxu0 }
 0x11a   : > { %v502_v48 = vadd.f32 %v496_v47, %v386_v41  ;;  %v1606_v49 = vpop.f32.mrb[5].mxu0  ;;  %v611_v50 = vpop.f32.mrb[4].mxu1 }
 0x11b   : > { %v499_v51 = vpop.f32.mrb[6].mxu0  ;;  %v1626_v52 = vpop.f32.mrb[5].mxu1 }
 0x11c   : > { %v617_v53 = vadd.f32 %v611_v50, %v502_v48  ;;  %v1607_v1 = vpop.f32.mrb[7].mxu0  ;;  %v614_v54 = vpop.f32.mrb[6].mxu1 }
 0x11d   : > { %v1627_v55 = vpop.f32.mrb[7].mxu1 }
 0x139   : > { %v723_v56 = vpop.f32.mrb[8].mxu0 }
 0x13a   : > { %v729_v57 = vadd.f32 %v723_v56, %v617_v53  ;;  %v1646_v58 = vpop.f32.mrb[9].mxu0  ;;  %v838_v59 = vpop.f32.mrb[8].mxu1 }
 0x13b   : > { %v726_v60 = vpop.f32.mrb[10].mxu0  ;;  %v1666_v61 = vpop.f32.mrb[9].mxu1 }
 0x13c   : > { %v844_v62 = vadd.f32 %v838_v59, %v729_v57  ;;  %v1647_v63 = vpop.f32.mrb[11].mxu0  ;;  %v841_v0 = vpop.f32.mrb[10].mxu1 }
 0x13d   : > { %v1667_v2 = vpop.f32.mrb[11].mxu1 }
 0x159   : > { %v953_v3 = vpop.f32.mrb[12].mxu0 }
 0x15a   : > { %v959_v4 = vadd.f32 %v953_v3, %v844_v62  ;;  %v1686_v5 = vpop.f32.mrb[13].mxu0  ;;  %v1068_v6 = vpop.f32.mrb[12].mxu1 }
 0x15b   : > { %v956_v7 = vpop.f32.mrb[14].mxu0  ;;  %v1706_v8 = vpop.f32.mrb[13].mxu1 }
 0x15c   : > { %v1074_v9 = vadd.f32 %v1068_v6, %v959_v4  ;;  %v1687_v10 = vpop.f32.mrb[15].mxu0  ;;  %v1071_v11 = vpop.f32.mrb[14].mxu1 }
 0x15d   : > { %v1707_v12 = vpop.f32.mrb[15].mxu1 }
 0x179   : > { %v1175_v13 = vpop.f32.mrb[16].mxu0 }
 0x17a   : > { %v1181_v15 = vadd.f32 %v1175_v13, %v1074_v9  ;;  %v1726_v16 = vpop.f32.mrb[17].mxu0 }
 0x17b   : > { %v1178_v17 = vpop.f32.mrb[18].mxu0 }
 0x17c   : > { %v1189_v18 = vadd.f32 %v1463_v14, %v1181_v15  ;;  %v1727_v19 = vpop.f32.mrb[19].mxu0 }
 0x17e   : > { %v1190_v20 = vmax.f32 %v1189_v18, 0.0 }
 0x180   : > { %v1191_v22 = vpack.c.bf16 %v1190_v20, %v1190_v20 }
 0x182   : > { %v1196_v23 = vsel %vm1194_vm3, %v1191_v22, %v1195_v21 }
 0x183   : > { %1197 = vst [vmem:[%s168_s21] sm:$0x3] %v1196_v23 }
 0x184 PF: > { %s13_s12 = sadd.s32 1, %s1820_s12  }
 0x185   : > { %p10_p4 = scmp.ge.s32.totalorder %s13_s12, 4  }
 0x187   :  { %12 = sbr.rel (!%p10_p4) target bundleno = 1 (0x1), region = 70 }

</bundles_post_ra>
